<compile_context>
chip_gen: v6e
topology: v6e:2x2x1
jax: 0.10.0
libtpu: 0.0.40
codegen_flags: <defaults>
</compile_context>

<pallas_src>
import functools
import math

import jax
import jax.numpy as jnp
from jax.experimental import pallas as pl
from jax.experimental.pallas import tpu as pltpu

_LANE = 128                            # lane-dense channel padding
_ACC_BUDGET_BYTES = 128 * 1024         # keep f32 accumulators ~vreg-resident
_WEIGHT_SINGLE_BUFFER_BYTES = 2 * 1024 * 1024
_TARGET_M = 256                        # fill the 256-wide MXU M dim (v6e/v7x)


def _round_up(n, m):
    return pl.cdiv(n, m) * m


@functools.lru_cache(maxsize=None)
def _vmem_cap_bytes():
    """Physical VMEM of the current chip; conservative default if unknown."""
    try:
        return int(pltpu.get_tpu_info().vmem_capacity_bytes)
    except Exception:
        return 64 * 1024 * 1024        # v7x per-TensorCore VMEM (smallest recent gen)


def _pick_batch_tile(n, ho, wo):
    """Images folded into the matmul M dim per grid step (perf item 6)."""
    target = max(1, _TARGET_M // (ho * wo))   # fill the MXU M dimension
    target = min(target, max(1, n // 2))      # keep >=2 grid steps for v7x megacore
    bt = 1
    for d in range(1, min(target, n) + 1):    # largest divisor of n <= target
        if n % d == 0:
            bt = d
    return bt


def _weight_spec(w):
    """Whole-array weight spec with a constant index_map (never re-fetched).
    Large weights are single-buffered to avoid 2x weight VMEM (perf item 5)."""
    shape = w.shape
    index_map = lambda i: (0,) * len(shape)
    if int(w.size) * w.dtype.itemsize > _WEIGHT_SINGLE_BUFFER_BYTES:
        return pl.BlockSpec(shape, index_map, pipeline_mode=pl.Buffered(1))
    return pl.BlockSpec(shape, index_map)


# ------------------------------ Pallas kernel ------------------------------- #

def _basic_block_kernel(x_ref, w1_ref, w2_ref, *rest,
                        stride, ho, wo, band, equal):
    """Fused pre-activation BasicBlock for a tile of `bt` images.

    x_ref : stride==1: (bt, Ho, Wo, Cx)        raw, unpadded input
            stride>1 : (s*s, bt, Hps, Wps, Cx) raw, spatially padded + parity-split
    w1_ref: (9, Cx, Cmid_p)     bf16 conv1 taps (K padded to Cx)
    w2_ref: (9, Cmid_p, Cout_p) bf16 conv2 taps
    ws_ref: (Cx, Cout_p)        bf16 1x1 shortcut (only when not `equal`)
    o_ref : (bt, Ho, Wo, Cout_p)        bf16 lane-dense output
    xr_ref: bf16 scratch holding relu(x), spatially padded (same parity layout)
    h_ref : (bt, Ho+2, Wo+2, Cmid_p)    bf16 scratch, padded conv1 output
    """
    if equal:
        o_ref, xr_ref, h_ref = rest
        ws_ref = None
    else:
        ws_ref, o_ref, xr_ref, h_ref = rest

    s = stride
    bt = o_ref.shape[0]
    cx = xr_ref.shape[-1]
    cmid = h_ref.shape[-1]
    cout = o_ref.shape[-1]

    # ---- stage 0: relu(x) -> bf16 once per step (perf item 3) --------------
    if s == 1:
        # spatial zero-pad done in-kernel (perf item 7): border rows + padded rows
        zrow = jnp.zeros((bt, 1, wo + 2, cx), jnp.bfloat16)
        zcol = jnp.zeros((bt, ho, 1, cx), jnp.bfloat16)
        xr_ref[:, 0:1, :, :] = zrow
        xr_ref[:, ho + 1:ho + 2, :, :] = zrow
        xr_ref[:, 1:1 + ho, :, :] = jnp.concatenate(
            [zcol, jnp.maximum(x_ref[...], 0.0).astype(jnp.bfloat16), zcol], axis=2)
    else:
        # wrapper already zero-padded + parity-split; relu keeps zeros zero
        xr_ref[...] = jnp.maximum(x_ref[...], 0.0).astype(jnp.bfloat16)

    def xr_tap(dy, dx, r0, br):
        # tap (dy,dx) of a stride-s 3x3 conv == unit-stride window of parity
        # image (dy%s, dx%s) at offset (dy//s, dx//s); rows restricted to band.
        if s == 1:
            t = xr_ref[:, dy + r0:dy + r0 + br, dx:dx + wo, :]
        else:
            p = (dy % s) * s + (dx % s)
            oy, ox = dy // s, dx // s
            t = xr_ref[p, :, oy + r0:oy + r0 + br, ox:ox + wo, :]
        return t.reshape(bt * br * wo, cx)

    # ---- h scratch: zero only the two border ROWS each step (perf item 4) --
    hrow = jnp.zeros((bt, 1, wo + 2, cmid), jnp.bfloat16)
    h_ref[:, 0:1, :, :] = hrow
    h_ref[:, ho + 1:ho + 2, :, :] = hrow

    # ---- conv1: 3x3 stride-s as 9 accumulated MXU matmuls, banded (item 1) --
    for r0 in range(0, ho, band):
        br = min(band, ho - r0)
        acc1 = jnp.zeros((bt * br * wo, cmid), jnp.float32)
        for dy in range(3):
            for dx in range(3):
                acc1 += jnp.dot(xr_tap(dy, dx, r0, br), w1_ref[dy * 3 + dx],
                                preferred_element_type=jnp.float32)
        # relu + single bf16 cast at write time (perf item 2)
        hband = jnp.maximum(acc1, 0.0).astype(jnp.bfloat16).reshape(bt, br, wo, cmid)
        zc = jnp.zeros((bt, br, 1, cmid), jnp.bfloat16)
        # W-border zeros folded into the contiguous interior row store
        h_ref[:, 1 + r0:1 + r0 + br, :, :] = jnp.concatenate([zc, hband, zc], axis=2)

    # ---- shortcut + conv2 (3x3 stride-1), band-by-band ----------------------
    for r0 in range(0, ho, band):
        br = min(band, ho - r0)
        m = bt * br * wo
        if equal:
            # identity residual: raw (non-ReLU'd) rows of x for this band
            acc2 = x_ref[:, r0:r0 + br, :, :].reshape(m, cout).astype(jnp.float32)
        else:
            # 1x1 stride-s conv of relu(x) == matmul on the center tap
            acc2 = jnp.dot(xr_tap(1, 1, r0, br), ws_ref[...],
                           preferred_element_type=jnp.float32)
        for dy in range(3):
            for dx in range(3):
                tap = h_ref[:, dy + r0:dy + r0 + br, dx:dx + wo, :].reshape(m, cmid)
                acc2 += jnp.dot(tap, w2_ref[dy * 3 + dx],
                                preferred_element_type=jnp.float32)
        o_ref[:, r0:r0 + br, :, :] = acc2.reshape(bt, br, wo, cout).astype(o_ref.dtype)


# ------------------------------ block wrapper ------------------------------- #

def basic_block_forward(x, p, stride):
    """Pre-activation WRN BasicBlock (identity norm, no dropout), NHWC input.

    Returns an NHWC bf16 activation whose channel dim is zero-padded to a
    multiple of 128 (lane-dense); padded channels are exactly zero.
    """
    n, h, w, cx = x.shape
    cmid = p["conv1"].shape[-1]
    cout = p["conv2"].shape[-1]
    cmid_p = _round_up(cmid, _LANE)
    cout_p = _round_up(cout, _LANE)
    equal = "shortcut" not in p
    s = stride
    assert s in (1, 2), "WRN uses stride 1 or 2"
    assert h % s == 0 and w % s == 0

    # identity residual requires x's channel dim to match the padded output
    if equal and cx < cout_p:
        x = jnp.pad(x, ((0, 0), (0, 0), (0, 0), (0, cout_p - cx)))
        cx = cout_p

    ho = (h + 2 - 3) // s + 1
    wo = (w + 2 - 3) // s + 1

    bt = _pick_batch_tile(n, ho, wo)                 # perf item 6 (batch folding)
    grid = (n // bt,)

    # output-row band so the f32 accumulators stay vreg-resident (perf item 1)
    band = max(1, _ACC_BUDGET_BYTES // (bt * wo * max(cmid_p, cout_p) * 4))
    band = min(band, ho)

    if s == 1:
        # spatial pad moved into the kernel (perf item 7)
        xin = x
        x_blk_shape = (bt, h, w, cx)
        x_spec = pl.BlockSpec(x_blk_shape, lambda i: (i, 0, 0, 0))
        xr_shape = (bt, h + 2, w + 2, cx)
    else:
        # stride folded into layout: spatial zero-pad + stride-parity split
        xp = jnp.pad(x, ((0, 0), (1, 1), (1, 1), (0, 0)))
        xin = jnp.stack([xp[:, i::s, j::s, :]
                         for i in range(s) for j in range(s)], axis=0)
        s2, _, hps, wps, _ = xin.shape
        x_blk_shape = (s2, bt, hps, wps, cx)
        x_spec = pl.BlockSpec(x_blk_shape, lambda i: (0, i, 0, 0, 0))
        xr_shape = x_blk_shape

    # Weights -> (taps, K, Cout): K zero-padded to the activation channel count,
    # Cout zero-padded lane-dense to a multiple of 128, bf16 for the MXU.
    def prep(w_hwio, k_to, cout_to):
        kh, kw, ci, co = w_hwio.shape
        wk = w_hwio.reshape(kh * kw, ci, co)
        wk = jnp.pad(wk, ((0, 0), (0, k_to - ci), (0, cout_to - co)))
        return wk.astype(jnp.bfloat16)

    w1 = prep(p["conv1"], cx, cmid_p)
    w2 = prep(p["conv2"], cmid_p, cout_p)

    args = [xin, w1, w2]
    in_specs = [x_spec, _weight_spec(w1), _weight_spec(w2)]
    if not equal:
        ws = prep(p["shortcut"], cx, cout_p)[0]      # (Cx, Cout_p)
        args.append(ws)
        in_specs.append(_weight_spec(ws))

    # VMEM budget from actual tile sizes, clamped under the physical VMEM of
    # the current generation (64 MiB/TC on v7x, 128 MiB on v5e/v6e) — item 8.
    nbytes = lambda a: int(a.size) * a.dtype.itemsize
    x_blk = math.prod(x_blk_shape) * xin.dtype.itemsize
    w_bytes = sum(
        nbytes(a) * (1 if nbytes(a) > _WEIGHT_SINGLE_BUFFER_BYTES else 2)
        for a in args[1:])
    scratch = (math.prod(xr_shape) + bt * (ho + 2) * (wo + 2) * cmid_p) * 2
    out_blk = bt * ho * wo * cout_p * 2
    est = 2 * x_blk + w_bytes + scratch + 2 * out_blk
    vmem_limit = max(32 * 1024 * 1024, int(est * 1.25) + (4 << 20))
    vmem_limit = min(vmem_limit, _vmem_cap_bytes() - (8 << 20))

    kernel = functools.partial(_basic_block_kernel, stride=s, ho=ho, wo=wo,
                               band=band, equal=equal)
    return pl.pallas_call(
        kernel,
        grid=grid,
        in_specs=in_specs,
        out_specs=pl.BlockSpec((bt, ho, wo, cout_p), lambda i: (i, 0, 0, 0)),
        out_shape=jax.ShapeDtypeStruct((n, ho, wo, cout_p), jnp.bfloat16),
        scratch_shapes=[pltpu.VMEM(xr_shape, jnp.bfloat16),
                        pltpu.VMEM((bt, ho + 2, wo + 2, cmid_p), jnp.bfloat16)],
        compiler_params=pltpu.CompilerParams(
            dimension_semantics=("parallel",),
            vmem_limit_bytes=vmem_limit,
        ),
    )(*args)


def network_block_forward(x_nchw, params, stride):
    x = jnp.transpose(x_nchw, (0, 2, 3, 1))          # NCHW -> NHWC, once per network
    for i, p in enumerate(params):
        x = basic_block_forward(x, p, stride if i == 0 else 1)
    cout = params[-1]["conv2"].shape[-1]
    x = x[..., :cout].astype(jnp.float32)            # drop lane padding
    return jnp.transpose(x, (0, 3, 1, 2))            # back to NCHW


# ----------------------------- params / reference --------------------------- #

def init_network_block_params(key, nb_layers, in_planes, out_planes):
    """Weights stored HWIO (== PyTorch (Cout,Cin,kh,kw).transpose(2,3,1,0))."""
    params = []
    for i in range(nb_layers):
        cin = in_planes if i == 0 else out_planes
        key, k1, k2, k3 = jax.random.split(key, 4)
        std = math.sqrt(2.0 / (9 * out_planes))
        p = {
            "conv1": std * jax.random.normal(k1, (3, 3, cin, out_planes), jnp.float32),
            "conv2": std * jax.random.normal(k2, (3, 3, out_planes, out_planes), jnp.float32),
        }
        if cin != out_planes:
            stds = math.sqrt(2.0 / out_planes)
            p["shortcut"] = stds * jax.random.normal(k3, (1, 1, cin, out_planes), jnp.float32)
        params.append(p)
    return params


def _conv_ref(x, w_hwio, stride, pad):
    return jax.lax.conv_general_dilated(
        x, w_hwio, window_strides=(stride, stride), padding=pad,
        dimension_numbers=("NHWC", "HWIO", "NHWC"))


def network_block_ref(x_nchw, params, stride):
    x = jnp.transpose(x_nchw, (0, 2, 3, 1))
    for i, p in enumerate(params):
        s = stride if i == 0 else 1
        cin, cout = x.shape[-1], p["conv1"].shape[-1]
        equal = (cin == cout) and (s == 1)
        a = jax.nn.relu(x)
        h = jax.nn.relu(_conv_ref(a, p["conv1"], s, ((1, 1), (1, 1))))
        out = _conv_ref(h, p["conv2"], 1, ((1, 1), (1, 1)))
        sc = x if equal else _conv_ref(a, p["shortcut"], s, ((0, 0), (0, 0)))
        x = sc + out
    return jnp.transpose(x, (0, 3, 1, 2))


# ---------------------------------- main ------------------------------------ #

if __name__ == "__main__":
    key = jax.random.PRNGKey(0)
    key, kx = jax.random.split(key)

    # NetworkBlock(nb_layers=2, in_planes=4, out_planes=8, block=BasicBlock, stride=2)
    N, Cin, H, W = 2, 4, 16, 16
    nb_layers, out_planes, stride = 2, 8, 2

    x = jax.random.normal(kx, (N, Cin, H, W), jnp.float32)
    params = init_network_block_params(key, nb_layers, Cin, out_planes)

    fwd = jax.jit(network_block_forward, static_argnums=2)
    y = jax.block_until_ready(fwd(x, params, stride))

    y_ref = network_block_ref(x, params, stride)
    assert y.shape == (N, out_planes, H // stride, W // stride), y.shape
    max_err = float(jnp.max(jnp.abs(y - y_ref)))
    # bf16 MXU operands / bf16 inter-block activations => looser tolerance
    assert jnp.allclose(y, y_ref, atol=5e-2, rtol=5e-2), f"mismatch (max abs err {max_err})"

    print("KERNEL_OK")
</pallas_src>

<mosaic_0001>
module attributes {stable_mosaic.version = 11 : i64} {
  func.func @_basic_block_kernel(%arg0: i32, %arg1: memref<4x1x9x9x4xf32, #tpu.memory_space<vmem>>, %arg2: memref<9x4x128xbf16, #tpu.memory_space<vmem>>, %arg3: memref<9x128x128xbf16, #tpu.memory_space<vmem>>, %arg4: memref<4x128xbf16, #tpu.memory_space<vmem>>, %arg5: memref<1x8x8x128xbf16, #tpu.memory_space<vmem>>, %arg6: memref<4x1x9x9x4xbf16, #tpu.memory_space<vmem>>, %arg7: memref<1x10x10x128xbf16, #tpu.memory_space<vmem>>) attributes {dimension_semantics = [#tpu.dimension_semantics<parallel>], iteration_bounds = array<i64: 2>, scalar_prefetch = 0 : i64, scratch_operands = 2 : i64, tpu.core_type = #tpu.core_type<tc>, window_params = [{transform_indices = @transform_0, window_bounds = array<i64: 4, 1, 9, 9, 4>}, {pipeline_mode = #tpu.pipeline_mode<synchronous>, transform_indices = @transform_1, window_bounds = array<i64: 9, 4, 128>}, {pipeline_mode = #tpu.pipeline_mode<synchronous>, transform_indices = @transform_2, window_bounds = array<i64: 9, 128, 128>}, {pipeline_mode = #tpu.pipeline_mode<synchronous>, transform_indices = @transform_3, window_bounds = array<i64: 4, 128>}, {transform_indices = @transform_4, window_bounds = array<i64: 1, 8, 8, 128>}]} {
    %c0 = arith.constant 0 : index
    %c0_0 = arith.constant 0 : index
    %c0_1 = arith.constant 0 : index
    %c0_2 = arith.constant 0 : index
    %c0_3 = arith.constant 0 : index
    %0 = vector.load %arg1[%c0, %c0_0, %c0_1, %c0_2, %c0_3] : memref<4x1x9x9x4xf32, #tpu.memory_space<vmem>>, vector<4x1x9x9x4xf32>
    %cst = arith.constant 0.000000e+00 : f32
    %1 = vector.broadcast %cst : f32 to vector<4x1x9x9x4xf32>
    %2 = arith.maximumf %0, %1 : vector<4x1x9x9x4xf32>
    %3 = arith.truncf %2 : vector<4x1x9x9x4xf32> to vector<4x1x9x9x4xbf16>
    %c0_4 = arith.constant 0 : index
    %c0_5 = arith.constant 0 : index
    %c0_6 = arith.constant 0 : index
    %c0_7 = arith.constant 0 : index
    %c0_8 = arith.constant 0 : index
    %4 = vector.load %arg6[%c0_4, %c0_5, %c0_6, %c0_7, %c0_8] : memref<4x1x9x9x4xbf16, #tpu.memory_space<vmem>>, vector<4x1x9x9x4xbf16>
    tpu.vector_store %arg6[%c0_4, %c0_5, %c0_6, %c0_7, %c0_8], %3 {strides = array<i32>} : memref<4x1x9x9x4xbf16, #tpu.memory_space<vmem>>, vector<4x1x9x9x4xbf16>,
    %cst_9 = arith.constant 0.000000e+00 : bf16
    %5 = vector.broadcast %cst_9 : bf16 to vector<1x1x10x128xbf16>
    %c0_10 = arith.constant 0 : index
    %c0_11 = arith.constant 0 : index
    %c0_12 = arith.constant 0 : index
    %c0_13 = arith.constant 0 : index
    %6 = vector.load %arg7[%c0_10, %c0_11, %c0_12, %c0_13] : memref<1x10x10x128xbf16, #tpu.memory_space<vmem>>, vector<1x1x10x128xbf16>
    tpu.vector_store %arg7[%c0_10, %c0_11, %c0_12, %c0_13], %5 {strides = array<i32>} : memref<1x10x10x128xbf16, #tpu.memory_space<vmem>>, vector<1x1x10x128xbf16>,
    %c0_14 = arith.constant 0 : index
    %c9 = arith.constant 9 : index
    %c0_15 = arith.constant 0 : index
    %c0_16 = arith.constant 0 : index
    %7 = vector.load %arg7[%c0_14, %c9, %c0_15, %c0_16] : memref<1x10x10x128xbf16, #tpu.memory_space<vmem>>, vector<1x1x10x128xbf16>
    tpu.vector_store %arg7[%c0_14, %c9, %c0_15, %c0_16], %5 {strides = array<i32>} : memref<1x10x10x128xbf16, #tpu.memory_space<vmem>>, vector<1x1x10x128xbf16>,
    %cst_17 = arith.constant 0.000000e+00 : f32
    %8 = vector.broadcast %cst_17 : f32 to vector<64x128xf32>
    %c0_18 = arith.constant 0 : index
    %c0_19 = arith.constant 0 : index
    %c0_20 = arith.constant 0 : index
    %c0_21 = arith.constant 0 : index
    %c0_22 = arith.constant 0 : index
    %9 = vector.load %arg6[%c0_18, %c0_19, %c0_20, %c0_21, %c0_22] : memref<4x1x9x9x4xbf16, #tpu.memory_space<vmem>>, vector<1x1x8x8x4xbf16>
    %10 = vector.shape_cast %9 : vector<1x1x8x8x4xbf16> to vector<1x8x8x4xbf16>
    %11 = vector.shape_cast %10 : vector<1x8x8x4xbf16> to vector<64x4xbf16>
    %c0_23 = arith.constant 0 : index
    %c0_24 = arith.constant 0 : index
    %c0_25 = arith.constant 0 : index
    %12 = vector.load %arg2[%c0_23, %c0_24, %c0_25] : memref<9x4x128xbf16, #tpu.memory_space<vmem>>, vector<1x4x128xbf16>
    %13 = vector.shape_cast %12 : vector<1x4x128xbf16> to vector<4x128xbf16>
    %cst_26 = arith.constant dense<0.000000e+00> : vector<64x128xf32>
    %14 = tpu.matmul %11, %13, %cst_26 {dimension_numbers = #tpu.dot_dimension_numbers<[1], [0], [0], [1], [0, 0, 1, 1], [], []>} : vector<64x4xbf16>, vector<4x128xbf16>, vector<64x128xf32> -> vector<64x128xf32>
    %15 = arith.addf %8, %14 : vector<64x128xf32>
    %c1 = arith.constant 1 : index
    %c0_27 = arith.constant 0 : index
    %c0_28 = arith.constant 0 : index
    %c0_29 = arith.constant 0 : index
    %c0_30 = arith.constant 0 : index
    %16 = vector.load %arg6[%c1, %c0_27, %c0_28, %c0_29, %c0_30] : memref<4x1x9x9x4xbf16, #tpu.memory_space<vmem>>, vector<1x1x8x8x4xbf16>
    %17 = vector.shape_cast %16 : vector<1x1x8x8x4xbf16> to vector<1x8x8x4xbf16>
    %18 = vector.shape_cast %17 : vector<1x8x8x4xbf16> to vector<64x4xbf16>
    %c1_31 = arith.constant 1 : index
    %c0_32 = arith.constant 0 : index
    %c0_33 = arith.constant 0 : index
    %19 = vector.load %arg2[%c1_31, %c0_32, %c0_33] : memref<9x4x128xbf16, #tpu.memory_space<vmem>>, vector<1x4x128xbf16>
    %20 = vector.shape_cast %19 : vector<1x4x128xbf16> to vector<4x128xbf16>
    %cst_34 = arith.constant dense<0.000000e+00> : vector<64x128xf32>
    %21 = tpu.matmul %18, %20, %cst_34 {dimension_numbers = #tpu.dot_dimension_numbers<[1], [0], [0], [1], [0, 0, 1, 1], [], []>} : vector<64x4xbf16>, vector<4x128xbf16>, vector<64x128xf32> -> vector<64x128xf32>
    %22 = arith.addf %15, %21 : vector<64x128xf32>
    %c0_35 = arith.constant 0 : index
    %c0_36 = arith.constant 0 : index
    %c0_37 = arith.constant 0 : index
    %c1_38 = arith.constant 1 : index
    %c0_39 = arith.constant 0 : index
    %23 = vector.load %arg6[%c0_35, %c0_36, %c0_37, %c1_38, %c0_39] : memref<4x1x9x9x4xbf16, #tpu.memory_space<vmem>>, vector<1x1x8x8x4xbf16>
    %24 = vector.shape_cast %23 : vector<1x1x8x8x4xbf16> to vector<1x8x8x4xbf16>
    %25 = vector.shape_cast %24 : vector<1x8x8x4xbf16> to vector<64x4xbf16>
    %c2 = arith.constant 2 : index
    %c0_40 = arith.constant 0 : index
    %c0_41 = arith.constant 0 : index
    %26 = vector.load %arg2[%c2, %c0_40, %c0_41] : memref<9x4x128xbf16, #tpu.memory_space<vmem>>, vector<1x4x128xbf16>
    %27 = vector.shape_cast %26 : vector<1x4x128xbf16> to vector<4x128xbf16>
    %cst_42 = arith.constant dense<0.000000e+00> : vector<64x128xf32>
    %28 = tpu.matmul %25, %27, %cst_42 {dimension_numbers = #tpu.dot_dimension_numbers<[1], [0], [0], [1], [0, 0, 1, 1], [], []>} : vector<64x4xbf16>, vector<4x128xbf16>, vector<64x128xf32> -> vector<64x128xf32>
    %29 = arith.addf %22, %28 : vector<64x128xf32>
    %c2_43 = arith.constant 2 : index
    %c0_44 = arith.constant 0 : index
    %c0_45 = arith.constant 0 : index
    %c0_46 = arith.constant 0 : index
    %c0_47 = arith.constant 0 : index
    %30 = vector.load %arg6[%c2_43, %c0_44, %c0_45, %c0_46, %c0_47] : memref<4x1x9x9x4xbf16, #tpu.memory_space<vmem>>, vector<1x1x8x8x4xbf16>
    %31 = vector.shape_cast %30 : vector<1x1x8x8x4xbf16> to vector<1x8x8x4xbf16>
    %32 = vector.shape_cast %31 : vector<1x8x8x4xbf16> to vector<64x4xbf16>
    %c3 = arith.constant 3 : index
    %c0_48 = arith.constant 0 : index
    %c0_49 = arith.constant 0 : index
    %33 = vector.load %arg2[%c3, %c0_48, %c0_49] : memref<9x4x128xbf16, #tpu.memory_space<vmem>>, vector<1x4x128xbf16>
    %34 = vector.shape_cast %33 : vector<1x4x128xbf16> to vector<4x128xbf16>
    %cst_50 = arith.constant dense<0.000000e+00> : vector<64x128xf32>
    %35 = tpu.matmul %32, %34, %cst_50 {dimension_numbers = #tpu.dot_dimension_numbers<[1], [0], [0], [1], [0, 0, 1, 1], [], []>} : vector<64x4xbf16>, vector<4x128xbf16>, vector<64x128xf32> -> vector<64x128xf32>
    %36 = arith.addf %29, %35 : vector<64x128xf32>
    %c3_51 = arith.constant 3 : index
    %c0_52 = arith.constant 0 : index
    %c0_53 = arith.constant 0 : index
    %c0_54 = arith.constant 0 : index
    %c0_55 = arith.constant 0 : index
    %37 = vector.load %arg6[%c3_51, %c0_52, %c0_53, %c0_54, %c0_55] : memref<4x1x9x9x4xbf16, #tpu.memory_space<vmem>>, vector<1x1x8x8x4xbf16>
    %38 = vector.shape_cast %37 : vector<1x1x8x8x4xbf16> to vector<1x8x8x4xbf16>
    %39 = vector.shape_cast %38 : vector<1x8x8x4xbf16> to vector<64x4xbf16>
    %c4 = arith.constant 4 : index
    %c0_56 = arith.constant 0 : index
    %c0_57 = arith.constant 0 : index
    %40 = vector.load %arg2[%c4, %c0_56, %c0_57] : memref<9x4x128xbf16, #tpu.memory_space<vmem>>, vector<1x4x128xbf16>
    %41 = vector.shape_cast %40 : vector<1x4x128xbf16> to vector<4x128xbf16>
    %cst_58 = arith.constant dense<0.000000e+00> : vector<64x128xf32>
    %42 = tpu.matmul %39, %41, %cst_58 {dimension_numbers = #tpu.dot_dimension_numbers<[1], [0], [0], [1], [0, 0, 1, 1], [], []>} : vector<64x4xbf16>, vector<4x128xbf16>, vector<64x128xf32> -> vector<64x128xf32>
    %43 = arith.addf %36, %42 : vector<64x128xf32>
    %c2_59 = arith.constant 2 : index
    %c0_60 = arith.constant 0 : index
    %c0_61 = arith.constant 0 : index
    %c1_62 = arith.constant 1 : index
    %c0_63 = arith.constant 0 : index
    %44 = vector.load %arg6[%c2_59, %c0_60, %c0_61, %c1_62, %c0_63] : memref<4x1x9x9x4xbf16, #tpu.memory_space<vmem>>, vector<1x1x8x8x4xbf16>
    %45 = vector.shape_cast %44 : vector<1x1x8x8x4xbf16> to vector<1x8x8x4xbf16>
    %46 = vector.shape_cast %45 : vector<1x8x8x4xbf16> to vector<64x4xbf16>
    %c5 = arith.constant 5 : index
    %c0_64 = arith.constant 0 : index
    %c0_65 = arith.constant 0 : index
    %47 = vector.load %arg2[%c5, %c0_64, %c0_65] : memref<9x4x128xbf16, #tpu.memory_space<vmem>>, vector<1x4x128xbf16>
    %48 = vector.shape_cast %47 : vector<1x4x128xbf16> to vector<4x128xbf16>
    %cst_66 = arith.constant dense<0.000000e+00> : vector<64x128xf32>
    %49 = tpu.matmul %46, %48, %cst_66 {dimension_numbers = #tpu.dot_dimension_numbers<[1], [0], [0], [1], [0, 0, 1, 1], [], []>} : vector<64x4xbf16>, vector<4x128xbf16>, vector<64x128xf32> -> vector<64x128xf32>
    %50 = arith.addf %43, %49 : vector<64x128xf32>
    %c0_67 = arith.constant 0 : index
    %c0_68 = arith.constant 0 : index
    %c1_69 = arith.constant 1 : index
    %c0_70 = arith.constant 0 : index
    %c0_71 = arith.constant 0 : index
    %51 = vector.load %arg6[%c0_67, %c0_68, %c1_69, %c0_70, %c0_71] : memref<4x1x9x9x4xbf16, #tpu.memory_space<vmem>>, vector<1x1x8x8x4xbf16>
    %52 = vector.shape_cast %51 : vector<1x1x8x8x4xbf16> to vector<1x8x8x4xbf16>
    %53 = vector.shape_cast %52 : vector<1x8x8x4xbf16> to vector<64x4xbf16>
    %c6 = arith.constant 6 : index
    %c0_72 = arith.constant 0 : index
    %c0_73 = arith.constant 0 : index
    %54 = vector.load %arg2[%c6, %c0_72, %c0_73] : memref<9x4x128xbf16, #tpu.memory_space<vmem>>, vector<1x4x128xbf16>
    %55 = vector.shape_cast %54 : vector<1x4x128xbf16> to vector<4x128xbf16>
    %cst_74 = arith.constant dense<0.000000e+00> : vector<64x128xf32>
    %56 = tpu.matmul %53, %55, %cst_74 {dimension_numbers = #tpu.dot_dimension_numbers<[1], [0], [0], [1], [0, 0, 1, 1], [], []>} : vector<64x4xbf16>, vector<4x128xbf16>, vector<64x128xf32> -> vector<64x128xf32>
    %57 = arith.addf %50, %56 : vector<64x128xf32>
    %c1_75 = arith.constant 1 : index
    %c0_76 = arith.constant 0 : index
    %c1_77 = arith.constant 1 : index
    %c0_78 = arith.constant 0 : index
    %c0_79 = arith.constant 0 : index
    %58 = vector.load %arg6[%c1_75, %c0_76, %c1_77, %c0_78, %c0_79] : memref<4x1x9x9x4xbf16, #tpu.memory_space<vmem>>, vector<1x1x8x8x4xbf16>
    %59 = vector.shape_cast %58 : vector<1x1x8x8x4xbf16> to vector<1x8x8x4xbf16>
    %60 = vector.shape_cast %59 : vector<1x8x8x4xbf16> to vector<64x4xbf16>
    %c7 = arith.constant 7 : index
    %c0_80 = arith.constant 0 : index
    %c0_81 = arith.constant 0 : index
    %61 = vector.load %arg2[%c7, %c0_80, %c0_81] : memref<9x4x128xbf16, #tpu.memory_space<vmem>>, vector<1x4x128xbf16>
    %62 = vector.shape_cast %61 : vector<1x4x128xbf16> to vector<4x128xbf16>
    %cst_82 = arith.constant dense<0.000000e+00> : vector<64x128xf32>
    %63 = tpu.matmul %60, %62, %cst_82 {dimension_numbers = #tpu.dot_dimension_numbers<[1], [0], [0], [1], [0, 0, 1, 1], [], []>} : vector<64x4xbf16>, vector<4x128xbf16>, vector<64x128xf32> -> vector<64x128xf32>
    %64 = arith.addf %57, %63 : vector<64x128xf32>
    %c0_83 = arith.constant 0 : index
    %c0_84 = arith.constant 0 : index
    %c1_85 = arith.constant 1 : index
    %c1_86 = arith.constant 1 : index
    %c0_87 = arith.constant 0 : index
    %65 = vector.load %arg6[%c0_83, %c0_84, %c1_85, %c1_86, %c0_87] : memref<4x1x9x9x4xbf16, #tpu.memory_space<vmem>>, vector<1x1x8x8x4xbf16>
    %66 = vector.shape_cast %65 : vector<1x1x8x8x4xbf16> to vector<1x8x8x4xbf16>
    %67 = vector.shape_cast %66 : vector<1x8x8x4xbf16> to vector<64x4xbf16>
    %c8 = arith.constant 8 : index
    %c0_88 = arith.constant 0 : index
    %c0_89 = arith.constant 0 : index
    %68 = vector.load %arg2[%c8, %c0_88, %c0_89] : memref<9x4x128xbf16, #tpu.memory_space<vmem>>, vector<1x4x128xbf16>
    %69 = vector.shape_cast %68 : vector<1x4x128xbf16> to vector<4x128xbf16>
    %cst_90 = arith.constant dense<0.000000e+00> : vector<64x128xf32>
    %70 = tpu.matmul %67, %69, %cst_90 {dimension_numbers = #tpu.dot_dimension_numbers<[1], [0], [0], [1], [0, 0, 1, 1], [], []>} : vector<64x4xbf16>, vector<4x128xbf16>, vector<64x128xf32> -> vector<64x128xf32>
    %71 = arith.addf %64, %70 : vector<64x128xf32>
    %cst_91 = arith.constant 0.000000e+00 : f32
    %72 = vector.broadcast %cst_91 : f32 to vector<64x128xf32>
    %73 = arith.maximumf %71, %72 : vector<64x128xf32>
    %74 = arith.truncf %73 : vector<64x128xf32> to vector<64x128xbf16>
    %75 = vector.shape_cast %74 : vector<64x128xbf16> to vector<1x8x8x128xbf16>
    %cst_92 = arith.constant 0.000000e+00 : bf16
    %76 = vector.broadcast %cst_92 : bf16 to vector<1x8x1x128xbf16>
    %77 = tpu.concatenate %76, %75, %76 in 2 : vector<1x8x1x128xbf16>, vector<1x8x8x128xbf16>, vector<1x8x1x128xbf16> -> vector<1x8x10x128xbf16>
    %c0_93 = arith.constant 0 : index
    %c1_94 = arith.constant 1 : index
    %c0_95 = arith.constant 0 : index
    %c0_96 = arith.constant 0 : index
    %78 = vector.load %arg7[%c0_93, %c1_94, %c0_95, %c0_96] : memref<1x10x10x128xbf16, #tpu.memory_space<vmem>>, vector<1x8x10x128xbf16>
    tpu.vector_store %arg7[%c0_93, %c1_94, %c0_95, %c0_96], %77 {strides = array<i32>} : memref<1x10x10x128xbf16, #tpu.memory_space<vmem>>, vector<1x8x10x128xbf16>,
    %c3_97 = arith.constant 3 : index
    %c0_98 = arith.constant 0 : index
    %c0_99 = arith.constant 0 : index
    %c0_100 = arith.constant 0 : index
    %c0_101 = arith.constant 0 : index
    %79 = vector.load %arg6[%c3_97, %c0_98, %c0_99, %c0_100, %c0_101] : memref<4x1x9x9x4xbf16, #tpu.memory_space<vmem>>, vector<1x1x8x8x4xbf16>
    %80 = vector.shape_cast %79 : vector<1x1x8x8x4xbf16> to vector<1x8x8x4xbf16>
    %81 = vector.shape_cast %80 : vector<1x8x8x4xbf16> to vector<64x4xbf16>
    %c0_102 = arith.constant 0 : index
    %c0_103 = arith.constant 0 : index
    %82 = vector.load %arg4[%c0_102, %c0_103] : memref<4x128xbf16, #tpu.memory_space<vmem>>, vector<4x128xbf16>
    %cst_104 = arith.constant dense<0.000000e+00> : vector<64x128xf32>
    %83 = tpu.matmul %81, %82, %cst_104 {dimension_numbers = #tpu.dot_dimension_numbers<[1], [0], [0], [1], [0, 0, 1, 1], [], []>} : vector<64x4xbf16>, vector<4x128xbf16>, vector<64x128xf32> -> vector<64x128xf32>
    %c0_105 = arith.constant 0 : index
    %c0_106 = arith.constant 0 : index
    %c0_107 = arith.constant 0 : index
    %c0_108 = arith.constant 0 : index
    %84 = vector.load %arg7[%c0_105, %c0_106, %c0_107, %c0_108] : memref<1x10x10x128xbf16, #tpu.memory_space<vmem>>, vector<1x8x8x128xbf16>
    %85 = vector.shape_cast %84 : vector<1x8x8x128xbf16> to vector<64x128xbf16>
    %c0_109 = arith.constant 0 : index
    %c0_110 = arith.constant 0 : index
    %c0_111 = arith.constant 0 : index
    %86 = vector.load %arg3[%c0_109, %c0_110, %c0_111] : memref<9x128x128xbf16, #tpu.memory_space<vmem>>, vector<1x128x128xbf16>
    %87 = vector.shape_cast %86 : vector<1x128x128xbf16> to vector<128x128xbf16>
    %cst_112 = arith.constant dense<0.000000e+00> : vector<64x128xf32>
    %88 = tpu.matmul %85, %87, %cst_112 {dimension_numbers = #tpu.dot_dimension_numbers<[1], [0], [0], [1], [0, 0, 1, 1], [], []>} : vector<64x128xbf16>, vector<128x128xbf16>, vector<64x128xf32> -> vector<64x128xf32>
    %89 = arith.addf %83, %88 : vector<64x128xf32>
    %c0_113 = arith.constant 0 : index
    %c0_114 = arith.constant 0 : index
    %c1_115 = arith.constant 1 : index
    %c0_116 = arith.constant 0 : index
    %90 = vector.load %arg7[%c0_113, %c0_114, %c1_115, %c0_116] : memref<1x10x10x128xbf16, #tpu.memory_space<vmem>>, vector<1x8x8x128xbf16>
    %91 = vector.shape_cast %90 : vector<1x8x8x128xbf16> to vector<64x128xbf16>
    %c1_117 = arith.constant 1 : index
    %c0_118 = arith.constant 0 : index
    %c0_119 = arith.constant 0 : index
    %92 = vector.load %arg3[%c1_117, %c0_118, %c0_119] : memref<9x128x128xbf16, #tpu.memory_space<vmem>>, vector<1x128x128xbf16>
    %93 = vector.shape_cast %92 : vector<1x128x128xbf16> to vector<128x128xbf16>
    %cst_120 = arith.constant dense<0.000000e+00> : vector<64x128xf32>
    %94 = tpu.matmul %91, %93, %cst_120 {dimension_numbers = #tpu.dot_dimension_numbers<[1], [0], [0], [1], [0, 0, 1, 1], [], []>} : vector<64x128xbf16>, vector<128x128xbf16>, vector<64x128xf32> -> vector<64x128xf32>
    %95 = arith.addf %89, %94 : vector<64x128xf32>
    %c0_121 = arith.constant 0 : index
    %c0_122 = arith.constant 0 : index
    %c2_123 = arith.constant 2 : index
    %c0_124 = arith.constant 0 : index
    %96 = vector.load %arg7[%c0_121, %c0_122, %c2_123, %c0_124] : memref<1x10x10x128xbf16, #tpu.memory_space<vmem>>, vector<1x8x8x128xbf16>
    %97 = vector.shape_cast %96 : vector<1x8x8x128xbf16> to vector<64x128xbf16>
    %c2_125 = arith.constant 2 : index
    %c0_126 = arith.constant 0 : index
    %c0_127 = arith.constant 0 : index
    %98 = vector.load %arg3[%c2_125, %c0_126, %c0_127] : memref<9x128x128xbf16, #tpu.memory_space<vmem>>, vector<1x128x128xbf16>
    %99 = vector.shape_cast %98 : vector<1x128x128xbf16> to vector<128x128xbf16>
    %cst_128 = arith.constant dense<0.000000e+00> : vector<64x128xf32>
    %100 = tpu.matmul %97, %99, %cst_128 {dimension_numbers = #tpu.dot_dimension_numbers<[1], [0], [0], [1], [0, 0, 1, 1], [], []>} : vector<64x128xbf16>, vector<128x128xbf16>, vector<64x128xf32> -> vector<64x128xf32>
    %101 = arith.addf %95, %100 : vector<64x128xf32>
    %c0_129 = arith.constant 0 : index
    %c1_130 = arith.constant 1 : index
    %c0_131 = arith.constant 0 : index
    %c0_132 = arith.constant 0 : index
    %102 = vector.load %arg7[%c0_129, %c1_130, %c0_131, %c0_132] : memref<1x10x10x128xbf16, #tpu.memory_space<vmem>>, vector<1x8x8x128xbf16>
    %103 = vector.shape_cast %102 : vector<1x8x8x128xbf16> to vector<64x128xbf16>
    %c3_133 = arith.constant 3 : index
    %c0_134 = arith.constant 0 : index
    %c0_135 = arith.constant 0 : index
    %104 = vector.load %arg3[%c3_133, %c0_134, %c0_135] : memref<9x128x128xbf16, #tpu.memory_space<vmem>>, vector<1x128x128xbf16>
    %105 = vector.shape_cast %104 : vector<1x128x128xbf16> to vector<128x128xbf16>
    %cst_136 = arith.constant dense<0.000000e+00> : vector<64x128xf32>
    %106 = tpu.matmul %103, %105, %cst_136 {dimension_numbers = #tpu.dot_dimension_numbers<[1], [0], [0], [1], [0, 0, 1, 1], [], []>} : vector<64x128xbf16>, vector<128x128xbf16>, vector<64x128xf32> -> vector<64x128xf32>
    %107 = arith.addf %101, %106 : vector<64x128xf32>
    %c0_137 = arith.constant 0 : index
    %c1_138 = arith.constant 1 : index
    %c1_139 = arith.constant 1 : index
    %c0_140 = arith.constant 0 : index
    %108 = vector.load %arg7[%c0_137, %c1_138, %c1_139, %c0_140] : memref<1x10x10x128xbf16, #tpu.memory_space<vmem>>, vector<1x8x8x128xbf16>
    %109 = vector.shape_cast %108 : vector<1x8x8x128xbf16> to vector<64x128xbf16>
    %c4_141 = arith.constant 4 : index
    %c0_142 = arith.constant 0 : index
    %c0_143 = arith.constant 0 : index
    %110 = vector.load %arg3[%c4_141, %c0_142, %c0_143] : memref<9x128x128xbf16, #tpu.memory_space<vmem>>, vector<1x128x128xbf16>
    %111 = vector.shape_cast %110 : vector<1x128x128xbf16> to vector<128x128xbf16>
    %cst_144 = arith.constant dense<0.000000e+00> : vector<64x128xf32>
    %112 = tpu.matmul %109, %111, %cst_144 {dimension_numbers = #tpu.dot_dimension_numbers<[1], [0], [0], [1], [0, 0, 1, 1], [], []>} : vector<64x128xbf16>, vector<128x128xbf16>, vector<64x128xf32> -> vector<64x128xf32>
    %113 = arith.addf %107, %112 : vector<64x128xf32>
    %c0_145 = arith.constant 0 : index
    %c1_146 = arith.constant 1 : index
    %c2_147 = arith.constant 2 : index
    %c0_148 = arith.constant 0 : index
    %114 = vector.load %arg7[%c0_145, %c1_146, %c2_147, %c0_148] : memref<1x10x10x128xbf16, #tpu.memory_space<vmem>>, vector<1x8x8x128xbf16>
    %115 = vector.shape_cast %114 : vector<1x8x8x128xbf16> to vector<64x128xbf16>
    %c5_149 = arith.constant 5 : index
    %c0_150 = arith.constant 0 : index
    %c0_151 = arith.constant 0 : index
    %116 = vector.load %arg3[%c5_149, %c0_150, %c0_151] : memref<9x128x128xbf16, #tpu.memory_space<vmem>>, vector<1x128x128xbf16>
    %117 = vector.shape_cast %116 : vector<1x128x128xbf16> to vector<128x128xbf16>
    %cst_152 = arith.constant dense<0.000000e+00> : vector<64x128xf32>
    %118 = tpu.matmul %115, %117, %cst_152 {dimension_numbers = #tpu.dot_dimension_numbers<[1], [0], [0], [1], [0, 0, 1, 1], [], []>} : vector<64x128xbf16>, vector<128x128xbf16>, vector<64x128xf32> -> vector<64x128xf32>
    %119 = arith.addf %113, %118 : vector<64x128xf32>
    %c0_153 = arith.constant 0 : index
    %c2_154 = arith.constant 2 : index
    %c0_155 = arith.constant 0 : index
    %c0_156 = arith.constant 0 : index
    %120 = vector.load %arg7[%c0_153, %c2_154, %c0_155, %c0_156] : memref<1x10x10x128xbf16, #tpu.memory_space<vmem>>, vector<1x8x8x128xbf16>
    %121 = vector.shape_cast %120 : vector<1x8x8x128xbf16> to vector<64x128xbf16>
    %c6_157 = arith.constant 6 : index
    %c0_158 = arith.constant 0 : index
    %c0_159 = arith.constant 0 : index
    %122 = vector.load %arg3[%c6_157, %c0_158, %c0_159] : memref<9x128x128xbf16, #tpu.memory_space<vmem>>, vector<1x128x128xbf16>
    %123 = vector.shape_cast %122 : vector<1x128x128xbf16> to vector<128x128xbf16>
    %cst_160 = arith.constant dense<0.000000e+00> : vector<64x128xf32>
    %124 = tpu.matmul %121, %123, %cst_160 {dimension_numbers = #tpu.dot_dimension_numbers<[1], [0], [0], [1], [0, 0, 1, 1], [], []>} : vector<64x128xbf16>, vector<128x128xbf16>, vector<64x128xf32> -> vector<64x128xf32>
    %125 = arith.addf %119, %124 : vector<64x128xf32>
    %c0_161 = arith.constant 0 : index
    %c2_162 = arith.constant 2 : index
    %c1_163 = arith.constant 1 : index
    %c0_164 = arith.constant 0 : index
    %126 = vector.load %arg7[%c0_161, %c2_162, %c1_163, %c0_164] : memref<1x10x10x128xbf16, #tpu.memory_space<vmem>>, vector<1x8x8x128xbf16>
    %127 = vector.shape_cast %126 : vector<1x8x8x128xbf16> to vector<64x128xbf16>
    %c7_165 = arith.constant 7 : index
    %c0_166 = arith.constant 0 : index
    %c0_167 = arith.constant 0 : index
    %128 = vector.load %arg3[%c7_165, %c0_166, %c0_167] : memref<9x128x128xbf16, #tpu.memory_space<vmem>>, vector<1x128x128xbf16>
    %129 = vector.shape_cast %128 : vector<1x128x128xbf16> to vector<128x128xbf16>
    %cst_168 = arith.constant dense<0.000000e+00> : vector<64x128xf32>
    %130 = tpu.matmul %127, %129, %cst_168 {dimension_numbers = #tpu.dot_dimension_numbers<[1], [0], [0], [1], [0, 0, 1, 1], [], []>} : vector<64x128xbf16>, vector<128x128xbf16>, vector<64x128xf32> -> vector<64x128xf32>
    %131 = arith.addf %125, %130 : vector<64x128xf32>
    %c0_169 = arith.constant 0 : index
    %c2_170 = arith.constant 2 : index
    %c2_171 = arith.constant 2 : index
    %c0_172 = arith.constant 0 : index
    %132 = vector.load %arg7[%c0_169, %c2_170, %c2_171, %c0_172] : memref<1x10x10x128xbf16, #tpu.memory_space<vmem>>, vector<1x8x8x128xbf16>
    %133 = vector.shape_cast %132 : vector<1x8x8x128xbf16> to vector<64x128xbf16>
    %c8_173 = arith.constant 8 : index
    %c0_174 = arith.constant 0 : index
    %c0_175 = arith.constant 0 : index
    %134 = vector.load %arg3[%c8_173, %c0_174, %c0_175] : memref<9x128x128xbf16, #tpu.memory_space<vmem>>, vector<1x128x128xbf16>
    %135 = vector.shape_cast %134 : vector<1x128x128xbf16> to vector<128x128xbf16>
    %cst_176 = arith.constant dense<0.000000e+00> : vector<64x128xf32>
    %136 = tpu.matmul %133, %135, %cst_176 {dimension_numbers = #tpu.dot_dimension_numbers<[1], [0], [0], [1], [0, 0, 1, 1], [], []>} : vector<64x128xbf16>, vector<128x128xbf16>, vector<64x128xf32> -> vector<64x128xf32>
    %137 = arith.addf %131, %136 : vector<64x128xf32>
    %138 = vector.shape_cast %137 : vector<64x128xf32> to vector<1x8x8x128xf32>
    %139 = arith.truncf %138 : vector<1x8x8x128xf32> to vector<1x8x8x128xbf16>
    %c0_177 = arith.constant 0 : index
    %c0_178 = arith.constant 0 : index
    %c0_179 = arith.constant 0 : index
    %c0_180 = arith.constant 0 : index
    %140 = vector.load %arg5[%c0_177, %c0_178, %c0_179, %c0_180] : memref<1x8x8x128xbf16, #tpu.memory_space<vmem>>, vector<1x8x8x128xbf16>
    tpu.vector_store %arg5[%c0_177, %c0_178, %c0_179, %c0_180], %139 {strides = array<i32>} : memref<1x8x8x128xbf16, #tpu.memory_space<vmem>>, vector<1x8x8x128xbf16>,
    return
  }
  func.func @transform_0(%arg0: i32) -> (i32, i32, i32, i32, i32) {
    %c0_i32 = arith.constant 0 : i32
    %c0_i32_0 = arith.constant 0 : i32
    %c0_i32_1 = arith.constant 0 : i32
    %c0_i32_2 = arith.constant 0 : i32
    %c0_i32_3 = arith.constant 0 : i32
    return %c0_i32, %arg0, %c0_i32_0, %c0_i32_1, %c0_i32_2 : i32, i32, i32, i32, i32
  }
  func.func @transform_1(%arg0: i32) -> (i32, i32, i32) {
    %c0_i32 = arith.constant 0 : i32
    %c0_i32_0 = arith.constant 0 : i32
    %c0_i32_1 = arith.constant 0 : i32
    %c0_i32_2 = arith.constant 0 : i32
    return %c0_i32, %c0_i32_0, %c0_i32_1 : i32, i32, i32
  }
  func.func @transform_2(%arg0: i32) -> (i32, i32, i32) {
    %c0_i32 = arith.constant 0 : i32
    %c0_i32_0 = arith.constant 0 : i32
    %c0_i32_1 = arith.constant 0 : i32
    %c0_i32_2 = arith.constant 0 : i32
    return %c0_i32, %c0_i32_0, %c0_i32_1 : i32, i32, i32
  }
  func.func @transform_3(%arg0: i32) -> (i32, i32) {
    %c0_i32 = arith.constant 0 : i32
    %c0_i32_0 = arith.constant 0 : i32
    %c0_i32_1 = arith.constant 0 : i32
    return %c0_i32, %c0_i32_0 : i32, i32
  }
  func.func @transform_4(%arg0: i32) -> (i32, i32, i32, i32) {
    %c0_i32 = arith.constant 0 : i32
    %c0_i32_0 = arith.constant 0 : i32
    %c0_i32_1 = arith.constant 0 : i32
    %c0_i32_2 = arith.constant 0 : i32
    return %arg0, %c0_i32, %c0_i32_0, %c0_i32_1 : i32, i32, i32, i32
  }
}

module attributes {stable_mosaic.version = 11 : i64} {
  func.func @_basic_block_kernel(%arg0: i32, %arg1: memref<1x8x8x128xbf16, #tpu.memory_space<vmem>>, %arg2: memref<9x128x128xbf16, #tpu.memory_space<vmem>>, %arg3: memref<9x128x128xbf16, #tpu.memory_space<vmem>>, %arg4: memref<1x8x8x128xbf16, #tpu.memory_space<vmem>>, %arg5: memref<1x10x10x128xbf16, #tpu.memory_space<vmem>>, %arg6: memref<1x10x10x128xbf16, #tpu.memory_space<vmem>>) attributes {dimension_semantics = [#tpu.dimension_semantics<parallel>], iteration_bounds = array<i64: 2>, scalar_prefetch = 0 : i64, scratch_operands = 2 : i64, tpu.core_type = #tpu.core_type<tc>, window_params = [{transform_indices = @transform_0, window_bounds = array<i64: 1, 8, 8, 128>}, {pipeline_mode = #tpu.pipeline_mode<synchronous>, transform_indices = @transform_1, window_bounds = array<i64: 9, 128, 128>}, {pipeline_mode = #tpu.pipeline_mode<synchronous>, transform_indices = @transform_2, window_bounds = array<i64: 9, 128, 128>}, {transform_indices = @transform_3, window_bounds = array<i64: 1, 8, 8, 128>}]} {
    %cst = arith.constant 0.000000e+00 : bf16
    %0 = vector.broadcast %cst : bf16 to vector<1x1x10x128xbf16>
    %cst_0 = arith.constant 0.000000e+00 : bf16
    %1 = vector.broadcast %cst_0 : bf16 to vector<1x8x1x128xbf16>
    %c0 = arith.constant 0 : index
    %c0_1 = arith.constant 0 : index
    %c0_2 = arith.constant 0 : index
    %c0_3 = arith.constant 0 : index
    %2 = vector.load %arg5[%c0, %c0_1, %c0_2, %c0_3] : memref<1x10x10x128xbf16, #tpu.memory_space<vmem>>, vector<1x1x10x128xbf16>
    tpu.vector_store %arg5[%c0, %c0_1, %c0_2, %c0_3], %0 {strides = array<i32>} : memref<1x10x10x128xbf16, #tpu.memory_space<vmem>>, vector<1x1x10x128xbf16>,
    %c0_4 = arith.constant 0 : index
    %c9 = arith.constant 9 : index
    %c0_5 = arith.constant 0 : index
    %c0_6 = arith.constant 0 : index
    %3 = vector.load %arg5[%c0_4, %c9, %c0_5, %c0_6] : memref<1x10x10x128xbf16, #tpu.memory_space<vmem>>, vector<1x1x10x128xbf16>
    tpu.vector_store %arg5[%c0_4, %c9, %c0_5, %c0_6], %0 {strides = array<i32>} : memref<1x10x10x128xbf16, #tpu.memory_space<vmem>>, vector<1x1x10x128xbf16>,
    %c0_7 = arith.constant 0 : index
    %c0_8 = arith.constant 0 : index
    %c0_9 = arith.constant 0 : index
    %c0_10 = arith.constant 0 : index
    %4 = vector.load %arg1[%c0_7, %c0_8, %c0_9, %c0_10] : memref<1x8x8x128xbf16, #tpu.memory_space<vmem>>, vector<1x8x8x128xbf16>
    %cst_11 = arith.constant 0.000000e+00 : bf16
    %5 = vector.broadcast %cst_11 : bf16 to vector<1x8x8x128xbf16>
    %6 = arith.maximumf %4, %5 : vector<1x8x8x128xbf16>
    %7 = tpu.concatenate %1, %6, %1 in 2 : vector<1x8x1x128xbf16>, vector<1x8x8x128xbf16>, vector<1x8x1x128xbf16> -> vector<1x8x10x128xbf16>
    %c0_12 = arith.constant 0 : index
    %c1 = arith.constant 1 : index
    %c0_13 = arith.constant 0 : index
    %c0_14 = arith.constant 0 : index
    %8 = vector.load %arg5[%c0_12, %c1, %c0_13, %c0_14] : memref<1x10x10x128xbf16, #tpu.memory_space<vmem>>, vector<1x8x10x128xbf16>
    tpu.vector_store %arg5[%c0_12, %c1, %c0_13, %c0_14], %7 {strides = array<i32>} : memref<1x10x10x128xbf16, #tpu.memory_space<vmem>>, vector<1x8x10x128xbf16>,
    %cst_15 = arith.constant 0.000000e+00 : bf16
    %9 = vector.broadcast %cst_15 : bf16 to vector<1x1x10x128xbf16>
    %c0_16 = arith.constant 0 : index
    %c0_17 = arith.constant 0 : index
    %c0_18 = arith.constant 0 : index
    %c0_19 = arith.constant 0 : index
    %10 = vector.load %arg6[%c0_16, %c0_17, %c0_18, %c0_19] : memref<1x10x10x128xbf16, #tpu.memory_space<vmem>>, vector<1x1x10x128xbf16>
    tpu.vector_store %arg6[%c0_16, %c0_17, %c0_18, %c0_19], %9 {strides = array<i32>} : memref<1x10x10x128xbf16, #tpu.memory_space<vmem>>, vector<1x1x10x128xbf16>,
    %c0_20 = arith.constant 0 : index
    %c9_21 = arith.constant 9 : index
    %c0_22 = arith.constant 0 : index
    %c0_23 = arith.constant 0 : index
    %11 = vector.load %arg6[%c0_20, %c9_21, %c0_22, %c0_23] : memref<1x10x10x128xbf16, #tpu.memory_space<vmem>>, vector<1x1x10x128xbf16>
    tpu.vector_store %arg6[%c0_20, %c9_21, %c0_22, %c0_23], %9 {strides = array<i32>} : memref<1x10x10x128xbf16, #tpu.memory_space<vmem>>, vector<1x1x10x128xbf16>,
    %cst_24 = arith.constant 0.000000e+00 : f32
    %12 = vector.broadcast %cst_24 : f32 to vector<64x128xf32>
    %c0_25 = arith.constant 0 : index
    %c0_26 = arith.constant 0 : index
    %c0_27 = arith.constant 0 : index
    %c0_28 = arith.constant 0 : index
    %13 = vector.load %arg5[%c0_25, %c0_26, %c0_27, %c0_28] : memref<1x10x10x128xbf16, #tpu.memory_space<vmem>>, vector<1x8x8x128xbf16>
    %14 = vector.shape_cast %13 : vector<1x8x8x128xbf16> to vector<64x128xbf16>
    %c0_29 = arith.constant 0 : index
    %c0_30 = arith.constant 0 : index
    %c0_31 = arith.constant 0 : index
    %15 = vector.load %arg2[%c0_29, %c0_30, %c0_31] : memref<9x128x128xbf16, #tpu.memory_space<vmem>>, vector<1x128x128xbf16>
    %16 = vector.shape_cast %15 : vector<1x128x128xbf16> to vector<128x128xbf16>
    %cst_32 = arith.constant dense<0.000000e+00> : vector<64x128xf32>
    %17 = tpu.matmul %14, %16, %cst_32 {dimension_numbers = #tpu.dot_dimension_numbers<[1], [0], [0], [1], [0, 0, 1, 1], [], []>} : vector<64x128xbf16>, vector<128x128xbf16>, vector<64x128xf32> -> vector<64x128xf32>
    %18 = arith.addf %12, %17 : vector<64x128xf32>
    %c0_33 = arith.constant 0 : index
    %c0_34 = arith.constant 0 : index
    %c1_35 = arith.constant 1 : index
    %c0_36 = arith.constant 0 : index
    %19 = vector.load %arg5[%c0_33, %c0_34, %c1_35, %c0_36] : memref<1x10x10x128xbf16, #tpu.memory_space<vmem>>, vector<1x8x8x128xbf16>
    %20 = vector.shape_cast %19 : vector<1x8x8x128xbf16> to vector<64x128xbf16>
    %c1_37 = arith.constant 1 : index
    %c0_38 = arith.constant 0 : index
    %c0_39 = arith.constant 0 : index
    %21 = vector.load %arg2[%c1_37, %c0_38, %c0_39] : memref<9x128x128xbf16, #tpu.memory_space<vmem>>, vector<1x128x128xbf16>
    %22 = vector.shape_cast %21 : vector<1x128x128xbf16> to vector<128x128xbf16>
    %cst_40 = arith.constant dense<0.000000e+00> : vector<64x128xf32>
    %23 = tpu.matmul %20, %22, %cst_40 {dimension_numbers = #tpu.dot_dimension_numbers<[1], [0], [0], [1], [0, 0, 1, 1], [], []>} : vector<64x128xbf16>, vector<128x128xbf16>, vector<64x128xf32> -> vector<64x128xf32>
    %24 = arith.addf %18, %23 : vector<64x128xf32>
    %c0_41 = arith.constant 0 : index
    %c0_42 = arith.constant 0 : index
    %c2 = arith.constant 2 : index
    %c0_43 = arith.constant 0 : index
    %25 = vector.load %arg5[%c0_41, %c0_42, %c2, %c0_43] : memref<1x10x10x128xbf16, #tpu.memory_space<vmem>>, vector<1x8x8x128xbf16>
    %26 = vector.shape_cast %25 : vector<1x8x8x128xbf16> to vector<64x128xbf16>
    %c2_44 = arith.constant 2 : index
    %c0_45 = arith.constant 0 : index
    %c0_46 = arith.constant 0 : index
    %27 = vector.load %arg2[%c2_44, %c0_45, %c0_46] : memref<9x128x128xbf16, #tpu.memory_space<vmem>>, vector<1x128x128xbf16>
    %28 = vector.shape_cast %27 : vector<1x128x128xbf16> to vector<128x128xbf16>
    %cst_47 = arith.constant dense<0.000000e+00> : vector<64x128xf32>
    %29 = tpu.matmul %26, %28, %cst_47 {dimension_numbers = #tpu.dot_dimension_numbers<[1], [0], [0], [1], [0, 0, 1, 1], [], []>} : vector<64x128xbf16>, vector<128x128xbf16>, vector<64x128xf32> -> vector<64x128xf32>
    %30 = arith.addf %24, %29 : vector<64x128xf32>
    %c0_48 = arith.constant 0 : index
    %c1_49 = arith.constant 1 : index
    %c0_50 = arith.constant 0 : index
    %c0_51 = arith.constant 0 : index
    %31 = vector.load %arg5[%c0_48, %c1_49, %c0_50, %c0_51] : memref<1x10x10x128xbf16, #tpu.memory_space<vmem>>, vector<1x8x8x128xbf16>
    %32 = vector.shape_cast %31 : vector<1x8x8x128xbf16> to vector<64x128xbf16>
    %c3 = arith.constant 3 : index
    %c0_52 = arith.constant 0 : index
    %c0_53 = arith.constant 0 : index
    %33 = vector.load %arg2[%c3, %c0_52, %c0_53] : memref<9x128x128xbf16, #tpu.memory_space<vmem>>, vector<1x128x128xbf16>
    %34 = vector.shape_cast %33 : vector<1x128x128xbf16> to vector<128x128xbf16>
    %cst_54 = arith.constant dense<0.000000e+00> : vector<64x128xf32>
    %35 = tpu.matmul %32, %34, %cst_54 {dimension_numbers = #tpu.dot_dimension_numbers<[1], [0], [0], [1], [0, 0, 1, 1], [], []>} : vector<64x128xbf16>, vector<128x128xbf16>, vector<64x128xf32> -> vector<64x128xf32>
    %36 = arith.addf %30, %35 : vector<64x128xf32>
    %c0_55 = arith.constant 0 : index
    %c1_56 = arith.constant 1 : index
    %c1_57 = arith.constant 1 : index
    %c0_58 = arith.constant 0 : index
    %37 = vector.load %arg5[%c0_55, %c1_56, %c1_57, %c0_58] : memref<1x10x10x128xbf16, #tpu.memory_space<vmem>>, vector<1x8x8x128xbf16>
    %38 = vector.shape_cast %37 : vector<1x8x8x128xbf16> to vector<64x128xbf16>
    %c4 = arith.constant 4 : index
    %c0_59 = arith.constant 0 : index
    %c0_60 = arith.constant 0 : index
    %39 = vector.load %arg2[%c4, %c0_59, %c0_60] : memref<9x128x128xbf16, #tpu.memory_space<vmem>>, vector<1x128x128xbf16>
    %40 = vector.shape_cast %39 : vector<1x128x128xbf16> to vector<128x128xbf16>
    %cst_61 = arith.constant dense<0.000000e+00> : vector<64x128xf32>
    %41 = tpu.matmul %38, %40, %cst_61 {dimension_numbers = #tpu.dot_dimension_numbers<[1], [0], [0], [1], [0, 0, 1, 1], [], []>} : vector<64x128xbf16>, vector<128x128xbf16>, vector<64x128xf32> -> vector<64x128xf32>
    %42 = arith.addf %36, %41 : vector<64x128xf32>
    %c0_62 = arith.constant 0 : index
    %c1_63 = arith.constant 1 : index
    %c2_64 = arith.constant 2 : index
    %c0_65 = arith.constant 0 : index
    %43 = vector.load %arg5[%c0_62, %c1_63, %c2_64, %c0_65] : memref<1x10x10x128xbf16, #tpu.memory_space<vmem>>, vector<1x8x8x128xbf16>
    %44 = vector.shape_cast %43 : vector<1x8x8x128xbf16> to vector<64x128xbf16>
    %c5 = arith.constant 5 : index
    %c0_66 = arith.constant 0 : index
    %c0_67 = arith.constant 0 : index
    %45 = vector.load %arg2[%c5, %c0_66, %c0_67] : memref<9x128x128xbf16, #tpu.memory_space<vmem>>, vector<1x128x128xbf16>
    %46 = vector.shape_cast %45 : vector<1x128x128xbf16> to vector<128x128xbf16>
    %cst_68 = arith.constant dense<0.000000e+00> : vector<64x128xf32>
    %47 = tpu.matmul %44, %46, %cst_68 {dimension_numbers = #tpu.dot_dimension_numbers<[1], [0], [0], [1], [0, 0, 1, 1], [], []>} : vector<64x128xbf16>, vector<128x128xbf16>, vector<64x128xf32> -> vector<64x128xf32>
    %48 = arith.addf %42, %47 : vector<64x128xf32>
    %c0_69 = arith.constant 0 : index
    %c2_70 = arith.constant 2 : index
    %c0_71 = arith.constant 0 : index
    %c0_72 = arith.constant 0 : index
    %49 = vector.load %arg5[%c0_69, %c2_70, %c0_71, %c0_72] : memref<1x10x10x128xbf16, #tpu.memory_space<vmem>>, vector<1x8x8x128xbf16>
    %50 = vector.shape_cast %49 : vector<1x8x8x128xbf16> to vector<64x128xbf16>
    %c6 = arith.constant 6 : index
    %c0_73 = arith.constant 0 : index
    %c0_74 = arith.constant 0 : index
    %51 = vector.load %arg2[%c6, %c0_73, %c0_74] : memref<9x128x128xbf16, #tpu.memory_space<vmem>>, vector<1x128x128xbf16>
    %52 = vector.shape_cast %51 : vector<1x128x128xbf16> to vector<128x128xbf16>
    %cst_75 = arith.constant dense<0.000000e+00> : vector<64x128xf32>
    %53 = tpu.matmul %50, %52, %cst_75 {dimension_numbers = #tpu.dot_dimension_numbers<[1], [0], [0], [1], [0, 0, 1, 1], [], []>} : vector<64x128xbf16>, vector<128x128xbf16>, vector<64x128xf32> -> vector<64x128xf32>
    %54 = arith.addf %48, %53 : vector<64x128xf32>
    %c0_76 = arith.constant 0 : index
    %c2_77 = arith.constant 2 : index
    %c1_78 = arith.constant 1 : index
    %c0_79 = arith.constant 0 : index
    %55 = vector.load %arg5[%c0_76, %c2_77, %c1_78, %c0_79] : memref<1x10x10x128xbf16, #tpu.memory_space<vmem>>, vector<1x8x8x128xbf16>
    %56 = vector.shape_cast %55 : vector<1x8x8x128xbf16> to vector<64x128xbf16>
    %c7 = arith.constant 7 : index
    %c0_80 = arith.constant 0 : index
    %c0_81 = arith.constant 0 : index
    %57 = vector.load %arg2[%c7, %c0_80, %c0_81] : memref<9x128x128xbf16, #tpu.memory_space<vmem>>, vector<1x128x128xbf16>
    %58 = vector.shape_cast %57 : vector<1x128x128xbf16> to vector<128x128xbf16>
    %cst_82 = arith.constant dense<0.000000e+00> : vector<64x128xf32>
    %59 = tpu.matmul %56, %58, %cst_82 {dimension_numbers = #tpu.dot_dimension_numbers<[1], [0], [0], [1], [0, 0, 1, 1], [], []>} : vector<64x128xbf16>, vector<128x128xbf16>, vector<64x128xf32> -> vector<64x128xf32>
    %60 = arith.addf %54, %59 : vector<64x128xf32>
    %c0_83 = arith.constant 0 : index
    %c2_84 = arith.constant 2 : index
    %c2_85 = arith.constant 2 : index
    %c0_86 = arith.constant 0 : index
    %61 = vector.load %arg5[%c0_83, %c2_84, %c2_85, %c0_86] : memref<1x10x10x128xbf16, #tpu.memory_space<vmem>>, vector<1x8x8x128xbf16>
    %62 = vector.shape_cast %61 : vector<1x8x8x128xbf16> to vector<64x128xbf16>
    %c8 = arith.constant 8 : index
    %c0_87 = arith.constant 0 : index
    %c0_88 = arith.constant 0 : index
    %63 = vector.load %arg2[%c8, %c0_87, %c0_88] : memref<9x128x128xbf16, #tpu.memory_space<vmem>>, vector<1x128x128xbf16>
    %64 = vector.shape_cast %63 : vector<1x128x128xbf16> to vector<128x128xbf16>
    %cst_89 = arith.constant dense<0.000000e+00> : vector<64x128xf32>
    %65 = tpu.matmul %62, %64, %cst_89 {dimension_numbers = #tpu.dot_dimension_numbers<[1], [0], [0], [1], [0, 0, 1, 1], [], []>} : vector<64x128xbf16>, vector<128x128xbf16>, vector<64x128xf32> -> vector<64x128xf32>
    %66 = arith.addf %60, %65 : vector<64x128xf32>
    %cst_90 = arith.constant 0.000000e+00 : f32
    %67 = vector.broadcast %cst_90 : f32 to vector<64x128xf32>
    %68 = arith.maximumf %66, %67 : vector<64x128xf32>
    %69 = arith.truncf %68 : vector<64x128xf32> to vector<64x128xbf16>
    %70 = vector.shape_cast %69 : vector<64x128xbf16> to vector<1x8x8x128xbf16>
    %cst_91 = arith.constant 0.000000e+00 : bf16
    %71 = vector.broadcast %cst_91 : bf16 to vector<1x8x1x128xbf16>
    %72 = tpu.concatenate %71, %70, %71 in 2 : vector<1x8x1x128xbf16>, vector<1x8x8x128xbf16>, vector<1x8x1x128xbf16> -> vector<1x8x10x128xbf16>
    %c0_92 = arith.constant 0 : index
    %c1_93 = arith.constant 1 : index
    %c0_94 = arith.constant 0 : index
    %c0_95 = arith.constant 0 : index
    %73 = vector.load %arg6[%c0_92, %c1_93, %c0_94, %c0_95] : memref<1x10x10x128xbf16, #tpu.memory_space<vmem>>, vector<1x8x10x128xbf16>
    tpu.vector_store %arg6[%c0_92, %c1_93, %c0_94, %c0_95], %72 {strides = array<i32>} : memref<1x10x10x128xbf16, #tpu.memory_space<vmem>>, vector<1x8x10x128xbf16>,
    %c0_96 = arith.constant 0 : index
    %c0_97 = arith.constant 0 : index
    %c0_98 = arith.constant 0 : index
    %c0_99 = arith.constant 0 : index
    %74 = vector.load %arg1[%c0_96, %c0_97, %c0_98, %c0_99] : memref<1x8x8x128xbf16, #tpu.memory_space<vmem>>, vector<1x8x8x128xbf16>
    %75 = vector.shape_cast %74 : vector<1x8x8x128xbf16> to vector<64x128xbf16>
    %76 = arith.extf %75 : vector<64x128xbf16> to vector<64x128xf32>
    %c0_100 = arith.constant 0 : index
    %c0_101 = arith.constant 0 : index
    %c0_102 = arith.constant 0 : index
    %c0_103 = arith.constant 0 : index
    %77 = vector.load %arg6[%c0_100, %c0_101, %c0_102, %c0_103] : memref<1x10x10x128xbf16, #tpu.memory_space<vmem>>, vector<1x8x8x128xbf16>
    %78 = vector.shape_cast %77 : vector<1x8x8x128xbf16> to vector<64x128xbf16>
    %c0_104 = arith.constant 0 : index
    %c0_105 = arith.constant 0 : index
    %c0_106 = arith.constant 0 : index
    %79 = vector.load %arg3[%c0_104, %c0_105, %c0_106] : memref<9x128x128xbf16, #tpu.memory_space<vmem>>, vector<1x128x128xbf16>
    %80 = vector.shape_cast %79 : vector<1x128x128xbf16> to vector<128x128xbf16>
    %cst_107 = arith.constant dense<0.000000e+00> : vector<64x128xf32>
    %81 = tpu.matmul %78, %80, %cst_107 {dimension_numbers = #tpu.dot_dimension_numbers<[1], [0], [0], [1], [0, 0, 1, 1], [], []>} : vector<64x128xbf16>, vector<128x128xbf16>, vector<64x128xf32> -> vector<64x128xf32>
    %82 = arith.addf %76, %81 : vector<64x128xf32>
    %c0_108 = arith.constant 0 : index
    %c0_109 = arith.constant 0 : index
    %c1_110 = arith.constant 1 : index
    %c0_111 = arith.constant 0 : index
    %83 = vector.load %arg6[%c0_108, %c0_109, %c1_110, %c0_111] : memref<1x10x10x128xbf16, #tpu.memory_space<vmem>>, vector<1x8x8x128xbf16>
    %84 = vector.shape_cast %83 : vector<1x8x8x128xbf16> to vector<64x128xbf16>
    %c1_112 = arith.constant 1 : index
    %c0_113 = arith.constant 0 : index
    %c0_114 = arith.constant 0 : index
    %85 = vector.load %arg3[%c1_112, %c0_113, %c0_114] : memref<9x128x128xbf16, #tpu.memory_space<vmem>>, vector<1x128x128xbf16>
    %86 = vector.shape_cast %85 : vector<1x128x128xbf16> to vector<128x128xbf16>
    %cst_115 = arith.constant dense<0.000000e+00> : vector<64x128xf32>
    %87 = tpu.matmul %84, %86, %cst_115 {dimension_numbers = #tpu.dot_dimension_numbers<[1], [0], [0], [1], [0, 0, 1, 1], [], []>} : vector<64x128xbf16>, vector<128x128xbf16>, vector<64x128xf32> -> vector<64x128xf32>
    %88 = arith.addf %82, %87 : vector<64x128xf32>
    %c0_116 = arith.constant 0 : index
    %c0_117 = arith.constant 0 : index
    %c2_118 = arith.constant 2 : index
    %c0_119 = arith.constant 0 : index
    %89 = vector.load %arg6[%c0_116, %c0_117, %c2_118, %c0_119] : memref<1x10x10x128xbf16, #tpu.memory_space<vmem>>, vector<1x8x8x128xbf16>
    %90 = vector.shape_cast %89 : vector<1x8x8x128xbf16> to vector<64x128xbf16>
    %c2_120 = arith.constant 2 : index
    %c0_121 = arith.constant 0 : index
    %c0_122 = arith.constant 0 : index
    %91 = vector.load %arg3[%c2_120, %c0_121, %c0_122] : memref<9x128x128xbf16, #tpu.memory_space<vmem>>, vector<1x128x128xbf16>
    %92 = vector.shape_cast %91 : vector<1x128x128xbf16> to vector<128x128xbf16>
    %cst_123 = arith.constant dense<0.000000e+00> : vector<64x128xf32>
    %93 = tpu.matmul %90, %92, %cst_123 {dimension_numbers = #tpu.dot_dimension_numbers<[1], [0], [0], [1], [0, 0, 1, 1], [], []>} : vector<64x128xbf16>, vector<128x128xbf16>, vector<64x128xf32> -> vector<64x128xf32>
    %94 = arith.addf %88, %93 : vector<64x128xf32>
    %c0_124 = arith.constant 0 : index
    %c1_125 = arith.constant 1 : index
    %c0_126 = arith.constant 0 : index
    %c0_127 = arith.constant 0 : index
    %95 = vector.load %arg6[%c0_124, %c1_125, %c0_126, %c0_127] : memref<1x10x10x128xbf16, #tpu.memory_space<vmem>>, vector<1x8x8x128xbf16>
    %96 = vector.shape_cast %95 : vector<1x8x8x128xbf16> to vector<64x128xbf16>
    %c3_128 = arith.constant 3 : index
    %c0_129 = arith.constant 0 : index
    %c0_130 = arith.constant 0 : index
    %97 = vector.load %arg3[%c3_128, %c0_129, %c0_130] : memref<9x128x128xbf16, #tpu.memory_space<vmem>>, vector<1x128x128xbf16>
    %98 = vector.shape_cast %97 : vector<1x128x128xbf16> to vector<128x128xbf16>
    %cst_131 = arith.constant dense<0.000000e+00> : vector<64x128xf32>
    %99 = tpu.matmul %96, %98, %cst_131 {dimension_numbers = #tpu.dot_dimension_numbers<[1], [0], [0], [1], [0, 0, 1, 1], [], []>} : vector<64x128xbf16>, vector<128x128xbf16>, vector<64x128xf32> -> vector<64x128xf32>
    %100 = arith.addf %94, %99 : vector<64x128xf32>
    %c0_132 = arith.constant 0 : index
    %c1_133 = arith.constant 1 : index
    %c1_134 = arith.constant 1 : index
    %c0_135 = arith.constant 0 : index
    %101 = vector.load %arg6[%c0_132, %c1_133, %c1_134, %c0_135] : memref<1x10x10x128xbf16, #tpu.memory_space<vmem>>, vector<1x8x8x128xbf16>
    %102 = vector.shape_cast %101 : vector<1x8x8x128xbf16> to vector<64x128xbf16>
    %c4_136 = arith.constant 4 : index
    %c0_137 = arith.constant 0 : index
    %c0_138 = arith.constant 0 : index
    %103 = vector.load %arg3[%c4_136, %c0_137, %c0_138] : memref<9x128x128xbf16, #tpu.memory_space<vmem>>, vector<1x128x128xbf16>
    %104 = vector.shape_cast %103 : vector<1x128x128xbf16> to vector<128x128xbf16>
    %cst_139 = arith.constant dense<0.000000e+00> : vector<64x128xf32>
    %105 = tpu.matmul %102, %104, %cst_139 {dimension_numbers = #tpu.dot_dimension_numbers<[1], [0], [0], [1], [0, 0, 1, 1], [], []>} : vector<64x128xbf16>, vector<128x128xbf16>, vector<64x128xf32> -> vector<64x128xf32>
    %106 = arith.addf %100, %105 : vector<64x128xf32>
    %c0_140 = arith.constant 0 : index
    %c1_141 = arith.constant 1 : index
    %c2_142 = arith.constant 2 : index
    %c0_143 = arith.constant 0 : index
    %107 = vector.load %arg6[%c0_140, %c1_141, %c2_142, %c0_143] : memref<1x10x10x128xbf16, #tpu.memory_space<vmem>>, vector<1x8x8x128xbf16>
    %108 = vector.shape_cast %107 : vector<1x8x8x128xbf16> to vector<64x128xbf16>
    %c5_144 = arith.constant 5 : index
    %c0_145 = arith.constant 0 : index
    %c0_146 = arith.constant 0 : index
    %109 = vector.load %arg3[%c5_144, %c0_145, %c0_146] : memref<9x128x128xbf16, #tpu.memory_space<vmem>>, vector<1x128x128xbf16>
    %110 = vector.shape_cast %109 : vector<1x128x128xbf16> to vector<128x128xbf16>
    %cst_147 = arith.constant dense<0.000000e+00> : vector<64x128xf32>
    %111 = tpu.matmul %108, %110, %cst_147 {dimension_numbers = #tpu.dot_dimension_numbers<[1], [0], [0], [1], [0, 0, 1, 1], [], []>} : vector<64x128xbf16>, vector<128x128xbf16>, vector<64x128xf32> -> vector<64x128xf32>
    %112 = arith.addf %106, %111 : vector<64x128xf32>
    %c0_148 = arith.constant 0 : index
    %c2_149 = arith.constant 2 : index
    %c0_150 = arith.constant 0 : index
    %c0_151 = arith.constant 0 : index
    %113 = vector.load %arg6[%c0_148, %c2_149, %c0_150, %c0_151] : memref<1x10x10x128xbf16, #tpu.memory_space<vmem>>, vector<1x8x8x128xbf16>
    %114 = vector.shape_cast %113 : vector<1x8x8x128xbf16> to vector<64x128xbf16>
    %c6_152 = arith.constant 6 : index
    %c0_153 = arith.constant 0 : index
    %c0_154 = arith.constant 0 : index
    %115 = vector.load %arg3[%c6_152, %c0_153, %c0_154] : memref<9x128x128xbf16, #tpu.memory_space<vmem>>, vector<1x128x128xbf16>
    %116 = vector.shape_cast %115 : vector<1x128x128xbf16> to vector<128x128xbf16>
    %cst_155 = arith.constant dense<0.000000e+00> : vector<64x128xf32>
    %117 = tpu.matmul %114, %116, %cst_155 {dimension_numbers = #tpu.dot_dimension_numbers<[1], [0], [0], [1], [0, 0, 1, 1], [], []>} : vector<64x128xbf16>, vector<128x128xbf16>, vector<64x128xf32> -> vector<64x128xf32>
    %118 = arith.addf %112, %117 : vector<64x128xf32>
    %c0_156 = arith.constant 0 : index
    %c2_157 = arith.constant 2 : index
    %c1_158 = arith.constant 1 : index
    %c0_159 = arith.constant 0 : index
    %119 = vector.load %arg6[%c0_156, %c2_157, %c1_158, %c0_159] : memref<1x10x10x128xbf16, #tpu.memory_space<vmem>>, vector<1x8x8x128xbf16>
    %120 = vector.shape_cast %119 : vector<1x8x8x128xbf16> to vector<64x128xbf16>
    %c7_160 = arith.constant 7 : index
    %c0_161 = arith.constant 0 : index
    %c0_162 = arith.constant 0 : index
    %121 = vector.load %arg3[%c7_160, %c0_161, %c0_162] : memref<9x128x128xbf16, #tpu.memory_space<vmem>>, vector<1x128x128xbf16>
    %122 = vector.shape_cast %121 : vector<1x128x128xbf16> to vector<128x128xbf16>
    %cst_163 = arith.constant dense<0.000000e+00> : vector<64x128xf32>
    %123 = tpu.matmul %120, %122, %cst_163 {dimension_numbers = #tpu.dot_dimension_numbers<[1], [0], [0], [1], [0, 0, 1, 1], [], []>} : vector<64x128xbf16>, vector<128x128xbf16>, vector<64x128xf32> -> vector<64x128xf32>
    %124 = arith.addf %118, %123 : vector<64x128xf32>
    %c0_164 = arith.constant 0 : index
    %c2_165 = arith.constant 2 : index
    %c2_166 = arith.constant 2 : index
    %c0_167 = arith.constant 0 : index
    %125 = vector.load %arg6[%c0_164, %c2_165, %c2_166, %c0_167] : memref<1x10x10x128xbf16, #tpu.memory_space<vmem>>, vector<1x8x8x128xbf16>
    %126 = vector.shape_cast %125 : vector<1x8x8x128xbf16> to vector<64x128xbf16>
    %c8_168 = arith.constant 8 : index
    %c0_169 = arith.constant 0 : index
    %c0_170 = arith.constant 0 : index
    %127 = vector.load %arg3[%c8_168, %c0_169, %c0_170] : memref<9x128x128xbf16, #tpu.memory_space<vmem>>, vector<1x128x128xbf16>
    %128 = vector.shape_cast %127 : vector<1x128x128xbf16> to vector<128x128xbf16>
    %cst_171 = arith.constant dense<0.000000e+00> : vector<64x128xf32>
    %129 = tpu.matmul %126, %128, %cst_171 {dimension_numbers = #tpu.dot_dimension_numbers<[1], [0], [0], [1], [0, 0, 1, 1], [], []>} : vector<64x128xbf16>, vector<128x128xbf16>, vector<64x128xf32> -> vector<64x128xf32>
    %130 = arith.addf %124, %129 : vector<64x128xf32>
    %131 = vector.shape_cast %130 : vector<64x128xf32> to vector<1x8x8x128xf32>
    %132 = arith.truncf %131 : vector<1x8x8x128xf32> to vector<1x8x8x128xbf16>
    %c0_172 = arith.constant 0 : index
    %c0_173 = arith.constant 0 : index
    %c0_174 = arith.constant 0 : index
    %c0_175 = arith.constant 0 : index
    %133 = vector.load %arg4[%c0_172, %c0_173, %c0_174, %c0_175] : memref<1x8x8x128xbf16, #tpu.memory_space<vmem>>, vector<1x8x8x128xbf16>
    tpu.vector_store %arg4[%c0_172, %c0_173, %c0_174, %c0_175], %132 {strides = array<i32>} : memref<1x8x8x128xbf16, #tpu.memory_space<vmem>>, vector<1x8x8x128xbf16>,
    return
  }
  func.func @transform_0(%arg0: i32) -> (i32, i32, i32, i32) {
    %c0_i32 = arith.constant 0 : i32
    %c0_i32_0 = arith.constant 0 : i32
    %c0_i32_1 = arith.constant 0 : i32
    %c0_i32_2 = arith.constant 0 : i32
    return %arg0, %c0_i32, %c0_i32_0, %c0_i32_1 : i32, i32, i32, i32
  }
  func.func @transform_1(%arg0: i32) -> (i32, i32, i32) {
    %c0_i32 = arith.constant 0 : i32
    %c0_i32_0 = arith.constant 0 : i32
    %c0_i32_1 = arith.constant 0 : i32
    %c0_i32_2 = arith.constant 0 : i32
    return %c0_i32, %c0_i32_0, %c0_i32_1 : i32, i32, i32
  }
  func.func @transform_2(%arg0: i32) -> (i32, i32, i32) {
    %c0_i32 = arith.constant 0 : i32
    %c0_i32_0 = arith.constant 0 : i32
    %c0_i32_1 = arith.constant 0 : i32
    %c0_i32_2 = arith.constant 0 : i32
    return %c0_i32, %c0_i32_0, %c0_i32_1 : i32, i32, i32
  }
  func.func @transform_3(%arg0: i32) -> (i32, i32, i32, i32) {
    %c0_i32 = arith.constant 0 : i32
    %c0_i32_0 = arith.constant 0 : i32
    %c0_i32_1 = arith.constant 0 : i32
    %c0_i32_2 = arith.constant 0 : i32
    return %arg0, %c0_i32, %c0_i32_0, %c0_i32_1 : i32, i32, i32, i32
  }
}

</mosaic_0001>

<bundles_post_ra>
// kernel: network_block_forward.2
= control target key start
LH: loop header
LB: loop body
LE: loop exit
PB: predicated region body
PF: predicated region fallthrough
CT: control target
= control target key end

     0   :  { %s6084_s15 = smov 0   ;;  %s6086_s16 = smov 0   ;;  %s7287_s0 = inlined_call_operand.vmem [shape: f32[4,2,9,9,4], index: 0, kind: input, shape index: {}]   ;;  %s7288_s1 = inlined_call_operand.vmem [shape: bf16[9,4,128], index: 1, kind: input, shape index: {}]   ;;  %s7289_s2 = inlined_call_operand.vmem [shape: bf16[9,128,128], index: 2, kind: input, shape index: {}]   ;;  %s7290_s3 = inlined_call_operand.vmem [shape: bf16[4,128], index: 3, kind: input, shape index: {}]   ;;  %s7291_s4 = inlined_call_operand.vmem [shape: bf16[2,8,8,128], index: 4, kind: output, shape index: {}]  }
   0x1   :  { %s6088_s17 = smov 0  }
   0x2 LB: > { %s4852_s18 = sadd.s32 4294967295, %s6056_s17   ;;  %s6101_s19 = sadd.s32 1, %s6056_s17   ;;  %s6056_s17 = sphi %s6088_s17, %s7333_s17   ;;  %s6052_s16 = sphi %s6086_s16, %s7332_s16   ;;  %s6048_s15 = sphi %s6084_s15, %s7331_s15  }
   0x3   : > { %s18_s20 = ssub.s32 %s6056_s17, %s6101_s19  ;;  %s21_s21 = sadd.s32 1, %s6052_s16 }
   0x4   : > { %p19_p0 = scmp.eq.s32.totalorder %s18_s20, 0  ;;  %p28_p1 = scmp.ne.s32.totalorder %s6052_s16, %s6048_s15 }
   0x5   : > { %p29_p2 = scmp.eq.s32.totalorder %s6056_s17, 0  ;;  %p4855_p4 = scmp.ge.s32.totalorder %s6056_s17, 2 }
   0x6   : > { %s6110_s22 = scalar_select %p19_p0, %s6052_s16, %s21_s21  }
   0x7   : > { %p30_p3 = por %p29_p2, %p28_p1  ;;  %152 = sbr.rel (%p4855_p4) target bundleno = 53 (0x35), region = 28 }
   0xc   : > { %155 = sbr.rel (!%p30_p3) target bundleno = 53 (0x35), region = 32  ;;  %s157_s23 = sand.u32 (%p30_p3), 1, %s6052_s16  }
   0xd   : > { %s5895_s24 = smul.u32 (%p30_p3), 144, %s6056_s17 }
   0xe   : > { %s5894_s25 = smul.u32 (%p30_p3), 576, %s157_s23 }
   0xf   : > { %s6118_s28 = scalar_lea.vmem (%p30_p3), %s7287_s0, %s5895_s24 }
  0x10   : > { %v333_v0 = vld [vmem:[%s6118_s28] sm:$0xff] (%p30_p3)  ;;  %v335_v1 = vld [vmem:[%s6118_s28 + $0x8] sm:$0xff] (%p30_p3)  ;;  %v337_v2 = vld [vmem:[%s6118_s28 + $0x10] sm:$0xff] (%p30_p3)  ;;  %s6123_s29 = scalar_lea.vmem (%p30_p3), [#allocation4], %s5894_s25 }
  0x11   : > { %334 = vst [vmem:[%s6123_s29] sm:$0xff] %v333_v0  ;;  %336 = vst [vmem:[%s6123_s29 + $0x8] sm:$0xff] %v335_v1  ;;  %v339_v3 = vld [vmem:[%s6118_s28 + $0x18] sm:$0xff]  ;;  %v341_v4 = vld [vmem:[%s6118_s28 + $0x20] sm:$0xff] }
  0x12   : > { %338 = vst [vmem:[%s6123_s29 + $0x10] sm:$0xff] %v337_v2  ;;  %v343_v5 = vld [vmem:[%s6118_s28 + $0x28] sm:$0xff]  ;;  %340 = vst [vmem:[%s6123_s29 + $0x18] sm:$0xff] %v339_v3  ;;  %v345_v6 = vld [vmem:[%s6118_s28 + $0x30] sm:$0xff] }
  0x13   : > { %342 = vst [vmem:[%s6123_s29 + $0x20] sm:$0xff] %v341_v4  ;;  %344 = vst [vmem:[%s6123_s29 + $0x28] sm:$0xff] %v343_v5  ;;  %v347_v7 = vld [vmem:[%s6118_s28 + $0x38] sm:$0xff]  ;;  %v349_v8 = vld [vmem:[%s6118_s28 + $0x40] sm:$0xff] }
  0x14   : > { %346 = vst [vmem:[%s6123_s29 + $0x30] sm:$0xff] %v345_v6  ;;  %348 = vst [vmem:[%s6123_s29 + $0x38] sm:$0xff] %v347_v7  ;;  %v351_v9 = vld [vmem:[%s6118_s28 + $0x48] sm:$0xff]  ;;  %v353_v10 = vld [vmem:[%s6118_s28 + $0x50] sm:$0xff] }
  0x15   : > { %350 = vst [vmem:[%s6123_s29 + $0x40] sm:$0xff] %v349_v8  ;;  %v355_v11 = vld [vmem:[%s6118_s28 + $0x58] sm:$0xff]  ;;  %352 = vst [vmem:[%s6123_s29 + $0x48] sm:$0xff] %v351_v9  ;;  %v357_v12 = vld [vmem:[%s6118_s28 + $0x60] sm:$0xff] }
  0x16   : > { %354 = vst [vmem:[%s6123_s29 + $0x50] sm:$0xff] %v353_v10  ;;  %356 = vst [vmem:[%s6123_s29 + $0x58] sm:$0xff] %v355_v11  ;;  %v359_v13 = vld [vmem:[%s6118_s28 + $0x68] sm:$0xff]  ;;  %v361_v14 = vld [vmem:[%s6118_s28 + $0x70] sm:$0xff] }
  0x17   : > { %358 = vst [vmem:[%s6123_s29 + $0x60] sm:$0xff] %v357_v12  ;;  %360 = vst [vmem:[%s6123_s29 + $0x68] sm:$0xff] %v359_v13  ;;  %v363_v15 = vld [vmem:[%s6118_s28 + $0x78] sm:$0xff]  ;;  %v365_v16 = vld [vmem:[%s6118_s28 + $0x80] sm:$0xff] }
  0x18   : > { %362 = vst [vmem:[%s6123_s29 + $0x70] sm:$0xff] %v361_v14  ;;  %v367_v17 = vld [vmem:[%s6118_s28 + $0x88] sm:$0xff]  ;;  %364 = vst [vmem:[%s6123_s29 + $0x78] sm:$0xff] %v363_v15  ;;  %v369_v18 = vld [vmem:[%s6118_s28 + $0x120] sm:$0xff] }
  0x19   : > { %366 = vst [vmem:[%s6123_s29 + $0x80] sm:$0xff] %v365_v16  ;;  %368 = vst [vmem:[%s6123_s29 + $0x88] sm:$0xff] %v367_v17  ;;  %v371_v19 = vld [vmem:[%s6118_s28 + $0x128] sm:$0xff]  ;;  %v373_v20 = vld [vmem:[%s6118_s28 + $0x130] sm:$0xff] }
  0x1a   : > { %370 = vst [vmem:[%s6123_s29 + $0x90] sm:$0xff] %v369_v18  ;;  %372 = vst [vmem:[%s6123_s29 + $0x98] sm:$0xff] %v371_v19  ;;  %v375_v21 = vld [vmem:[%s6118_s28 + $0x138] sm:$0xff]  ;;  %v377_v22 = vld [vmem:[%s6118_s28 + $0x140] sm:$0xff] }
  0x1b   : > { %374 = vst [vmem:[%s6123_s29 + $0xa0] sm:$0xff] %v373_v20  ;;  %v379_v23 = vld [vmem:[%s6118_s28 + $0x148] sm:$0xff]  ;;  %376 = vst [vmem:[%s6123_s29 + $0xa8] sm:$0xff] %v375_v21  ;;  %v381_v24 = vld [vmem:[%s6118_s28 + $0x150] sm:$0xff] }
  0x1c   : > { %378 = vst [vmem:[%s6123_s29 + $0xb0] sm:$0xff] %v377_v22  ;;  %380 = vst [vmem:[%s6123_s29 + $0xb8] sm:$0xff] %v379_v23  ;;  %v383_v25 = vld [vmem:[%s6118_s28 + $0x158] sm:$0xff]  ;;  %v385_v26 = vld [vmem:[%s6118_s28 + $0x160] sm:$0xff] }
  0x1d   : > { %382 = vst [vmem:[%s6123_s29 + $0xc0] sm:$0xff] %v381_v24  ;;  %384 = vst [vmem:[%s6123_s29 + $0xc8] sm:$0xff] %v383_v25  ;;  %v387_v27 = vld [vmem:[%s6118_s28 + $0x168] sm:$0xff]  ;;  %v389_v28 = vld [vmem:[%s6118_s28 + $0x170] sm:$0xff] }
  0x1e   : > { %386 = vst [vmem:[%s6123_s29 + $0xd0] sm:$0xff] %v385_v26  ;;  %v391_v29 = vld [vmem:[%s6118_s28 + $0x178] sm:$0xff]  ;;  %388 = vst [vmem:[%s6123_s29 + $0xd8] sm:$0xff] %v387_v27  ;;  %v393_v30 = vld [vmem:[%s6118_s28 + $0x180] sm:$0xff] }
  0x1f   : > { %390 = vst [vmem:[%s6123_s29 + $0xe0] sm:$0xff] %v389_v28  ;;  %392 = vst [vmem:[%s6123_s29 + $0xe8] sm:$0xff] %v391_v29  ;;  %v395_v31 = vld [vmem:[%s6118_s28 + $0x188] sm:$0xff]  ;;  %v397_v32 = vld [vmem:[%s6118_s28 + $0x190] sm:$0xff] }
  0x20   : > { %394 = vst [vmem:[%s6123_s29 + $0xf0] sm:$0xff] %v393_v30  ;;  %396 = vst [vmem:[%s6123_s29 + $0xf8] sm:$0xff] %v395_v31  ;;  %v399_v33 = vld [vmem:[%s6118_s28 + $0x198] sm:$0xff]  ;;  %v401_v34 = vld [vmem:[%s6118_s28 + $0x1a0] sm:$0xff] }
  0x21   : > { %398 = vst [vmem:[%s6123_s29 + $0x100] sm:$0xff] %v397_v32  ;;  %v403_v35 = vld [vmem:[%s6118_s28 + $0x1a8] sm:$0xff]  ;;  %400 = vst [vmem:[%s6123_s29 + $0x108] sm:$0xff] %v399_v33  ;;  %v405_v36 = vld [vmem:[%s6118_s28 + $0x240] sm:$0xff] }
  0x22   : > { %402 = vst [vmem:[%s6123_s29 + $0x110] sm:$0xff] %v401_v34  ;;  %404 = vst [vmem:[%s6123_s29 + $0x118] sm:$0xff] %v403_v35  ;;  %v407_v37 = vld [vmem:[%s6118_s28 + $0x248] sm:$0xff]  ;;  %v409_v38 = vld [vmem:[%s6118_s28 + $0x250] sm:$0xff] }
  0x23   : > { %406 = vst [vmem:[%s6123_s29 + $0x120] sm:$0xff] %v405_v36  ;;  %408 = vst [vmem:[%s6123_s29 + $0x128] sm:$0xff] %v407_v37  ;;  %v411_v39 = vld [vmem:[%s6118_s28 + $0x258] sm:$0xff]  ;;  %v413_v40 = vld [vmem:[%s6118_s28 + $0x260] sm:$0xff] }
  0x24   : > { %410 = vst [vmem:[%s6123_s29 + $0x130] sm:$0xff] %v409_v38  ;;  %v415_v41 = vld [vmem:[%s6118_s28 + $0x268] sm:$0xff]  ;;  %412 = vst [vmem:[%s6123_s29 + $0x138] sm:$0xff] %v411_v39  ;;  %v417_v42 = vld [vmem:[%s6118_s28 + $0x270] sm:$0xff] }
  0x25   : > { %414 = vst [vmem:[%s6123_s29 + $0x140] sm:$0xff] %v413_v40  ;;  %416 = vst [vmem:[%s6123_s29 + $0x148] sm:$0xff] %v415_v41  ;;  %v419_v43 = vld [vmem:[%s6118_s28 + $0x278] sm:$0xff]  ;;  %v421_v44 = vld [vmem:[%s6118_s28 + $0x280] sm:$0xff] }
  0x26   : > { %418 = vst [vmem:[%s6123_s29 + $0x150] sm:$0xff] %v417_v42  ;;  %420 = vst [vmem:[%s6123_s29 + $0x158] sm:$0xff] %v419_v43  ;;  %v423_v45 = vld [vmem:[%s6118_s28 + $0x288] sm:$0xff]  ;;  %v425_v46 = vld [vmem:[%s6118_s28 + $0x290] sm:$0xff] }
  0x27   : > { %422 = vst [vmem:[%s6123_s29 + $0x160] sm:$0xff] %v421_v44  ;;  %v427_v47 = vld [vmem:[%s6118_s28 + $0x298] sm:$0xff]  ;;  %424 = vst [vmem:[%s6123_s29 + $0x168] sm:$0xff] %v423_v45  ;;  %v429_v48 = vld [vmem:[%s6118_s28 + $0x2a0] sm:$0xff] }
  0x28   : > { %426 = vst [vmem:[%s6123_s29 + $0x170] sm:$0xff] %v425_v46  ;;  %428 = vst [vmem:[%s6123_s29 + $0x178] sm:$0xff] %v427_v47  ;;  %v431_v49 = vld [vmem:[%s6118_s28 + $0x2a8] sm:$0xff]  ;;  %v433_v50 = vld [vmem:[%s6118_s28 + $0x2b0] sm:$0xff] }
  0x29   : > { %430 = vst [vmem:[%s6123_s29 + $0x180] sm:$0xff] %v429_v48  ;;  %432 = vst [vmem:[%s6123_s29 + $0x188] sm:$0xff] %v431_v49  ;;  %v435_v51 = vld [vmem:[%s6118_s28 + $0x2b8] sm:$0xff]  ;;  %v437_v52 = vld [vmem:[%s6118_s28 + $0x2c0] sm:$0xff] }
  0x2a   : > { %434 = vst [vmem:[%s6123_s29 + $0x190] sm:$0xff] %v433_v50  ;;  %v439_v53 = vld [vmem:[%s6118_s28 + $0x2c8] sm:$0xff]  ;;  %436 = vst [vmem:[%s6123_s29 + $0x198] sm:$0xff] %v435_v51  ;;  %v441_v54 = vld [vmem:[%s6118_s28 + $0x360] sm:$0xff] }
  0x2b   : > { %438 = vst [vmem:[%s6123_s29 + $0x1a0] sm:$0xff] %v437_v52  ;;  %440 = vst [vmem:[%s6123_s29 + $0x1a8] sm:$0xff] %v439_v53  ;;  %v443_v55 = vld [vmem:[%s6118_s28 + $0x368] sm:$0xff]  ;;  %v445_v56 = vld [vmem:[%s6118_s28 + $0x370] sm:$0xff] }
  0x2c   : > { %442 = vst [vmem:[%s6123_s29 + $0x1b0] sm:$0xff] %v441_v54  ;;  %444 = vst [vmem:[%s6123_s29 + $0x1b8] sm:$0xff] %v443_v55  ;;  %v447_v57 = vld [vmem:[%s6118_s28 + $0x378] sm:$0xff]  ;;  %v449_v58 = vld [vmem:[%s6118_s28 + $0x380] sm:$0xff] }
  0x2d   : > { %446 = vst [vmem:[%s6123_s29 + $0x1c0] sm:$0xff] %v445_v56  ;;  %v451_v59 = vld [vmem:[%s6118_s28 + $0x388] sm:$0xff]  ;;  %448 = vst [vmem:[%s6123_s29 + $0x1c8] sm:$0xff] %v447_v57  ;;  %v453_v60 = vld [vmem:[%s6118_s28 + $0x390] sm:$0xff] }
  0x2e   : > { %450 = vst [vmem:[%s6123_s29 + $0x1d0] sm:$0xff] %v449_v58  ;;  %452 = vst [vmem:[%s6123_s29 + $0x1d8] sm:$0xff] %v451_v59  ;;  %v455_v61 = vld [vmem:[%s6118_s28 + $0x398] sm:$0xff]  ;;  %v457_v62 = vld [vmem:[%s6118_s28 + $0x3a0] sm:$0xff] }
  0x2f   : > { %454 = vst [vmem:[%s6123_s29 + $0x1e0] sm:$0xff] %v453_v60  ;;  %456 = vst [vmem:[%s6123_s29 + $0x1e8] sm:$0xff] %v455_v61  ;;  %v459_v63 = vld [vmem:[%s6118_s28 + $0x3a8] sm:$0xff]  ;;  %v461_v0 = vld [vmem:[%s6118_s28 + $0x3b0] sm:$0xff] }
  0x30   : > { %458 = vst [vmem:[%s6123_s29 + $0x1f0] sm:$0xff] %v457_v62  ;;  %v463_v1 = vld [vmem:[%s6118_s28 + $0x3b8] sm:$0xff]  ;;  %460 = vst [vmem:[%s6123_s29 + $0x1f8] sm:$0xff] %v459_v63  ;;  %v465_v2 = vld [vmem:[%s6118_s28 + $0x3c0] sm:$0xff] }
  0x31   : > { %462 = vst [vmem:[%s6123_s29 + $0x200] sm:$0xff] %v461_v0  ;;  %464 = vst [vmem:[%s6123_s29 + $0x208] sm:$0xff] %v463_v1  ;;  %v467_v3 = vld [vmem:[%s6118_s28 + $0x3c8] sm:$0xff]  ;;  %v469_v4 = vld [vmem:[%s6118_s28 + $0x3d0] sm:$0xff] }
  0x32   : > { %466 = vst [vmem:[%s6123_s29 + $0x210] sm:$0xff] %v465_v2  ;;  %468 = vst [vmem:[%s6123_s29 + $0x218] sm:$0xff] %v467_v3  ;;  %v471_v5 = vld [vmem:[%s6118_s28 + $0x3d8] sm:$0xff]  ;;  %v473_v6 = vld [vmem:[%s6118_s28 + $0x3e0] sm:$0xff] }
  0x33   : > { %470 = vst [vmem:[%s6123_s29 + $0x220] sm:$0xff] %v469_v4  ;;  %v475_v7 = vld [vmem:[%s6118_s28 + $0x3e8] sm:$0xff]  ;;  %472 = vst [vmem:[%s6123_s29 + $0x228] sm:$0xff] %v471_v5 }
  0x34   : > { %474 = vst [vmem:[%s6123_s29 + $0x230] sm:$0xff] %v473_v6  ;;  %476 = vst [vmem:[%s6123_s29 + $0x238] sm:$0xff] %v475_v7 }
  0x35 PF: > { %p4857_p5 = scmp.ge.s32.totalorder %s6056_s17, 1  ;;  %p481_p6 = scmp.lt.s32.totalorder %s6056_s17, 3 }
  0x37   : > { %p482_p7 = pnand %p4857_p5, %p481_p6 }
  0x39   : > { %485 = sbr.rel (%p482_p7) target bundleno = 753 (0x2f1), region = 70 }
  0x3e   : > { %v4932_v8 = vld [vmem:[%s7288_s1 + $0x2] sm:$0x3]  ;;  %vm1157_vm0 = vcmask 1041408   ;;  %v1112_v9 = vld [vmem:[%s7288_s1] sm:$0x3]  ;;  %s488_s8 = sand.u32 1, %s6048_s15  }
  0x3f   : > { %5884 = vmatprep.subr.msk.bf16.mxu0 %vm1157_vm0, %v4932_v8  ;;  %v1159_v10 = vsel %vm1157_vm0, %v4932_v8, 0  ;;  %5885 = vmatprep.subr.msk.bf16.mxu1 %vm1157_vm0, %v1112_v9  ;;  %v1259_v11 = vsel %vm1157_vm0, %v1112_v9, 0  ;;  %s5896_s9 = smul.u32 576, %s488_s8  ;;  %v6282_v12 = vld [vmem:[%s7288_s1 + $0x4] sm:$0x3]  ;;  %vm951_vm1 = vcmask 27648  }
  0x40   : > { %5569 = vmatpush3.bf16.msra.mxu0 %v1159_v10  ;;  %5579 = vmatpush3.bf16.msra.mxu1 %v1259_v11  ;;  %v6287_v13 = vld [vmem:[%s7288_s1 + $0x6] sm:$0x3]  ;;  %vm1144_vm2 = vcmask 31744   ;;  %v1484_v1 = vsel %vm1157_vm0, %v6282_v12, 0  ;;  %vm953_vm3 = vcmask 24576   ;;  %vm2591_vm9 = vcmask 1040384  }
  0x41   : > { %5886 = vmatprep.subr.msk.bf16.mxu0 %vm1157_vm0, %v6282_v12  ;;  %5887 = vmatprep.subr.msk.bf16.mxu1 %vm1157_vm0, %v6287_v13  ;;  %s6293_s14 = scalar_lea.vmem [#allocation4], %s5896_s9  ;;  %v1603_v2 = vsel %vm1157_vm0, %v6287_v13, 0  ;;  %vm954_vm4 = vsmask.f32 256  ;;  %vm1342_vm6 = vsmask.f32 3328 }
  0x42   : > { %v537_v14 = vld [vmem:[%s6293_s14 + $0x90] sm:$0xff]  ;;  %v539_v15 = vld [vmem:[%s6293_s14 + $0xa0] sm:$0xff]  ;;  %v520_v5 = vld [vmem:[%s6293_s14 + $0x8] sm:$0x1]  ;;  %vm1343_vm7 = vsmask.f32 7440 }
  0x43   : > { %v609_v16 = vmax.f32 %v537_v14, 0.0  ;;  %v611_v17 = vmax.f32 %v539_v15, 0.0  ;;  %v519_v18 = vld [vmem:[%s6293_s14] sm:$0xff]  ;;  %v521_v19 = vld [vmem:[%s6293_s14 + $0x10] sm:$0xff]  ;;  %v522_v6 = vld [vmem:[%s6293_s14 + $0x18] sm:$0x1] }
  0x44   : > { %v591_v20 = vmax.f32 %v519_v18, 0.0  ;;  %v593_v21 = vmax.f32 %v521_v19, 0.0  ;;  %v541_v22 = vld [vmem:[%s6293_s14 + $0xb0] sm:$0xff]  ;;  %v543_v23 = vld [vmem:[%s6293_s14 + $0xc0] sm:$0xff]  ;;  %v538_v8 = vld [vmem:[%s6293_s14 + $0x98] sm:$0x1] }
  0x45   : > { %v523_v24 = vld [vmem:[%s6293_s14 + $0x20] sm:$0xff]  ;;  %v5325_v25 = vpack.c.bf16 %v609_v16, %v609_v16  ;;  %v5327_v26 = vpack.c.bf16 %v611_v17, %v611_v17  ;;  %v613_v27 = vmax.f32 %v541_v22, 0.0  ;;  %v525_v28 = vld [vmem:[%s6293_s14 + $0x30] sm:$0xff]  ;;  %v615_v33 = vmax.f32 %v543_v23, 0.0  ;;  %v540_v9 = vld [vmem:[%s6293_s14 + $0xa8] sm:$0x1] }
  0x46   : > { %v545_v29 = vld [vmem:[%s6293_s14 + $0xd0] sm:$0xff]  ;;  %v547_v30 = vld [vmem:[%s6293_s14 + $0xe0] sm:$0xff]  ;;  %v5307_v31 = vpack.c.bf16 %v591_v20, %v591_v20  ;;  %v5309_v32 = vpack.c.bf16 %v593_v21, %v593_v21  ;;  %v595_v38 = vmax.f32 %v523_v24, 0.0  ;;  %v597_v39 = vmax.f32 %v525_v28, 0.0  ;;  %v542_v10 = vld [vmem:[%s6293_s14 + $0xb8] sm:$0x1] }
  0x47   : > { %v527_v34 = vld [vmem:[%s6293_s14 + $0x40] sm:$0xff]  ;;  %v529_v35 = vld [vmem:[%s6293_s14 + $0x50] sm:$0xff]  ;;  %991 = vst.msk [vmem:[#allocation2 + $0x48] sm:$0xf] %vm951_vm1, %v5325_v25  ;;  %995 = vst.msk [vmem:[#allocation2 + $0x50] sm:$0xf] %vm951_vm1, %v5327_v26  ;;  %v5329_v37 = vpack.c.bf16 %v613_v27, %v613_v27  ;;  %v5331_v42 = vpack.c.bf16 %v615_v33, %v615_v33 }
  0x48   : > { %v549_v36 = vld [vmem:[%s6293_s14 + $0xf0] sm:$0xff]  ;;  %v617_v40 = vmax.f32 %v545_v29, 0.0  ;;  %v551_v41 = vld [vmem:[%s6293_s14 + $0x100] sm:$0xff]  ;;  %952 = vst.msk [vmem:[#allocation2] sm:$0xf] %vm951_vm1, %v5307_v31  ;;  %v619_v43 = vmax.f32 %v547_v30, 0.0  ;;  %v5311_v48 = vpack.c.bf16 %v595_v38, %v595_v38  ;;  %v5313_v49 = vpack.c.bf16 %v597_v39, %v597_v39  ;;  %vm6362_vm5 = vmand %vm953_vm3, %vm954_vm4 }
  0x49   : > { %959 = vst.msk [vmem:[#allocation2 + $0x8] sm:$0xf] %vm951_vm1, %v5309_v32  ;;  %v599_v44 = vmax.f32 %v527_v34, 0.0  ;;  %v601_v45 = vmax.f32 %v529_v35, 0.0  ;;  %v531_v46 = vld [vmem:[%s6293_s14 + $0x60] sm:$0xff]  ;;  %v533_v47 = vld [vmem:[%s6293_s14 + $0x70] sm:$0xff]  ;;  %vm6424_vm8 = vmor %vm1342_vm6, %vm1343_vm7 }
  0x4a   : > { %999 = vst.msk [vmem:[#allocation2 + $0x58] sm:$0xf] %vm951_vm1, %v5329_v37  ;;  %v5333_v50 = vpack.c.bf16 %v617_v40, %v617_v40  ;;  %v621_v51 = vmax.f32 %v549_v36, 0.0  ;;  %1003 = vst.msk [vmem:[#allocation2 + $0x60] sm:$0xf] %vm951_vm1, %v5331_v42  ;;  %v5335_v52 = vpack.c.bf16 %v619_v43, %v619_v43  ;;  %v623_v55 = vmax.f32 %v551_v41, 0.0 }
  0x4b   : > { %v5315_v53 = vpack.c.bf16 %v599_v44, %v599_v44  ;;  %v5317_v54 = vpack.c.bf16 %v601_v45, %v601_v45  ;;  %963 = vst.msk [vmem:[#allocation2 + $0x10] sm:$0xf] %vm951_vm1, %v5311_v48  ;;  %967 = vst.msk [vmem:[#allocation2 + $0x18] sm:$0xf] %vm951_vm1, %v5313_v49  ;;  %v603_v57 = vmax.f32 %v531_v46, 0.0  ;;  %v605_v58 = vmax.f32 %v533_v47, 0.0 }
  0x4c   : > { %1007 = vst.msk [vmem:[#allocation2 + $0x68] sm:$0xf] %vm951_vm1, %v5333_v50  ;;  %v5337_v56 = vpack.c.bf16 %v621_v51, %v621_v51  ;;  %1011 = vst.msk [vmem:[#allocation2 + $0x70] sm:$0xf] %vm951_vm1, %v5335_v52  ;;  %v5339_v59 = vpack.c.bf16 %v623_v55, %v623_v55  ;;  %v544_v11 = vld [vmem:[%s6293_s14 + $0xc8] sm:$0x1] }
  0x4d   : > { %971 = vst.msk [vmem:[#allocation2 + $0x20] sm:$0xf] %vm951_vm1, %v5315_v53  ;;  %975 = vst.msk [vmem:[#allocation2 + $0x28] sm:$0xf] %vm951_vm1, %v5317_v54  ;;  %v5319_v60 = vpack.c.bf16 %v603_v57, %v603_v57  ;;  %v5321_v61 = vpack.c.bf16 %v605_v58, %v605_v58  ;;  %v546_v12 = vld [vmem:[%s6293_s14 + $0xd8] sm:$0x1] }
  0x4e   : > { %1015 = vst.msk [vmem:[#allocation2 + $0x78] sm:$0xf] %vm951_vm1, %v5337_v56  ;;  %v5922_v62 = vld [vmem:[#allocation2 + $0x48] ss:$8 sps:$4 sm:$0xff]   ;;  %1019 = vst.msk [vmem:[#allocation2 + $0x80] sm:$0xf] %vm951_vm1, %v5339_v59 }
  0x4f   : > { %979 = vst.msk [vmem:[#allocation2 + $0x30] sm:$0xf] %vm951_vm1, %v5319_v60  ;;  %983 = vst.msk [vmem:[#allocation2 + $0x38] sm:$0xf] %vm951_vm1, %v5321_v61  ;;  %5570 = vmatprep.mubr.msk.bf16.mxu0 %vm1144_vm2, %v5922_v62  ;;  %v548_v13 = vld [vmem:[%s6293_s14 + $0xe8] sm:$0x1] }
  0x50   : > { %v5923_v63 = vld [vmem:[#allocation2] ss:$8 sps:$4 sm:$0xff]   ;;  %v552_v15 = vld [vmem:[%s6293_s14 + $0x108] sm:$0x1]  ;;  %v592_v27 = vmax.f32 %v520_v5, 0.0  ;;  %v594_v28 = vmax.f32 %v522_v6, 0.0  ;;  %vm6725_vm12 = vmand %vm2591_vm9, %vm954_vm4 }
  0x51   : > { %5580 = vmatprep.mubr.msk.bf16.mxu1 %vm1144_vm2, %v5923_v63  ;;  %v5924_v0 = vld [vmem:[#allocation2 + $0x58] ss:$8 sps:$4 sm:$0xff]   ;;  %v550_v14 = vld [vmem:[%s6293_s14 + $0xf8] sm:$0x1]  ;;  %v610_v30 = vmax.f32 %v538_v8, 0.0  ;;  %v612_v31 = vmax.f32 %v540_v9, 0.0 }
  0x52   : > { %v5925_v3 = vld [vmem:[#allocation2 + $0x10] ss:$8 sps:$4 sm:$0xff]   ;;  %5571 = vmatmul.mubr.msk.bf16.vlgmr.msra.gmra.mxu0 %vm1144_vm2, %v5924_v0  ;;  %v554_v16 = vld [vmem:[%s6293_s14 + $0x118] sm:$0x1]  ;;  %v614_v32 = vmax.f32 %v542_v10, 0.0  ;;  %v616_v33 = vmax.f32 %v544_v11, 0.0  ;;  %v5308_v50 = vpack.c.bf16 %v592_v27, %v592_v27  ;;  %v5310_v52 = vpack.c.bf16 %v594_v28, %v594_v28 }
  0x53   : > { %v5926_v4 = vld [vmem:[#allocation2 + $0x68] ss:$8 sps:$4 sm:$0xff]   ;;  %5581 = vmatmul.mubr.msk.bf16.vlgmr.msra.gmra.mxu1 %vm1144_vm2, %v5925_v3  ;;  %5589 = vmatpush3.bf16.msra.mxu0 %v1484_v1  ;;  %v572_v17 = vld [vmem:[%s6293_s14 + $0x1a8] sm:$0x1]  ;;  %v618_v35 = vmax.f32 %v546_v12, 0.0  ;;  %v620_v36 = vmax.f32 %v548_v13, 0.0  ;;  %v5326_v53 = vpack.c.bf16 %v610_v30, %v610_v30  ;;  %v5328_v54 = vpack.c.bf16 %v612_v31, %v612_v31 }
  0x54   : > { %v5927_v7 = vld [vmem:[#allocation2 + $0x20] ss:$8 sps:$4 sm:$0xff]   ;;  %5574 = vmatprep.mubr.msk.bf16.mxu0 %vm1144_vm2, %v5926_v4  ;;  %5599 = vmatpush3.bf16.msra.mxu1 %v1603_v2  ;;  %v576_v19 = vld [vmem:[%s6293_s14 + $0x1c8] sm:$0x1]  ;;  %v622_v37 = vmax.f32 %v550_v14, 0.0  ;;  %v624_v38 = vmax.f32 %v552_v15, 0.0  ;;  %v5330_v55 = vpack.c.bf16 %v614_v32, %v614_v32  ;;  %v5332_v59 = vpack.c.bf16 %v616_v33, %v616_v33 }
  0x55   : > { %5584 = vmatprep.mubr.msk.bf16.mxu1 %vm1144_vm2, %v5927_v7  ;;  %v574_v18 = vld [vmem:[%s6293_s14 + $0x1b8] sm:$0x1]  ;;  %v5928_v20 = vld [vmem:[#allocation2 + $0x78] ss:$8 sps:$4 sm:$0xff]   ;;  %v626_v39 = vmax.f32 %v554_v16, 0.0  ;;  %v644_v40 = vmax.f32 %v572_v17, 0.0  ;;  %v5334_v60 = vpack.c.bf16 %v618_v35, %v618_v35  ;;  %v5336_v61 = vpack.c.bf16 %v620_v36, %v620_v36 }
  0x56   : > { %v5929_v21 = vld [vmem:[#allocation2 + $0x30] ss:$8 sps:$4 sm:$0xff]   ;;  %v578_v22 = vld [vmem:[%s6293_s14 + $0x1d8] sm:$0x1]  ;;  %v646_v41 = vmax.f32 %v574_v18, 0.0  ;;  %v648_v42 = vmax.f32 %v576_v19, 0.0  ;;  %v5338_v62 = vpack.c.bf16 %v622_v37, %v622_v37  ;;  %v5340_v2 = vpack.c.bf16 %v624_v38, %v624_v38 }
  0x57   : > { %v580_v23 = vld [vmem:[%s6293_s14 + $0x1e8] sm:$0x1]  ;;  %v582_v24 = vld [vmem:[%s6293_s14 + $0x1f8] sm:$0x1]  ;;  %v650_v43 = vmax.f32 %v578_v22, 0.0  ;;  %v5342_v3 = vpack.c.bf16 %v626_v39, %v626_v39  ;;  %v5360_v4 = vpack.c.bf16 %v644_v40, %v644_v40  ;;  %vm2601_vm10 = vcmask 1044480  }
  0x58   : > { %v584_v25 = vld [vmem:[%s6293_s14 + $0x208] sm:$0x1]  ;;  %v586_v26 = vld [vmem:[%s6293_s14 + $0x218] sm:$0x1]  ;;  %v652_v44 = vmax.f32 %v580_v23, 0.0  ;;  %v654_v45 = vmax.f32 %v582_v24, 0.0  ;;  %v5362_v5 = vpack.c.bf16 %v646_v41, %v646_v41  ;;  %v5364_v9 = vpack.c.bf16 %v648_v42, %v648_v42 }
  0x59   : > { %v588_v29 = vld [vmem:[%s6293_s14 + $0x228] sm:$0x1]  ;;  %v590_v34 = vld [vmem:[%s6293_s14 + $0x238] sm:$0x1]  ;;  %v656_v46 = vmax.f32 %v584_v25, 0.0  ;;  %v658_v47 = vmax.f32 %v586_v26, 0.0  ;;  %v5366_v10 = vpack.c.bf16 %v650_v43, %v650_v43 }
  0x5a   : > { %5575 = vmatmul.mubr.msk.bf16.gmra.mxu0 %vm1144_vm2, %v5928_v20  ;;  %v660_v48 = vmax.f32 %v588_v29, 0.0  ;;  %v662_v49 = vmax.f32 %v590_v34, 0.0  ;;  %v956_v56 = vld [vmem:[#allocation2 + $0x4] sm:$0x1]  ;;  %v960_v57 = vld [vmem:[#allocation2 + $0xc] sm:$0x1]  ;;  %v5368_v11 = vpack.c.bf16 %v652_v44, %v652_v44  ;;  %v5370_v12 = vpack.c.bf16 %v654_v45, %v654_v45 }
  0x5b   : > { %5585 = vmatmul.mubr.msk.bf16.gmra.mxu1 %vm1144_vm2, %v5929_v21  ;;  %v992_v58 = vld [vmem:[#allocation2 + $0x4c] sm:$0x1]  ;;  %v996_v63 = vld [vmem:[#allocation2 + $0x54] sm:$0x1]  ;;  %v1000_v0 = vld [vmem:[#allocation2 + $0x5c] sm:$0x1]  ;;  %v5372_v16 = vpack.c.bf16 %v656_v46, %v656_v46  ;;  %v5374_v17 = vpack.c.bf16 %v658_v47, %v658_v47  ;;  %v957_v23 = vsel %vm6362_vm5, %v5308_v50, %v956_v56  ;;  %v961_v24 = vsel %vm6362_vm5, %v5310_v52, %v960_v57 }
  0x5c   : > { %v1004_v1 = vld [vmem:[#allocation2 + $0x64] sm:$0x1]  ;;  %v1008_v6 = vld [vmem:[#allocation2 + $0x6c] sm:$0x1]  ;;  %v1012_v7 = vld [vmem:[#allocation2 + $0x74] sm:$0x1]  ;;  %v5376_v18 = vpack.c.bf16 %v660_v48, %v660_v48  ;;  %v6366_v19 = vpack.c.bf16 %v662_v49, %v662_v49  ;;  %v993_v25 = vsel %vm6362_vm5, %v5326_v53, %v992_v58  ;;  %v997_v26 = vsel %vm6362_vm5, %v5328_v54, %v996_v63 }
  0x5d   : > { %v1016_v8 = vld [vmem:[#allocation2 + $0x7c] sm:$0x1]  ;;  %v1020_v13 = vld [vmem:[#allocation2 + $0x84] sm:$0x1]  ;;  %v1024_v14 = vld [vmem:[#allocation2 + $0x8c] sm:$0x1]  ;;  %v1001_v30 = vsel %vm6362_vm5, %v5330_v55, %v1000_v0  ;;  %v1005_v31 = vsel %vm6362_vm5, %v5332_v59, %v1004_v1  ;;  %v1009_v32 = vsel %vm6362_vm5, %v5334_v60, %v1008_v6  ;;  %v1013_v33 = vsel %vm6362_vm5, %v5336_v61, %v1012_v7 }
  0x5e   : > { %v1060_v15 = vld [vmem:[#allocation2 + $0xd4] sm:$0x1]  ;;  %v1064_v20 = vld [vmem:[#allocation2 + $0xdc] sm:$0x1]  ;;  %v1068_v21 = vld [vmem:[#allocation2 + $0xe4] sm:$0x1]  ;;  %v1017_v37 = vsel %vm6362_vm5, %v5338_v62, %v1016_v8  ;;  %v1021_v38 = vsel %vm6362_vm5, %v5340_v2, %v1020_v13  ;;  %v1025_v39 = vsel %vm6362_vm5, %v5342_v3, %v1024_v14 }
  0x5f   : > { %v1072_v22 = vld [vmem:[#allocation2 + $0xec] sm:$0x1]  ;;  %v1076_v27 = vld [vmem:[#allocation2 + $0xf4] sm:$0x1]  ;;  %v1080_v28 = vld [vmem:[#allocation2 + $0xfc] sm:$0x1]  ;;  %v1061_v40 = vsel %vm6362_vm5, %v5360_v4, %v1060_v15  ;;  %v1065_v43 = vsel %vm6362_vm5, %v5362_v5, %v1064_v20  ;;  %v1069_v44 = vsel %vm6362_vm5, %v5364_v9, %v1068_v21 }
  0x60   : > { %v1084_v29 = vld [vmem:[#allocation2 + $0x104] sm:$0x1]  ;;  %958 = vst [vmem:[#allocation2 + $0x4] sm:$0x1] %v957_v23  ;;  %962 = vst [vmem:[#allocation2 + $0xc] sm:$0x1] %v961_v24  ;;  %v1073_v45 = vsel %vm6362_vm5, %v5366_v10, %v1072_v22  ;;  %v1077_v46 = vsel %vm6362_vm5, %v5368_v11, %v1076_v27  ;;  %v1081_v50 = vsel %vm6362_vm5, %v5370_v12, %v1080_v28 }
  0x61   : > { %994 = vst [vmem:[#allocation2 + $0x4c] sm:$0x1] %v993_v25  ;;  %998 = vst [vmem:[#allocation2 + $0x54] sm:$0x1] %v997_v26  ;;  %v1088_v34 = vld [vmem:[#allocation2 + $0x10c] sm:$0x1]  ;;  %v1085_v52 = vsel %vm6362_vm5, %v5372_v16, %v1084_v29 }
  0x62   : > { %v1092_v35 = vld [vmem:[#allocation2 + $0x114] sm:$0x1]  ;;  %v6387_v36 = vld [vmem:[%s7288_s1 + $0x8] sm:$0x3]  ;;  %1002 = vst [vmem:[#allocation2 + $0x5c] sm:$0x1] %v1001_v30  ;;  %v1089_v53 = vsel %vm6362_vm5, %v5374_v17, %v1088_v34 }
  0x63   : > { %1006 = vst [vmem:[#allocation2 + $0x64] sm:$0x1] %v1005_v31  ;;  %1010 = vst [vmem:[#allocation2 + $0x6c] sm:$0x1] %v1009_v32  ;;  %v1096_v41 = vld [vmem:[#allocation2 + $0x11c] sm:$0x1]  ;;  %5888 = vmatprep.subr.msk.bf16.mxu0 %vm1157_vm0, %v6387_v36  ;;  %v1093_v54 = vsel %vm6362_vm5, %v5376_v18, %v1092_v35 }
  0x64   : > { %1014 = vst [vmem:[#allocation2 + $0x74] sm:$0x1] %v1013_v33  ;;  %v1326_v42 = vld [vmem:[#allocation2] sm:$0xf]  ;;  %1018 = vst [vmem:[#allocation2 + $0x7c] sm:$0x1] %v1017_v37  ;;  %v1097_v56 = vsel %vm6362_vm5, %v6366_v19, %v1096_v41 }
  0x65   : > { %1022 = vst [vmem:[#allocation2 + $0x84] sm:$0x1] %v1021_v38  ;;  %1026 = vst [vmem:[#allocation2 + $0x8c] sm:$0x1] %v1025_v39  ;;  %v1328_v47 = vld [vmem:[#allocation2 + $0x8] sm:$0xf] }
  0x66   : > { %1062 = vst [vmem:[#allocation2 + $0xd4] sm:$0x1] %v1061_v40  ;;  %v524_v48 = vld [vmem:[%s6293_s14 + $0x28] sm:$0x1]  ;;  %v526_v49 = vld [vmem:[%s6293_s14 + $0x38] sm:$0x1] }
  0x67   : > { %1066 = vst [vmem:[#allocation2 + $0xdc] sm:$0x1] %v1065_v43  ;;  %1070 = vst [vmem:[#allocation2 + $0xe4] sm:$0x1] %v1069_v44  ;;  %v1330_v55 = vld [vmem:[#allocation2 + $0x10] sm:$0xf] }
  0x68   : > { %1074 = vst [vmem:[#allocation2 + $0xec] sm:$0x1] %v1073_v45  ;;  %1078 = vst [vmem:[#allocation2 + $0xf4] sm:$0x1] %v1077_v46  ;;  %v1346_v57 = vshrl.u32 %v1326_v42, 16  ;;  %v1349_v58 = vshll.u32 %v1326_v42, 16 }
  0x69   : > { %1082 = vst [vmem:[#allocation2 + $0xfc] sm:$0x1] %v1081_v50  ;;  %1086 = vst [vmem:[#allocation2 + $0x104] sm:$0x1] %v1085_v52  ;;  %v964_v59 = vld [vmem:[#allocation2 + $0x14] sm:$0x1] }
  0x6a   : > { %1090 = vst [vmem:[#allocation2 + $0x10c] sm:$0x1] %v1089_v53  ;;  %1094 = vst [vmem:[#allocation2 + $0x114] sm:$0x1] %v1093_v54  ;;  %v1360_v60 = vshrl.u32 %v1328_v47, 16  ;;  %v1363_v61 = vshll.u32 %v1328_v47, 16 }
  0x6b   : > { %1098 = vst [vmem:[#allocation2 + $0x11c] sm:$0x1] %v1097_v56  ;;  %v596_v62 = vmax.f32 %v524_v48, 0.0  ;;  %v598_v63 = vmax.f32 %v526_v49, 0.0  ;;  %v968_v0 = vld [vmem:[#allocation2 + $0x1c] sm:$0x1] }
  0x6c   : > { %v1348_v1 = vrot.slane %v1346_v57, 4  ;;  %v1351_v2 = vrot.slane %v1349_v58, 5  ;;  %v1332_v3 = vld [vmem:[#allocation2 + $0x18] sm:$0xf]  ;;  %v1374_v4 = vshrl.u32 %v1330_v55, 16  ;;  %v1377_v5 = vshll.u32 %v1330_v55, 16 }
  0x6d   : > { %v1327_v6 = vld [vmem:[#allocation2 + $0x4] sm:$0x1]  ;;  %v1329_v7 = vld [vmem:[#allocation2 + $0xc] sm:$0x1]  ;;  %v1362_v8 = vrot.slane %v1360_v60, 4  ;;  %v1365_v9 = vrot.slane %v1363_v61, 5  ;;  %v5312_v10 = vpack.c.bf16 %v596_v62, %v596_v62  ;;  %v5314_v11 = vpack.c.bf16 %v598_v63, %v598_v63 }
  0x6e   : > { %v1352_v12 = vor.u32 %v1351_v2, %v1348_v1  ;;  %v1355_v13 = vshll.u32 %v1327_v6, 16  ;;  %v1369_v14 = vshll.u32 %v1329_v7, 16  ;;  %v1376_v15 = vrot.slane %v1374_v4, 4  ;;  %v555_v16 = vld [vmem:[%s6293_s14 + $0x120] sm:$0xff]  ;;  %v557_v17 = vld [vmem:[%s6293_s14 + $0x130] sm:$0xff]  ;;  %p7226_p8 = scmp.lt.s32.totalorder %s4852_s18, 1 }
  0x6f   : > { %v1366_v19 = vor.u32 %v1365_v9, %v1362_v8  ;;  %v965_v20 = vsel %vm6362_vm5, %v5312_v10, %v964_v59  ;;  %v969_v21 = vsel %vm6362_vm5, %v5314_v11, %v968_v0  ;;  %v1379_v22 = vrot.slane %v1377_v5, 5  ;;  %v559_v23 = vld [vmem:[%s6293_s14 + $0x140] sm:$0xff]  ;;  %v561_v24 = vld [vmem:[%s6293_s14 + $0x150] sm:$0xff]  ;;  %v528_v29 = vld [vmem:[%s6293_s14 + $0x48] sm:$0x1] }
  0x70   : > { %v1353_v25 = vrot.slane %v1352_v12, 4  ;;  %v1357_v26 = vrot.slane %v1355_v13, 5  ;;  %v1371_v27 = vrot.slane %v1369_v14, 5  ;;  %966 = vst [vmem:[#allocation2 + $0x14] sm:$0x1] %v965_v20  ;;  %v1388_v28 = vshrl.u32 %v1332_v3, 16 }
  0x71   : > { %970 = vst [vmem:[#allocation2 + $0x1c] sm:$0x1] %v969_v21  ;;  %v1367_v30 = vrot.slane %v1366_v19, 4  ;;  %v1380_v31 = vor.u32 %v1379_v22, %v1376_v15  ;;  %v1391_v32 = vshll.u32 %v1332_v3, 16  ;;  %v530_v33 = vld [vmem:[%s6293_s14 + $0x58] sm:$0x1] }
  0x72   : > { %v1334_v34 = vld [vmem:[#allocation2 + $0x20] sm:$0xf]  ;;  %v1358_v35 = vsel %vm6424_vm8, %v1353_v25, %v1357_v26  ;;  %v1390_v37 = vrot.slane %v1388_v28, 4  ;;  %v627_v38 = vmax.f32 %v555_v16, 0.0  ;;  %v629_v39 = vmax.f32 %v557_v17, 0.0  ;;  %s7335_s18 = smov (!%p7226_p8, %s4852_s18), 1 }
  0x73   : > { %v6441_v40 = vld [vmem:[%s7288_s1 + $0xa] sm:$0x3]  ;;  %v1372_v41 = vsel %vm6424_vm8, %v1367_v30, %v1371_v27  ;;  %v1381_v42 = vrot.slane %v1380_v31, 4  ;;  %v1393_v43 = vrot.slane %v1391_v32, 5  ;;  %v631_v44 = vmax.f32 %v559_v23, 0.0  ;;  %v565_v30 = vld [vmem:[%s6293_s14 + $0x170] sm:$0xff] }
  0x74   : > { %v1336_v45 = vld [vmem:[#allocation2 + $0x28] sm:$0xf]  ;;  %5889 = vmatprep.subr.msk.bf16.mxu1 %vm1157_vm0, %v6441_v40  ;;  %v4950_v46 = vcombine.low %v1358_v35, %v1372_v41  ;;  %v5343_v47 = vpack.c.bf16 %v627_v38, %v627_v38  ;;  %v5345_v48 = vpack.c.bf16 %v629_v39, %v629_v39  ;;  %v633_v49 = vmax.f32 %v561_v24, 0.0  ;;  %v972_v50 = vld [vmem:[#allocation2 + $0x24] sm:$0x1]  ;;  %v563_v24 = vld [vmem:[%s6293_s14 + $0x160] sm:$0xff] }
  0x75   : > { %v1394_v52 = vor.u32 %v1393_v43, %v1390_v37  ;;  %v5347_v53 = vpack.c.bf16 %v631_v44, %v631_v44  ;;  %v600_v54 = vmax.f32 %v528_v29, 0.0  ;;  %v602_v55 = vmax.f32 %v530_v33, 0.0  ;;  %v976_v56 = vld [vmem:[#allocation2 + $0x2c] sm:$0x1]  ;;  %v532_v57 = vld [vmem:[%s6293_s14 + $0x68] sm:$0x1] }
  0x76   : > { %5590 = vmatprep.mubr.msk.bf16.mxu0 %vm1144_vm2, %v4950_v46  ;;  %1027 = vst.msk [vmem:[#allocation2 + $0x90] sm:$0xf] %vm951_vm1, %v5343_v47  ;;  %1031 = vst.msk [vmem:[#allocation2 + $0x98] sm:$0xf] %vm951_vm1, %v5345_v48  ;;  %v5349_v58 = vpack.c.bf16 %v633_v49, %v633_v49  ;;  %v1402_v59 = vshrl.u32 %v1334_v34, 16  ;;  %v1405_v60 = vshll.u32 %v1334_v34, 16 }
  0x77   : > { %v1416_v61 = vshrl.u32 %v1336_v45, 16  ;;  %v534_v62 = vld [vmem:[%s6293_s14 + $0x78] sm:$0x1]  ;;  %v1331_v63 = vld [vmem:[#allocation2 + $0x14] sm:$0x1]  ;;  %v1395_v1 = vrot.slane %v1394_v52, 4  ;;  %v5316_v2 = vpack.c.bf16 %v600_v54, %v600_v54  ;;  %v5318_v3 = vpack.c.bf16 %v602_v55, %v602_v55 }
  0x78   : > { %v1333_v0 = vld [vmem:[#allocation2 + $0x1c] sm:$0x1]  ;;  %1035 = vst.msk [vmem:[#allocation2 + $0xa0] sm:$0xf] %vm951_vm1, %v5347_v53  ;;  %v1419_v4 = vshll.u32 %v1336_v45, 16  ;;  %v1383_v5 = vshll.u32 %v1331_v63, 16 }
  0x79   : > { %v1397_v6 = vshll.u32 %v1333_v0, 16  ;;  %1039 = vst.msk [vmem:[#allocation2 + $0xa8] sm:$0xf] %vm951_vm1, %v5349_v58  ;;  %v1404_v7 = vrot.slane %v1402_v59, 4  ;;  %v1407_v8 = vrot.slane %v1405_v60, 5  ;;  %v973_v10 = vsel %vm6362_vm5, %v5316_v2, %v972_v50  ;;  %v567_v31 = vld [vmem:[%s6293_s14 + $0x180] sm:$0xff] }
  0x7a   : > { %v1338_v9 = vld [vmem:[#allocation2 + $0x30] sm:$0xf]  ;;  %v977_v11 = vsel %vm6362_vm5, %v5318_v3, %v976_v56  ;;  %v1418_v12 = vrot.slane %v1416_v61, 4  ;;  %v1385_v13 = vrot.slane %v1383_v5, 5  ;;  %974 = vst [vmem:[#allocation2 + $0x24] sm:$0x1] %v973_v10 }
  0x7b   : > { %v1399_v14 = vrot.slane %v1397_v6, 5  ;;  %978 = vst [vmem:[#allocation2 + $0x2c] sm:$0x1] %v977_v11  ;;  %v1421_v15 = vrot.slane %v1419_v4, 5  ;;  %v604_v16 = vmax.f32 %v532_v57, 0.0  ;;  %v1722_v19 = vsel %vm1157_vm0, %v6387_v36, 0 }
  0x7c   : > { %v980_v17 = vld [vmem:[#allocation2 + $0x34] sm:$0x1]  ;;  %v606_v20 = vmax.f32 %v534_v62, 0.0  ;;  %v984_v21 = vld [vmem:[#allocation2 + $0x3c] sm:$0x1]  ;;  %v1430_v22 = vshrl.u32 %v1338_v9, 16  ;;  %v1386_v25 = vsel %vm6424_vm8, %v1381_v42, %v1385_v13  ;;  %v1408_v27 = vor.u32 %v1407_v8, %v1404_v7 }
  0x7d   : > { %v1433_v23 = vshll.u32 %v1338_v9, 16  ;;  %v1400_v26 = vsel %vm6424_vm8, %v1395_v1, %v1399_v14  ;;  %v5320_v28 = vpack.c.bf16 %v604_v16, %v604_v16  ;;  %v1340_v29 = vld [vmem:[#allocation2 + $0x38] sm:$0xf]  ;;  %v1422_v36 = vor.u32 %v1421_v15, %v1418_v12  ;;  %v6472_v39 = vld [vmem:[%s7288_s1 + $0xc] sm:$0x3]  ;;  %v569_v48 = vld [vmem:[%s6293_s14 + $0x190] sm:$0xff] }
  0x7e   : > { %v4951_v32 = vcombine.low %v1386_v25, %v1400_v26  ;;  %v5930_v33 = vld [vmem:[#allocation2 + $0x90] ss:$8 sps:$4 sm:$0xff]   ;;  %v5322_v34 = vpack.c.bf16 %v606_v20, %v606_v20  ;;  %v1432_v37 = vrot.slane %v1430_v22, 4  ;;  %v1444_v43 = vshrl.u32 %v1340_v29, 16  ;;  %v573_v50 = vld [vmem:[%s6293_s14 + $0x1b0] sm:$0xff]  ;;  %s5306_s17 = sshll.u32 %s7335_s18, 5 }
  0x7f   : > { %v981_v35 = vsel %vm6362_vm5, %v5320_v28, %v980_v17  ;;  %v1435_v38 = vrot.slane %v1433_v23, 5  ;;  %5600 = vmatprep.mubr.msk.bf16.mxu1 %vm1144_vm2, %v5930_v33  ;;  %v1447_v44 = vshll.u32 %v1340_v29, 16  ;;  %v1409_v45 = vrot.slane %v1408_v27, 4  ;;  %v575_v61 = vld [vmem:[%s6293_s14 + $0x1c0] sm:$0xff]  ;;  %v577_v62 = vld [vmem:[%s6293_s14 + $0x1d0] sm:$0xff]  ;;  %s7265_s5 = scalar_lea.vmem %s7291_s4, %s5306_s17 }
  0x80   : > { %5591 = vmatmul.mubr.msk.bf16.vlgmr.msra.gmra.mxu0 %vm1144_vm2, %v4951_v32  ;;  %v5931_v41 = vld [vmem:[#allocation2 + $0xa0] ss:$8 sps:$4 sm:$0xff]   ;;  %982 = vst [vmem:[#allocation2 + $0x34] sm:$0x1] %v981_v35  ;;  %v985_v42 = vsel %vm6362_vm5, %v5322_v34, %v984_v21  ;;  %v635_v46 = vmax.f32 %v563_v24, 0.0  ;;  %v637_v47 = vmax.f32 %v565_v30, 0.0 }
  0x81   : > { %5609 = vmatpush3.bf16.msra.mxu0 %v1722_v19  ;;  %986 = vst [vmem:[#allocation2 + $0x3c] sm:$0x1] %v985_v42  ;;  %v639_v49 = vmax.f32 %v567_v31, 0.0  ;;  %5601 = vmatmul.mubr.msk.bf16.vlgmr.msra.gmra.mxu1 %vm1144_vm2, %v5931_v41  ;;  %v1335_v52 = vld [vmem:[#allocation2 + $0x24] sm:$0x1]  ;;  %v1436_v54 = vor.u32 %v1435_v38, %v1432_v37  ;;  %v1446_v55 = vrot.slane %v1444_v43, 4 }
  0x82   : > { %v1337_v53 = vld [vmem:[#allocation2 + $0x2c] sm:$0x1]  ;;  %v1449_v56 = vrot.slane %v1447_v44, 5  ;;  %5890 = vmatprep.subr.msk.bf16.mxu0 %vm1157_vm0, %v6472_v39  ;;  %v1411_v57 = vshll.u32 %v1335_v52, 16  ;;  %v1423_v58 = vrot.slane %v1422_v36, 4  ;;  %v5351_v60 = vpack.c.bf16 %v635_v46, %v635_v46  ;;  %v579_v3 = vld [vmem:[%s6293_s14 + $0x1e0] sm:$0xff] }
  0x83   : > { %v1425_v59 = vshll.u32 %v1337_v53, 16  ;;  %v5353_v0 = vpack.c.bf16 %v637_v47, %v637_v47  ;;  %v641_v1 = vmax.f32 %v569_v48, 0.0  ;;  %v5355_v2 = vpack.c.bf16 %v639_v49, %v639_v49  ;;  %v556_v8 = vld [vmem:[%s6293_s14 + $0x128] sm:$0x1]  ;;  %v558_v13 = vld [vmem:[%s6293_s14 + $0x138] sm:$0x1] }
  0x84   : > { %v1450_v63 = vor.u32 %v1449_v56, %v1446_v55  ;;  %v1413_v4 = vrot.slane %v1411_v57, 5  ;;  %1043 = vst.msk [vmem:[#allocation2 + $0xb0] sm:$0xf] %vm951_vm1, %v5351_v60  ;;  %v1952_v6 = vsel %vm1157_vm0, %v6441_v40, 0  ;;  %v645_v7 = vmax.f32 %v573_v50, 0.0 }
  0x85   : > { %v1427_v5 = vrot.slane %v1425_v59, 5  ;;  %v1437_v9 = vrot.slane %v1436_v54, 4  ;;  %1047 = vst.msk [vmem:[#allocation2 + $0xb8] sm:$0xf] %vm951_vm1, %v5353_v0  ;;  %v5357_v10 = vpack.c.bf16 %v641_v1, %v641_v1  ;;  %1051 = vst.msk [vmem:[#allocation2 + $0xc0] sm:$0xf] %vm951_vm1, %v5355_v2  ;;  %5619 = vmatpush3.bf16.msra.mxu1 %v1952_v6 }
  0x86   : > { %v647_v11 = vmax.f32 %v575_v61, 0.0  ;;  %v649_v12 = vmax.f32 %v577_v62, 0.0  ;;  %v1414_v14 = vsel %vm6424_vm8, %v1409_v45, %v1413_v4  ;;  %v5361_v40 = vpack.c.bf16 %v645_v7, %v645_v7  ;;  %v1797_v19 = vld [vmem:[#allocation2 + $0x90] sm:$0xf]  ;;  %v1028_v25 = vld [vmem:[#allocation2 + $0x94] sm:$0x1] }
  0x87   : > { %v1428_v15 = vsel %vm6424_vm8, %v1423_v58, %v1427_v5  ;;  %v1339_v16 = vld [vmem:[#allocation2 + $0x34] sm:$0x1]  ;;  %v651_v17 = vmax.f32 %v579_v3, 0.0  ;;  %1055 = vst.msk [vmem:[#allocation2 + $0xc8] sm:$0xf] %vm951_vm1, %v5357_v10  ;;  %v1451_v27 = vrot.slane %v1450_v63, 4 }
  0x88   : > { %v4952_v20 = vcombine.low %v1414_v14, %v1428_v15  ;;  %v1341_v21 = vld [vmem:[#allocation2 + $0x3c] sm:$0x1]  ;;  %v1439_v22 = vshll.u32 %v1339_v16, 16  ;;  %v5363_v23 = vpack.c.bf16 %v647_v11, %v647_v11  ;;  %v5365_v24 = vpack.c.bf16 %v649_v12, %v649_v12  ;;  %v1799_v26 = vld [vmem:[#allocation2 + $0x98] sm:$0xf]  ;;  %v581_v0 = vld [vmem:[%s6293_s14 + $0x1f0] sm:$0xff] }
  0x89   : > { %v1453_v28 = vshll.u32 %v1341_v21, 16  ;;  %1063 = vst.msk [vmem:[#allocation2 + $0xd8] sm:$0xf] %vm951_vm1, %v5361_v40  ;;  %v5367_v29 = vpack.c.bf16 %v651_v17, %v651_v17  ;;  %v628_v30 = vmax.f32 %v556_v8, 0.0  ;;  %v1032_v31 = vld [vmem:[#allocation2 + $0x9c] sm:$0x1] }
  0x8a   : > { %5594 = vmatprep.mubr.msk.bf16.mxu0 %vm1144_vm2, %v4952_v20  ;;  %v1441_v32 = vrot.slane %v1439_v22, 5  ;;  %1067 = vst.msk [vmem:[#allocation2 + $0xe0] sm:$0xf] %vm951_vm1, %v5363_v23  ;;  %1071 = vst.msk [vmem:[#allocation2 + $0xe8] sm:$0xf] %vm951_vm1, %v5365_v24  ;;  %v630_v33 = vmax.f32 %v558_v13, 0.0 }
  0x8b   : > { %v1814_v34 = vshrl.u32 %v1797_v19, 16  ;;  %v1817_v36 = vshll.u32 %v1797_v19, 16  ;;  %v560_v35 = vld [vmem:[%s6293_s14 + $0x148] sm:$0x1]  ;;  %v6506_v37 = vld [vmem:[%s7288_s1 + $0xe] sm:$0x3]  ;;  %v5344_v41 = vpack.c.bf16 %v628_v30, %v628_v30 }
  0x8c   : > { %v1455_v38 = vrot.slane %v1453_v28, 5  ;;  %1075 = vst.msk [vmem:[#allocation2 + $0xf0] sm:$0xf] %vm951_vm1, %v5367_v29  ;;  %v1828_v42 = vshrl.u32 %v1799_v26, 16  ;;  %v1831_v43 = vshll.u32 %v1799_v26, 16  ;;  %5891 = vmatprep.subr.msk.bf16.mxu1 %vm1157_vm0, %v6506_v37  ;;  %v1442_v45 = vsel %vm6424_vm8, %v1437_v9, %v1441_v32  ;;  %v583_v1 = vld [vmem:[%s6293_s14 + $0x200] sm:$0xff] }
  0x8d   : > { %v562_v44 = vld [vmem:[%s6293_s14 + $0x158] sm:$0x1]  ;;  %v5346_v46 = vpack.c.bf16 %v630_v33, %v630_v33  ;;  %v1816_v47 = vrot.slane %v1814_v34, 4  ;;  %v1819_v48 = vrot.slane %v1817_v36, 5  ;;  %v1801_v49 = vld [vmem:[#allocation2 + $0xa0] sm:$0xf]  ;;  %v1029_v53 = vsel %vm6362_vm5, %v5344_v41, %v1028_v25 }
  0x8e   : > { %v1456_v50 = vsel %vm6424_vm8, %v1451_v27, %v1455_v38  ;;  %v5932_v52 = vld [vmem:[#allocation2 + $0xb0] ss:$8 sps:$4 sm:$0xff]   ;;  %1030 = vst [vmem:[#allocation2 + $0x94] sm:$0x1] %v1029_v53  ;;  %v1830_v57 = vrot.slane %v1828_v42, 4  ;;  %v1833_v61 = vrot.slane %v1831_v43, 5 }
  0x8f   : > { %v4953_v54 = vcombine.low %v1442_v45, %v1456_v50  ;;  %v1033_v55 = vsel %vm6362_vm5, %v5346_v46, %v1032_v31  ;;  %v1820_v56 = vor.u32 %v1819_v48, %v1816_v47  ;;  %v1036_v58 = vld [vmem:[#allocation2 + $0xa4] sm:$0x1]  ;;  %v1803_v59 = vld [vmem:[#allocation2 + $0xa8] sm:$0xf]  ;;  %5604 = vmatprep.mubr.msk.bf16.mxu1 %vm1144_vm2, %v5932_v52  ;;  %v632_v62 = vmax.f32 %v560_v35, 0.0  ;;  %v587_v14 = vld [vmem:[%s6293_s14 + $0x220] sm:$0xff] }
  0x90   : > { %v5933_v60 = vld [vmem:[#allocation2 + $0xc0] ss:$8 sps:$4 sm:$0xff]   ;;  %1034 = vst [vmem:[#allocation2 + $0x9c] sm:$0x1] %v1033_v55  ;;  %v1040_v63 = vld [vmem:[#allocation2 + $0xac] sm:$0x1]  ;;  %v1834_v8 = vor.u32 %v1833_v61, %v1830_v57 }
  0x91   : > { %5595 = vmatmul.mubr.msk.bf16.gmra.mxu0 %vm1144_vm2, %v4953_v54  ;;  %v2071_v2 = vsel %vm1157_vm0, %v6472_v39, 0  ;;  %v634_v3 = vmax.f32 %v562_v44, 0.0  ;;  %v1842_v4 = vshrl.u32 %v1801_v49, 16  ;;  %v1845_v5 = vshll.u32 %v1801_v49, 16  ;;  %v585_v6 = vld [vmem:[%s6293_s14 + $0x210] sm:$0xff]  ;;  %5605 = vmatmul.mubr.msk.bf16.gmra.mxu1 %vm1144_vm2, %v5933_v60 }
  0x92   : > { %v5934_v7 = vld [vmem:[#allocation2 + $0xd8] ss:$8 sps:$4 sm:$0xff]   ;;  %v5348_v9 = vpack.c.bf16 %v632_v62, %v632_v62  ;;  %v6528_v10 = vrot.slane %v1820_v56, 4  ;;  %v1835_v39 = vrot.slane %v1834_v8, 4  ;;  %v1856_v16 = vshrl.u32 %v1803_v59, 16 }
  0x93   : > { %v5350_v11 = vpack.c.bf16 %v634_v3, %v634_v3  ;;  %v1844_v12 = vrot.slane %v1842_v4, 4  ;;  %v1847_v13 = vrot.slane %v1845_v5, 5  ;;  %5610 = vmatprep.mubr.msk.bf16.mxu0 %vm1144_vm2, %v5934_v7  ;;  %v1859_v40 = vshll.u32 %v1803_v59, 16  ;;  %v564_v17 = vld [vmem:[%s6293_s14 + $0x168] sm:$0x1] }
  0x94   : > { %v1037_v15 = vsel %vm6362_vm5, %v5348_v9, %v1036_v58  ;;  %v566_v19 = vld [vmem:[%s6293_s14 + $0x178] sm:$0x1]  ;;  %v1805_v20 = vld [vmem:[#allocation2 + $0xb0] sm:$0xf]  ;;  %v653_v24 = vmax.f32 %v581_v0, 0.0  ;;  %v655_v25 = vmax.f32 %v583_v1, 0.0 }
  0x95   : > { %v5935_v21 = vld [vmem:[#allocation2 + $0xe8] ss:$8 sps:$4 sm:$0xff]   ;;  %1038 = vst [vmem:[#allocation2 + $0xa4] sm:$0x1] %v1037_v15  ;;  %v1041_v22 = vsel %vm6362_vm5, %v5350_v11, %v1040_v63  ;;  %v1848_v23 = vor.u32 %v1847_v13, %v1844_v12  ;;  %v1807_v26 = vld [vmem:[#allocation2 + $0xb8] sm:$0xf] }
  0x96   : > { %v1798_v27 = vld [vmem:[#allocation2 + $0x94] sm:$0x1]  ;;  %1042 = vst [vmem:[#allocation2 + $0xac] sm:$0x1] %v1041_v22  ;;  %v1858_v28 = vrot.slane %v1856_v16, 4  ;;  %v1861_v29 = vrot.slane %v1859_v40, 5  ;;  %v5369_v36 = vpack.c.bf16 %v653_v24, %v653_v24  ;;  %v5371_v35 = vpack.c.bf16 %v655_v25, %v655_v25 }
  0x97   : > { %v657_v30 = vmax.f32 %v585_v6, 0.0  ;;  %v659_v31 = vmax.f32 %v587_v14, 0.0  ;;  %v1800_v32 = vld [vmem:[#allocation2 + $0x9c] sm:$0x1]  ;;  %v1823_v33 = vshll.u32 %v1798_v27, 16  ;;  %v6538_v34 = vrot.slane %v1848_v23, 4 }
  0x98   : > { %v6543_v38 = vld [vmem:[%s7288_s1 + $0x10] sm:$0x3]  ;;  %v1837_v41 = vshll.u32 %v1800_v32, 16  ;;  %v1862_v42 = vor.u32 %v1861_v29, %v1858_v28  ;;  %v1044_v45 = vld [vmem:[#allocation2 + $0xb4] sm:$0x1]  ;;  %v636_v48 = vmax.f32 %v564_v17, 0.0 }
  0x99   : > { %v5373_v43 = vpack.c.bf16 %v657_v30, %v657_v30  ;;  %v5375_v44 = vpack.c.bf16 %v659_v31, %v659_v31  ;;  %v1048_v46 = vld [vmem:[#allocation2 + $0xbc] sm:$0x1]  ;;  %5611 = vmatmul.mubr.msk.bf16.vlgmr.msra.gmra.mxu0 %vm1144_vm2, %v5935_v21  ;;  %v1825_v47 = vrot.slane %v1823_v33, 5  ;;  %1079 = vst.msk [vmem:[#allocation2 + $0xf8] sm:$0xf] %vm951_vm1, %v5369_v36  ;;  %v638_v49 = vmax.f32 %v566_v19, 0.0 }
  0x9a   : > { %1083 = vst.msk [vmem:[#allocation2 + $0x100] sm:$0xf] %vm951_vm1, %v5371_v35  ;;  %v1870_v50 = vshrl.u32 %v1805_v20, 16  ;;  %v568_v52 = vld [vmem:[%s6293_s14 + $0x188] sm:$0x1]  ;;  %5629 = vmatpush3.bf16.msra.mxu0 %v2071_v2  ;;  %v1839_v53 = vrot.slane %v1837_v41, 5  ;;  %v5352_v59 = vpack.c.bf16 %v636_v48, %v636_v48 }
  0x9b   : > { %v1863_v54 = vrot.slane %v1862_v42, 4  ;;  %1087 = vst.msk [vmem:[#allocation2 + $0x108] sm:$0xf] %vm951_vm1, %v5373_v43  ;;  %1091 = vst.msk [vmem:[#allocation2 + $0x110] sm:$0xf] %vm951_vm1, %v5375_v44  ;;  %v1873_v55 = vshll.u32 %v1805_v20, 16  ;;  %v1826_v58 = vsel %vm6424_vm8, %v6528_v10, %v1825_v47  ;;  %v5354_v60 = vpack.c.bf16 %v638_v49, %v638_v49  ;;  %5892 = vmatprep.subr.msk.bf16.mxu0 %vm1157_vm0, %v6543_v38 }
  0x9c   : > { %v1884_v56 = vshrl.u32 %v1807_v26, 16  ;;  %v570_v57 = vld [vmem:[%s6293_s14 + $0x198] sm:$0x1]  ;;  %v1872_v61 = vrot.slane %v1870_v50, 4  ;;  %v1809_v62 = vld [vmem:[#allocation2 + $0xc0] sm:$0xf]  ;;  %v1840_v63 = vsel %vm6424_vm8, %v1835_v39, %v1839_v53  ;;  %v1045_v7 = vsel %vm6362_vm5, %v5352_v59, %v1044_v45 }
  0x9d   : > { %v1802_v0 = vld [vmem:[#allocation2 + $0xa4] sm:$0x1]  ;;  %v1875_v1 = vrot.slane %v1873_v55, 5  ;;  %v1887_v3 = vshll.u32 %v1807_v26, 16  ;;  %v4977_v4 = vcombine.low %v1826_v58, %v1840_v63  ;;  %v1804_v5 = vld [vmem:[#allocation2 + $0xac] sm:$0x1]  ;;  %v1049_v8 = vsel %vm6362_vm5, %v5354_v60, %v1048_v46 }
  0x9e   : > { %v1886_v2 = vrot.slane %v1884_v56, 4  ;;  %v1851_v6 = vshll.u32 %v1802_v0, 16  ;;  %v1052_v9 = vld [vmem:[#allocation2 + $0xc4] sm:$0x1]  ;;  %v1865_v10 = vshll.u32 %v1804_v5, 16  ;;  %v640_v13 = vmax.f32 %v568_v52, 0.0 }
  0x9f   : > { %1046 = vst [vmem:[#allocation2 + $0xb4] sm:$0x1] %v1045_v7  ;;  %1050 = vst [vmem:[#allocation2 + $0xbc] sm:$0x1] %v1049_v8  ;;  %v1876_v11 = vor.u32 %v1875_v1, %v1872_v61  ;;  %v1889_v12 = vrot.slane %v1887_v3, 5  ;;  %5620 = vmatprep.mubr.msk.bf16.mxu1 %vm1144_vm2, %v4977_v4  ;;  %v642_v16 = vmax.f32 %v570_v57, 0.0 }
  0xa0   : > { %v1056_v14 = vld [vmem:[#allocation2 + $0xcc] sm:$0x1]  ;;  %v1811_v39 = vld [vmem:[#allocation2 + $0xc8] sm:$0xf]  ;;  %v1853_v15 = vrot.slane %v1851_v6, 5  ;;  %v1898_v40 = vshrl.u32 %v1809_v62, 16  ;;  %v5356_v23 = vpack.c.bf16 %v640_v13, %v640_v13 }
  0xa1   : > { %v1901_v17 = vshll.u32 %v1809_v62, 16  ;;  %v5938_v19 = vld [vmem:[#allocation2 + $0x8] ss:$8 sps:$4 sm:$0xff]   ;;  %v1867_v21 = vrot.slane %v1865_v10, 5  ;;  %v1890_v22 = vor.u32 %v1889_v12, %v1886_v2  ;;  %v553_v24 = vld [vmem:[%s6293_s14 + $0x110] sm:$0xff]  ;;  %v5358_v27 = vpack.c.bf16 %v642_v16, %v642_v16 }
  0xa2   : > { %v535_v20 = vld [vmem:[%s6293_s14 + $0x80] sm:$0xff]  ;;  %v1854_v25 = vsel %vm6424_vm8, %v6538_v34, %v1853_v15  ;;  %v5936_v26 = vld [vmem:[#allocation2 + $0xf8] ss:$8 sps:$4 sm:$0xff]   ;;  %v1877_v30 = vrot.slane %v1876_v11, 4  ;;  %v1053_v31 = vsel %vm6362_vm5, %v5356_v23, %v1052_v9  ;;  %v1900_v32 = vrot.slane %v1898_v40, 4 }
  0xa3   : > { %v1868_v28 = vsel %vm6424_vm8, %v1863_v54, %v1867_v21  ;;  %v5937_v29 = vld [vmem:[#allocation2 + $0x108] ss:$8 sps:$4 sm:$0xff]   ;;  %5614 = vmatprep.mubr.msk.bf16.mxu0 %vm1144_vm2, %v5936_v26  ;;  %1054 = vst [vmem:[#allocation2 + $0xc4] sm:$0x1] %v1053_v31  ;;  %v1057_v36 = vsel %vm6362_vm5, %v5358_v27, %v1056_v14  ;;  %v1903_v35 = vrot.slane %v1901_v17, 5  ;;  %v1912_v34 = vshrl.u32 %v1811_v39, 16 }
  0xa4   : > { %v4978_v33 = vcombine.low %v1854_v25, %v1868_v28  ;;  %5615 = vmatmul.mubr.msk.bf16.gmra.mxu0 %vm1144_vm2, %v5937_v29  ;;  %v1891_v41 = vrot.slane %v1890_v22, 4  ;;  %1058 = vst [vmem:[#allocation2 + $0xcc] sm:$0x1] %v1057_v36  ;;  %v1915_v42 = vshll.u32 %v1811_v39, 16  ;;  %v2190_v43 = vsel %vm1157_vm0, %v6506_v37, 0 }
  0xa5   : > { %v607_v44 = vmax.f32 %v535_v20, 0.0  ;;  %v1904_v47 = vor.u32 %v1903_v35, %v1900_v32  ;;  %v1914_v48 = vrot.slane %v1912_v34, 4  ;;  %5630 = vmatprep.mubr.msk.bf16.mxu0 %vm1144_vm2, %v5938_v19  ;;  %v625_v49 = vmax.f32 %v553_v24, 0.0  ;;  %v5939_v56 = vld [vmem:[#allocation2 + $0x18] ss:$8 sps:$4 sm:$0xff]  }
  0xa6   : > { %5621 = vmatmul.mubr.msk.bf16.vlgmr.msra.gmra.mxu1 %vm1144_vm2, %v4978_v33  ;;  %v1806_v45 = vld [vmem:[#allocation2 + $0xb4] sm:$0x1]  ;;  %v1808_v46 = vld [vmem:[#allocation2 + $0xbc] sm:$0x1]  ;;  %v1917_v53 = vrot.slane %v1915_v42, 5  ;;  %v2420_v37 = vsel %vm1157_vm0, %v6543_v38, 0 }
  0xa7   : > { %v1879_v50 = vshll.u32 %v1806_v45, 16  ;;  %v1893_v52 = vshll.u32 %v1808_v46, 16  ;;  %5639 = vmatpush3.bf16.msra.mxu1 %v2190_v43  ;;  %v5323_v54 = vpack.c.bf16 %v607_v44, %v607_v44  ;;  %v1905_v55 = vrot.slane %v1904_v47, 4  ;;  %v5942_v61 = vld [vmem:[#allocation2 + $0x28] ss:$8 sps:$4 sm:$0xff]  }
  0xa8   : > { %v5341_v57 = vpack.c.bf16 %v625_v49, %v625_v49  ;;  %v1918_v60 = vor.u32 %v1917_v53, %v1914_v48  ;;  %v2265_v62 = vld [vmem:[#allocation2 + $0x8] sm:$0xf]  ;;  %v2266_v63 = vld [vmem:[#allocation2 + $0xc] sm:$0x1]  ;;  %v2267_v0 = vld [vmem:[#allocation2 + $0x10] sm:$0xf] }
  0xa9   : > { %v1881_v58 = vrot.slane %v1879_v50, 5  ;;  %v1895_v59 = vrot.slane %v1893_v52, 5  ;;  %987 = vst.msk [vmem:[#allocation2 + $0x40] sm:$0xf] %vm951_vm1, %v5323_v54  ;;  %v2268_v1 = vld [vmem:[#allocation2 + $0x14] sm:$0x1] }
  0xaa   : > { %1023 = vst.msk [vmem:[#allocation2 + $0x88] sm:$0xf] %vm951_vm1, %v5341_v57  ;;  %v1810_v38 = vld [vmem:[#allocation2 + $0xc4] sm:$0x1]  ;;  %v1919_v4 = vrot.slane %v1918_v60, 4  ;;  %v2282_v5 = vshrl.u32 %v2265_v62, 16 }
  0xab   : > { %v1882_v2 = vsel %vm6424_vm8, %v1877_v30, %v1881_v58  ;;  %v1896_v3 = vsel %vm6424_vm8, %v1891_v41, %v1895_v59  ;;  %v2269_v6 = vld [vmem:[#allocation2 + $0x18] sm:$0xf]  ;;  %v1812_v8 = vld [vmem:[#allocation2 + $0xcc] sm:$0x1]  ;;  %v1907_v9 = vshll.u32 %v1810_v38, 16  ;;  %v2285_v10 = vshll.u32 %v2265_v62, 16 }
  0xac   : > { %v4979_v7 = vcombine.low %v1882_v2, %v1896_v3  ;;  %v2291_v11 = vshll.u32 %v2266_v63, 16  ;;  %v1921_v12 = vshll.u32 %v1812_v8, 16  ;;  %5631 = vmatmul.mubr.msk.bf16.vlgmr.msra.gmra.mxu0 %vm1144_vm2, %v5939_v56  ;;  %v2284_v13 = vrot.slane %v2282_v5, 4  ;;  %v2270_v19 = vld [vmem:[#allocation2 + $0x1c] sm:$0x1] }
  0xad   : > { %v2296_v14 = vshrl.u32 %v2267_v0, 16  ;;  %v2299_v39 = vshll.u32 %v2267_v0, 16  ;;  %v1909_v15 = vrot.slane %v1907_v9, 5  ;;  %5649 = vmatpush3.bf16.msra.mxu0 %v2420_v37  ;;  %v2287_v16 = vrot.slane %v2285_v10, 5  ;;  %v5940_v21 = vld [vmem:[#allocation2 + $0x50] ss:$8 sps:$4 sm:$0xff]   ;;  %5634 = vmatprep.mubr.msk.bf16.mxu0 %vm1144_vm2, %v5942_v61 }
  0xae   : > { %5624 = vmatprep.mubr.msk.bf16.mxu1 %vm1144_vm2, %v4979_v7  ;;  %v2293_v40 = vrot.slane %v2291_v11, 5  ;;  %v2305_v17 = vshll.u32 %v2268_v1, 16  ;;  %v1923_v20 = vrot.slane %v1921_v12, 5  ;;  %v2271_v24 = vld [vmem:[#allocation2 + $0x20] sm:$0xf]  ;;  %v2310_v25 = vshrl.u32 %v2269_v6, 16 }
  0xaf   : > { %v2298_v22 = vrot.slane %v2296_v14, 4  ;;  %v2301_v23 = vrot.slane %v2299_v39, 5  ;;  %v1910_v26 = vsel %vm6424_vm8, %v1905_v55, %v1909_v15  ;;  %v2288_v27 = vor.u32 %v2287_v16, %v2284_v13  ;;  %v2272_v29 = vld [vmem:[#allocation2 + $0x24] sm:$0x1]  ;;  %v2273_v44 = vld [vmem:[#allocation2 + $0x28] sm:$0xf] }
  0xb0   : > { %v2307_v28 = vrot.slane %v2305_v17, 5  ;;  %v2313_v30 = vshll.u32 %v2269_v6, 16  ;;  %v1924_v31 = vsel %vm6424_vm8, %v1919_v4, %v1923_v20  ;;  %v5943_v32 = vld [vmem:[#allocation2 + $0x38] ss:$8 sps:$4 sm:$0xff]   ;;  %v2312_v36 = vrot.slane %v2310_v25, 4 }
  0xb1   : > { %v2302_v33 = vor.u32 %v2301_v23, %v2298_v22  ;;  %v2319_v35 = vshll.u32 %v2270_v19, 16  ;;  %v4980_v34 = vcombine.low %v1910_v26, %v1924_v31  ;;  %v2289_v41 = vrot.slane %v2288_v27, 4  ;;  %v2274_v49 = vld [vmem:[#allocation2 + $0x2c] sm:$0x1]  ;;  %v2275_v54 = vld [vmem:[#allocation2 + $0x30] sm:$0xf] }
  0xb2   : > { %v2315_v42 = vrot.slane %v2313_v30, 5  ;;  %v2324_v43 = vshrl.u32 %v2271_v24, 16  ;;  %v2327_v47 = vshll.u32 %v2271_v24, 16  ;;  %v2333_v48 = vshll.u32 %v2272_v29, 16  ;;  %v2276_v55 = vld [vmem:[#allocation2 + $0x34] sm:$0x1] }
  0xb3   : > { %v2303_v45 = vrot.slane %v2302_v33, 4  ;;  %v2321_v46 = vrot.slane %v2319_v35, 5  ;;  %5625 = vmatmul.mubr.msk.bf16.gmra.mxu1 %vm1144_vm2, %v4980_v34  ;;  %v2294_v50 = vsel %vm6424_vm8, %v2289_v41, %v2293_v40  ;;  %v2338_v56 = vshrl.u32 %v2273_v44, 16  ;;  %v536_v60 = vld [vmem:[%s6293_s14 + $0x88] sm:$0x1] }
  0xb4   : > { %v2316_v52 = vor.u32 %v2315_v42, %v2312_v36  ;;  %v2326_v53 = vrot.slane %v2324_v43, 4  ;;  %5640 = vmatprep.mubr.msk.bf16.mxu1 %vm1144_vm2, %v5940_v21  ;;  %5635 = vmatmul.mubr.msk.bf16.gmra.mxu0 %vm1144_vm2, %v5943_v32  ;;  %v2329_v57 = vrot.slane %v2327_v47, 5  ;;  %v2335_v58 = vrot.slane %v2333_v48, 5  ;;  %v5941_v61 = vld [vmem:[#allocation2 + $0x60] ss:$8 sps:$4 sm:$0xff]  }
  0xb5   : > { %v2308_v37 = vsel %vm6424_vm8, %v2303_v45, %v2307_v28  ;;  %v2341_v59 = vshll.u32 %v2273_v44, 16  ;;  %v2340_v0 = vrot.slane %v2338_v56, 4  ;;  %v2347_v1 = vshll.u32 %v2274_v49, 16  ;;  %v5944_v2 = vld [vmem:[#allocation2 + $0x70] ss:$8 sps:$4 sm:$0xff]  }
  0xb6   : > { %v5004_v62 = vcombine.low %v2294_v50, %v2308_v37  ;;  %v2317_v63 = vrot.slane %v2316_v52, 4  ;;  %v2330_v3 = vor.u32 %v2329_v57, %v2326_v53  ;;  %v2352_v4 = vshrl.u32 %v2275_v54, 16  ;;  %v988_v6 = vld [vmem:[#allocation2 + $0x44] sm:$0x1]  ;;  %v2277_v7 = vld [vmem:[#allocation2 + $0x38] sm:$0xf] }
  0xb7   : > { %v2343_v38 = vrot.slane %v2341_v59, 5  ;;  %v2355_v5 = vshll.u32 %v2275_v54, 16  ;;  %v2349_v9 = vrot.slane %v2347_v1, 5  ;;  %v2361_v10 = vshll.u32 %v2276_v55, 16  ;;  %v2278_v12 = vld [vmem:[#allocation2 + $0x3c] sm:$0x1] }
  0xb8   : > { %5650 = vmatprep.mubr.msk.bf16.mxu0 %vm1144_vm2, %v5004_v62  ;;  %v2322_v8 = vsel %vm6424_vm8, %v2317_v63, %v2321_v46  ;;  %v608_v11 = vmax.f32 %v536_v60, 0.0  ;;  %v2331_v13 = vrot.slane %v2330_v3, 4  ;;  %v2354_v39 = vrot.slane %v2352_v4, 4  ;;  %v2279_v16 = vld [vmem:[#allocation2 + $0x40] sm:$0xf]  ;;  %v5946_v53 = vld [vmem:[%s7289_s2 + $0x38] sm:$0xff]  }
  0xb9   : > { %v2344_v14 = vor.u32 %v2343_v38, %v2340_v0  ;;  %v2357_v15 = vrot.slane %v2355_v5, 5  ;;  %v2363_v40 = vrot.slane %v2361_v10, 5  ;;  %v2366_v19 = vshrl.u32 %v2277_v7, 16  ;;  %v5945_v32 = vld [vmem:[#allocation2 + $0x80] ss:$8 sps:$4 sm:$0xff]   ;;  %5658 = vmatprep.subr.bf16.mxu1 %v5946_v53  ;;  %v5947_v54 = vld [vmem:[%s7289_s2 + $0x30] sm:$0xff]  }
  0xba   : > { %v5324_v17 = vpack.c.bf16 %v608_v11, %v608_v11  ;;  %v2369_v20 = vshll.u32 %v2277_v7, 16  ;;  %v2336_v21 = vsel %vm6424_vm8, %v2331_v13, %v2335_v58  ;;  %v2375_v24 = vshll.u32 %v2278_v12, 16  ;;  %v2693_v55 = vld [vmem:[%s7290_s3] sm:$0x3]  ;;  %v5948_v37 = vld [vmem:[%s7289_s2 + $0x28] sm:$0xff]   ;;  %v5950_v58 = vld [vmem:[%s7289_s2 + $0x78] sm:$0xff]  }
  0xbb   : > { %v2345_v22 = vrot.slane %v2344_v14, 4  ;;  %v2358_v23 = vor.u32 %v2357_v15, %v2354_v39  ;;  %5641 = vmatmul.mubr.msk.bf16.vlgmr.msra.gmra.mxu1 %vm1144_vm2, %v5941_v61  ;;  %v5005_v25 = vcombine.low %v2322_v8, %v2336_v21  ;;  %v2368_v27 = vrot.slane %v2366_v19, 4  ;;  %5893 = vmatprep.subr.msk.bf16.mxu0 %vm1157_vm0, %v2693_v55  ;;  %v5949_v57 = vld [vmem:[#allocation2 + $0xd8] ss:$8 sps:$4 sm:$0xff]   ;;  %v5951_v59 = vld [vmem:[#allocation2 + $0xe8] ss:$8 sps:$4 sm:$0xff]  }
  0xbc   : > { %v989_v26 = vsel %vm6362_vm5, %v5324_v17, %v988_v6  ;;  %v2371_v28 = vrot.slane %v2369_v20, 5  ;;  %5644 = vmatprep.mubr.msk.bf16.mxu1 %vm1144_vm2, %v5944_v2  ;;  %v2380_v31 = vshrl.u32 %v2279_v16, 16  ;;  %v2383_v36 = vshll.u32 %v2279_v16, 16  ;;  %5659 = vmatpush3.bf16.msra.mxu1 %v5946_v53  ;;  %v5952_v60 = vld [vmem:[%s7289_s2 + $0x20] sm:$0xff]   ;;  %v5953_v61 = vld [vmem:[%s7289_s2 + $0x70] sm:$0xff]   ;;  %v5954_v62 = vld [vmem:[%s7289_s2 + $0x18] sm:$0xff]  }
  0xbd   : > { %v2350_v29 = vsel %vm6424_vm8, %v2345_v22, %v2349_v9  ;;  %v2359_v30 = vrot.slane %v2358_v23, 4  ;;  %990 = vst [vmem:[#allocation2 + $0x44] sm:$0x1] %v989_v26  ;;  %5651 = vmatmul.mubr.msk.bf16.vlgmr.msra.gmra.mxu0 %vm1144_vm2, %v5005_v25  ;;  %v2377_v51 = vrot.slane %v2375_v24, 5  ;;  %5660 = vmatprep.subr.bf16.mxu1 %v5947_v54  ;;  %v2888_v56 = vsel %vm1157_vm0, %v2693_v55, 0  ;;  %v5955_v63 = vld [vmem:[%s7289_s2 + $0x68] sm:$0xff]  }
  0xbe   : > { %v2372_v33 = vor.u32 %v2371_v28, %v2368_v27  ;;  %v2382_v34 = vrot.slane %v2380_v31, 4  ;;  %v2385_v43 = vrot.slane %v2383_v36, 5  ;;  %5683 = vmatpush3.bf16.msra.mxu0 %v2888_v56  ;;  %v5956_v0 = vld [vmem:[%s7289_s2 + $0x10] sm:$0xff]   ;;  %v5957_v1 = vld [vmem:[%s7289_s2 + $0x60] sm:$0xff]   ;;  %v6058_v2 = vmov 0   ;;  %v5958_v3 = vld [vmem:[%s7289_s2 + $0x8] sm:$0xff]  }
  0xbf   : > { %v2364_v35 = vsel %vm6424_vm8, %v2359_v30, %v2363_v40  ;;  %5692 = vmatprep.subr.bf16.mxu0 %v5950_v58  ;;  %1099 = vst [vmem:[#allocation3] sm:$0xf] %v6058_v2  ;;  %1100 = vst [vmem:[#allocation3 + $0x4] sm:$0x1] %v6058_v2  ;;  %v5959_v38 = vld [vmem:[%s7289_s2 + $0x58] sm:$0xff]   ;;  %v5960_v5 = vld [vmem:[%s7289_s2] sm:$0xff]  }
  0xc0   : > { %v5006_v41 = vcombine.low %v2350_v29, %v2364_v35  ;;  %v2373_v42 = vrot.slane %v2372_v33, 4  ;;  %v2386_v44 = vor.u32 %v2385_v43, %v2382_v34  ;;  %5661 = vmatpush3.bf16.msra.mxu1 %v5947_v54  ;;  %1102 = vst [vmem:[#allocation3 + $0x48] sm:$0xf] %v6058_v2  ;;  %1103 = vst [vmem:[#allocation3 + $0x4c] sm:$0x1] %v6058_v2  ;;  %v5962_v6 = vld [vmem:[%s7289_s2 + $0x50] sm:$0xff]  }
  0xc1   : > { %5662 = vmatprep.subr.bf16.mxu1 %v5948_v37  ;;  %v6679_v7 = vld [vmem:[%s7289_s2 + $0xb8] sm:$0xff]   ;;  %v5967_v9 = vld [vmem:[#allocation2 + $0x108] ss:$8 sps:$4 sm:$0xff]   ;;  %v5970_v14 = vld [vmem:[%s7289_s2 + $0x40] sm:$0xff]   ;;  %vm2602_vm11 = vsmask.f32 4352 }
  0xc2   : > { %5654 = vmatprep.mubr.msk.bf16.mxu0 %vm1144_vm2, %v5006_v41  ;;  %v2387_v46 = vrot.slane %v2386_v44, 4  ;;  %v2378_v48 = vsel %vm6424_vm8, %v2373_v42, %v2377_v51  ;;  %v5965_v8 = vld [vmem:[#allocation2 + $0xf8] ss:$8 sps:$4 sm:$0xff]   ;;  %v5966_v11 = vld [vmem:[%s7289_s2 + $0x48] sm:$0xff]   ;;  %vm6733_vm13 = vmand %vm2601_vm10, %vm2602_vm11  ;;  %vm3261_vm14 = vcmask 1042432   ;;  %vm3262_vm15 = vcmask 1046532  }
  0xc3   : > { %5645 = vmatmul.mubr.msk.bf16.gmra.mxu1 %vm1144_vm2, %v5945_v32  ;;  %v6693_v16 = vld [vmem:[%s7289_s2 + $0xf8] sm:$0xff]   ;;  %vm6819_vm0 = vmor %vm3261_vm14, %vm3262_vm15 }
  0xc4   : > { %v2280_v45 = vld [vmem:[#allocation2 + $0x44] sm:$0x1]  ;;  %5663 = vmatpush3.bf16.msra.mxu1 %v5948_v37 }
  0xc5   : > { %v2389_v47 = vshll.u32 %v2280_v45, 16  ;;  %5664 = vmatprep.subr.bf16.mxu1 %v5952_v60 }
  0xc7   : > { %v2391_v49 = vrot.slane %v2389_v47, 5 }
  0xc8   : > { %5665 = vmatpush3.bf16.msra.mxu1 %v5952_v60 }
  0xc9   : > { %v2392_v50 = vsel %vm6424_vm8, %v2387_v46, %v2391_v49  ;;  %5666 = vmatprep.subr.bf16.mxu1 %v5954_v62 }
  0xca   : > { %v5007_v52 = vcombine.low %v2378_v48, %v2392_v50 }
  0xcc   : > { %5655 = vmatmul.mubr.msk.bf16.gmra.mxu0 %vm1144_vm2, %v5007_v52  ;;  %5667 = vmatpush3.bf16.msra.mxu1 %v5954_v62 }
  0xcd   : > { %5684 = vmatprep.mubr.msk.bf16.mxu0 %vm1144_vm2, %v5949_v57  ;;  %5668 = vmatprep.subr.bf16.mxu1 %v5956_v0 }
  0xd0   : > { %5669 = vmatpush3.bf16.msra.mxu1 %v5956_v0 }
  0xd1   : > { %5670 = vmatprep.subr.bf16.mxu1 %v5958_v3 }
  0xd4   : > { %5685 = vmatmul.mubr.msk.bf16.vlgmr.msra.gmra.mxu0 %vm1144_vm2, %v5951_v59  ;;  %5671 = vmatpush3.bf16.msra.mxu1 %v5958_v3 }
  0xd5   : > { %5693 = vmatpush3.bf16.msra.mxu0 %v5950_v58  ;;  %5672 = vmatprep.subr.bf16.mxu1 %v5960_v5 }
  0xd6   : > { %5694 = vmatprep.subr.bf16.mxu0 %v5953_v61  ;;  %5688 = vmatprep.mubr.msk.bf16.mxu0 %vm1144_vm2, %v5965_v8 }
  0xd8   : > { %5673 = vmatpush3.bf16.msra.mxu1 %v5960_v5 }
  0xd9   : > { %5695 = vmatpush3.bf16.msra.mxu0 %v5953_v61  ;;  %5716 = vmatprep.subr.bf16.mxu1 %v6679_v7 }
  0xda   : > { %5696 = vmatprep.subr.bf16.mxu0 %v5955_v63 }
  0xdc   : > { %5689 = vmatmul.mubr.msk.bf16.gmra.mxu0 %vm1144_vm2, %v5967_v9 }
  0xdd   : > { %5697 = vmatpush3.bf16.msra.mxu0 %v5955_v63 }
  0xde   : > { %5698 = vmatprep.subr.bf16.mxu0 %v5957_v1 }
  0xe1   : > { %5699 = vmatpush3.bf16.msra.mxu0 %v5957_v1 }
  0xe2   : > { %5700 = vmatprep.subr.bf16.mxu0 %v5959_v38 }
  0xe5   : > { %5701 = vmatpush3.bf16.msra.mxu0 %v5959_v38 }
  0xe6   : > { %5702 = vmatprep.subr.bf16.mxu0 %v5962_v6 }
  0xe9   : > { %5703 = vmatpush3.bf16.msra.mxu0 %v5962_v6 }
  0xea   : > { %5704 = vmatprep.subr.bf16.mxu0 %v5966_v11 }
  0xed   : > { %5705 = vmatpush3.bf16.msra.mxu0 %v5966_v11 }
  0xee   : > { %5706 = vmatprep.subr.bf16.mxu0 %v5970_v14 }
  0xf1   : > { %5707 = vmatpush3.bf16.msra.mxu0 %v5970_v14 }
  0xf2   : > { %5740 = vmatprep.subr.bf16.mxu0 %v6693_v16 }
 0x112   : > { %v6668_v4 = vpop.f32.mrf.mxu0 }
 0x113   : > { %v5582_v12 = vpop.f32.mrf.mxu1 }
 0x114   : > { %v1195_v10 = vpop.f32.mrf.mxu0  ;;  %v1304_v56 = vadd.f32 %v5582_v12, %v6668_v4 }
 0x115   : > { %v1295_v39 = vpop.f32.mrf.mxu1 }
 0x116   : > { %v5573_v13 = vpop.f32.mrf.mxu0  ;;  %v1296_v58 = vadd.f32 %v1295_v39, %v1195_v10 }
 0x117   : > { %v5583_v40 = vpop.f32.mrf.mxu1 }
 0x118   : > { %v1198_v15 = vpop.f32.mrf.mxu0  ;;  %v1307_v61 = vadd.f32 %v5583_v40, %v5573_v13 }
 0x119   : > { %v1298_v19 = vpop.f32.mrf.mxu1 }
 0x11a   : > { %v5576_v17 = vpop.f32.mrf.mxu0  ;;  %v1299_v38 = vadd.f32 %v1298_v19, %v1198_v15 }
 0x11b   : > { %v5586_v21 = vpop.f32.mrf.mxu1 }
 0x11c   : > { %v1211_v20 = vpop.f32.mrf.mxu0  ;;  %v1320_v40 = vadd.f32 %v5586_v21, %v5576_v17 }
 0x11d   : > { %v1311_v23 = vpop.f32.mrf.mxu1 }
 0x11e   : > { %v5577_v22 = vpop.f32.mrf.mxu0 }
 0x11f   : > { %v5587_v25 = vpop.f32.mrf.mxu1 }
 0x120   : > { %v6696_v24 = vpop.f32.mrf.mxu0 }
 0x121   : > { %v6698_v27 = vpop.f32.mrf.mxu1 }
 0x140   : > { %v5592_v26 = vpop.f32.mrf.mxu0 }
 0x141   : > { %v5602_v29 = vpop.f32.mrf.mxu1  ;;  %v1553_v59 = vadd.f32 %v5592_v26, %v1304_v56  ;;  %v1323_v56 = vadd.f32 %v5587_v25, %v5577_v22 }
 0x142   : > { %v1520_v28 = vpop.f32.mrf.mxu0 }
 0x143   : > { %v1639_v31 = vpop.f32.mrf.mxu1  ;;  %v1551_v62 = vadd.f32 %v1520_v28, %v1296_v58  ;;  %v1672_v1 = vadd.f32 %v5602_v29, %v1553_v59  ;;  %v1312_v28 = vadd.f32 %v1311_v23, %v1211_v20 }
 0x144   : > { %v5593_v30 = vpop.f32.mrf.mxu0 }
 0x145   : > { %v5603_v33 = vpop.f32.mrf.mxu1  ;;  %v1554_v2 = vadd.f32 %v5593_v30, %v1307_v61  ;;  %v1670_v5 = vadd.f32 %v1639_v31, %v1551_v62 }
 0x146   : > { %v1523_v32 = vpop.f32.mrf.mxu0 }
 0x147   : > { %v1642_v35 = vpop.f32.mrf.mxu1  ;;  %v1552_v9 = vadd.f32 %v1523_v32, %v1299_v38  ;;  %v1673_v4 = vadd.f32 %v5603_v33, %v1554_v2 }
 0x149   : > { %v1671_v29 = vadd.f32 %v1642_v35, %v1552_v9 }
 0x151   : > { %v5596_v36 = vpop.f32.mrf.mxu0  ;;  %v5606_v34 = vpop.f32.mrf.mxu1 }
 0x153   : > { %v1536_v51 = vpop.f32.mrf.mxu0  ;;  %v1655_v43 = vpop.f32.mrf.mxu1 }
 0x154   : > { %v1555_v32 = vadd.f32 %v1536_v51, %v1312_v28 }
 0x155   : > { %v5597_v41 = vpop.f32.mrf.mxu0  ;;  %v5607_v46 = vpop.f32.mrf.mxu1 }
 0x156   : > { %v1674_v22 = vadd.f32 %v1655_v43, %v1555_v32 }
 0x157   : > { %v1539_v42 = vpop.f32.mrf.mxu0  ;;  %v6700_v49 = vpop.f32.mrf.mxu1 }
 0x159   : > { %v5612_v44 = vpop.f32.mrf.mxu0 }
 0x15a   : > { %v1791_v6 = vadd.f32 %v5612_v44, %v1672_v1  ;;  %v1557_v44 = vadd.f32 %v5596_v36, %v1320_v40 }
 0x15b   : > { %v1758_v45 = vpop.f32.mrf.mxu0 }
 0x15c   : > { %v1789_v12 = vadd.f32 %v1758_v45, %v1670_v5  ;;  %v1558_v45 = vadd.f32 %v5597_v41, %v1323_v56  ;;  %v1676_v23 = vadd.f32 %v5606_v34, %v1557_v44  ;;  %v2955_v41 = vld [vmem:[#allocation3] sm:$0xf] }
 0x15d   : > { %v5613_v47 = vpop.f32.mrf.mxu0  ;;  %v2972_v38 = vshrl.u32 %v2955_v41, 16 }
 0x15e   : > { %v1792_v26 = vadd.f32 %v5613_v47, %v1673_v4  ;;  %v1315_v47 = vadd.f32 %v6698_v27, %v6696_v24  ;;  %v1677_v51 = vadd.f32 %v5607_v46, %v1558_v45 }
 0x15f   : > { %v1761_v48 = vpop.f32.mrf.mxu0 }
 0x160   : > { %v1790_v58 = vadd.f32 %v1761_v48, %v1671_v29  ;;  %v1556_v25 = vadd.f32 %v1539_v42, %v1315_v47 }
 0x162   : > { %v1675_v42 = vadd.f32 %v6700_v49, %v1556_v25 }
 0x164   : > { %v5616_v50 = vpop.f32.mrf.mxu0 }
 0x166   : > { %v5622_v52 = vpop.f32.mrf.mxu1  ;;  %v1774_v53 = vpop.f32.mrf.mxu0 }
 0x167   : > { %v2021_v39 = vadd.f32 %v5622_v52, %v1791_v6  ;;  %v2975_v6 = vshll.u32 %v2955_v41, 16 }
 0x168   : > { %v1988_v54 = vpop.f32.mrf.mxu1  ;;  %v6702_v55 = vpop.f32.mrf.mxu0 }
 0x169   : > { %v2019_v15 = vadd.f32 %v1988_v54, %v1789_v12  ;;  %v1796_v24 = vadd.f32 %v6702_v55, %v1677_v51 }
 0x16a   : > { %v6705_v37 = vpop.f32.mrf.mxu0  ;;  %v5623_v57 = vpop.f32.mrf.mxu1 }
 0x16b   : > { %v2022_v59 = vadd.f32 %v5623_v57, %v1792_v26  ;;  %v1795_v57 = vadd.f32 %v5616_v50, %v1676_v23  ;;  %v1794_v55 = vadd.f32 %v6705_v37, %v1675_v42 }
 0x16c   : > { %v5632_v60 = vpop.f32.mrf.mxu0  ;;  %v1991_v0 = vpop.f32.mrf.mxu1 }
 0x16d   : > { %v2140_v19 = vadd.f32 %v5632_v60, %v2021_v39  ;;  %v2020_v35 = vadd.f32 %v1991_v0, %v1790_v58  ;;  %v1793_v60 = vadd.f32 %v1774_v53, %v1674_v22  ;;  %v6717_v0 = vld [vmem:[#allocation3 + $0x4] sm:$0x1] }
 0x16e   : > { %v2107_v63 = vpop.f32.mrf.mxu0  ;;  %v3266_v28 = vrot.slane %v6717_v0, 5 }
 0x16f   : > { %v2138_v61 = vadd.f32 %v2107_v63, %v2019_v15 }
 0x170   : > { %v5633_v3 = vpop.f32.mrf.mxu0 }
 0x171   : > { %v2141_v21 = vadd.f32 %v5633_v3, %v2022_v59 }
 0x172   : > { %v2110_v8 = vpop.f32.mrf.mxu0 }
 0x173   : > { %v5626_v11 = vpop.f32.mrf.mxu1  ;;  %v2139_v63 = vadd.f32 %v2110_v8, %v2020_v35 }
 0x174   : > { %v6707_v14 = vpop.f32.mrf.mxu0  ;;  %v2025_v8 = vadd.f32 %v5626_v11, %v1795_v57 }
 0x175   : > { %v2004_v10 = vpop.f32.mrf.mxu1 }
 0x176   : > { %v6709_v13 = vpop.f32.mrf.mxu0  ;;  %v2023_v9 = vadd.f32 %v2004_v10, %v1793_v60  ;;  %v2144_v29 = vadd.f32 %v6707_v14, %v2025_v8  ;;  %v6729_v14 = vrot.slane %v2972_v38, 4 }
 0x177   : > { %v5627_v30 = vpop.f32.mrf.mxu1 }
 0x178   : > { %v5637_v31 = vpop.f32.mrf.mxu0  ;;  %v2026_v26 = vadd.f32 %v5627_v30, %v1796_v24  ;;  %v2142_v56 = vadd.f32 %v6709_v13, %v2023_v9  ;;  %v2981_v9 = vshll.u32 %v6717_v0, 16 }
 0x179   : > { %v2007_v33 = vpop.f32.mrf.mxu1 }
 0x17a   : > { %v6711_v62 = vpop.f32.mrf.mxu0  ;;  %v2145_v32 = vadd.f32 %v5637_v31, %v2026_v26  ;;  %v2024_v37 = vadd.f32 %v2007_v33, %v1794_v55  ;;  %v6753_v55 = vld [vmem:[#allocation3] sm:$0xe] }
 0x17b   : > { %v5642_v17 = vpop.f32.mrf.mxu1 }
 0x17c   : > { %v2259_v20 = vadd.f32 %v5642_v17, %v2140_v19  ;;  %v6737_v17 = vrot.slane %v2975_v6, 5 }
 0x17d   : > { %v2226_v52 = vpop.f32.mrf.mxu1  ;;  %v5652_v36 = vpop.f32.mrf.mxu0 }
 0x17e   : > { %v2257_v48 = vadd.f32 %v2226_v52, %v2138_v61  ;;  %v2489_v54 = vadd.f32 %v5652_v36, %v2259_v20  ;;  %v2978_v8 = vor.u32 %v6737_v17, %v6729_v14 }
 0x17f   : > { %v5643_v1 = vpop.f32.mrf.mxu1  ;;  %v2456_v2 = vpop.f32.mrf.mxu0 }
 0x180   : > { %v2260_v27 = vadd.f32 %v5643_v1, %v2141_v21  ;;  %v2497_v3 = vmax.f32 %v2489_v54, 0.0  ;;  %v2487_v34 = vadd.f32 %v2456_v2, %v2257_v48  ;;  %v2143_v21 = vadd.f32 %v6711_v62, %v2024_v37 }
 0x181   : > { %v2229_v43 = vpop.f32.mrf.mxu1  ;;  %v5653_v46 = vpop.f32.mrf.mxu0  ;;  %v6764_v17 = vrot.slane %v2978_v8, 4 }
 0x182   : > { %v5381_v50 = vpack.c.bf16 %v2497_v3, %v2497_v3  ;;  %v2495_v53 = vmax.f32 %v2487_v34, 0.0  ;;  %v2490_v5 = vadd.f32 %v5653_v46, %v2260_v27  ;;  %v2258_v4 = vadd.f32 %v2229_v43, %v2139_v63 }
 0x183   : > { %v5646_v12 = vpop.f32.mrf.mxu1  ;;  %v2459_v39 = vpop.f32.mrf.mxu0 }
 0x184   : > { %v2542_v49 = vshrl.u32 %v5381_v50, 16  ;;  %v5379_v40 = vpack.c.bf16 %v2495_v53, %v2495_v53  ;;  %v2498_v19 = vmax.f32 %v2490_v5, 0.0  ;;  %v2488_v44 = vadd.f32 %v2459_v39, %v2258_v4 }
 0x185   : > { %v2242_v15 = vpop.f32.mrf.mxu1  ;;  %v2545_v10 = vshll.u32 %v5381_v50, 16  ;;  %v2263_v20 = vadd.f32 %v5646_v12, %v2144_v29 }
 0x186   : > { %v2544_v11 = vrot.slane %v2542_v49, 7  ;;  %v2528_v58 = vshrl.u32 %v5379_v40, 16  ;;  %v5382_v59 = vpack.c.bf16 %v2498_v19, %v2498_v19  ;;  %v2496_v61 = vmax.f32 %v2488_v44, 0.0 }
 0x187   : > { %v5647_v45 = vpop.f32.mrf.mxu1  ;;  %v2531_v33 = vshll.u32 %v5379_v40, 16  ;;  %v2261_v25 = vadd.f32 %v2242_v15, %v2142_v56 }
 0x188   : > { %v2547_v13 = vor.u32 %v2545_v10, %v2544_v11  ;;  %v2530_v47 = vrot.slane %v2528_v58, 7  ;;  %v2549_v23 = vshrl.u32 %v5382_v59, 16  ;;  %v5380_v22 = vpack.c.bf16 %v2496_v61, %v2496_v61 }
 0x189   : > { %v2264_v35 = vadd.f32 %v5647_v45, %v2145_v32  ;;  %v2552_v54 = vshll.u32 %v5382_v59, 16  ;;  %v2245_v42 = vpop.f32.mrf.mxu1  ;;  %v5084_v11 = vrot.slane %v6753_v55, 9 }
 0x18a   : > { %v2595_v52 = vsel %vm6725_vm12, 0, %v2547_v13  ;;  %v2533_v36 = vor.u32 %v2531_v33, %v2530_v47  ;;  %v2551_v48 = vrot.slane %v2549_v23, 7  ;;  %v2535_v41 = vshrl.u32 %v5380_v22, 16 }
 0x18b   : > { %v2606_v51 = vsel %vm6733_vm13, %v2595_v52, 0  ;;  %v2538_v3 = vshll.u32 %v5380_v22, 16  ;;  %v2262_v49 = vadd.f32 %v2245_v42, %v2143_v21  ;;  %v6762_v13 = vrot.slane %v2981_v9, 5 }
 0x18c   : > { %v5656_v57 = vpop.f32.mrf.mxu0  ;;  %v5024_v60 = vcombine.low %v2606_v51, %v2606_v51  ;;  %v5025_v63 = vcombine.high %v2606_v51, %v2606_v51  ;;  %v2593_v62 = vsel %vm6725_vm12, 0, %v2533_v36  ;;  %v2554_v24 = vor.u32 %v2552_v54, %v2551_v48 }
 0x18d   : > { %v2493_v1 = vadd.f32 %v5656_v57, %v2263_v20  ;;  %v2604_v2 = vsel %vm6733_vm13, %v2593_v62, 0  ;;  %v2537_v27 = vrot.slane %v2535_v41, 7 }
 0x18e   : > { %v2472_v34 = vpop.f32.mrf.mxu0  ;;  %2673 = vst [vmem:[#allocation3 + $0x18] sm:$0xf] %v5024_v60  ;;  %2674 = vst [vmem:[#allocation3 + $0x1c] sm:$0x1] %v5025_v63  ;;  %v5020_v43 = vcombine.low %v2604_v2, %v2604_v2  ;;  %v5021_v46 = vcombine.high %v2604_v2, %v2604_v2  ;;  %v2596_v53 = vsel %vm6725_vm12, 0, %v2554_v24 }
 0x18f   : > { %v2501_v38 = vmax.f32 %v2493_v1, 0.0  ;;  %v2491_v50 = vadd.f32 %v2472_v34, %v2261_v25  ;;  %v2540_v5 = vor.u32 %v2538_v3, %v2537_v27  ;;  %v2607_v4 = vsel %vm6733_vm13, %v2596_v53, 0 }
 0x190   : > { %v5657_v6 = vpop.f32.mrf.mxu0  ;;  %2669 = vst [vmem:[#allocation3 + $0x8] sm:$0xf] %v5020_v43  ;;  %2670 = vst [vmem:[#allocation3 + $0xc] sm:$0x1] %v5021_v46  ;;  %v5026_v40 = vcombine.low %v2607_v4, %v2607_v4  ;;  %v5027_v29 = vcombine.high %v2607_v4, %v2607_v4 }
 0x191   : > { %v5385_v12 = vpack.c.bf16 %v2501_v38, %v2501_v38  ;;  %v2499_v39 = vmax.f32 %v2491_v50, 0.0  ;;  %v2494_v26 = vadd.f32 %v5657_v6, %v2264_v35  ;;  %v2594_v56 = vsel %vm6725_vm12, 0, %v2540_v5  ;;  %v5968_v50 = vld [vmem:[%s7289_s2 + $0xb0] sm:$0xff]  }
 0x192   : > { %v2475_v15 = vpop.f32.mrf.mxu0  ;;  %v2605_v19 = vsel %vm6733_vm13, %v2594_v56, 0  ;;  %2675 = vst [vmem:[#allocation3 + $0x20] sm:$0xf] %v5026_v40  ;;  %2676 = vst [vmem:[#allocation3 + $0x24] sm:$0x1] %v5027_v29 }
 0x193   : > { %v2570_v44 = vshrl.u32 %v5385_v12, 16  ;;  %v5383_v32 = vpack.c.bf16 %v2499_v39, %v2499_v39  ;;  %v5022_v10 = vcombine.low %v2605_v19, %v2605_v19  ;;  %v5023_v58 = vcombine.high %v2605_v19, %v2605_v19 }
 0x194   : > { %v2502_v37 = vmax.f32 %v2494_v26, 0.0  ;;  %v2492_v45 = vadd.f32 %v2475_v15, %v2262_v49  ;;  %v2573_v61 = vshll.u32 %v5385_v12, 16  ;;  %v2984_v26 = vsel %vm6424_vm8, %v6764_v17, %v6762_v13 }
 0x195   : > { %v2572_v59 = vrot.slane %v2570_v44, 7  ;;  %v2556_v14 = vshrl.u32 %v5383_v32, 16  ;;  %2671 = vst [vmem:[#allocation3 + $0x10] sm:$0xf] %v5022_v10  ;;  %2672 = vst [vmem:[#allocation3 + $0x14] sm:$0x1] %v5023_v58 }
 0x196   : > { %v5386_v47 = vpack.c.bf16 %v2502_v37, %v2502_v37  ;;  %v2500_v33 = vmax.f32 %v2492_v45, 0.0  ;;  %v6766_v20 = vld [vmem:[#allocation3 + $0x18] sm:$0xf]  ;;  %v2559_v22 = vshll.u32 %v5383_v32, 16  ;;  %v6794_v56 = vld [vmem:[#allocation3 + $0x1c] sm:$0x1] }
 0x197   : > { %v2575_v21 = vor.u32 %v2573_v61, %v2572_v59  ;;  %v2558_v23 = vrot.slane %v2556_v14, 7  ;;  %v3014_v25 = vshrl.u32 %v6766_v20, 16  ;;  %v5961_v36 = vld [vmem:[#allocation3] ss:$8 sps:$4 sm:$0xff]   ;;  %v3017_v51 = vshll.u32 %v6766_v20, 16 }
 0x198   : > { %v2577_v35 = vshrl.u32 %v5386_v47, 16  ;;  %v5384_v52 = vpack.c.bf16 %v2500_v33, %v2500_v33  ;;  %v2580_v41 = vshll.u32 %v5386_v47, 16  ;;  %v2957_v57 = vld [vmem:[#allocation3 + $0x8] sm:$0xf]  ;;  %5674 = vmatprep.mubr.bf16.mxu1 %v5961_v36  ;;  %v6776_v24 = vld [vmem:[#allocation3 + $0xc] sm:$0x1] }
 0x199   : > { %v2599_v48 = vsel %vm6725_vm12, 0, %v2575_v21  ;;  %v2561_v54 = vor.u32 %v2559_v22, %v2558_v23  ;;  %v6772_v60 = vrot.slane %v3014_v25, 4  ;;  %v2986_v42 = vshrl.u32 %v2957_v57, 16  ;;  %v5971_v59 = vld [vmem:[%s7289_s2 + $0xa8] sm:$0xff]   ;;  %v2963_v17 = vld [vmem:[#allocation3 + $0x20] sm:$0xf] }
 0x19a   : > { %v2610_v63 = vsel %vm6733_vm13, %v2599_v48, 0  ;;  %v2579_v62 = vrot.slane %v2577_v35, 7  ;;  %v2563_v1 = vshrl.u32 %v5384_v52, 16  ;;  %v2566_v2 = vshll.u32 %v5384_v52, 16  ;;  %v3238_v61 = vld [vmem:[#allocation3 + $0x8] sm:$0xe] }
 0x19b   : > { %v5032_v27 = vcombine.low %v2610_v63, %v2610_v63  ;;  %v5033_v3 = vcombine.high %v2610_v63, %v2610_v63  ;;  %v2597_v34 = vsel %vm6725_vm12, 0, %v2561_v54  ;;  %v2989_v53 = vshll.u32 %v2957_v57, 16  ;;  %v6812_v48 = vld [vmem:[#allocation3 + $0x24] sm:$0x1] }
 0x19c   : > { %v2608_v43 = vsel %vm6733_vm13, %v2597_v34, 0  ;;  %v2582_v46 = vor.u32 %v2580_v41, %v2579_v62  ;;  %v2565_v38 = vrot.slane %v2563_v1, 7  ;;  %v5964_v8 = vld [vmem:[#allocation3 + $0x10] ss:$8 sps:$4 sm:$0xff]   ;;  %v2988_v9 = vrot.slane %v2986_v42, 4  ;;  %v5974_v63 = vld [vmem:[%s7289_s2 + $0xa0] sm:$0xff]  }
 0x19d   : > { %2681 = vst [vmem:[#allocation3 + $0x38] sm:$0xf] %v5032_v27  ;;  %2682 = vst [vmem:[#allocation3 + $0x3c] sm:$0x1] %v5033_v3  ;;  %v5028_v5 = vcombine.low %v2608_v43, %v2608_v43  ;;  %v5029_v6 = vcombine.high %v2608_v43, %v2608_v43  ;;  %v2995_v4 = vshll.u32 %v6776_v24, 16  ;;  %v2991_v49 = vrot.slane %v2989_v53, 5  ;;  %5675 = vmatmul.mubr.bf16.vlgmr.msra.gmra.mxu1 %v5964_v8 }
 0x19e   : > { %v2600_v12 = vsel %vm6725_vm12, 0, %v2582_v46  ;;  %v2568_v39 = vor.u32 %v2566_v2, %v2565_v38  ;;  %v2959_v40 = vld [vmem:[#allocation3 + $0x10] sm:$0xf]  ;;  %v6792_v29 = vld [vmem:[#allocation3 + $0x14] sm:$0x1]  ;;  %5717 = vmatpush3.bf16.msra.mxu1 %v6679_v7  ;;  %v3019_v21 = vrot.slane %v3017_v51, 5  ;;  %v3267_v34 = vsel %vm6819_vm0, %v5084_v11, %v3266_v28 }
 0x19f   : > { %2677 = vst [vmem:[#allocation3 + $0x28] sm:$0xf] %v5028_v5  ;;  %2678 = vst [vmem:[#allocation3 + $0x2c] sm:$0x1] %v5029_v6  ;;  %v2611_v15 = vsel %vm6733_vm13, %v2600_v12, 0  ;;  %v2997_v19 = vrot.slane %v2995_v4, 5  ;;  %v2992_v45 = vor.u32 %v2991_v49, %v2988_v9  ;;  %5718 = vmatprep.subr.bf16.mxu1 %v5968_v50 }
 0x1a0   : > { %v3000_v44 = vshrl.u32 %v2959_v40, 16  ;;  %v3003_v32 = vshll.u32 %v2959_v40, 16  ;;  %v5034_v10 = vcombine.low %v2611_v15, %v2611_v15  ;;  %v5035_v58 = vcombine.high %v2611_v15, %v2611_v15  ;;  %v5975_v28 = vld [vmem:[%s7289_s2 + $0xf0] sm:$0xff]   ;;  %v5976_v6 = vld [vmem:[%s7289_s2 + $0x98] sm:$0xff]  }
 0x1a1   : > { %v2598_v37 = vsel %vm6725_vm12, 0, %v2568_v39  ;;  %v3009_v33 = vshll.u32 %v6792_v29, 16  ;;  %v2993_v7 = vrot.slane %v2992_v45, 4  ;;  %v3023_v25 = vshll.u32 %v6794_v56, 16 }
 0x1a2   : > { %v2609_v14 = vsel %vm6733_vm13, %v2598_v37, 0  ;;  %v3002_v13 = vrot.slane %v3000_v44, 4  ;;  %v3005_v47 = vrot.slane %v3003_v32, 5  ;;  %2683 = vst [vmem:[#allocation3 + $0x40] sm:$0xf] %v5034_v10  ;;  %v5085_v35 = vrot.slane %v3238_v61, 9  ;;  %5719 = vmatpush3.bf16.msra.mxu1 %v5968_v50 }
 0x1a3   : > { %2684 = vst [vmem:[#allocation3 + $0x44] sm:$0x1] %v5035_v58  ;;  %v5030_v30 = vcombine.low %v2609_v14, %v2609_v14  ;;  %v5031_v20 = vcombine.high %v2609_v14, %v2609_v14  ;;  %v3011_v22 = vrot.slane %v3009_v33, 5  ;;  %v2998_v31 = vsel %vm6424_vm8, %v2993_v7, %v2997_v19  ;;  %5720 = vmatprep.subr.bf16.mxu1 %v5971_v59  ;;  %v5977_v37 = vld [vmem:[%s7289_s2 + $0xe8] sm:$0xff]   ;;  %v5979_v61 = vld [vmem:[%s7289_s2 + $0x90] sm:$0xff]  }
 0x1a4   : > { %v3006_v23 = vor.u32 %v3005_v47, %v3002_v13  ;;  %v3020_v52 = vor.u32 %v3019_v21, %v6772_v60  ;;  %v3270_v36 = vrot.slane %v6776_v24, 5  ;;  %v3028_v54 = vshrl.u32 %v2963_v17, 16  ;;  %v2969_v1 = vld [vmem:[#allocation3 + $0x38] sm:$0xf]  ;;  %v6845_v39 = vld [vmem:[#allocation3 + $0x3c] sm:$0x1] }
 0x1a5   : > { %2679 = vst [vmem:[#allocation3 + $0x30] sm:$0xf] %v5030_v30  ;;  %2680 = vst [vmem:[#allocation3 + $0x34] sm:$0x1] %v5031_v20  ;;  %v5072_v41 = vcombine.low %v2984_v26, %v2998_v31  ;;  %v3025_v57 = vrot.slane %v3023_v25, 5  ;;  %v3031_v62 = vshll.u32 %v2963_v17, 16 }
 0x1a6   : > { %v3007_v51 = vrot.slane %v3006_v23, 4  ;;  %v5969_v2 = vld [vmem:[#allocation3 + $0x20] ss:$8 sps:$4 sm:$0xff]   ;;  %v3021_v27 = vrot.slane %v3020_v52, 4  ;;  %v3030_v24 = vrot.slane %v3028_v54, 4  ;;  %5721 = vmatpush3.bf16.msra.mxu1 %v5971_v59  ;;  %v3271_v50 = vsel %vm6819_vm0, %v5085_v35, %v3270_v36 }
 0x1a7   : > { %5708 = vmatprep.mubr.bf16.mxu0 %v5072_v41  ;;  %v2965_v42 = vld [vmem:[#allocation3 + $0x28] sm:$0xf]  ;;  %v6831_v43 = vld [vmem:[#allocation3 + $0x2c] sm:$0x1]  ;;  %v3033_v46 = vrot.slane %v3031_v62, 5  ;;  %5678 = vmatprep.mubr.bf16.mxu1 %v5969_v2  ;;  %v3037_v11 = vshll.u32 %v6812_v48, 16  ;;  %v5108_v15 = vcombine.low %v3267_v34, %v3271_v50 }
 0x1a8   : > { %v3012_v3 = vsel %vm6424_vm8, %v3007_v51, %v3011_v22  ;;  %v3026_v38 = vsel %vm6424_vm8, %v3021_v27, %v3025_v57  ;;  %v3042_v53 = vshrl.u32 %v2965_v42, 16  ;;  %v3045_v5 = vshll.u32 %v2965_v42, 16  ;;  %5722 = vmatprep.subr.bf16.mxu1 %v5974_v63  ;;  %v5980_v35 = vld [vmem:[%s7289_s2 + $0xe0] sm:$0xff]   ;;  %v5981_v31 = vld [vmem:[%s7289_s2 + $0x88] sm:$0xff]   ;;  %v3239_v52 = vld [vmem:[#allocation3 + $0x10] sm:$0xe] }
 0x1a9   : > { %v5073_v0 = vcombine.low %v3012_v3, %v3026_v38  ;;  %v3034_v55 = vor.u32 %v3033_v46, %v3030_v24  ;;  %v3070_v8 = vshrl.u32 %v2969_v1, 16  ;;  %v3051_v12 = vshll.u32 %v6831_v43, 16  ;;  %v3620_v36 = vld [vmem:[#allocation3 + $0x8] sm:$0xf]  ;;  %v3622_v2 = vld [vmem:[#allocation3 + $0x10] sm:$0xf] }
 0x1aa   : > { %v3044_v9 = vrot.slane %v3042_v53, 4  ;;  %v3047_v4 = vrot.slane %v3045_v5, 5  ;;  %v3073_v26 = vshll.u32 %v2969_v1, 16  ;;  %5723 = vmatpush3.bf16.msra.mxu1 %v5974_v63  ;;  %v3079_v20 = vshll.u32 %v6845_v39, 16  ;;  %v3242_v57 = vld [vmem:[#allocation3 + $0x28] sm:$0xe] }
 0x1ab   : > { %5709 = vmatmul.mubr.bf16.vlgmr.msra.gmra.mxu0 %v5073_v0  ;;  %v3072_v40 = vrot.slane %v3070_v8, 4  ;;  %v3035_v19 = vrot.slane %v3034_v55, 4  ;;  %v3053_v13 = vrot.slane %v3051_v12, 5  ;;  %5724 = vmatprep.subr.bf16.mxu1 %v5976_v6  ;;  %v3240_v1 = vld [vmem:[#allocation3 + $0x18] sm:$0xe]  ;;  %v3637_v27 = vshrl.u32 %v3620_v36, 16 }
 0x1ac   : > { %v5972_v49 = vld [vmem:[#allocation3 + $0x30] ss:$8 sps:$4 sm:$0xff]   ;;  %5741 = vmatpush3.bf16.msra.mxu0 %v6693_v16  ;;  %v3048_v44 = vor.u32 %v3047_v4, %v3044_v9  ;;  %v6848_v10 = vld [vmem:[#allocation3 + $0x34] sm:$0x1]  ;;  %v3075_v58 = vrot.slane %v3073_v26, 5  ;;  %v3039_v16 = vrot.slane %v3037_v11, 5 }
 0x1ad   : > { %v2967_v32 = vld [vmem:[#allocation3 + $0x30] sm:$0xf]  ;;  %5679 = vmatmul.mubr.bf16.gmra.mxu1 %v5972_v49  ;;  %5742 = vmatprep.subr.bf16.mxu0 %v5975_v28  ;;  %v3065_v30 = vshll.u32 %v6848_v10, 16  ;;  %v3081_v51 = vrot.slane %v3079_v20, 5  ;;  %v3640_v24 = vshll.u32 %v3620_v36, 16  ;;  %v5982_v34 = vld [vmem:[%s7289_s2 + $0xd8] sm:$0xff]  }
 0x1ae   : > { %v3056_v45 = vshrl.u32 %v2967_v32, 16  ;;  %v3059_v59 = vshll.u32 %v2967_v32, 16  ;;  %5732 = vmatprep.mubr.bf16.mxu1 %v5108_v15  ;;  %v3049_v14 = vrot.slane %v3048_v44, 4  ;;  %v3076_v47 = vor.u32 %v3075_v58, %v3072_v40  ;;  %5725 = vmatpush3.bf16.msra.mxu1 %v5976_v6  ;;  %v5983_v42 = vld [vmem:[%s7289_s2 + $0x80] sm:$0xff]   ;;  %v5978_v53 = vld [vmem:[#allocation3 + $0x8] ss:$8 sps:$4 sm:$0xff]  }
 0x1af   : > { %v3040_v7 = vsel %vm6424_vm8, %v3035_v19, %v3039_v16  ;;  %5726 = vmatprep.subr.bf16.mxu1 %v5979_v61  ;;  %v3067_v41 = vrot.slane %v3065_v30, 5  ;;  %v5086_v46 = vrot.slane %v3239_v52, 9  ;;  %v3274_v38 = vrot.slane %v6792_v29, 5  ;;  %v3241_v50 = vld [vmem:[#allocation3 + $0x20] sm:$0xe]  ;;  %v5985_v8 = vld [vmem:[%s7289_s2 + $0x138] sm:$0xff]  }
 0x1b0   : > { %v3058_v33 = vrot.slane %v3056_v45, 4  ;;  %v3061_v17 = vrot.slane %v3059_v59, 5  ;;  %v3054_v21 = vsel %vm6424_vm8, %v3049_v14, %v3053_v13  ;;  %5743 = vmatpush3.bf16.msra.mxu0 %v5975_v28  ;;  %v3077_v25 = vrot.slane %v3076_v47, 4  ;;  %v6890_v26 = vld [vmem:[#allocation3 + $0x14] sm:$0x1]  ;;  %v5986_v13 = vld [vmem:[%s7289_s2 + $0xc8] sm:$0xff]  }
 0x1b1   : > { %v5074_v23 = vcombine.low %v3040_v7, %v3054_v21  ;;  %5744 = vmatprep.subr.bf16.mxu0 %v5977_v37  ;;  %v5089_v5 = vrot.slane %v3242_v57, 9  ;;  %v3286_v0 = vrot.slane %v6831_v43, 5  ;;  %v5087_v28 = vrot.slane %v3240_v1, 9  ;;  %v5984_v43 = vld [vmem:[%s7289_s2 + $0xd0] sm:$0xff]   ;;  %v6896_v44 = vld [vmem:[#allocation3 + $0xc] sm:$0x1] }
 0x1b2   : > { %v3062_v22 = vor.u32 %v3061_v17, %v3058_v33  ;;  %5727 = vmatpush3.bf16.msra.mxu1 %v5979_v61  ;;  %v3082_v62 = vsel %vm6424_vm8, %v3077_v25, %v3081_v51  ;;  %v3278_v55 = vrot.slane %v6794_v56, 5  ;;  %v3651_v11 = vshrl.u32 %v3622_v2, 16  ;;  %v3243_v19 = vld [vmem:[#allocation3 + $0x30] sm:$0xe]  ;;  %v3244_v59 = vld [vmem:[#allocation3 + $0x38] sm:$0xe] }
 0x1b3   : > { %5712 = vmatprep.mubr.bf16.mxu0 %v5074_v23  ;;  %5728 = vmatprep.subr.bf16.mxu1 %v5981_v31  ;;  %v3654_v6 = vshll.u32 %v3622_v2, 16  ;;  %v5088_v9 = vrot.slane %v3241_v50, 9  ;;  %v3282_v29 = vrot.slane %v6812_v48, 5  ;;  %v3639_v4 = vrot.slane %v3637_v27, 4  ;;  %v5987_v45 = vld [vmem:[%s7289_s2 + $0x130] sm:$0xff]   ;;  %v5989_v21 = vld [vmem:[%s7289_s2 + $0x128] sm:$0xff]  }
 0x1b4   : > { %v3063_v54 = vrot.slane %v3062_v22, 4  ;;  %5745 = vmatpush3.bf16.msra.mxu0 %v5977_v37  ;;  %v3642_v12 = vrot.slane %v3640_v24, 5  ;;  %v3275_v56 = vsel %vm6819_vm0, %v5086_v46, %v3274_v38  ;;  %v3653_v49 = vrot.slane %v3651_v11, 4  ;;  %v5991_v51 = vld [vmem:[%s7289_s2 + $0x178] sm:$0xff]   ;;  %v3626_v57 = vld [vmem:[#allocation3 + $0x20] sm:$0xf] }
 0x1b5   : > { %5746 = vmatprep.subr.bf16.mxu0 %v5980_v35  ;;  %v3656_v40 = vrot.slane %v3654_v6, 5  ;;  %v3287_v15 = vsel %vm6819_vm0, %v5089_v5, %v3286_v0  ;;  %v3279_v48 = vsel %vm6819_vm0, %v5087_v28, %v3278_v55  ;;  %v3283_v37 = vsel %vm6819_vm0, %v5088_v9, %v3282_v29  ;;  %v5995_v1 = vld [vmem:[%s7289_s2 + $0x118] sm:$0xff]   ;;  %v3903_v2 = vld [vmem:[#allocation3 + $0x10] sm:$0xe]  ;;  %v3628_v38 = vld [vmem:[#allocation3 + $0x28] sm:$0xf] }
 0x1b6   : > { %v3068_v63 = vsel %vm6424_vm8, %v3063_v54, %v3067_v41  ;;  %5729 = vmatpush3.bf16.msra.mxu1 %v5981_v31  ;;  %v5109_v58 = vcombine.low %v3275_v56, %v3279_v48  ;;  %v3643_v61 = vor.u32 %v3642_v12, %v3639_v4  ;;  %v3660_v16 = vshll.u32 %v6890_v26, 16  ;;  %v5993_v54 = vld [vmem:[%s7289_s2 + $0x120] sm:$0xff]   ;;  %v3630_v27 = vld [vmem:[#allocation3 + $0x30] sm:$0xf]  ;;  %v5997_v9 = vld [vmem:[%s7289_s2 + $0x168] sm:$0xff]  }
 0x1b7   : > { %v5075_v3 = vcombine.low %v3068_v63, %v3082_v62  ;;  %5730 = vmatprep.subr.bf16.mxu1 %v5983_v42  ;;  %v3657_v32 = vor.u32 %v3656_v40, %v3653_v49  ;;  %v5110_v14 = vcombine.low %v3283_v37, %v3287_v15  ;;  %v5090_v47 = vrot.slane %v3243_v19, 9  ;;  %v5990_v63 = vld [vmem:[#allocation3 + $0x18] ss:$8 sps:$4 sm:$0xff]   ;;  %v5994_v62 = vld [vmem:[%s7289_s2 + $0x170] sm:$0xff]  }
 0x1b8   : > { %5747 = vmatpush3.bf16.msra.mxu0 %v5980_v35  ;;  %v3290_v33 = vrot.slane %v6848_v10, 5  ;;  %v3646_v17 = vshll.u32 %v6896_v44, 16  ;;  %v5091_v20 = vrot.slane %v3244_v59, 9  ;;  %v3294_v7 = vrot.slane %v6845_v39, 5  ;;  %v5988_v10 = vld [vmem:[%s7289_s2 + $0xc0] sm:$0xff]   ;;  %v5998_v11 = vld [vmem:[%s7289_s2 + $0x110] sm:$0xff]  }
 0x1b9   : > { %5713 = vmatmul.mubr.bf16.gmra.mxu0 %v5075_v3  ;;  %5748 = vmatprep.subr.bf16.mxu0 %v5982_v34  ;;  %v3658_v30 = vrot.slane %v3657_v32, 4  ;;  %v3644_v23 = vrot.slane %v3643_v61, 4  ;;  %v3662_v22 = vrot.slane %v3660_v16, 5  ;;  %v5992_v24 = vld [vmem:[#allocation3 + $0x28] ss:$8 sps:$4 sm:$0xff]   ;;  %v3682_v46 = vshll.u32 %v3626_v57, 16 }
 0x1ba   : > { %5756 = vmatprep.mubr.bf16.mxu0 %v5978_v53  ;;  %5731 = vmatpush3.bf16.msra.mxu1 %v5983_v42  ;;  %v3291_v25 = vsel %vm6819_vm0, %v5090_v47, %v3290_v33  ;;  %v3648_v35 = vrot.slane %v3646_v17, 5  ;;  %v3295_v31 = vsel %vm6819_vm0, %v5091_v20, %v3294_v7  ;;  %v3902_v3 = vld [vmem:[#allocation3 + $0x8] sm:$0xe]  ;;  %v3679_v42 = vshrl.u32 %v3626_v57, 16  ;;  %v3634_v49 = vld [vmem:[#allocation3 + $0x40] sm:$0xf] }
 0x1bb   : > { %5764 = vmatprep.subr.bf16.mxu1 %v5985_v8  ;;  %v3663_v39 = vsel %vm6424_vm8, %v3658_v30, %v3662_v22  ;;  %v5111_v52 = vcombine.low %v3291_v25, %v3295_v31  ;;  %v5177_v50 = vrot.slane %v3903_v2, 9  ;;  %v3932_v53 = vrot.slane %v6890_v26, 5  ;;  %v3632_v48 = vld [vmem:[#allocation3 + $0x38] sm:$0xf]  ;;  %v5999_v32 = vld [vmem:[%s7289_s2 + $0x160] sm:$0xff]  }
 0x1bc   : > { %5749 = vmatpush3.bf16.msra.mxu0 %v5982_v34  ;;  %v3649_v36 = vsel %vm6424_vm8, %v3644_v23, %v3648_v35  ;;  %v3624_v34 = vld [vmem:[#allocation3 + $0x18] sm:$0xf]  ;;  %v3707_v5 = vshrl.u32 %v3630_v27, 16  ;;  %v3710_v0 = vshll.u32 %v3630_v27, 16  ;;  %v3693_v6 = vshrl.u32 %v3628_v38, 16 }
 0x1bd   : > { %5750 = vmatprep.subr.bf16.mxu0 %v5984_v43  ;;  %5733 = vmatmul.mubr.bf16.vlgmr.msra.gmra.mxu1 %v5109_v58  ;;  %v5164_v41 = vcombine.low %v3649_v36, %v3663_v39  ;;  %v3665_v28 = vshrl.u32 %v3624_v34, 16  ;;  %v3668_v55 = vshll.u32 %v3624_v34, 16  ;;  %v5176_v29 = vrot.slane %v3902_v3, 9  ;;  %v6952_v58 = vld [vmem:[#allocation3 + $0x24] sm:$0x1]  ;;  %v6001_v39 = vld [vmem:[%s7289_s2 + $0x158] sm:$0xff]  }
 0x1be   : > { %5736 = vmatprep.mubr.bf16.mxu1 %v5110_v14  ;;  %5765 = vmatpush3.bf16.msra.mxu1 %v5985_v8  ;;  %v3696_v8 = vshll.u32 %v3628_v38, 16  ;;  %v3928_v4 = vrot.slane %v6896_v44, 5  ;;  %v3681_v12 = vrot.slane %v3679_v42, 4  ;;  %v3709_v56 = vrot.slane %v3707_v5, 4  ;;  %v6000_v44 = vld [vmem:[%s7289_s2 + $0x108] sm:$0xff]   ;;  %v6004_v2 = vld [vmem:[%s7289_s2 + $0x1b8] sm:$0xff]  }
 0x1bf   : > { %5766 = vmatprep.subr.bf16.mxu1 %v5987_v45  ;;  %v3712_v26 = vrot.slane %v3710_v0, 5  ;;  %v3933_v40 = vsel %vm6819_vm0, %v5177_v50, %v3932_v53  ;;  %v3667_v15 = vrot.slane %v3665_v28, 4  ;;  %v3670_v19 = vrot.slane %v3668_v55, 5  ;;  %v5996_v59 = vld [vmem:[#allocation3 + $0x38] ss:$8 sps:$4 sm:$0xff]   ;;  %v6003_v34 = vld [vmem:[%s7289_s2 + $0x150] sm:$0xff]  }
 0x1c0   : > { %5751 = vmatpush3.bf16.msra.mxu0 %v5984_v43  ;;  %v3684_v43 = vrot.slane %v3682_v46, 5  ;;  %v3695_v37 = vrot.slane %v3693_v6, 4  ;;  %v3929_v61 = vsel %vm6819_vm0, %v5176_v29, %v3928_v4  ;;  %v6956_v14 = vld [vmem:[#allocation3 + $0x34] sm:$0x1]  ;;  %v3738_v47 = vshll.u32 %v3634_v49, 16 }
 0x1c1   : > { %5752 = vmatprep.subr.bf16.mxu0 %v5986_v13  ;;  %v5200_v33 = vcombine.low %v3929_v61, %v3933_v40  ;;  %v6958_v17 = vld [vmem:[#allocation3 + $0x1c] sm:$0x1]  ;;  %v3713_v30 = vor.u32 %v3712_v26, %v3709_v56  ;;  %v3721_v20 = vshrl.u32 %v3632_v48, 16  ;;  %v3724_v7 = vshll.u32 %v3632_v48, 16  ;;  %v6961_v22 = vld [vmem:[#allocation3 + $0x2c] sm:$0x1] }
 0x1c2   : > { %5767 = vmatpush3.bf16.msra.mxu1 %v5987_v45  ;;  %v3698_v45 = vrot.slane %v3696_v8, 5  ;;  %v3685_v16 = vor.u32 %v3684_v43, %v3681_v12  ;;  %v3688_v23 = vshll.u32 %v6952_v58, 16  ;;  %v3716_v35 = vshll.u32 %v6956_v14, 16  ;;  %v6975_v3 = vld [vmem:[#allocation3 + $0x44] sm:$0x1]  ;;  %v6006_v8 = vld [vmem:[%s7289_s2 + $0x1b0] sm:$0xff]  }
 0x1c3   : > { %5768 = vmatprep.subr.bf16.mxu1 %v5989_v21  ;;  %v3674_v31 = vshll.u32 %v6958_v17, 16  ;;  %v3723_v57 = vrot.slane %v3721_v20, 4  ;;  %v6982_v38 = vld [vmem:[#allocation3 + $0x3c] sm:$0x1]  ;;  %v3744_v55 = vshll.u32 %v6975_v3, 16  ;;  %v6005_v12 = vld [vmem:[%s7289_s2 + $0x148] sm:$0xff]  }
 0x1c4   : > { %5753 = vmatpush3.bf16.msra.mxu0 %v5986_v13  ;;  %v3735_v13 = vshrl.u32 %v3634_v49, 16  ;;  %v3699_v25 = vor.u32 %v3698_v45, %v3695_v37  ;;  %v4283_v29 = vld [vmem:[#allocation3 + $0x10] sm:$0xf]  ;;  %v4285_v26 = vld [vmem:[#allocation3 + $0x18] sm:$0xf]  ;;  %v6007_v37 = vld [vmem:[%s7289_s2 + $0x140] sm:$0xff]  }
 0x1c5   : > { %5754 = vmatprep.subr.bf16.mxu0 %v5988_v10  ;;  %5737 = vmatmul.mubr.bf16.gmra.mxu1 %v5111_v52  ;;  %v3686_v52 = vrot.slane %v3685_v16, 4  ;;  %v3676_v42 = vrot.slane %v3674_v31, 5  ;;  %v3746_v49 = vrot.slane %v3744_v55, 5  ;;  %v3905_v40 = vld [vmem:[#allocation3 + $0x20] sm:$0xe]  ;;  %v4314_v61 = vshrl.u32 %v4285_v26, 16 }
 0x1c6   : > { %5769 = vmatpush3.bf16.msra.mxu1 %v5989_v21  ;;  %5780 = vmatprep.mubr.bf16.mxu1 %v5164_v41  ;;  %v3671_v21 = vor.u32 %v3670_v19, %v3667_v15  ;;  %v3737_v36 = vrot.slane %v3735_v13, 4  ;;  %v3702_v41 = vshll.u32 %v6961_v22, 16  ;;  %v3700_v27 = vrot.slane %v3699_v25, 4  ;;  %v6009_v31 = vld [vmem:[#allocation3 + $0x10] ss:$8 sps:$4 sm:$0xff]  }
 0x1c7   : > { %5770 = vmatprep.subr.bf16.mxu1 %v5993_v54  ;;  %v4300_v15 = vshrl.u32 %v4283_v29, 16  ;;  %v4303_v19 = vshll.u32 %v4283_v29, 16  ;;  %v4317_v16 = vshll.u32 %v4285_v26, 16  ;;  %v6016_v26 = vld [vmem:[%s7289_s2 + $0x1e0] sm:$0xff]  }
 0x1c8   : > { %5755 = vmatpush3.bf16.msra.mxu0 %v5988_v10  ;;  %v6002_v10 = vld [vmem:[%s7289_s2 + $0x100] sm:$0xff]   ;;  %v3704_v53 = vrot.slane %v3702_v41, 5 }
 0x1c9   : > { %5788 = vmatprep.subr.bf16.mxu0 %v5991_v51 }
 0x1ca   : > { %5771 = vmatpush3.bf16.msra.mxu1 %v5993_v54  ;;  %v3740_v54 = vrot.slane %v3738_v47, 5  ;;  %v3705_v6 = vsel %vm6424_vm8, %v3700_v27, %v3704_v53  ;;  %v5179_v47 = vrot.slane %v3905_v40, 9  ;;  %v6012_v27 = vld [vmem:[%s7289_s2 + $0x1f0] sm:$0xff]  }
 0x1cb   : > { %5757 = vmatmul.mubr.bf16.vlgmr.msra.gmra.mxu0 %v5990_v63  ;;  %5772 = vmatprep.subr.bf16.mxu1 %v5995_v1  ;;  %v3726_v63 = vrot.slane %v3724_v7, 5  ;;  %v3948_v7 = vrot.slane %v6956_v14, 5  ;;  %v3944_v14 = vrot.slane %v6961_v22, 5  ;;  %v7026_v22 = vld [vmem:[#allocation3 + $0x1c] sm:$0x1] }
 0x1cc   : > { %5760 = vmatprep.mubr.bf16.mxu0 %v5992_v24  ;;  %5789 = vmatpush3.bf16.msra.mxu0 %v5991_v51  ;;  %v3714_v51 = vrot.slane %v3713_v30, 4  ;;  %v3718_v24 = vrot.slane %v3716_v35, 5  ;;  %v3741_v50 = vor.u32 %v3740_v54, %v3737_v36  ;;  %v3906_v30 = vld [vmem:[#allocation3 + $0x28] sm:$0xe]  ;;  %v3936_v35 = vrot.slane %v6958_v17, 5 }
 0x1cd   : > { %5790 = vmatprep.subr.bf16.mxu0 %v5994_v62  ;;  %v3727_v0 = vor.u32 %v3726_v63, %v3723_v57  ;;  %v4316_v36 = vrot.slane %v4314_v61, 4  ;;  %v4319_v54 = vrot.slane %v4317_v16, 5  ;;  %v7020_v17 = vld [vmem:[#allocation3 + $0x14] sm:$0x1]  ;;  %v3909_v57 = vld [vmem:[#allocation3 + $0x40] sm:$0xe] }
 0x1ce   : > { %5773 = vmatpush3.bf16.msra.mxu1 %v5995_v1  ;;  %v3690_v1 = vrot.slane %v3688_v23, 5  ;;  %v3719_v5 = vsel %vm6424_vm8, %v3714_v51, %v3718_v24  ;;  %v3742_v43 = vrot.slane %v3741_v50, 4  ;;  %v4305_v23 = vrot.slane %v4303_v19, 5  ;;  %v6013_v24 = vld [vmem:[%s7289_s2 + $0x198] sm:$0xff]   ;;  %v6019_v19 = vld [vmem:[%s7289_s2 + $0x180] sm:$0xff]  }
 0x1cf   : > { %5774 = vmatprep.subr.bf16.mxu1 %v5998_v11  ;;  %v5166_v4 = vcombine.low %v3705_v6, %v3719_v5  ;;  %v3728_v56 = vrot.slane %v3727_v0, 4  ;;  %v5183_v53 = vrot.slane %v3909_v57, 9  ;;  %v3956_v5 = vrot.slane %v6975_v3, 5  ;;  %v6015_v6 = vld [vmem:[%s7289_s2 + $0x190] sm:$0xff]   ;;  %v6014_v3 = vld [vmem:[%s7289_s2 + $0x1e8] sm:$0xff]  }
 0x1d0   : > { %5791 = vmatpush3.bf16.msra.mxu0 %v5994_v62  ;;  %v3672_v62 = vrot.slane %v3671_v21, 4  ;;  %v3691_v46 = vsel %vm6424_vm8, %v3686_v52, %v3690_v1  ;;  %v3747_v45 = vsel %vm6424_vm8, %v3742_v43, %v3746_v49  ;;  %v4302_v21 = vrot.slane %v4300_v15, 4  ;;  %v6017_v49 = vld [vmem:[%s7289_s2 + $0x188] sm:$0xff]  }
 0x1d1   : > { %5792 = vmatprep.subr.bf16.mxu0 %v5997_v9  ;;  %v5180_v52 = vrot.slane %v3906_v30, 9  ;;  %v3957_v29 = vsel %vm6819_vm0, %v5183_v53, %v3956_v5  ;;  %v4289_v15 = vld [vmem:[#allocation3 + $0x28] sm:$0xf] }
 0x1d2   : > { %5775 = vmatpush3.bf16.msra.mxu1 %v5998_v11  ;;  %v3677_v28 = vsel %vm6424_vm8, %v3672_v62, %v3676_v42  ;;  %v4306_v63 = vor.u32 %v4305_v23, %v4302_v21  ;;  %v4309_v42 = vshll.u32 %v7020_v17, 16  ;;  %v4297_v61 = vld [vmem:[#allocation3 + $0x48] sm:$0xf] }
 0x1d3   : > { %5761 = vmatmul.mubr.bf16.gmra.mxu0 %v5996_v59  ;;  %5776 = vmatprep.subr.bf16.mxu1 %v6000_v44  ;;  %v5165_v11 = vcombine.low %v3677_v28, %v3691_v46  ;;  %v3904_v59 = vld [vmem:[#allocation3 + $0x18] sm:$0xe]  ;;  %v4320_v46 = vor.u32 %v4319_v54, %v4316_v36  ;;  %v4323_v28 = vshll.u32 %v7026_v22, 16  ;;  %v4398_v23 = vshrl.u32 %v4297_v61, 16  ;;  %v4295_v54 = vld [vmem:[#allocation3 + $0x40] sm:$0xf] }
 0x1d4   : > { %5793 = vmatpush3.bf16.msra.mxu0 %v5997_v9  ;;  %5804 = vmatprep.mubr.bf16.mxu0 %v5200_v33  ;;  %v3730_v9 = vshll.u32 %v6982_v38, 16  ;;  %v3940_v33 = vrot.slane %v6952_v58, 5  ;;  %v5178_v25 = vrot.slane %v3904_v59, 9  ;;  %v6011_v58 = vld [vmem:[%s7289_s2 + $0x1a0] sm:$0xff]   ;;  %v4307_v0 = vrot.slane %v4306_v63, 4 }
 0x1d5   : > { %5794 = vmatprep.subr.bf16.mxu0 %v5999_v32  ;;  %v4293_v59 = vld [vmem:[#allocation3 + $0x38] sm:$0xf]  ;;  %v4387_v53 = vshll.u32 %v4295_v54, 16 }
 0x1d6   : > { %5777 = vmatpush3.bf16.msra.mxu1 %v6000_v44  ;;  %v3732_v48 = vrot.slane %v3730_v9, 5  ;;  %v3907_v44 = vld [vmem:[#allocation3 + $0x30] sm:$0xe]  ;;  %v3941_v41 = vsel %vm6819_vm0, %v5179_v47, %v3940_v33  ;;  %v3937_v62 = vsel %vm6819_vm0, %v5178_v25, %v3936_v35  ;;  %v4321_v9 = vrot.slane %v4320_v46, 4  ;;  %v6022_v47 = vld [vmem:[%s7289_s2 + $0x238] sm:$0xff]  }
 0x1d7   : > { %5778 = vmatprep.subr.bf16.mxu1 %v6002_v10  ;;  %v5181_v20 = vrot.slane %v3907_v44, 9  ;;  %v5201_v1 = vcombine.low %v3937_v62, %v3941_v41  ;;  %v4287_v44 = vld [vmem:[#allocation3 + $0x20] sm:$0xf]  ;;  %v4373_v21 = vshll.u32 %v4293_v59, 16  ;;  %v6025_v35 = vld [vmem:[%s7289_s2 + $0x230] sm:$0xff]   ;;  %v6024_v62 = vld [vmem:[%s7289_s2 + $0x1c8] sm:$0xff]  }
 0x1d8   : > { %5795 = vmatpush3.bf16.msra.mxu0 %v5999_v32  ;;  %v6008_v32 = vld [vmem:[%s7289_s2 + $0x1a8] sm:$0xff]   ;;  %v3733_v13 = vsel %vm6424_vm8, %v3728_v56, %v3732_v48  ;;  %v4291_v48 = vld [vmem:[#allocation3 + $0x30] sm:$0xf]  ;;  %v4328_v33 = vshrl.u32 %v4287_v44, 16  ;;  %v4331_v30 = vshll.u32 %v4287_v44, 16 }
 0x1d9   : > { %5796 = vmatprep.subr.bf16.mxu0 %v6001_v39  ;;  %v3949_v51 = vsel %vm6819_vm0, %v5181_v20, %v3948_v7  ;;  %v4356_v16 = vshrl.u32 %v4291_v48, 16  ;;  %v6020_v20 = vld [vmem:[%s7289_s2 + $0x1d0] sm:$0xff]   ;;  %v4370_v7 = vshrl.u32 %v4293_v59, 16  ;;  %v6021_v25 = vld [vmem:[#allocation3 + $0x20] ss:$8 sps:$4 sm:$0xff]  }
 0x1da   : > { %5779 = vmatpush3.bf16.msra.mxu1 %v6002_v10  ;;  %v5167_v10 = vcombine.low %v3733_v13, %v3747_v45  ;;  %v4345_v45 = vshll.u32 %v4289_v15, 16  ;;  %v4359_v13 = vshll.u32 %v4291_v48, 16  ;;  %v7075_v41 = vld [vmem:[#allocation3 + $0x24] sm:$0x1]  ;;  %v4330_v57 = vrot.slane %v4328_v33, 4 }
 0x1db   : > { %5812 = vmatprep.subr.bf16.mxu1 %v6004_v2  ;;  %v4333_v63 = vrot.slane %v4331_v30, 5  ;;  %v7083_v46 = vld [vmem:[#allocation3 + $0x34] sm:$0x1]  ;;  %v7105_v59 = vld [vmem:[#allocation3 + $0x44] sm:$0x1] }
 0x1dc   : > { %5797 = vmatpush3.bf16.msra.mxu0 %v6001_v39  ;;  %v6010_v39 = vld [vmem:[%s7289_s2 + $0x1f8] sm:$0xff]   ;;  %v4361_v36 = vrot.slane %v4359_v13, 5 }
 0x1dd   : > { %5798 = vmatprep.subr.bf16.mxu0 %v6003_v34  ;;  %5781 = vmatmul.mubr.bf16.vlgmr.msra.gmra.mxu1 %v5165_v11  ;;  %v3952_v11 = vrot.slane %v6982_v38, 5  ;;  %v4325_v38 = vrot.slane %v4323_v28, 5  ;;  %v6028_v28 = vld [vmem:[%s7289_s2 + $0x228] sm:$0xff]  }
 0x1de   : > { %5784 = vmatprep.mubr.bf16.mxu1 %v5166_v4  ;;  %5813 = vmatpush3.bf16.msra.mxu1 %v6004_v2  ;;  %v3945_v2 = vsel %vm6819_vm0, %v5180_v52, %v3944_v14  ;;  %v6023_v52 = vld [vmem:[#allocation3 + $0x30] ss:$8 sps:$4 sm:$0xff]   ;;  %v4358_v14 = vrot.slane %v4356_v16, 4 }
 0x1df   : > { %5814 = vmatprep.subr.bf16.mxu1 %v6006_v8  ;;  %v5202_v50 = vcombine.low %v3945_v2, %v3949_v51  ;;  %v4326_v56 = vsel %vm6424_vm8, %v4321_v9, %v4325_v38  ;;  %v7077_v51 = vld [vmem:[#allocation3 + $0x2c] sm:$0x1]  ;;  %v4337_v9 = vshll.u32 %v7075_v41, 16 }
 0x1e0   : > { %5799 = vmatpush3.bf16.msra.mxu0 %v6003_v34  ;;  %v3908_v34 = vld [vmem:[#allocation3 + $0x38] sm:$0xe]  ;;  %v4362_v5 = vor.u32 %v4361_v36, %v4358_v14  ;;  %v6031_v36 = vld [vmem:[%s7289_s2 + $0x210] sm:$0xff]   ;;  %v4603_v18 = vrot.slane %v7077_v51, 5 }
 0x1e1   : > { %5800 = vmatprep.subr.bf16.mxu0 %v6005_v12  ;;  %v5182_v55 = vrot.slane %v3908_v34, 9  ;;  %v4339_v13 = vrot.slane %v4337_v9, 5 }
 0x1e2   : > { %5815 = vmatpush3.bf16.msra.mxu1 %v6006_v8  ;;  %v4311_v8 = vrot.slane %v4309_v42, 5  ;;  %v4591_v42 = vrot.slane %v7020_v17, 5  ;;  %v4595_v17 = vrot.slane %v7026_v22, 5  ;;  %v4363_v22 = vrot.slane %v4362_v5, 4 }
 0x1e3   : > { %5816 = vmatprep.subr.bf16.mxu1 %v6008_v32 }
 0x1e4   : > { %5801 = vmatpush3.bf16.msra.mxu0 %v6005_v12  ;;  %v4312_v4 = vsel %vm6424_vm8, %v4307_v0, %v4311_v8  ;;  %v3953_v12 = vsel %vm6819_vm0, %v5182_v55, %v3952_v11  ;;  %v4400_v0 = vrot.slane %v4398_v23, 4  ;;  %v4334_v55 = vor.u32 %v4333_v63, %v4330_v57  ;;  %v6026_v8 = vld [vmem:[%s7289_s2 + $0x1c0] sm:$0xff]   ;;  %v6030_v23 = vld [vmem:[%s7289_s2 + $0x218] sm:$0xff]   ;;  %v6032_v63 = vld [vmem:[%s7289_s2 + $0x208] sm:$0xff]  }
 0x1e5   : > { %5802 = vmatprep.subr.bf16.mxu0 %v6007_v37  ;;  %5785 = vmatmul.mubr.bf16.gmra.mxu1 %v5167_v10  ;;  %v5203_v43 = vcombine.low %v3953_v12, %v3957_v29  ;;  %v5256_v40 = vcombine.low %v4312_v4, %v4326_v56  ;;  %v4401_v10 = vshll.u32 %v4297_v61, 16  ;;  %v4351_v11 = vshll.u32 %v7077_v51, 16  ;;  %v7107_v61 = vld [vmem:[#allocation3 + $0x4c] sm:$0x1]  ;;  %v4571_v51 = vld [vmem:[#allocation3 + $0x40] sm:$0xe] }
 0x1e6   : > { %5817 = vmatpush3.bf16.msra.mxu1 %v6008_v32  ;;  %5828 = vmatprep.mubr.bf16.mxu1 %v6009_v31  ;;  %v6018_v32 = vld [vmem:[%s7289_s2 + $0x1d8] sm:$0xff]   ;;  %v4565_v31 = vld [vmem:[#allocation3 + $0x10] sm:$0xe]  ;;  %v4365_v29 = vshll.u32 %v7083_v46, 16  ;;  %v4407_v30 = vshll.u32 %v7107_v61, 16 }
 0x1e7   : > { %5818 = vmatprep.subr.bf16.mxu1 %v6011_v58  ;;  %v5268_v2 = vrot.slane %v4565_v31, 9  ;;  %v4403_v38 = vrot.slane %v4401_v10, 5  ;;  %v4393_v10 = vshll.u32 %v7105_v59, 16 }
 0x1e8   : > { %5803 = vmatpush3.bf16.msra.mxu0 %v6007_v37  ;;  %v4342_v37 = vshrl.u32 %v4289_v15, 16  ;;  %v4335_v15 = vrot.slane %v4334_v55, 4 }
 0x1e9   : > { %5836 = vmatprep.subr.bf16.mxu0 %v6010_v39  ;;  %v4404_v16 = vor.u32 %v4403_v38, %v4400_v0  ;;  %v4395_v14 = vrot.slane %v4393_v10, 5  ;;  %v4599_v0 = vrot.slane %v7075_v41, 5  ;;  %v4619_v38 = vrot.slane %v7107_v61, 5 }
 0x1ea   : > { %5819 = vmatpush3.bf16.msra.mxu1 %v6011_v58  ;;  %v4347_v58 = vrot.slane %v4345_v45, 5 }
 0x1eb   : > { %5805 = vmatmul.mubr.bf16.vlgmr.msra.gmra.mxu0 %v5201_v1  ;;  %5820 = vmatprep.subr.bf16.mxu1 %v6013_v24  ;;  %v4566_v1 = vld [vmem:[#allocation3 + $0x18] sm:$0xe]  ;;  %v4405_v31 = vrot.slane %v4404_v16, 4 }
 0x1ec   : > { %5808 = vmatprep.mubr.bf16.mxu0 %v5202_v50  ;;  %5837 = vmatpush3.bf16.msra.mxu0 %v6010_v39  ;;  %v4344_v39 = vrot.slane %v4342_v37, 4  ;;  %v4384_v50 = vshrl.u32 %v4295_v54, 16  ;;  %v4367_v37 = vrot.slane %v4365_v29, 5 }
 0x1ed   : > { %5838 = vmatprep.subr.bf16.mxu0 %v6012_v27 }
 0x1ee   : > { %5821 = vmatpush3.bf16.msra.mxu1 %v6013_v24  ;;  %v4375_v24 = vrot.slane %v4373_v21, 5  ;;  %v4348_v34 = vor.u32 %v4347_v58, %v4344_v39  ;;  %v4386_v56 = vrot.slane %v4384_v50, 4  ;;  %v4340_v21 = vsel %vm6424_vm8, %v4335_v15, %v4339_v13 }
 0x1ef   : > { %5822 = vmatprep.subr.bf16.mxu1 %v6015_v6 }
 0x1f0   : > { %5839 = vmatpush3.bf16.msra.mxu0 %v6012_v27  ;;  %v4372_v27 = vrot.slane %v4370_v7, 4  ;;  %v4349_v12 = vrot.slane %v4348_v34, 4 }
 0x1f1   : > { %5840 = vmatprep.subr.bf16.mxu0 %v6014_v3 }
 0x1f2   : > { %5823 = vmatpush3.bf16.msra.mxu1 %v6015_v6  ;;  %v5269_v6 = vrot.slane %v4566_v1, 9  ;;  %v4376_v4 = vor.u32 %v4375_v24, %v4372_v27  ;;  %v4568_v1 = vld [vmem:[#allocation3 + $0x28] sm:$0xe]  ;;  %v6033_v27 = vld [vmem:[%s7289_s2 + $0x200] sm:$0xff]  }
 0x1f3   : > { %5809 = vmatmul.mubr.bf16.gmra.mxu0 %v5203_v43  ;;  %5824 = vmatprep.subr.bf16.mxu1 %v6017_v49  ;;  %v4592_v43 = vsel %vm6819_vm0, %v5268_v2, %v4591_v42  ;;  %v4569_v2 = vld [vmem:[#allocation3 + $0x30] sm:$0xe]  ;;  %v4567_v24 = vld [vmem:[#allocation3 + $0x20] sm:$0xe]  ;;  %v5271_v34 = vrot.slane %v4568_v1, 9 }
 0x1f4   : > { %5841 = vmatpush3.bf16.msra.mxu0 %v6014_v3  ;;  %5852 = vmatprep.mubr.bf16.mxu0 %v5256_v40  ;;  %v7090_v3 = vld [vmem:[#allocation3 + $0x3c] sm:$0x1]  ;;  %v6027_v40 = vld [vmem:[#allocation3 + $0x40] ss:$8 sps:$4 sm:$0xff]   ;;  %v4596_v48 = vsel %vm6819_vm0, %v5269_v6, %v4595_v17  ;;  %v4377_v45 = vrot.slane %v4376_v4, 4  ;;  %v5272_v50 = vrot.slane %v4569_v2, 9 }
 0x1f5   : > { %5842 = vmatprep.subr.bf16.mxu0 %v6016_v26  ;;  %v5292_v44 = vcombine.low %v4592_v43, %v4596_v48  ;;  %v4570_v42 = vld [vmem:[#allocation3 + $0x38] sm:$0xe]  ;;  %v5270_v5 = vrot.slane %v4567_v24, 9  ;;  %v4611_v55 = vrot.slane %v7090_v3, 5  ;;  %v4572_v6 = vld [vmem:[#allocation3 + $0x48] sm:$0xe] }
 0x1f6   : > { %5825 = vmatpush3.bf16.msra.mxu1 %v6017_v49  ;;  %v4379_v49 = vshll.u32 %v7090_v3, 16  ;;  %v5275_v9 = vrot.slane %v4572_v6, 9  ;;  %v5274_v4 = vrot.slane %v4571_v51, 9  ;;  %v4615_v3 = vrot.slane %v7105_v59, 5 }
 0x1f7   : > { %5826 = vmatprep.subr.bf16.mxu1 %v6019_v19 }
 0x1f8   : > { %5843 = vmatpush3.bf16.msra.mxu0 %v6016_v26  ;;  %v4389_v26 = vrot.slane %v4387_v53, 5  ;;  %v4381_v7 = vrot.slane %v4379_v49, 5  ;;  %v4607_v53 = vrot.slane %v7083_v46, 5  ;;  %v4600_v46 = vsel %vm6819_vm0, %v5270_v5, %v4599_v0 }
 0x1f9   : > { %5844 = vmatprep.subr.bf16.mxu0 %v6018_v32  ;;  %v4620_v43 = vsel %vm6819_vm0, %v5275_v9, %v4619_v38 }
 0x1fa   : > { %5827 = vmatpush3.bf16.msra.mxu1 %v6019_v19  ;;  %v4353_v19 = vrot.slane %v4351_v11, 5  ;;  %v4390_v33 = vor.u32 %v4389_v26, %v4386_v56  ;;  %v4604_v11 = vsel %vm6819_vm0, %v5271_v34, %v4603_v18  ;;  %v4608_v17 = vsel %vm6819_vm0, %v5272_v50, %v4607_v53  ;;  %v7153_v26 = vpop.f32.mrf.mxu0 }
 0x1fb   : > { %5860 = vmatprep.subr.bf16.mxu1 %v6022_v47 }
 0x1fc   : > { %5845 = vmatpush3.bf16.msra.mxu0 %v6018_v32  ;;  %v6029_v32 = vld [vmem:[%s7289_s2 + $0x220] sm:$0xff]   ;;  %v4391_v58 = vrot.slane %v4390_v33, 4 }
 0x1fd   : > { %5846 = vmatprep.subr.bf16.mxu0 %v6020_v20  ;;  %5829 = vmatmul.mubr.bf16.vlgmr.msra.gmra.mxu1 %v6021_v25 }
 0x1fe   : > { %5832 = vmatprep.mubr.bf16.mxu1 %v6023_v52  ;;  %5861 = vmatpush3.bf16.msra.mxu1 %v6022_v47  ;;  %v4354_v47 = vsel %vm6424_vm8, %v4349_v12, %v4353_v19  ;;  %v4409_v52 = vrot.slane %v4407_v30, 5  ;;  %v4396_v54 = vsel %vm6424_vm8, %v4391_v58, %v4395_v14  ;;  %v4616_v12 = vsel %vm6819_vm0, %v5274_v4, %v4615_v3 }
 0x1ff   : > { %5862 = vmatprep.subr.bf16.mxu1 %v6025_v35  ;;  %v5257_v25 = vcombine.low %v4340_v21, %v4354_v47  ;;  %v5295_v56 = vcombine.low %v4616_v12, %v4620_v43 }
 0x200   : > { %5847 = vmatpush3.bf16.msra.mxu0 %v6020_v20  ;;  %v4368_v20 = vsel %vm6424_vm8, %v4363_v22, %v4367_v37  ;;  %v4410_v57 = vsel %vm6424_vm8, %v4405_v31, %v4409_v52  ;;  %v7155_v22 = vpop.f32.mrf.mxu0 }
 0x201   : > { %5848 = vmatprep.subr.bf16.mxu0 %v6024_v62 }
 0x202   : > { %5863 = vmatpush3.bf16.msra.mxu1 %v6025_v35  ;;  %v4382_v35 = vsel %vm6424_vm8, %v4377_v45, %v4381_v7  ;;  %v5687_v49 = vpop.f32.mrf.mxu0 }
 0x203   : > { %5864 = vmatprep.subr.bf16.mxu1 %v6028_v28  ;;  %v5258_v39 = vcombine.low %v4368_v20, %v4382_v35 }
 0x204   : > { %5849 = vmatpush3.bf16.msra.mxu0 %v6024_v62  ;;  %v5259_v62 = vcombine.low %v4396_v54, %v4410_v57 }
 0x205   : > { %5850 = vmatprep.subr.bf16.mxu0 %v6026_v8  ;;  %5833 = vmatmul.mubr.bf16.gmra.mxu1 %v6027_v40  ;;  %v7157_v40 = vpop.f32.mrf.mxu0 }
 0x206   : > { %5865 = vmatpush3.bf16.msra.mxu1 %v6028_v28  ;;  %5876 = vmatprep.mubr.bf16.mxu1 %v5292_v44  ;;  %v5273_v28 = vrot.slane %v4570_v42, 9 }
 0x207   : > { %5866 = vmatprep.subr.bf16.mxu1 %v6029_v32  ;;  %v7159_v15 = vpop.f32.mrf.mxu0 }
 0x208   : > { %5851 = vmatpush3.bf16.msra.mxu0 %v6026_v8  ;;  %v5293_v8 = vcombine.low %v4600_v46, %v4604_v11  ;;  %v4612_v41 = vsel %vm6819_vm0, %v5273_v28, %v4611_v55 }
 0x209   : > { %v5294_v29 = vcombine.low %v4608_v17, %v4612_v41  ;;  %v7161_v48 = vpop.f32.mrf.mxu0 }
 0x20a   : > { %5867 = vmatpush3.bf16.msra.mxu1 %v6029_v32 }
 0x20b   : > { %5853 = vmatmul.mubr.bf16.vlgmr.msra.gmra.mxu0 %v5257_v25  ;;  %5868 = vmatprep.subr.bf16.mxu1 %v6030_v23  ;;  %v7163_v44 = vpop.f32.mrf.mxu0 }
 0x20c   : > { %5856 = vmatprep.mubr.bf16.mxu0 %v5258_v39 }
 0x20d   : > { %v7165_v60 = vpop.f32.mrf.mxu0 }
 0x20e   : > { %5869 = vmatpush3.bf16.msra.mxu1 %v6030_v23 }
 0x20f   : > { %5870 = vmatprep.subr.bf16.mxu1 %v6031_v36 }
 0x212   : > { %5871 = vmatpush3.bf16.msra.mxu1 %v6031_v36 }
 0x213   : > { %5857 = vmatmul.mubr.bf16.gmra.mxu0 %v5259_v62  ;;  %5872 = vmatprep.subr.bf16.mxu1 %v6032_v63 }
 0x216   : > { %5873 = vmatpush3.bf16.msra.mxu1 %v6032_v63 }
 0x217   : > { %5874 = vmatprep.subr.bf16.mxu1 %v6033_v27 }
 0x21a   : > { %5875 = vmatpush3.bf16.msra.mxu1 %v6033_v27 }
 0x21d   : > { %5877 = vmatmul.mubr.bf16.vlgmr.msra.gmra.mxu1 %v5293_v8 }
 0x21e   : > { %5880 = vmatprep.mubr.bf16.mxu1 %v5294_v29 }
 0x225   : > { %5881 = vmatmul.mubr.bf16.gmra.mxu1 %v5295_v56 }
 0x25d   : > { %v5676_v19 = vpop.f32.mrf.mxu1 }
 0x25e   : > { %v2933_v56 = vadd.f32 %v7153_v26, %v5676_v19 }
 0x25f   : > { %v2824_v32 = vpop.f32.mrf.mxu1 }
 0x261   : > { %v5677_v37 = vpop.f32.mrf.mxu1 }
 0x263   : > { %v2827_v45 = vpop.f32.mrf.mxu1 }
 0x26b   : > { %v5710_v59 = vpop.f32.mrf.mxu0 }
 0x26d   : > { %v7167_v61 = vpop.f32.mrf.mxu1  ;;  %v3198_v16 = vpop.f32.mrf.mxu0 }
 0x26f   : > { %v7169_v13 = vpop.f32.mrf.mxu1  ;;  %v5711_v47 = vpop.f32.mrf.mxu0 }
 0x271   : > { %v7171_v33 = vpop.f32.mrf.mxu1  ;;  %v3201_v30 = vpop.f32.mrf.mxu0 }
 0x273   : > { %v7173_v20 = vpop.f32.mrf.mxu1 }
 0x279   : > { %v7175_v7 = vpop.f32.mrf.mxu0 }
 0x27b   : > { %v7177_v23 = vpop.f32.mrf.mxu0 }
 0x27d   : > { %v5734_v21 = vpop.f32.mrf.mxu1  ;;  %v7179_v25 = vpop.f32.mrf.mxu0 }
 0x27f   : > { %v3411_v10 = vpop.f32.mrf.mxu1  ;;  %v7181_v39 = vpop.f32.mrf.mxu0 }
 0x281   : > { %v5735_v35 = vpop.f32.mrf.mxu1 }
 0x283   : > { %v3414_v58 = vpop.f32.mrf.mxu1 }
 0x285   : > { %v7183_v52 = vpop.f32.mrf.mxu1 }
 0x287   : > { %v7185_v36 = vpop.f32.mrf.mxu1 }
 0x289   : > { %v7187_v57 = vpop.f32.mrf.mxu1 }
 0x28b   : > { %v5758_v31 = vpop.f32.mrf.mxu0  ;;  %v7189_v62 = vpop.f32.mrf.mxu1 }
 0x28c   : > { %7302 = vst [vmem:[#allocation5_spill] sm:$0xff] %v7189_v62 }
 0x28d   : > { %v3581_v14 = vpop.f32.mrf.mxu0 }
 0x28f   : > { %v5759_v54 = vpop.f32.mrf.mxu0 }
 0x291   : > { %v3584_v63 = vpop.f32.mrf.mxu0 }
 0x293   : > { %v7191_v1 = vpop.f32.mrf.mxu0 }
 0x294   : > { %7303 = vst [vmem:[#allocation6_spill] sm:$0xff] %v7191_v1 }
 0x295   : > { %v7193_v27 = vpop.f32.mrf.mxu0 }
 0x296   : > { %7304 = vst [vmem:[#allocation7_spill] sm:$0xff] %v7193_v27 }
 0x297   : > { %v7195_v34 = vpop.f32.mrf.mxu0 }
 0x298   : > { %7305 = vst [vmem:[#allocation8_spill] sm:$0xff] %v7195_v34 }
 0x299   : > { %v7197_v42 = vpop.f32.mrf.mxu0 }
 0x29a   : > { %7306 = vst [vmem:[#allocation9_spill] sm:$0xff] %v7197_v42 }
 0x29d   : > { %v5782_v2 = vpop.f32.mrf.mxu1 }
 0x29f   : > { %v3863_v24 = vpop.f32.mrf.mxu1 }
 0x2a1   : > { %v5783_v18 = vpop.f32.mrf.mxu1 }
 0x2a3   : > { %v3866_v50 = vpop.f32.mrf.mxu1 }
 0x2a5   : > { %v7199_v5 = vpop.f32.mrf.mxu1 }
 0x2a6   : > { %7307 = vst [vmem:[#allocation10_spill] sm:$0xff] %v7199_v5 }
 0x2a7   : > { %v7201_v28 = vpop.f32.mrf.mxu1 }
 0x2a8   : > { %7308 = vst [vmem:[#allocation11_spill] sm:$0xff] %v7201_v28  ;;  %v2936_v28 = vadd.f32 %v5687_v49, %v5677_v37 }
 0x2a9   : > { %v7203_v11 = vpop.f32.mrf.mxu1 }
 0x2aa   : > { %7309 = vst [vmem:[#allocation12_spill] sm:$0xff] %v7203_v11  ;;  %v2928_v11 = vadd.f32 %v7157_v40, %v2827_v45  ;;  %v3232_v5 = vadd.f32 %v5711_v47, %v2936_v28  ;;  %v2952_v40 = vadd.f32 %v7163_v44, %v7171_v33  ;;  %v2944_v47 = vadd.f32 %v7165_v60, %v7173_v20 }
 0x2ab   : > { %v5806_v53 = vpop.f32.mrf.mxu0  ;;  %v7205_v17 = vpop.f32.mrf.mxu1 }
 0x2ac   : > { %7310 = vst [vmem:[#allocation13_spill] sm:$0xff] %v7205_v17  ;;  %v3445_v34 = vadd.f32 %v5735_v35, %v3232_v5  ;;  %v7321_v5 = vld [vmem:[#allocation9_spill] sm:$0xff] }
 0x2ad   : > { %v4073_v0 = vpop.f32.mrf.mxu0  ;;  %v7322_v28 = vld [vmem:[#allocation10_spill] sm:$0xff] }
 0x2ae   : > { %v3615_v19 = vadd.f32 %v5759_v54, %v3445_v34 }
 0x2af   : > { %v5807_v55 = vpop.f32.mrf.mxu0 }
 0x2b1   : > { %v4076_v6 = vpop.f32.mrf.mxu0 }
 0x2b3   : > { %v7207_v51 = vpop.f32.mrf.mxu0 }
 0x2b4   : > { %7311 = vst [vmem:[#allocation14_spill] sm:$0xff] %v7207_v51 }
 0x2b5   : > { %v7209_v8 = vpop.f32.mrf.mxu0 }
 0x2b6   : > { %7312 = vst [vmem:[#allocation15_spill] sm:$0xff] %v7209_v8  ;;  %v2925_v8 = vadd.f32 %v7155_v22, %v2824_v32  ;;  %v2949_v22 = vadd.f32 %v7159_v15, %v7167_v61 }
 0x2b7   : > { %v7211_v9 = vpop.f32.mrf.mxu0 }
 0x2b8   : > { %7313 = vst [vmem:[#allocation16_spill] sm:$0xff] %v7211_v9  ;;  %v3231_v9 = vadd.f32 %v5710_v59, %v2933_v56  ;;  %v3229_v42 = vadd.f32 %v3198_v16, %v2925_v8  ;;  %v3897_v59 = vadd.f32 %v5783_v18, %v3615_v19  ;;  %v2941_v16 = vadd.f32 %v7161_v48, %v7169_v13 }
 0x2b9   : > { %v7213_v4 = vpop.f32.mrf.mxu0  ;;  %v3234_v48 = vadd.f32 %v7181_v39, %v2944_v47 }
 0x2ba   : > { %7314 = vst [vmem:[#allocation17_spill] sm:$0xff] %v7213_v4  ;;  %v3230_v4 = vadd.f32 %v3201_v30, %v2928_v11  ;;  %v3444_v27 = vadd.f32 %v5734_v21, %v3231_v9  ;;  %v3442_v62 = vadd.f32 %v3411_v10, %v3229_v42  ;;  %v3235_v30 = vadd.f32 %v7175_v7, %v2949_v22 }
 0x2bb   : > { %v3236_v21 = vadd.f32 %v7179_v25, %v2952_v40  ;;  %v4107_v44 = vadd.f32 %v5807_v55, %v3897_v59  ;;  %v3233_v33 = vadd.f32 %v7177_v23, %v2941_v16 }
 0x2bc   : > { %v3443_v26 = vadd.f32 %v3414_v58, %v3230_v4  ;;  %v3614_v49 = vadd.f32 %v5758_v31, %v3444_v27  ;;  %v3612_v32 = vadd.f32 %v3581_v14, %v3442_v62  ;;  %v3448_v60 = vadd.f32 %v7183_v52, %v3235_v30  ;;  %v7324_v4 = vld [vmem:[#allocation11_spill] sm:$0xff] }
 0x2bd   : > { %v5830_v46 = vpop.f32.mrf.mxu1  ;;  %v3449_v13 = vadd.f32 %v7187_v57, %v3236_v21  ;;  %v3446_v54 = vadd.f32 %v7185_v36, %v3233_v33  ;;  %v7323_v36 = vld [vmem:[#allocation12_spill] sm:$0xff] }
 0x2be   : > { %v3613_v37 = vadd.f32 %v3584_v63, %v3443_v26  ;;  %v3896_v45 = vadd.f32 %v5782_v2, %v3614_v49  ;;  %v3894_v10 = vadd.f32 %v3863_v24, %v3612_v32  ;;  %v7317_v63 = vld [vmem:[#allocation5_spill] sm:$0xff]  ;;  %v7318_v2 = vld [vmem:[#allocation6_spill] sm:$0xff]  ;;  %v7319_v24 = vld [vmem:[#allocation8_spill] sm:$0xff] }
 0x2bf   : > { %v4244_v41 = vpop.f32.mrf.mxu1  ;;  %v3447_v62 = vadd.f32 %v7317_v63, %v3234_v48  ;;  %v3618_v27 = vadd.f32 %v7318_v2, %v3448_v60  ;;  %v3619_v23 = vadd.f32 %v7319_v24, %v3449_v13  ;;  %v7327_v19 = vld [vmem:[#allocation16_spill] sm:$0xff]  ;;  %v7328_v32 = vld [vmem:[#allocation15_spill] sm:$0xff] }
 0x2c0   : > { %v3895_v35 = vadd.f32 %v3866_v50, %v3613_v37  ;;  %v4106_v58 = vadd.f32 %v5806_v53, %v3896_v45  ;;  %v4104_v7 = vadd.f32 %v4073_v0, %v3894_v10  ;;  %v7320_v50 = vld [vmem:[#allocation7_spill] sm:$0xff] }
 0x2c1   : > { %v5831_v29 = vpop.f32.mrf.mxu1  ;;  %v3616_v53 = vadd.f32 %v7320_v50, %v3446_v54  ;;  %v3617_v0 = vadd.f32 %v7321_v5, %v3447_v62  ;;  %v3900_v55 = vadd.f32 %v7322_v28, %v3618_v27  ;;  %v3901_v11 = vadd.f32 %v7323_v36, %v3619_v23  ;;  %v7329_v59 = vld [vmem:[#allocation17_spill] sm:$0xff] }
 0x2c2   : > { %v4105_v25 = vadd.f32 %v4076_v6, %v3895_v35  ;;  %v4277_v31 = vadd.f32 %v5830_v46, %v4106_v58  ;;  %v4278_v14 = vadd.f32 %v5831_v29, %v4107_v44  ;;  %v4275_v18 = vadd.f32 %v4244_v41, %v4104_v7  ;;  %v7325_v41 = vld [vmem:[#allocation13_spill] sm:$0xff] }
 0x2c3   : > { %v4247_v3 = vpop.f32.mrf.mxu1  ;;  %v3898_v56 = vadd.f32 %v7324_v4, %v3616_v53  ;;  %v4111_v22 = vadd.f32 %v7327_v19, %v3901_v11 }
 0x2c4   : > { %v4276_v52 = vadd.f32 %v4247_v3, %v4105_v25  ;;  %v3899_v3 = vadd.f32 %v7325_v41, %v3617_v0 }
 0x2c5   : > { %v7215_v12 = vpop.f32.mrf.mxu1  ;;  %v4108_v37 = vadd.f32 %v7328_v32, %v3898_v56 }
 0x2c6   : > { %7315 = vst [vmem:[#allocation18_spill] sm:$0xff] %v7215_v12  ;;  %v4109_v16 = vadd.f32 %v7329_v59, %v3899_v3 }
 0x2c7   : > { %v7218_v17 = vpop.f32.mrf.mxu1 }
 0x2c8   : > { %v4279_v44 = vadd.f32 %v7218_v17, %v4108_v37 }
 0x2c9   : > { %v7222_v1 = vpop.f32.mrf.mxu1 }
 0x2ca   : > { %v4282_v21 = vadd.f32 %v7222_v1, %v4111_v22 }
 0x2cb   : > { %v5854_v38 = vpop.f32.mrf.mxu0  ;;  %v4263_v15 = vpop.f32.mrf.mxu1 }
 0x2cc   : > { %v4559_v42 = vadd.f32 %v5854_v38, %v4277_v31  ;;  %v7326_v38 = vld [vmem:[#allocation14_spill] sm:$0xff]  ;;  %v4280_v33 = vadd.f32 %v4263_v15, %v4109_v16 }
 0x2cd   : > { %v4526_v43 = vpop.f32.mrf.mxu0  ;;  %v7330_v47 = vld [vmem:[#allocation18_spill] sm:$0xff] }
 0x2ce   : > { %v4557_v46 = vadd.f32 %v4526_v43, %v4275_v18 }
 0x2cf   : > { %v5855_v51 = vpop.f32.mrf.mxu0 }
 0x2d0   : > { %v4560_v57 = vadd.f32 %v5855_v51, %v4278_v14  ;;  %v4110_v51 = vadd.f32 %v7326_v38, %v3900_v55 }
 0x2d1   : > { %v4529_v12 = vpop.f32.mrf.mxu0 }
 0x2d2   : > { %v4558_v8 = vadd.f32 %v4529_v12, %v4276_v52  ;;  %v4281_v30 = vadd.f32 %v7330_v47, %v4110_v51 }
 0x2d3   : > { %v5858_v61 = vpop.f32.mrf.mxu0 }
 0x2d4   : > { %v4563_v48 = vadd.f32 %v5858_v61, %v4281_v30 }
 0x2d5   : > { %v4542_v34 = vpop.f32.mrf.mxu0 }
 0x2d7   : > { %v5859_v26 = vpop.f32.mrf.mxu0 }
 0x2d8   : > { %v4564_v60 = vadd.f32 %v5859_v26, %v4282_v21 }
 0x2d9   : > { %v4545_v35 = vpop.f32.mrf.mxu0 }
 0x2da   : > { %v4562_v7 = vadd.f32 %v4545_v35, %v4280_v33 }
 0x2dd   : > { %v5878_v20 = vpop.f32.mrf.mxu1 }
 0x2de   : > { %v4769_v9 = vadd.f32 %v5878_v20, %v4559_v42  ;;  %v4561_v20 = vadd.f32 %v4542_v34, %v4279_v44 }
 0x2df   : > { %v4736_v39 = vpop.f32.mrf.mxu1 }
 0x2e0   : > { %v4767_v43 = vadd.f32 %v4736_v39, %v4557_v46 }
 0x2e1   : > { %v5879_v6 = vpop.f32.mrf.mxu1 }
 0x2e2   : > { %v4770_v29 = vadd.f32 %v5879_v6, %v4560_v57 }
 0x2e3   : > { %v4739_v49 = vpop.f32.mrf.mxu1 }
 0x2e4   : > { %v5395_v12 = vpack.c.bf16 %v4770_v29, %v4769_v9  ;;  %v4768_v40 = vadd.f32 %v4739_v49, %v4558_v8 }
 0x2e5   : > { %v5882_v45 = vpop.f32.mrf.mxu1 }
 0x2e6   : > { %5407 = vst [vmem:[%s7265_s5 + $0x8] sm:$0xff] %v5395_v12   ;;  %v5390_v10 = vpack.c.bf16 %v4768_v40, %v4767_v43  ;;  %v4773_v25 = vadd.f32 %v5882_v45, %v4563_v48 }
 0x2e7   : > { %v4752_v58 = vpop.f32.mrf.mxu1 }
 0x2e8   : > { %5391 = vst [vmem:[%s7265_s5] sm:$0xff] %v5390_v10   ;;  %v4771_v54 = vadd.f32 %v4752_v58, %v4561_v20 }
 0x2e9   : > { %v5883_v13 = vpop.f32.mrf.mxu1 }
 0x2ea   : > { %v4774_v31 = vadd.f32 %v5883_v13, %v4564_v60 }
 0x2eb   : > { %v4755_v14 = vpop.f32.mrf.mxu1 }
 0x2ec   : > { %v5405_v1 = vpack.c.bf16 %v4774_v31, %v4773_v25  ;;  %v4772_v63 = vadd.f32 %v4755_v14, %v4562_v7 }
 0x2ee   : > { %5409 = vst [vmem:[%s7265_s5 + $0x18] sm:$0xff] %v5405_v1   ;;  %v5400_v62 = vpack.c.bf16 %v4772_v63, %v4771_v54 }
 0x2f0   : > { %5408 = vst [vmem:[%s7265_s5 + $0x10] sm:$0xff] %v5400_v62  }
 0x2f1 PF: > { %p11_p9 = scmp.ge.s32.totalorder %s6101_s19, 4   ;;  %s7331_s15 = smov %s6052_s16 }
 0x2f2   : > { %s7332_s16 = smov %s6110_s22  ;;  %s7333_s17 = smov %s6101_s19 }
 0x2f3   :  { %13 = sbr.rel (!%p11_p9) target bundleno = 2 (0x2), region = 133 }

// kernel: network_block_forward.3
= control target key start
LH: loop header
LB: loop body
LE: loop exit
PB: predicated region body
PF: predicated region fallthrough
CT: control target
= control target key end

     0   :  { %s6092_s12 = smov 0   ;;  %s7394_s0 = inlined_call_operand.vmem [shape: bf16[2,8,8,128], index: 0, kind: input, shape index: {}]   ;;  %s7395_s1 = inlined_call_operand.vmem [shape: bf16[9,128,128], index: 1, kind: input, shape index: {}]   ;;  %s7396_s2 = inlined_call_operand.vmem [shape: bf16[9,128,128], index: 2, kind: input, shape index: {}]   ;;  %s7397_s3 = inlined_call_operand.vmem [shape: bf16[2,8,8,128], index: 3, kind: output, shape index: {}]  }
   0x1 LB: > { %s4607_s13 = sadd.s32 4294967295, %s6069_s12   ;;  %p4611_p0 = scmp.ge.s32.totalorder %s6069_s12, 1  ;;  %s6069_s12 = sphi %s6092_s12, %s13_s12  }
   0x2   : > { %p137_p1 = scmp.lt.s32.totalorder %s6069_s12, 3 }
   0x4   : > { %p138_p2 = pnand %p4611_p0, %p137_p1 }
   0x6   : > { %141 = sbr.rel (%p138_p2) target bundleno = 746 (0x2ea), region = 32 }
   0xb   : > { %v5895_v0 = vld [vmem:[%s7395_s1 + $0x78] sm:$0xff]   ;;  %v5897_v2 = vld [vmem:[%s7395_s1 + $0x70] sm:$0xff]   ;;  %p6109_p3 = scmp.lt.s32.totalorder %s4607_s13, 1  ;;  %v6071_v3 = vmov 0   ;;  %v5899_v5 = vld [vmem:[%s7395_s1 + $0x68] sm:$0xff]   ;;  %vm281_vm0 = vcmask 1040384  }
   0xc   : > { %v5896_v1 = vld [vmem:[%s7395_s1 + $0x38] sm:$0xff]   ;;  %5454 = vmatprep.subr.bf16.mxu0 %v5895_v0  ;;  %172 = vst [vmem:[#allocation2] sm:$0xf] %v6071_v3  ;;  %173 = vst [vmem:[#allocation2 + $0x4] sm:$0x1] %v6071_v3  ;;  %v5898_v4 = vld [vmem:[%s7395_s1 + $0x30] sm:$0xff]  }
   0xd   : > { %175 = vst [vmem:[#allocation2 + $0x48] sm:$0xf] %v6071_v3  ;;  %176 = vst [vmem:[#allocation2 + $0x4c] sm:$0x1] %v6071_v3  ;;  %5455 = vmatpush3.bf16.msra.mxu0 %v5895_v0  ;;  %5478 = vmatprep.subr.bf16.mxu1 %v5896_v1  ;;  %v5900_v6 = vld [vmem:[%s7395_s1 + $0x28] sm:$0xff]   ;;  %s7456_s13 = smov (!%p6109_p3, %s4607_s13), 1 }
   0xe   : > { %376 = vst [vmem:[#allocation3] sm:$0xf] %v6071_v3  ;;  %377 = vst [vmem:[#allocation3 + $0x4] sm:$0x1] %v6071_v3  ;;  %5479 = vmatpush3.bf16.msra.mxu1 %v5896_v1  ;;  %5456 = vmatprep.subr.bf16.mxu0 %v5897_v2  ;;  %v5901_v7 = vld [vmem:[%s7395_s1 + $0x60] sm:$0xff]   ;;  %s5186_s4 = sshll.u32 %s7456_s13, 5 }
   0xf   : > { %379 = vst [vmem:[#allocation3 + $0x48] sm:$0xf] %v6071_v3  ;;  %380 = vst [vmem:[#allocation3 + $0x4c] sm:$0x1] %v6071_v3  ;;  %5480 = vmatprep.subr.bf16.mxu1 %v5898_v4  ;;  %v5902_v8 = vld [vmem:[%s7395_s1 + $0x20] sm:$0xff]   ;;  %v5903_v9 = vld [vmem:[%s7395_s1 + $0x58] sm:$0xff]   ;;  %s6152_s11 = scalar_lea.vmem %s7394_s0, %s5186_s4  ;;  %s7379_s30 = scalar_lea.vmem %s7397_s3, %s5186_s4 }
  0x10   : > { %v5904_v10 = vld [vmem:[%s7395_s1 + $0x18] sm:$0xff]   ;;  %v5905_v11 = vld [vmem:[%s7395_s1 + $0x50] sm:$0xff]   ;;  %v177_v12 = vld [vmem:[%s6152_s11] sm:$0xf]  ;;  %vm292_vm1 = vcmask 1044480   ;;  %v7409_v29 = vmov 0 }
  0x11   : > { %5457 = vmatpush3.bf16.msra.mxu0 %v5897_v2  ;;  %v5906_v13 = vld [vmem:[%s7395_s1 + $0x10] sm:$0xff]   ;;  %v185_v14 = vmax.bf16 %v6071_v3, %v177_v12  ;;  %v5907_v15 = vld [vmem:[%s7395_s1 + $0x48] sm:$0xff]   ;;  %vm282_vm2 = vsmask.f32 256  ;;  %vm293_vm3 = vsmask.f32 4352 }
  0x12   : > { %5481 = vmatpush3.bf16.msra.mxu1 %v5898_v4  ;;  %5458 = vmatprep.subr.bf16.mxu0 %v5899_v5  ;;  %v5908_v16 = vld [vmem:[%s7395_s1 + $0x8] sm:$0xff]   ;;  %v178_v19 = vld [vmem:[%s6152_s11 + $0x4] sm:$0xf]  ;;  %vm6181_vm4 = vmand %vm281_vm0, %vm282_vm2  ;;  %v7412_v34 = vmov 0  ;;  %vm413_vm6 = vsmask.f32 3328 }
  0x13   : > { %5482 = vmatprep.subr.bf16.mxu1 %v5900_v6  ;;  %v4616_v17 = vcombine.low %v185_v14, %v185_v14  ;;  %v6168_v18 = vld [vmem:[#allocation2] sm:$0xf]  ;;  %v179_v22 = vld [vmem:[%s6152_s11 + $0x8] sm:$0xf]  ;;  %v186_v23 = vmax.bf16 %v6071_v3, %v178_v19  ;;  %v6173_v24 = vld [vmem:[#allocation2 + $0x4] sm:$0x1] }
  0x14   : > { %v187_v25 = vmax.bf16 %v6071_v3, %v179_v22  ;;  %v5909_v26 = vld [vmem:[%s7395_s1 + $0x40] sm:$0xff]   ;;  %v7410_v29 = vsel %vm6181_vm4, 4294967295, %v7409_v29  ;;  %v417_v30 = vshrl.u32 %v6168_v18, 16  ;;  %vm6191_vm5 = vmand %vm292_vm1, %vm293_vm3  ;;  %v420_v35 = vshll.u32 %v6168_v18, 16  ;;  %v6202_v42 = vld [vmem:[%s7395_s1 + $0xb8] sm:$0xff]  }
  0x15   : > { %5459 = vmatpush3.bf16.msra.mxu0 %v5899_v5  ;;  %v218_v20 = vshrl.u32 %v4616_v17, 16  ;;  %v221_v21 = vshll.u32 %v4616_v17, 16  ;;  %v4617_v28 = vcombine.low %v186_v23, %v186_v23  ;;  %7411 = vst [vmem:[#allocation4_spill] sm:$0xff] %v7410_v29  ;;  %v5910_v32 = vld [vmem:[%s7395_s1] sm:$0xff]   ;;  %v7413_v34 = vsel %vm6191_vm5, 4294967295, %v7412_v34  ;;  %v6209_v50 = vld [vmem:[%s7395_s1 + $0xf8] sm:$0xff]  }
  0x16   : > { %5483 = vmatpush3.bf16.msra.mxu1 %v5900_v6  ;;  %5460 = vmatprep.subr.bf16.mxu0 %v5901_v7  ;;  %v4618_v31 = vcombine.low %v187_v25, %v187_v25  ;;  %7414 = vst [vmem:[#allocation5_spill] sm:$0xff] %v7413_v34  ;;  %v426_v41 = vshll.u32 %v6173_v24, 16  ;;  %vm414_vm7 = vsmask.f32 7440  ;;  %v419_v48 = vrot.slane %v417_v30, 4 }
  0x17   : > { %5484 = vmatprep.subr.bf16.mxu1 %v5902_v8  ;;  %v220_v27 = vrot.slane %v218_v20, 7  ;;  %v225_v36 = vshrl.u32 %v4617_v28, 16  ;;  %v228_v37 = vshll.u32 %v4617_v28, 16  ;;  %v180_v52 = vld [vmem:[%s6152_s11 + $0xc] sm:$0xf]  ;;  %v422_v54 = vrot.slane %v420_v35, 5  ;;  %vm6237_vm8 = vmor %vm413_vm6, %vm414_vm7 }
  0x18   : > { %v232_v38 = vshrl.u32 %v4618_v31, 16  ;;  %v235_v39 = vshll.u32 %v4618_v31, 16  ;;  %v181_v53 = vld [vmem:[%s6152_s11 + $0x10] sm:$0xf]  ;;  %v188_v56 = vmax.bf16 %v6071_v3, %v180_v52  ;;  %v182_v58 = vld [vmem:[%s6152_s11 + $0x14] sm:$0xf] }
  0x19   : > { %5461 = vmatpush3.bf16.msra.mxu0 %v5901_v7  ;;  %v223_v33 = vor.u32 %v221_v21, %v220_v27  ;;  %v227_v43 = vrot.slane %v225_v36, 7  ;;  %v189_v57 = vmax.bf16 %v6071_v3, %v181_v53  ;;  %v183_v61 = vld [vmem:[%s6152_s11 + $0x18] sm:$0xf]  ;;  %v190_v62 = vmax.bf16 %v6071_v3, %v182_v58 }
  0x1a   : > { %5485 = vmatpush3.bf16.msra.mxu1 %v5902_v8  ;;  %5462 = vmatprep.subr.bf16.mxu0 %v5903_v9  ;;  %v234_v45 = vrot.slane %v232_v38, 7  ;;  %v4619_v2 = vcombine.low %v188_v56, %v188_v56  ;;  %v191_v7 = vmax.bf16 %v6071_v3, %v183_v61  ;;  %v423_v8 = vor.u32 %v422_v54, %v419_v48 }
  0x1b   : > { %5486 = vmatprep.subr.bf16.mxu1 %v5904_v10  ;;  %v284_v40 = vsel %vm6181_vm4, 0, %v223_v33  ;;  %v230_v49 = vor.u32 %v228_v37, %v227_v43  ;;  %v4620_v6 = vcombine.low %v189_v57, %v189_v57  ;;  %v7415_v28 = vmov 0 }
  0x1c   : > { %v295_v44 = vsel %vm6191_vm5, %v284_v40, 0  ;;  %v237_v51 = vor.u32 %v235_v39, %v234_v45  ;;  %v6229_v14 = vcombine.low %v191_v7, %v191_v7  ;;  %v424_v23 = vrot.slane %v423_v8, 4 }
  0x1d   : > { %5463 = vmatpush3.bf16.msra.mxu0 %v5903_v9  ;;  %v4624_v46 = vcombine.low %v295_v44, %v295_v44  ;;  %v4625_v47 = vcombine.high %v295_v44, %v295_v44  ;;  %v285_v55 = vsel %vm6181_vm4, 0, %v230_v49  ;;  %v239_v9 = vshrl.u32 %v4619_v2, 16 }
  0x1e   : > { %5487 = vmatpush3.bf16.msra.mxu1 %v5904_v10  ;;  %5464 = vmatprep.subr.bf16.mxu0 %v5905_v11  ;;  %v286_v59 = vsel %vm6181_vm4, 0, %v237_v51  ;;  %v296_v60 = vsel %vm6191_vm5, %v285_v55, 0  ;;  %v242_v10 = vshll.u32 %v4619_v2, 16  ;;  %v246_v12 = vshrl.u32 %v4620_v6, 16  ;;  %v5916_v2 = vld [vmem:[%s7395_s1 + $0xf0] sm:$0xff]  }
  0x1f   : > { %5488 = vmatprep.subr.bf16.mxu1 %v5906_v13  ;;  %360 = vst [vmem:[#allocation2 + $0x8] sm:$0xf] %v4624_v46  ;;  %361 = vst [vmem:[#allocation2 + $0xc] sm:$0x1] %v4625_v47  ;;  %v297_v63 = vsel %vm6191_vm5, %v286_v59, 0  ;;  %v4626_v0 = vcombine.low %v296_v60, %v296_v60  ;;  %v4627_v1 = vcombine.high %v296_v60, %v296_v60  ;;  %v260_v22 = vshrl.u32 %v6229_v14, 16 }
  0x20   : > { %v4628_v4 = vcombine.low %v297_v63, %v297_v63  ;;  %v4629_v5 = vcombine.high %v297_v63, %v297_v63  ;;  %v248_v21 = vrot.slane %v246_v12, 7  ;;  %v7416_v28 = vsel %vm6237_vm8, 4294967295, %v7415_v28 }
  0x21   : > { %5465 = vmatpush3.bf16.msra.mxu0 %v5905_v11  ;;  %362 = vst [vmem:[#allocation2 + $0x10] sm:$0xf] %v4626_v0  ;;  %363 = vst [vmem:[#allocation2 + $0x14] sm:$0x1] %v4627_v1  ;;  %v4621_v11 = vcombine.low %v190_v62, %v190_v62  ;;  %v262_v43 = vrot.slane %v260_v22, 7  ;;  %vm835_vm9 = vcmask 1042432  }
  0x22   : > { %5489 = vmatpush3.bf16.msra.mxu1 %v5906_v13  ;;  %5466 = vmatprep.subr.bf16.mxu0 %v5907_v15  ;;  %364 = vst [vmem:[#allocation2 + $0x18] sm:$0xf] %v4628_v4  ;;  %365 = vst [vmem:[#allocation2 + $0x1c] sm:$0x1] %v4629_v5  ;;  %v249_v13 = vshll.u32 %v4620_v6, 16  ;;  %vm836_vm10 = vcmask 1046532  }
  0x23   : > { %5490 = vmatprep.subr.bf16.mxu1 %v5908_v16  ;;  %v253_v17 = vshrl.u32 %v4621_v11, 16  ;;  %7417 = vst [vmem:[#allocation6_spill] sm:$0xff] %v7416_v28  ;;  %v256_v33 = vshll.u32 %v4621_v11, 16  ;;  %vm6331_vm11 = vmor %vm835_vm9, %vm836_vm10 }
  0x25   : > { %5467 = vmatpush3.bf16.msra.mxu0 %v5907_v15  ;;  %v428_v15 = vrot.slane %v426_v41, 5  ;;  %v255_v38 = vrot.slane %v253_v17, 7 }
  0x26   : > { %5491 = vmatpush3.bf16.msra.mxu1 %v5908_v16  ;;  %5468 = vmatprep.subr.bf16.mxu0 %v5909_v26  ;;  %v241_v16 = vrot.slane %v239_v9, 7  ;;  %v382_v19 = vld [vmem:[#allocation2 + $0x8] sm:$0xf]  ;;  %v6231_v20 = vld [vmem:[#allocation2 + $0xc] sm:$0x1] }
  0x27   : > { %5492 = vmatprep.subr.bf16.mxu1 %v5910_v32  ;;  %v431_v25 = vshrl.u32 %v382_v19, 16  ;;  %v440_v27 = vshll.u32 %v6231_v20, 16  ;;  %v4668_v30 = vcombine.low %v6168_v18, %v382_v19  ;;  %v429_v44 = vsel %vm6237_vm8, %v424_v23, %v428_v15 }
  0x28   : > { %v244_v31 = vor.u32 %v242_v10, %v241_v16  ;;  %v383_v39 = vld [vmem:[#allocation2 + $0x10] sm:$0xf]  ;;  %v6242_v40 = vld [vmem:[#allocation2 + $0x14] sm:$0x1]  ;;  %v258_v61 = vor.u32 %v256_v33, %v255_v38  ;;  %v263_v15 = vshll.u32 %v6229_v14, 16  ;;  %v844_v33 = vrot.slane %v6231_v20, 5 }
  0x29   : > { %5469 = vmatpush3.bf16.msra.mxu0 %v5909_v26  ;;  %v434_v26 = vshll.u32 %v382_v19, 16  ;;  %v433_v35 = vrot.slane %v431_v25, 4  ;;  %v442_v37 = vrot.slane %v440_v27, 5  ;;  %5494 = vmatprep.mubr.bf16.mxu1 %v4668_v30  ;;  %v384_v18 = vld [vmem:[#allocation2 + $0x18] sm:$0xf]  ;;  %v445_v47 = vshrl.u32 %v383_v39, 16 }
  0x2a   : > { %5493 = vmatpush3.bf16.msra.mxu1 %v5910_v32  ;;  %5502 = vmatprep.subr.bf16.mxu0 %v6202_v42  ;;  %v251_v32 = vor.u32 %v249_v13, %v248_v21  ;;  %v287_v41 = vsel %vm6181_vm4, 0, %v244_v31  ;;  %v6248_v46 = vld [vmem:[#allocation2 + $0x1c] sm:$0x1]  ;;  %v448_v48 = vshll.u32 %v383_v39, 16  ;;  %v454_v49 = vshll.u32 %v6242_v40, 16  ;;  %v5918_v19 = vld [vmem:[%s7395_s1 + $0xe8] sm:$0xff]  }
  0x2b   : > { %5526 = vmatprep.subr.bf16.mxu1 %v6209_v50  ;;  %v436_v36 = vrot.slane %v434_v26, 5  ;;  %v459_v51 = vshrl.u32 %v384_v18, 16  ;;  %v462_v52 = vshll.u32 %v384_v18, 16  ;;  %v468_v53 = vshll.u32 %v6248_v46, 16  ;;  %v5915_v26 = vld [vmem:[%s7395_s1 + $0xb0] sm:$0xff]   ;;  %v5920_v31 = vld [vmem:[%s7395_s1 + $0xe0] sm:$0xff]  }
  0x2c   : > { %v447_v55 = vrot.slane %v445_v47, 4  ;;  %v450_v56 = vrot.slane %v448_v48, 5  ;;  %v288_v57 = vsel %vm6181_vm4, 0, %v251_v32  ;;  %v456_v58 = vrot.slane %v454_v49, 5  ;;  %v5923_v38 = vld [vmem:[%s7395_s1 + $0xd8] sm:$0xff]  }
  0x2d   : > { %v437_v45 = vor.u32 %v436_v36, %v433_v35  ;;  %v461_v59 = vrot.slane %v459_v51, 4  ;;  %v464_v60 = vrot.slane %v462_v52, 5  ;;  %v470_v0 = vrot.slane %v468_v53, 5  ;;  %v5917_v35 = vld [vmem:[%s7395_s1 + $0xa8] sm:$0xff]  }
  0x2e   : > { %v451_v63 = vor.u32 %v450_v56, %v447_v55  ;;  %v4669_v1 = vcombine.low %v383_v39, %v384_v18  ;;  %v298_v6 = vsel %vm6191_vm5, %v287_v41, 0  ;;  %v299_v7 = vsel %vm6191_vm5, %v288_v57, 0  ;;  %v184_v39 = vld [vmem:[%s6152_s11 + $0x1c] sm:$0xf]  ;;  %v5919_v55 = vld [vmem:[%s7395_s1 + $0xa0] sm:$0xff]  }
  0x2f   : > { %v438_v54 = vrot.slane %v437_v45, 4  ;;  %v465_v5 = vor.u32 %v464_v60, %v461_v59  ;;  %v4630_v9 = vcombine.low %v298_v6, %v298_v6  ;;  %v4631_v10 = vcombine.high %v298_v6, %v298_v6  ;;  %v5926_v6 = vld [vmem:[%s7395_s1 + $0xd0] sm:$0xff]  }
  0x30   : > { %v452_v8 = vrot.slane %v451_v63, 4  ;;  %5495 = vmatmul.mubr.bf16.vlgmr.msra.gmra.mxu1 %v4669_v1  ;;  %v4632_v11 = vcombine.low %v299_v7, %v299_v7  ;;  %v4633_v13 = vcombine.high %v299_v7, %v299_v7  ;;  %v289_v16 = vsel %vm6181_vm4, 0, %v258_v61  ;;  %v5921_v7 = vld [vmem:[%s7395_s1 + $0x98] sm:$0xff]  }
  0x31   : > { %v443_v62 = vsel %vm6237_vm8, %v438_v54, %v442_v37  ;;  %v466_v12 = vrot.slane %v465_v5, 4  ;;  %5527 = vmatpush3.bf16.msra.mxu1 %v6209_v50  ;;  %366 = vst [vmem:[#allocation2 + $0x20] sm:$0xf] %v4630_v9  ;;  %367 = vst [vmem:[#allocation2 + $0x24] sm:$0x1] %v4631_v10  ;;  %v300_v50 = vsel %vm6191_vm5, %v289_v16, 0  ;;  %v265_v21 = vor.u32 %v263_v15, %v262_v43 }
  0x32   : > { %v4656_v4 = vcombine.low %v429_v44, %v443_v62  ;;  %v457_v17 = vsel %vm6237_vm8, %v452_v8, %v456_v58  ;;  %5528 = vmatprep.subr.bf16.mxu1 %v5916_v2  ;;  %368 = vst [vmem:[#allocation2 + $0x28] sm:$0xf] %v4632_v11  ;;  %369 = vst [vmem:[#allocation2 + $0x2c] sm:$0x1] %v4633_v13  ;;  %v4634_v22 = vcombine.low %v300_v50, %v300_v50  ;;  %v6304_v54 = vld [vmem:[#allocation2 + $0x8] sm:$0xe] }
  0x33   : > { %v471_v14 = vsel %vm6237_vm8, %v466_v12, %v470_v0  ;;  %v4635_v23 = vcombine.high %v300_v50, %v300_v50  ;;  %v840_v27 = vrot.slane %v6173_v24, 5  ;;  %v290_v30 = vsel %vm6181_vm4, 0, %v265_v21  ;;  %v6321_v12 = vld [vmem:[#allocation2 + $0x10] sm:$0xe]  ;;  %v814_v50 = vld [vmem:[#allocation2 + $0x18] sm:$0xe] }
  0x34   : > { %5470 = vmatprep.mubr.bf16.mxu0 %v4656_v4  ;;  %v4657_v25 = vcombine.low %v457_v17, %v471_v14  ;;  %370 = vst [vmem:[#allocation2 + $0x30] sm:$0xf] %v4634_v22  ;;  %v301_v32 = vsel %vm6191_vm5, %v290_v30, 0  ;;  %v192_v60 = vmax.bf16 %v6071_v3, %v184_v39  ;;  %v848_v61 = vrot.slane %v6242_v40, 5  ;;  %v5932_v13 = vld [vmem:[#allocation2 + $0x8] ss:$8 sps:$4 sm:$0xff]  }
  0x35   : > { %5529 = vmatpush3.bf16.msra.mxu1 %v5916_v2  ;;  %371 = vst [vmem:[#allocation2 + $0x34] sm:$0x1] %v4635_v23  ;;  %v4636_v36 = vcombine.low %v301_v32, %v301_v32  ;;  %v4637_v37 = vcombine.high %v301_v32, %v301_v32  ;;  %v7418_v30 = vmov 0  ;;  %v5927_v24 = vld [vmem:[%s7395_s1 + $0x88] sm:$0xff]  }
  0x36   : > { %5471 = vmatmul.mubr.bf16.vlgmr.msra.gmra.mxu0 %v4657_v25  ;;  %5530 = vmatprep.subr.bf16.mxu1 %v5918_v19  ;;  %v4623_v14 = vcombine.low %v192_v60, %v192_v60  ;;  %v7419_v30 = vsel %vm6331_vm11, 4294967295, %v7418_v30 }
  0x37   : > { %5503 = vmatpush3.bf16.msra.mxu0 %v6202_v42  ;;  %372 = vst [vmem:[#allocation2 + $0x38] sm:$0xf] %v4636_v36  ;;  %373 = vst [vmem:[#allocation2 + $0x3c] sm:$0x1] %v4637_v37  ;;  %v6298_v42 = vld [vmem:[#allocation2] sm:$0xe] }
  0x38   : > { %5504 = vmatprep.subr.bf16.mxu0 %v5915_v26  ;;  %v385_v41 = vld [vmem:[#allocation2 + $0x20] sm:$0xf]  ;;  %v6296_v44 = vld [vmem:[#allocation2 + $0x24] sm:$0x1]  ;;  %v4680_v3 = vrot.slane %v6298_v42, 9  ;;  %7420 = vst [vmem:[#allocation7_spill] sm:$0xff] %v7419_v30 }
  0x39   : > { %5531 = vmatpush3.bf16.msra.mxu1 %v5918_v19  ;;  %v386_v43 = vld [vmem:[#allocation2 + $0x28] sm:$0xf]  ;;  %v6300_v45 = vld [vmem:[#allocation2 + $0x2c] sm:$0x1]  ;;  %v473_v18 = vshrl.u32 %v385_v41, 16  ;;  %v476_v47 = vshll.u32 %v385_v41, 16 }
  0x3a   : > { %5532 = vmatprep.subr.bf16.mxu1 %v5920_v31  ;;  %v482_v48 = vshll.u32 %v6296_v44, 16  ;;  %v487_v49 = vshrl.u32 %v386_v43, 16  ;;  %v490_v51 = vshll.u32 %v386_v43, 16  ;;  %v496_v52 = vshll.u32 %v6300_v45, 16  ;;  %v816_v42 = vld [vmem:[#allocation2 + $0x28] sm:$0xe] }
  0x3b   : > { %5505 = vmatpush3.bf16.msra.mxu0 %v5915_v26  ;;  %v4670_v53 = vcombine.low %v385_v41, %v386_v43  ;;  %v475_v56 = vrot.slane %v473_v18, 4  ;;  %v478_v57 = vrot.slane %v476_v47, 5  ;;  %v387_v59 = vld [vmem:[#allocation2 + $0x30] sm:$0xf]  ;;  %v4681_v19 = vrot.slane %v6304_v54, 9  ;;  %v5928_v26 = vld [vmem:[%s7395_s1 + $0xc8] sm:$0xff]  }
  0x3c   : > { %5506 = vmatprep.subr.bf16.mxu0 %v5917_v35  ;;  %v489_v58 = vrot.slane %v487_v49, 4  ;;  %v492_v62 = vrot.slane %v490_v51, 5  ;;  %v6311_v63 = vld [vmem:[#allocation2 + $0x34] sm:$0x1]  ;;  %v501_v0 = vshrl.u32 %v387_v59, 16  ;;  %v504_v1 = vshll.u32 %v387_v59, 16 }
  0x3d   : > { %5533 = vmatpush3.bf16.msra.mxu1 %v5920_v31  ;;  %5498 = vmatprep.mubr.bf16.mxu1 %v4670_v53  ;;  %v479_v2 = vor.u32 %v478_v57, %v475_v56  ;;  %v484_v4 = vrot.slane %v482_v48, 5  ;;  %v510_v5 = vshll.u32 %v6311_v63, 16  ;;  %v498_v9 = vrot.slane %v496_v52, 5  ;;  %v6335_v31 = vld [vmem:[#allocation2 + $0x20] sm:$0xe]  ;;  %v5925_v48 = vld [vmem:[%s7395_s1 + $0x90] sm:$0xff]  }
  0x3e   : > { %5534 = vmatprep.subr.bf16.mxu1 %v5923_v38  ;;  %v493_v8 = vor.u32 %v492_v62, %v489_v58  ;;  %v503_v10 = vrot.slane %v501_v0, 4  ;;  %v506_v11 = vrot.slane %v504_v1, 5  ;;  %v388_v16 = vld [vmem:[#allocation2 + $0x38] sm:$0xf]  ;;  %v6323_v17 = vld [vmem:[#allocation2 + $0x3c] sm:$0x1]  ;;  %v841_v51 = vsel %vm6331_vm11, %v4680_v3, %v840_v27 }
  0x3f   : > { %5507 = vmatpush3.bf16.msra.mxu0 %v5917_v35  ;;  %v480_v15 = vrot.slane %v479_v2, 4  ;;  %v515_v23 = vshrl.u32 %v388_v16, 16  ;;  %v518_v25 = vshll.u32 %v388_v16, 16  ;;  %v512_v35 = vrot.slane %v510_v5, 5  ;;  %v5930_v49 = vld [vmem:[%s7395_s1 + $0xc0] sm:$0xff]   ;;  %v5934_v62 = vld [vmem:[%s7395_s1 + $0x178] sm:$0xff]  }
  0x40   : > { %5508 = vmatprep.subr.bf16.mxu0 %v5919_v55  ;;  %v494_v21 = vrot.slane %v493_v8, 4  ;;  %v507_v22 = vor.u32 %v506_v11, %v503_v10  ;;  %v524_v36 = vshll.u32 %v6323_v17, 16  ;;  %v4671_v37 = vcombine.low %v387_v59, %v388_v16  ;;  %v5933_v3 = vld [vmem:[#allocation2 + $0x18] ss:$8 sps:$4 sm:$0xff]   ;;  %v5938_v8 = vld [vmem:[#allocation2 + $0x28] ss:$8 sps:$4 sm:$0xff]  }
  0x41   : > { %5535 = vmatpush3.bf16.msra.mxu1 %v5923_v38  ;;  %v485_v32 = vsel %vm6237_vm8, %v480_v15, %v484_v4  ;;  %v517_v41 = vrot.slane %v515_v23, 4  ;;  %v520_v43 = vrot.slane %v518_v25, 5  ;;  %v852_v18 = vrot.slane %v6248_v46, 5  ;;  %v1194_v11 = vld [vmem:[#allocation2 + $0x8] sm:$0xf] }
  0x42   : > { %5536 = vmatprep.subr.bf16.mxu1 %v5926_v6  ;;  %v499_v38 = vsel %vm6237_vm8, %v494_v21, %v498_v9  ;;  %v508_v39 = vrot.slane %v507_v22, 4  ;;  %5499 = vmatmul.mubr.bf16.gmra.mxu1 %v4671_v37  ;;  %v4682_v52 = vrot.slane %v6321_v12, 9  ;;  %v526_v46 = vrot.slane %v524_v36, 5  ;;  %v6394_v12 = vld [vmem:[#allocation2 + $0xc] sm:$0x1]  ;;  %v5931_v21 = vld [vmem:[%s7395_s1 + $0x138] sm:$0xff]  }
  0x43   : > { %5509 = vmatpush3.bf16.msra.mxu0 %v5919_v55  ;;  %v4658_v47 = vcombine.low %v485_v32, %v499_v38  ;;  %v521_v53 = vor.u32 %v520_v43, %v517_v41  ;;  %v845_v54 = vsel %vm6331_vm11, %v4681_v19, %v844_v33  ;;  %v4683_v55 = vrot.slane %v814_v50, 9  ;;  %5542 = vmatprep.mubr.bf16.mxu1 %v5932_v13  ;;  %v6365_v33 = vld [vmem:[#allocation2 + $0x30] sm:$0xe]  ;;  %v6406_v50 = vld [vmem:[#allocation2 + $0x14] sm:$0x1] }
  0x44   : > { %5510 = vmatprep.subr.bf16.mxu0 %v5921_v7  ;;  %v4684_v27 = vrot.slane %v6335_v31, 9  ;;  %v856_v56 = vrot.slane %v6296_v44, 5  ;;  %v4685_v57 = vrot.slane %v816_v42, 9  ;;  %v267_v58 = vshrl.u32 %v4623_v14, 16  ;;  %v1196_v19 = vld [vmem:[#allocation2 + $0x10] sm:$0xf] }
  0x45   : > { %5537 = vmatpush3.bf16.msra.mxu1 %v5926_v6  ;;  %5474 = vmatprep.mubr.bf16.mxu0 %v4658_v47  ;;  %v513_v20 = vsel %vm6237_vm8, %v508_v39, %v512_v35  ;;  %v522_v59 = vrot.slane %v521_v53, 4  ;;  %v270_v60 = vshll.u32 %v4623_v14, 16  ;;  %v860_v0 = vrot.slane %v6300_v45, 5  ;;  %v5929_v45 = vld [vmem:[%s7395_s1 + $0x80] sm:$0xff]   ;;  %v818_v22 = vld [vmem:[#allocation2 + $0x38] sm:$0xe] }
  0x46   : > { %5538 = vmatprep.subr.bf16.mxu1 %v5928_v26  ;;  %v269_v1 = vrot.slane %v267_v58, 7  ;;  %v4704_v2 = vcombine.low %v841_v51, %v845_v54  ;;  %v6377_v4 = vsel %vm6331_vm11, %v4682_v52, %v848_v61  ;;  %v6381_v5 = vsel %vm6331_vm11, %v4683_v55, %v852_v18  ;;  %v5936_v61 = vld [vmem:[%s7395_s1 + $0x170] sm:$0xff]   ;;  %v1198_v32 = vld [vmem:[#allocation2 + $0x18] sm:$0xf]  ;;  %v1200_v39 = vld [vmem:[#allocation2 + $0x20] sm:$0xf] }
  0x47   : > { %5511 = vmatpush3.bf16.msra.mxu0 %v5921_v7  ;;  %v527_v44 = vsel %vm6237_vm8, %v522_v59, %v526_v46  ;;  %v4705_v40 = vcombine.low %v6377_v4, %v6381_v5  ;;  %v4686_v9 = vrot.slane %v6365_v33, 9  ;;  %v6398_v13 = vsel %vm6331_vm11, %v4684_v27, %v856_v56  ;;  %v6414_v42 = vld [vmem:[#allocation2 + $0x1c] sm:$0x1]  ;;  %v1476_v58 = vld [vmem:[#allocation2 + $0x8] sm:$0xe]  ;;  %v5942_v5 = vld [vmem:[%s7395_s1 + $0x160] sm:$0xff]  }
  0x48   : > { %5512 = vmatprep.subr.bf16.mxu0 %v5925_v48  ;;  %v4659_v6 = vcombine.low %v513_v20, %v527_v44  ;;  %v272_v7 = vor.u32 %v270_v60, %v269_v1  ;;  %v6402_v15 = vsel %vm6331_vm11, %v4685_v57, %v860_v0  ;;  %v1211_v14 = vshrl.u32 %v1194_v11, 16  ;;  %v6426_v44 = vld [vmem:[#allocation2 + $0x24] sm:$0x1] }
  0x49   : > { %5539 = vmatpush3.bf16.msra.mxu1 %v5928_v26  ;;  %v1214_v26 = vshll.u32 %v1194_v11, 16  ;;  %v1220_v31 = vshll.u32 %v6394_v12, 16  ;;  %v1225_v36 = vshrl.u32 %v1196_v19, 16  ;;  %v1228_v37 = vshll.u32 %v1196_v19, 16 }
  0x4a   : > { %5540 = vmatprep.subr.bf16.mxu1 %v5930_v49  ;;  %5475 = vmatmul.mubr.bf16.gmra.mxu0 %v4659_v6  ;;  %v291_v10 = vsel %vm6181_vm4, 0, %v272_v7  ;;  %v1213_v35 = vrot.slane %v1211_v14, 4  ;;  %v1234_v38 = vshll.u32 %v6406_v50, 16  ;;  %v864_v41 = vrot.slane %v6311_v63, 5  ;;  %v5940_v63 = vld [vmem:[%s7395_s1 + $0x168] sm:$0xff]  }
  0x4b   : > { %5513 = vmatpush3.bf16.msra.mxu0 %v5925_v48  ;;  %5518 = vmatprep.mubr.bf16.mxu0 %v4704_v2  ;;  %v302_v16 = vsel %vm6191_vm5, %v291_v10, 0  ;;  %v1216_v43 = vrot.slane %v1214_v26, 5  ;;  %v1239_v18 = vshrl.u32 %v1198_v32, 16  ;;  %v1242_v47 = vshll.u32 %v1198_v32, 16  ;;  %v6459_v14 = vld [vmem:[#allocation2 + $0x18] sm:$0xe] }
  0x4c   : > { %5514 = vmatprep.subr.bf16.mxu0 %v5927_v24  ;;  %v4638_v23 = vcombine.low %v302_v16, %v302_v16  ;;  %v4639_v25 = vcombine.high %v302_v16, %v302_v16  ;;  %v4687_v48 = vrot.slane %v818_v22, 9  ;;  %v1227_v51 = vrot.slane %v1225_v36, 4  ;;  %v1204_v26 = vld [vmem:[#allocation2 + $0x30] sm:$0xf] }
  0x4d   : > { %5541 = vmatpush3.bf16.msra.mxu1 %v5930_v49  ;;  %v868_v49 = vrot.slane %v6323_v17, 5  ;;  %v1230_v52 = vrot.slane %v1228_v37, 5  ;;  %v4706_v53 = vcombine.low %v6398_v13, %v6402_v15  ;;  %v1217_v46 = vor.u32 %v1216_v43, %v1213_v35  ;;  %v5944_v13 = vld [vmem:[%s7395_s1 + $0x158] sm:$0xff]  }
  0x4e   : > { %5574 = vmatprep.subr.bf16.mxu1 %v5934_v62  ;;  %374 = vst [vmem:[#allocation2 + $0x40] sm:$0xf] %v4638_v23  ;;  %375 = vst [vmem:[#allocation2 + $0x44] sm:$0x1] %v4639_v25  ;;  %v1222_v54 = vrot.slane %v1220_v31, 5  ;;  %v1253_v55 = vshrl.u32 %v1200_v39, 16 }
  0x4f   : > { %5515 = vmatpush3.bf16.msra.mxu0 %v5927_v24  ;;  %v5935_v24 = vld [vmem:[%s7395_s1 + $0x130] sm:$0xff]   ;;  %v1231_v17 = vor.u32 %v1230_v52, %v1227_v51  ;;  %v1236_v27 = vrot.slane %v1234_v38, 5  ;;  %v1248_v56 = vshll.u32 %v6414_v42, 16  ;;  %v1256_v57 = vshll.u32 %v1200_v39, 16  ;;  %v1202_v23 = vld [vmem:[#allocation2 + $0x28] sm:$0xf] }
  0x50   : > { %5516 = vmatprep.subr.bf16.mxu0 %v5929_v45  ;;  %5543 = vmatmul.mubr.bf16.vlgmr.msra.gmra.mxu1 %v5933_v3  ;;  %v1218_v20 = vrot.slane %v1217_v46, 4  ;;  %v1241_v59 = vrot.slane %v1239_v18, 4  ;;  %v1244_v60 = vrot.slane %v1242_v47, 5  ;;  %v4772_v0 = vrot.slane %v1476_v58, 9  ;;  %v5937_v3 = vld [vmem:[%s7395_s1 + $0x128] sm:$0xff]   ;;  %v5941_v31 = vld [vmem:[%s7395_s1 + $0x120] sm:$0xff]  }
  0x51   : > { %5575 = vmatpush3.bf16.msra.mxu1 %v5934_v62  ;;  %5546 = vmatprep.mubr.bf16.mxu1 %v5938_v8  ;;  %v1477_v62 = vld [vmem:[#allocation2 + $0x10] sm:$0xe]  ;;  %v1232_v1 = vrot.slane %v1231_v17, 4  ;;  %v1255_v2 = vrot.slane %v1253_v55, 4  ;;  %v1258_v6 = vrot.slane %v1256_v57, 5  ;;  %v1506_v8 = vrot.slane %v6406_v50, 5 }
  0x52   : > { %5576 = vmatprep.subr.bf16.mxu1 %v5936_v61  ;;  %v4773_v7 = vrot.slane %v1477_v62, 9  ;;  %v869_v10 = vsel %vm6331_vm11, %v4687_v48, %v868_v49  ;;  %v1245_v11 = vor.u32 %v1244_v60, %v1241_v59  ;;  %v1262_v33 = vshll.u32 %v6426_v44, 16  ;;  %v6463_v25 = vld [vmem:[#allocation2 + $0x2c] sm:$0x1]  ;;  %v6473_v38 = vld [vmem:[#allocation2 + $0x34] sm:$0x1] }
  0x53   : > { %5517 = vmatpush3.bf16.msra.mxu0 %v5929_v45  ;;  %v1502_v45 = vrot.slane %v6394_v12, 5  ;;  %v6447_v12 = vrot.slane %v1248_v56, 5  ;;  %v1223_v15 = vsel %vm6237_vm8, %v1218_v20, %v1222_v54  ;;  %v1237_v16 = vsel %vm6237_vm8, %v1232_v1, %v1236_v27  ;;  %v5946_v39 = vld [vmem:[%s7395_s1 + $0x150] sm:$0xff]   ;;  %v5943_v48 = vld [vmem:[%s7395_s1 + $0x118] sm:$0xff]  }
  0x54   : > { %5550 = vmatprep.subr.bf16.mxu0 %v5931_v21  ;;  %v1259_v19 = vor.u32 %v1258_v6, %v1255_v2  ;;  %v4760_v32 = vcombine.low %v1223_v15, %v1237_v16  ;;  %v6468_v35 = vrot.slane %v1245_v11, 4  ;;  %v6470_v36 = vrot.slane %v1262_v33, 5  ;;  %v6488_v55 = vld [vmem:[#allocation2 + $0x3c] sm:$0x1]  ;;  %v5945_v62 = vld [vmem:[%s7395_s1 + $0x110] sm:$0xff]  }
  0x55   : > { %5577 = vmatpush3.bf16.msra.mxu1 %v5936_v61  ;;  %v865_v61 = vsel %vm6331_vm11, %v4686_v9, %v864_v41  ;;  %v5939_v4 = vld [vmem:[#allocation2 + $0x38] ss:$8 sps:$4 sm:$0xff]   ;;  %v1507_v9 = vsel %vm6331_vm11, %v4773_v7, %v1506_v8  ;;  %v4774_v37 = vrot.slane %v6459_v14, 9  ;;  %v1510_v43 = vrot.slane %v6414_v42, 5 }
  0x56   : > { %5519 = vmatmul.mubr.bf16.vlgmr.msra.gmra.mxu0 %v4705_v40  ;;  %5578 = vmatprep.subr.bf16.mxu1 %v5940_v63  ;;  %v1503_v40 = vsel %vm6331_vm11, %v4772_v0, %v1502_v45  ;;  %v4707_v22 = vcombine.low %v865_v61, %v869_v10  ;;  %v6478_v41 = vrot.slane %v1259_v19, 4  ;;  %v1267_v18 = vshrl.u32 %v1202_v23, 16  ;;  %v1208_v54 = vld [vmem:[#allocation2 + $0x40] sm:$0xf]  ;;  %v5948_v0 = vld [vmem:[%s7395_s1 + $0x148] sm:$0xff]   ;;  %v5952_v19 = vld [vmem:[%s7395_s1 + $0x1f8] sm:$0xff]  }
  0x57   : > { %5551 = vmatpush3.bf16.msra.mxu0 %v5931_v21  ;;  %5522 = vmatprep.mubr.bf16.mxu0 %v4706_v53  ;;  %v4796_v50 = vcombine.low %v1503_v40, %v1507_v9  ;;  %v6461_v21 = vld [vmem:[#allocation2 + $0x20] sm:$0xe]  ;;  %v1270_v47 = vshll.u32 %v1202_v23, 16  ;;  %v1514_v51 = vrot.slane %v6426_v44, 5  ;;  %v1276_v52 = vshll.u32 %v6463_v25, 16  ;;  %v5947_v10 = vld [vmem:[%s7395_s1 + $0x108] sm:$0xff]  }
  0x58   : > { %5552 = vmatprep.subr.bf16.mxu0 %v5935_v24  ;;  %5547 = vmatmul.mubr.bf16.gmra.mxu1 %v5939_v4  ;;  %v4775_v49 = vrot.slane %v6461_v21, 9  ;;  %v1281_v53 = vshrl.u32 %v1204_v26, 16  ;;  %v1284_v46 = vshll.u32 %v1204_v26, 16  ;;  %v1290_v42 = vshll.u32 %v6473_v38, 16  ;;  %v1480_v45 = vld [vmem:[#allocation2 + $0x28] sm:$0xe] }
  0x59   : > { %5579 = vmatpush3.bf16.msra.mxu1 %v5940_v63  ;;  %5590 = vmatprep.mubr.bf16.mxu1 %v4796_v50  ;;  %v1206_v63 = vld [vmem:[#allocation2 + $0x38] sm:$0xf]  ;;  %v1269_v17 = vrot.slane %v1267_v18, 4  ;;  %v1272_v27 = vrot.slane %v1270_v47, 5  ;;  %v6492_v58 = vrot.slane %v1276_v52, 5  ;;  %v1309_v59 = vshrl.u32 %v1208_v54, 16 }
  0x5a   : > { %5580 = vmatprep.subr.bf16.mxu1 %v5942_v5  ;;  %v1295_v56 = vshrl.u32 %v1206_v63, 16  ;;  %v1298_v57 = vshll.u32 %v1206_v63, 16  ;;  %v1283_v20 = vrot.slane %v1281_v53, 4  ;;  %v1312_v60 = vshll.u32 %v1208_v54, 16  ;;  %v5950_v7 = vld [vmem:[%s7395_s1 + $0x140] sm:$0xff]  }
  0x5b   : > { %5553 = vmatpush3.bf16.msra.mxu0 %v5935_v24  ;;  %v6490_v24 = vld [vmem:[#allocation2 + $0x44] sm:$0x1]  ;;  %v1286_v1 = vrot.slane %v1284_v46, 5  ;;  %v6500_v44 = vrot.slane %v1290_v42, 5  ;;  %v1304_v2 = vshll.u32 %v6488_v55, 16  ;;  %v1311_v4 = vrot.slane %v1309_v59, 4 }
  0x5c   : > { %5554 = vmatprep.subr.bf16.mxu0 %v5937_v3  ;;  %v1318_v6 = vshll.u32 %v6490_v24, 16  ;;  %v1297_v8 = vrot.slane %v1295_v56, 4  ;;  %v1300_v61 = vrot.slane %v1298_v57, 5  ;;  %v4776_v40 = vrot.slane %v1480_v45, 9  ;;  %v1482_v16 = vld [vmem:[#allocation2 + $0x38] sm:$0xe] }
  0x5d   : > { %5581 = vmatpush3.bf16.msra.mxu1 %v5942_v5  ;;  %v1314_v5 = vrot.slane %v1312_v60, 5  ;;  %v1518_v11 = vrot.slane %v6463_v25, 5  ;;  %v1522_v9 = vrot.slane %v6473_v38, 5  ;;  %v1287_v15 = vor.u32 %v1286_v1, %v1283_v20  ;;  %v5949_v50 = vld [vmem:[%s7395_s1 + $0x100] sm:$0xff]   ;;  %v5953_v46 = vld [vmem:[%s7395_s1 + $0x1b0] sm:$0xff]  }
  0x5e   : > { %5523 = vmatmul.mubr.bf16.gmra.mxu0 %v4707_v22  ;;  %5582 = vmatprep.subr.bf16.mxu1 %v5944_v13  ;;  %v1511_v21 = vsel %vm6331_vm11, %v4774_v37, %v1510_v43  ;;  %v1515_v22 = vsel %vm6331_vm11, %v4775_v49, %v1514_v51  ;;  %v1483_v26 = vld [vmem:[#allocation2 + $0x40] sm:$0xe]  ;;  %v1251_v14 = vsel %vm6237_vm8, %v6468_v35, %v6447_v12  ;;  %v4778_v43 = vrot.slane %v1482_v16, 9  ;;  %v5954_v12 = vld [vmem:[%s7395_s1 + $0x1f0] sm:$0xff]   ;;  %v5951_v35 = vld [vmem:[%s7395_s1 + $0x1b8] sm:$0xff]  }
  0x5f   : > { %5555 = vmatpush3.bf16.msra.mxu0 %v5937_v3  ;;  %5566 = vmatprep.mubr.bf16.mxu0 %v4760_v32  ;;  %v1481_v3 = vld [vmem:[#allocation2 + $0x30] sm:$0xe]  ;;  %v1519_v23 = vsel %vm6331_vm11, %v4776_v40, %v1518_v11  ;;  %v1288_v37 = vrot.slane %v1287_v15, 4  ;;  %v4797_v38 = vcombine.low %v1511_v21, %v1515_v22  ;;  %v1526_v18 = vrot.slane %v6488_v55, 5  ;;  %v6560_v56 = vld [vmem:[#allocation2 + $0x14] sm:$0x1] }
  0x60   : > { %5556 = vmatprep.subr.bf16.mxu0 %v5941_v31  ;;  %v4777_v33 = vrot.slane %v1481_v3, 9  ;;  %v1315_v47 = vor.u32 %v1314_v5, %v1311_v4  ;;  %v4779_v49 = vrot.slane %v1483_v26, 9  ;;  %v1530_v51 = vrot.slane %v6490_v24, 5  ;;  %v6562_v20 = vld [vmem:[#allocation2 + $0x1c] sm:$0x1] }
  0x61   : > { %5583 = vmatpush3.bf16.msra.mxu1 %v5944_v13  ;;  %v1273_v13 = vor.u32 %v1272_v27, %v1269_v17  ;;  %v1306_v63 = vrot.slane %v1304_v2, 5  ;;  %v1320_v54 = vrot.slane %v1318_v6, 5  ;;  %v1527_v55 = vsel %vm6331_vm11, %v4778_v43, %v1526_v18  ;;  %v5956_v17 = vld [vmem:[%s7395_s1 + $0x1e8] sm:$0xff]   ;;  %v1857_v27 = vld [vmem:[#allocation2 + $0x10] sm:$0xf]  ;;  %v5960_v43 = vld [vmem:[%s7395_s1 + $0x1d8] sm:$0xff]  }
  0x62   : > { %5584 = vmatprep.subr.bf16.mxu1 %v5946_v39  ;;  %v1523_v25 = vsel %vm6331_vm11, %v4777_v33, %v1522_v9  ;;  %v1316_v42 = vrot.slane %v1315_v47, 4  ;;  %v1531_v24 = vsel %vm6331_vm11, %v4779_v49, %v1530_v51  ;;  %v1874_v59 = vshrl.u32 %v1857_v27, 16  ;;  %v1861_v2 = vld [vmem:[#allocation2 + $0x20] sm:$0xf]  ;;  %v6573_v11 = vld [vmem:[#allocation2 + $0x24] sm:$0x1] }
  0x63   : > { %5557 = vmatpush3.bf16.msra.mxu0 %v5941_v31  ;;  %v1265_v31 = vsel %vm6237_vm8, %v6478_v41, %v6470_v36  ;;  %v1274_v32 = vrot.slane %v1273_v13, 4  ;;  %v1293_v41 = vsel %vm6237_vm8, %v1288_v37, %v6500_v44  ;;  %v1877_v60 = vshll.u32 %v1857_v27, 16  ;;  %v5958_v33 = vld [vmem:[%s7395_s1 + $0x1e0] sm:$0xff]  }
  0x64   : > { %5558 = vmatprep.subr.bf16.mxu0 %v5943_v48  ;;  %v4761_v52 = vcombine.low %v1251_v14, %v1265_v31  ;;  %v1897_v44 = vshll.u32 %v6562_v20, 16  ;;  %v4799_v45 = vcombine.low %v1527_v55, %v1531_v24  ;;  %v1876_v3 = vrot.slane %v1874_v59, 4  ;;  %v5957_v31 = vld [vmem:[%s7395_s1 + $0x1a0] sm:$0xff]  }
  0x65   : > { %5585 = vmatpush3.bf16.msra.mxu1 %v5946_v39  ;;  %v1301_v39 = vor.u32 %v1300_v61, %v1297_v8  ;;  %v1279_v36 = vsel %vm6237_vm8, %v1274_v32, %v6492_v58  ;;  %v1859_v58 = vld [vmem:[#allocation2 + $0x18] sm:$0xf]  ;;  %v1863_v8 = vld [vmem:[#allocation2 + $0x28] sm:$0xf]  ;;  %v1321_v61 = vsel %vm6237_vm8, %v1316_v42, %v1320_v54  ;;  %v1902_v15 = vshrl.u32 %v1861_v2, 16 }
  0x66   : > { %5586 = vmatprep.subr.bf16.mxu1 %v5948_v0  ;;  %v4762_v57 = vcombine.low %v1279_v36, %v1293_v41  ;;  %v1891_v1 = vshll.u32 %v1859_v58, 16  ;;  %v1899_v13 = vrot.slane %v1897_v44, 5  ;;  %v1905_v16 = vshll.u32 %v1861_v2, 16  ;;  %v1865_v36 = vld [vmem:[#allocation2 + $0x30] sm:$0xf] }
  0x67   : > { %5559 = vmatpush3.bf16.msra.mxu0 %v5943_v48  ;;  %v4798_v48 = vcombine.low %v1519_v23, %v1523_v25  ;;  %v1302_v53 = vrot.slane %v1301_v39, 4  ;;  %v1916_v21 = vshrl.u32 %v1863_v8, 16  ;;  %v1919_v22 = vshll.u32 %v1863_v8, 16  ;;  %v6595_v41 = vld [vmem:[#allocation2 + $0x34] sm:$0x1] }
  0x68   : > { %5560 = vmatprep.subr.bf16.mxu0 %v5945_v62  ;;  %v1893_v40 = vrot.slane %v1891_v1, 5  ;;  %v1904_v26 = vrot.slane %v1902_v15, 4  ;;  %v1907_v14 = vrot.slane %v1905_v16, 5  ;;  %v1911_v37 = vshll.u32 %v6573_v11, 16  ;;  %v1869_v27 = vld [vmem:[#allocation2 + $0x40] sm:$0xf] }
  0x69   : > { %5587 = vmatpush3.bf16.msra.mxu1 %v5948_v0  ;;  %v1888_v0 = vshrl.u32 %v1859_v58, 16  ;;  %v1307_v6 = vsel %vm6237_vm8, %v1302_v53, %v1306_v63  ;;  %v1921_v39 = vrot.slane %v1919_v22, 5  ;;  %v1867_v63 = vld [vmem:[#allocation2 + $0x38] sm:$0xf]  ;;  %v1930_v42 = vshrl.u32 %v1865_v36, 16 }
  0x6a   : > { %5588 = vmatprep.subr.bf16.mxu1 %v5950_v7  ;;  %v4763_v23 = vcombine.low %v1307_v6, %v1321_v61  ;;  %v1908_v51 = vor.u32 %v1907_v14, %v1904_v26  ;;  %v1933_v55 = vshll.u32 %v1865_v36, 16  ;;  %v1939_v24 = vshll.u32 %v6595_v41, 16  ;;  %v6610_v44 = vld [vmem:[#allocation2 + $0x44] sm:$0x1]  ;;  %v1871_v2 = vld [vmem:[#allocation2 + $0x48] sm:$0xf] }
  0x6b   : > { %5561 = vmatpush3.bf16.msra.mxu0 %v5945_v62  ;;  %v1883_v62 = vshll.u32 %v6560_v56, 16  ;;  %v1890_v5 = vrot.slane %v1888_v0, 4  ;;  %v1932_v59 = vrot.slane %v1930_v42, 4  ;;  %v1961_v8 = vshll.u32 %v1869_v27, 16  ;;  %v5964_v61 = vld [vmem:[%s7395_s1 + $0x1c8] sm:$0xff]  }
  0x6c   : > { %5562 = vmatprep.subr.bf16.mxu0 %v5947_v10  ;;  %v6607_v58 = vrot.slane %v1908_v51, 4  ;;  %v1935_v0 = vrot.slane %v1933_v55, 5  ;;  %v2165_v36 = vrot.slane %v6560_v56, 5  ;;  %v2169_v55 = vrot.slane %v6562_v20, 5  ;;  %v6654_v56 = vld [vmem:[#allocation2 + $0x40] sm:$0xe] }
  0x6d   : > { %5589 = vmatpush3.bf16.msra.mxu1 %v5950_v7  ;;  %v1879_v7 = vrot.slane %v1877_v60, 5  ;;  %v1885_v4 = vrot.slane %v1883_v62, 5  ;;  %v1947_v60 = vshll.u32 %v1867_v63, 16  ;;  %v1963_v16 = vrot.slane %v1961_v8, 5  ;;  %v5969_v20 = vld [vmem:[%s7395_s1 + $0x238] sm:$0xff]  }
  0x6e   : > { %5622 = vmatprep.subr.bf16.mxu1 %v5952_v19 }
  0x6f   : > { %5563 = vmatpush3.bf16.msra.mxu0 %v5947_v10  ;;  %v5955_v10 = vld [vmem:[%s7395_s1 + $0x1a8] sm:$0xff]   ;;  %v1880_v9 = vor.u32 %v1879_v7, %v1876_v3  ;;  %v1958_v7 = vshrl.u32 %v1869_v27, 16  ;;  %v2173_v27 = vrot.slane %v6573_v11, 5  ;;  %v2181_v11 = vrot.slane %v6595_v41, 5  ;;  %v5970_v41 = vld [vmem:[%s7395_s1 + $0x230] sm:$0xff]  }
  0x70   : > { %5564 = vmatprep.subr.bf16.mxu0 %v5949_v50  ;;  %5591 = vmatmul.mubr.bf16.vlgmr.msra.gmra.mxu1 %v4797_v38  ;;  %v1918_v38 = vrot.slane %v1916_v21, 4  ;;  %v6612_v3 = vld [vmem:[#allocation2 + $0x4c] sm:$0x1]  ;;  %v1967_v21 = vshll.u32 %v6610_v44, 16 }
  0x71   : > { %5623 = vmatpush3.bf16.msra.mxu1 %v5952_v19  ;;  %5594 = vmatprep.mubr.bf16.mxu1 %v4798_v48  ;;  %v1894_v19 = vor.u32 %v1893_v40, %v1890_v5  ;;  %v1881_v25 = vrot.slane %v1880_v9, 4  ;;  %v5967_v48 = vld [vmem:[#allocation2 + $0x10] ss:$8 sps:$4 sm:$0xff]   ;;  %v1972_v5 = vshrl.u32 %v1871_v2, 16  ;;  %v1975_v40 = vshll.u32 %v1871_v2, 16 }
  0x72   : > { %5624 = vmatprep.subr.bf16.mxu1 %v5954_v12  ;;  %v1922_v53 = vor.u32 %v1921_v39, %v1918_v38  ;;  %v1960_v15 = vrot.slane %v1958_v7, 4  ;;  %v5968_v7 = vld [vmem:[#allocation2 + $0x20] ss:$8 sps:$4 sm:$0xff]  }
  0x73   : > { %5565 = vmatpush3.bf16.msra.mxu0 %v5949_v50  ;;  %v6578_v50 = vld [vmem:[#allocation2 + $0x2c] sm:$0x1]  ;;  %v1895_v32 = vrot.slane %v1894_v19, 4  ;;  %v1886_v18 = vsel %vm6237_vm8, %v1881_v25, %v1885_v4  ;;  %v1941_v4 = vrot.slane %v1939_v24, 5  ;;  %v5966_v19 = vld [vmem:[%s7395_s1 + $0x1c0] sm:$0xff]   ;;  %v1974_v22 = vrot.slane %v1972_v5, 4 }
  0x74   : > { %5598 = vmatprep.subr.bf16.mxu0 %v5951_v35  ;;  %v1925_v47 = vshll.u32 %v6578_v50, 16  ;;  %v1923_v6 = vrot.slane %v1922_v53, 4  ;;  %v1981_v25 = vshll.u32 %v6612_v3, 16  ;;  %v6645_v53 = vld [vmem:[#allocation2 + $0x28] sm:$0xe] }
  0x75   : > { %5625 = vmatpush3.bf16.msra.mxu1 %v5954_v12  ;;  %v1900_v49 = vsel %vm6237_vm8, %v1895_v32, %v1899_v13  ;;  %v5962_v12 = vld [vmem:[%s7395_s1 + $0x1d0] sm:$0xff]   ;;  %v5972_v5 = vld [vmem:[#allocation2 + $0x40] ss:$8 sps:$4 sm:$0xff]  }
  0x76   : > { %5567 = vmatmul.mubr.bf16.vlgmr.msra.gmra.mxu0 %v4761_v52  ;;  %5626 = vmatprep.subr.bf16.mxu1 %v5956_v17  ;;  %v6597_v52 = vrot.slane %v1911_v37, 5  ;;  %v6601_v54 = vrot.slane %v1925_v47, 5  ;;  %v5963_v37 = vld [vmem:[%s7395_s1 + $0x188] sm:$0xff]   ;;  %v2139_v47 = vld [vmem:[#allocation2 + $0x10] sm:$0xe] }
  0x77   : > { %5599 = vmatpush3.bf16.msra.mxu0 %v5951_v35  ;;  %5570 = vmatprep.mubr.bf16.mxu0 %v4762_v57  ;;  %v4852_v35 = vcombine.low %v1886_v18, %v1900_v49  ;;  %v5959_v57 = vld [vmem:[%s7395_s1 + $0x198] sm:$0xff]   ;;  %v1983_v18 = vrot.slane %v1981_v25, 5  ;;  %v5965_v49 = vld [vmem:[%s7395_s1 + $0x180] sm:$0xff]   ;;  %v4864_v42 = vrot.slane %v2139_v47, 9  ;;  %v6648_v24 = vld [vmem:[#allocation2 + $0x30] sm:$0xe] }
  0x78   : > { %5600 = vmatprep.subr.bf16.mxu0 %v5953_v46  ;;  %5595 = vmatmul.mubr.bf16.gmra.mxu1 %v4799_v45  ;;  %v1949_v45 = vrot.slane %v1947_v60, 5  ;;  %v1914_v38 = vsel %vm6237_vm8, %v6607_v58, %v6597_v52  ;;  %v1928_v39 = vsel %vm6237_vm8, %v1923_v6, %v6601_v54  ;;  %v6643_v52 = vld [vmem:[#allocation2 + $0x20] sm:$0xe]  ;;  %v4867_v60 = vrot.slane %v6645_v53, 9  ;;  %v5986_v53 = vld [vmem:[%s7396_s2 + $0x68] sm:$0xff]  }
  0x79   : > { %5627 = vmatpush3.bf16.msra.mxu1 %v5956_v17  ;;  %v1944_v17 = vshrl.u32 %v1867_v63, 16  ;;  %5638 = vmatprep.mubr.bf16.mxu1 %v4852_v35  ;;  %v4853_v58 = vcombine.low %v1914_v38, %v1928_v39  ;;  %v5979_v39 = vld [vmem:[%s7396_s2 + $0x38] sm:$0xff]  }
  0x7a   : > { %5628 = vmatprep.subr.bf16.mxu1 %v5958_v33 }
  0x7b   : > { %5601 = vmatpush3.bf16.msra.mxu0 %v5953_v46  ;;  %v6599_v46 = vld [vmem:[#allocation2 + $0x3c] sm:$0x1]  ;;  %v1946_v1 = vrot.slane %v1944_v17, 4  ;;  %v4866_v17 = vrot.slane %v6643_v52, 9 }
  0x7c   : > { %5602 = vmatprep.subr.bf16.mxu0 %v5955_v10  ;;  %v1953_v62 = vshll.u32 %v6599_v46, 16  ;;  %v2185_v6 = vrot.slane %v6599_v46, 5 }
  0x7d   : > { %5629 = vmatpush3.bf16.msra.mxu1 %v5958_v33  ;;  %v5961_v33 = vld [vmem:[%s7395_s1 + $0x190] sm:$0xff]   ;;  %v1950_v9 = vor.u32 %v1949_v45, %v1946_v1  ;;  %v4868_v1 = vrot.slane %v6648_v24, 9  ;;  %v4870_v45 = vrot.slane %v6654_v56, 9 }
  0x7e   : > { %5571 = vmatmul.mubr.bf16.gmra.mxu0 %v4763_v23  ;;  %5630 = vmatprep.subr.bf16.mxu1 %v5960_v43  ;;  %v1955_v13 = vrot.slane %v1953_v62, 5  ;;  %v1977_v23 = vrot.slane %v1975_v40, 5  ;;  %v2177_v62 = vrot.slane %v6578_v50, 5  ;;  %v2189_v50 = vrot.slane %v6610_v44, 5 }
  0x7f   : > { %5603 = vmatpush3.bf16.msra.mxu0 %v5955_v10  ;;  %5614 = vmatprep.mubr.bf16.mxu0 %v5967_v48  ;;  %v1936_v10 = vor.u32 %v1935_v0, %v1932_v59  ;;  %v1951_v14 = vrot.slane %v1950_v9, 4  ;;  %v2140_v48 = vld [vmem:[#allocation2 + $0x18] sm:$0xe]  ;;  %v6658_v0 = vld [vmem:[#allocation2 + $0x48] sm:$0xe]  ;;  %v2166_v40 = vsel %vm6331_vm11, %v4864_v42, %v2165_v36  ;;  %v5974_v9 = vld [vmem:[%s7395_s1 + $0x220] sm:$0xff]   ;;  %v2182_v25 = vsel %vm6331_vm11, %v4868_v1, %v2181_v11 }
  0x80   : > { %5604 = vmatprep.subr.bf16.mxu0 %v5957_v31  ;;  %v1978_v32 = vor.u32 %v1977_v23, %v1974_v22  ;;  %v4865_v54 = vrot.slane %v2140_v48, 9  ;;  %v4871_v8 = vrot.slane %v6658_v0, 9  ;;  %v2174_v22 = vsel %vm6331_vm11, %v4866_v17, %v2173_v27  ;;  %v5982_v48 = vld [vmem:[%s7396_s2 + $0x78] sm:$0xff]   ;;  %v5989_v17 = vld [vmem:[%s7396_s2 + $0x8] sm:$0xff]  }
  0x81   : > { %5631 = vmatpush3.bf16.msra.mxu1 %v5960_v43  ;;  %v1937_v26 = vrot.slane %v1936_v10, 4  ;;  %v1969_v43 = vrot.slane %v1967_v21, 5  ;;  %v5971_v10 = vld [vmem:[#allocation2 + $0x30] ss:$8 sps:$4 sm:$0xff]   ;;  %v5978_v21 = vld [vmem:[%s7395_s1 + $0x200] sm:$0xff]   ;;  %v2178_v23 = vsel %vm6331_vm11, %v4867_v60, %v2177_v62  ;;  %v5996_v1 = vld [vmem:[%s7396_s2 + $0x48] sm:$0xff]  }
  0x82   : > { %5632 = vmatprep.subr.bf16.mxu1 %v5962_v12  ;;  %v1979_v63 = vrot.slane %v1978_v32, 4  ;;  %v2190_v32 = vsel %vm6331_vm11, %v4870_v45, %v2189_v50  ;;  %v5993_v60 = vld [vmem:[%s7396_s2 + $0x50] sm:$0xff]   ;;  %v5999_v45 = vld [vmem:[%s7396_s2 + $0x40] sm:$0xff]  }
  0x83   : > { %5605 = vmatpush3.bf16.msra.mxu0 %v5957_v31  ;;  %v1964_v31 = vor.u32 %v1963_v16, %v1960_v15  ;;  %v1942_v51 = vsel %vm6237_vm8, %v1937_v26, %v1941_v4  ;;  %v5975_v15 = vld [vmem:[%s7395_s1 + $0x218] sm:$0xff]   ;;  %v5976_v16 = vld [vmem:[%s7395_s1 + $0x210] sm:$0xff]  }
  0x84   : > { %5606 = vmatprep.subr.bf16.mxu0 %v5959_v57  ;;  %v1984_v4 = vsel %vm6237_vm8, %v1979_v63, %v1983_v18  ;;  %v5981_v18 = vld [vmem:[%s7396_s2 + $0x28] sm:$0xff]   ;;  %v5987_v63 = vld [vmem:[%s7396_s2 + $0x10] sm:$0xff]  }
  0x85   : > { %5633 = vmatpush3.bf16.msra.mxu1 %v5962_v12  ;;  %v1956_v12 = vsel %vm6237_vm8, %v1951_v14, %v1955_v13  ;;  %v1965_v35 = vrot.slane %v1964_v31, 4  ;;  %v4889_v14 = vcombine.low %v2174_v22, %v2178_v23 }
  0x86   : > { %5634 = vmatprep.subr.bf16.mxu1 %v5964_v61  ;;  %v4854_v59 = vcombine.low %v1942_v51, %v1956_v12  ;;  %v5984_v12 = vld [vmem:[%s7396_s2 + $0x70] sm:$0xff]  }
  0x87   : > { %5607 = vmatpush3.bf16.msra.mxu0 %v5959_v57  ;;  %v6652_v57 = vld [vmem:[#allocation2 + $0x38] sm:$0xe]  ;;  %v1970_v46 = vsel %vm6237_vm8, %v1965_v35, %v1969_v43  ;;  %v5980_v43 = vld [vmem:[%s7396_s2 + $0x30] sm:$0xff]  }
  0x88   : > { %5608 = vmatprep.subr.bf16.mxu0 %v5961_v33  ;;  %v4869_v2 = vrot.slane %v6652_v57, 9  ;;  %v4855_v44 = vcombine.low %v1970_v46, %v1984_v4  ;;  %v5985_v35 = vld [vmem:[%s7396_s2 + $0x18] sm:$0xff]  }
  0x89   : > { %5635 = vmatpush3.bf16.msra.mxu1 %v5964_v61  ;;  %v2193_v61 = vrot.slane %v6612_v3, 5  ;;  %v5973_v3 = vld [vmem:[%s7395_s1 + $0x228] sm:$0xff]   ;;  %v5990_v57 = vld [vmem:[%s7396_s2 + $0x58] sm:$0xff]  }
  0x8a   : > { %5636 = vmatprep.subr.bf16.mxu1 %v5966_v19  ;;  %v2186_v26 = vsel %vm6331_vm11, %v4869_v2, %v2185_v6 }
  0x8b   : > { %5609 = vmatpush3.bf16.msra.mxu0 %v5961_v33  ;;  %v2170_v33 = vsel %vm6331_vm11, %v4865_v54, %v2169_v55  ;;  %v4890_v31 = vcombine.low %v2182_v25, %v2186_v26  ;;  %v5988_v55 = vld [vmem:[%s7396_s2 + $0x60] sm:$0xff]  }
  0x8c   : > { %5610 = vmatprep.subr.bf16.mxu0 %v5963_v37  ;;  %v4888_v13 = vcombine.low %v2166_v40, %v2170_v33 }
  0x8d   : > { %5637 = vmatpush3.bf16.msra.mxu1 %v5966_v19  ;;  %v5977_v19 = vld [vmem:[%s7395_s1 + $0x208] sm:$0xff]  }
  0x8e   : > { %5670 = vmatprep.subr.bf16.mxu1 %v5979_v39 }
  0x8f   : > { %5611 = vmatpush3.bf16.msra.mxu0 %v5963_v37  ;;  %v2194_v37 = vsel %vm6331_vm11, %v4871_v8, %v2193_v61  ;;  %v6795_v8 = vld [vmem:[%s7396_s2 + $0xf8] sm:$0xff]  }
  0x90   : > { %5612 = vmatprep.subr.bf16.mxu0 %v5965_v49  ;;  %5639 = vmatmul.mubr.bf16.vlgmr.msra.gmra.mxu1 %v4853_v58  ;;  %v4891_v38 = vcombine.low %v2190_v32, %v2194_v37  ;;  %v5991_v58 = vld [vmem:[%s7396_s2] sm:$0xff]   ;;  %7422 = vst [vmem:[#allocation9_spill] sm:$0xff] %v6795_v8 }
  0x91   : > { %5642 = vmatprep.mubr.bf16.mxu1 %v4854_v59  ;;  %5671 = vmatpush3.bf16.msra.mxu1 %v5979_v39 }
  0x92   : > { %5672 = vmatprep.subr.bf16.mxu1 %v5980_v43 }
  0x93   : > { %5613 = vmatpush3.bf16.msra.mxu0 %v5965_v49  ;;  %v5983_v49 = vld [vmem:[%s7396_s2 + $0x20] sm:$0xff]  }
  0x94   : > { %5646 = vmatprep.subr.bf16.mxu0 %v5969_v20 }
  0x95   : > { %5673 = vmatpush3.bf16.msra.mxu1 %v5980_v43 }
  0x96   : > { %5615 = vmatmul.mubr.bf16.vlgmr.msra.gmra.mxu0 %v5968_v7  ;;  %5674 = vmatprep.subr.bf16.mxu1 %v5981_v18 }
  0x97   : > { %5647 = vmatpush3.bf16.msra.mxu0 %v5969_v20  ;;  %5618 = vmatprep.mubr.bf16.mxu0 %v5971_v10  ;;  %v6781_v20 = vld [vmem:[%s7396_s2 + $0xb8] sm:$0xff]  }
  0x98   : > { %5648 = vmatprep.subr.bf16.mxu0 %v5970_v41  ;;  %5643 = vmatmul.mubr.bf16.gmra.mxu1 %v4855_v44  ;;  %7421 = vst [vmem:[#allocation8_spill] sm:$0xff] %v6781_v20 }
  0x99   : > { %5675 = vmatpush3.bf16.msra.mxu1 %v5981_v18 }
  0x9a   : > { %5676 = vmatprep.subr.bf16.mxu1 %v5983_v49 }
  0x9b   : > { %5649 = vmatpush3.bf16.msra.mxu0 %v5970_v41 }
  0x9c   : > { %5650 = vmatprep.subr.bf16.mxu0 %v5973_v3 }
  0x9d   : > { %5677 = vmatpush3.bf16.msra.mxu1 %v5983_v49 }
  0x9e   : > { %5619 = vmatmul.mubr.bf16.gmra.mxu0 %v5972_v5  ;;  %5678 = vmatprep.subr.bf16.mxu1 %v5985_v35 }
  0x9f   : > { %5651 = vmatpush3.bf16.msra.mxu0 %v5973_v3  ;;  %5662 = vmatprep.mubr.bf16.mxu0 %v4888_v13 }
  0xa0   : > { %5652 = vmatprep.subr.bf16.mxu0 %v5974_v9 }
  0xa1   : > { %5679 = vmatpush3.bf16.msra.mxu1 %v5985_v35 }
  0xa2   : > { %5680 = vmatprep.subr.bf16.mxu1 %v5987_v63 }
  0xa3   : > { %5653 = vmatpush3.bf16.msra.mxu0 %v5974_v9 }
  0xa4   : > { %5654 = vmatprep.subr.bf16.mxu0 %v5975_v15 }
  0xa5   : > { %5681 = vmatpush3.bf16.msra.mxu1 %v5987_v63 }
  0xa6   : > { %5682 = vmatprep.subr.bf16.mxu1 %v5989_v17 }
  0xa7   : > { %5655 = vmatpush3.bf16.msra.mxu0 %v5975_v15 }
  0xa8   : > { %5656 = vmatprep.subr.bf16.mxu0 %v5976_v16 }
  0xa9   : > { %5683 = vmatpush3.bf16.msra.mxu1 %v5989_v17 }
  0xaa   : > { %5684 = vmatprep.subr.bf16.mxu1 %v5991_v58 }
  0xab   : > { %5657 = vmatpush3.bf16.msra.mxu0 %v5976_v16 }
  0xac   : > { %5658 = vmatprep.subr.bf16.mxu0 %v5977_v19 }
  0xad   : > { %5685 = vmatpush3.bf16.msra.mxu1 %v5991_v58 }
  0xae   : > { %5718 = vmatprep.subr.bf16.mxu1 %v6781_v20 }
  0xaf   : > { %5659 = vmatpush3.bf16.msra.mxu0 %v5977_v19 }
  0xb0   : > { %5660 = vmatprep.subr.bf16.mxu0 %v5978_v21 }
  0xb3   : > { %5661 = vmatpush3.bf16.msra.mxu0 %v5978_v21 }
  0xb4   : > { %5694 = vmatprep.subr.bf16.mxu0 %v5982_v48 }
  0xb6   : > { %5663 = vmatmul.mubr.bf16.vlgmr.msra.gmra.mxu0 %v4889_v14 }
  0xb7   : > { %5666 = vmatprep.mubr.bf16.mxu0 %v4890_v31  ;;  %5695 = vmatpush3.bf16.msra.mxu0 %v5982_v48 }
  0xb8   : > { %5696 = vmatprep.subr.bf16.mxu0 %v5984_v12 }
  0xbb   : > { %5697 = vmatpush3.bf16.msra.mxu0 %v5984_v12 }
  0xbc   : > { %5698 = vmatprep.subr.bf16.mxu0 %v5986_v53 }
  0xbe   : > { %5667 = vmatmul.mubr.bf16.gmra.mxu0 %v4891_v38 }
  0xbf   : > { %5699 = vmatpush3.bf16.msra.mxu0 %v5986_v53 }
  0xc0   : > { %5700 = vmatprep.subr.bf16.mxu0 %v5988_v55 }
  0xc3   : > { %5701 = vmatpush3.bf16.msra.mxu0 %v5988_v55 }
  0xc4   : > { %5702 = vmatprep.subr.bf16.mxu0 %v5990_v57 }
  0xc7   : > { %5703 = vmatpush3.bf16.msra.mxu0 %v5990_v57 }
  0xc8   : > { %5704 = vmatprep.subr.bf16.mxu0 %v5993_v60 }
  0xcb   : > { %5705 = vmatpush3.bf16.msra.mxu0 %v5993_v60 }
  0xcc   : > { %5706 = vmatprep.subr.bf16.mxu0 %v5996_v1 }
  0xcf   : > { %5707 = vmatpush3.bf16.msra.mxu0 %v5996_v1 }
  0xd0   : > { %5708 = vmatprep.subr.bf16.mxu0 %v5999_v45 }
  0xd3   : > { %5709 = vmatpush3.bf16.msra.mxu0 %v5999_v45 }
  0xd4   : > { %5742 = vmatprep.subr.bf16.mxu0 %v6795_v8 }
  0xf0   : > { %v6739_v52 = vpop.f32.mrf.mxu1 }
  0xf2   : > { %v6749_v54 = vpop.f32.mrf.mxu1 }
  0xf4   : > { %v6759_v27 = vpop.f32.mrf.mxu1 }
  0xf6   : > { %v6721_v47 = vpop.f32.mrf.mxu0  ;;  %v6769_v59 = vpop.f32.mrf.mxu1 }
  0xf7   : > { %v789_v17 = vadd.f32 %v6739_v52, %v6721_v47 }
  0xf8   : > { %v6729_v51 = vpop.f32.mrf.mxu0 }
  0xf9   : > { %v781_v58 = vadd.f32 %v6749_v54, %v6729_v51 }
  0xfa   : > { %v6737_v36 = vpop.f32.mrf.mxu0 }
  0xfb   : > { %v792_v45 = vadd.f32 %v6759_v27, %v6737_v36 }
  0xfc   : > { %v6747_v42 = vpop.f32.mrf.mxu0 }
  0xfd   : > { %v784_v29 = vadd.f32 %v6769_v59, %v6747_v42 }
 0x102   : > { %v6776_v0 = vpop.f32.mrf.mxu1 }
 0x104   : > { %v796_v2 = vpop.f32.mrf.mxu1 }
 0x106   : > { %v5501_v50 = vpop.f32.mrf.mxu1 }
 0x108   : > { %v799_v61 = vpop.f32.mrf.mxu1 }
 0x10a   : > { %v6754_v24 = vpop.f32.mrf.mxu0 }
 0x10b   : > { %v805_v47 = vadd.f32 %v6776_v0, %v6754_v24  ;;  %v2719_v24 = vld [vmem:[#allocation3] sm:$0xf] }
 0x10c   : > { %v6764_v56 = vpop.f32.mrf.mxu0 }
 0x10d   : > { %v797_v51 = vadd.f32 %v796_v2, %v6764_v56 }
 0x10e   : > { %v6774_v62 = vpop.f32.mrf.mxu0 }
 0x10f   : > { %v808_v27 = vadd.f32 %v5501_v50, %v6774_v62  ;;  %v2736_v62 = vshrl.u32 %v2719_v24, 16  ;;  %v2739_v50 = vshll.u32 %v2719_v24, 16 }
 0x110   : > { %v6787_v11 = vpop.f32.mrf.mxu0  ;;  %v5544_v41 = vpop.f32.mrf.mxu1 }
 0x112   : > { %v1155_v4 = vpop.f32.mrf.mxu1 }
 0x114   : > { %v5545_v3 = vpop.f32.mrf.mxu1 }
 0x116   : > { %v5520_v6 = vpop.f32.mrf.mxu0  ;;  %v1158_v40 = vpop.f32.mrf.mxu1 }
 0x117   : > { %v1018_v60 = vadd.f32 %v5520_v6, %v789_v17 }
 0x118   : > { %v985_v7 = vpop.f32.mrf.mxu0  ;;  %v5548_v9 = vpop.f32.mrf.mxu1 }
 0x119   : > { %v1016_v8 = vadd.f32 %v985_v7, %v781_v58  ;;  %v1188_v28 = vadd.f32 %v5544_v41, %v1018_v60  ;;  %v800_v7 = vadd.f32 %v799_v61, %v6787_v11 }
 0x11a   : > { %v5521_v10 = vpop.f32.mrf.mxu0  ;;  %v1171_v15 = vpop.f32.mrf.mxu1 }
 0x11b   : > { %v1019_v20 = vadd.f32 %v5521_v10, %v792_v45 }
 0x11c   : > { %v988_v46 = vpop.f32.mrf.mxu0  ;;  %v6798_v19 = vpop.f32.mrf.mxu1 }
 0x11d   : > { %v1017_v52 = vadd.f32 %v988_v46, %v784_v29  ;;  %v1189_v6 = vadd.f32 %v5545_v3, %v1019_v20 }
 0x11e   : > { %v5524_v44 = vpop.f32.mrf.mxu0  ;;  %v1174_v22 = vpop.f32.mrf.mxu1 }
 0x11f   : > { %v1022_v10 = vadd.f32 %v5524_v44, %v805_v47  ;;  %v1187_v59 = vadd.f32 %v1158_v40, %v1017_v52  ;;  %v6830_v52 = vld [vmem:[#allocation3] sm:$0xe] }
 0x120   : > { %v1001_v5 = vpop.f32.mrf.mxu0 }
 0x121   : > { %v1020_v41 = vadd.f32 %v1001_v5, %v797_v51  ;;  %v1192_v2 = vadd.f32 %v5548_v9, %v1022_v10 }
 0x122   : > { %v5525_v33 = vpop.f32.mrf.mxu0 }
 0x123   : > { %v1190_v20 = vadd.f32 %v1171_v15, %v1020_v41 }
 0x124   : > { %v1004_v13 = vpop.f32.mrf.mxu0 }
 0x130   : > { %v5592_v25 = vpop.f32.mrf.mxu1 }
 0x132   : > { %v1647_v14 = vpop.f32.mrf.mxu1 }
 0x134   : > { %v5593_v32 = vpop.f32.mrf.mxu1 }
 0x136   : > { %v5568_v16 = vpop.f32.mrf.mxu0  ;;  %v1650_v38 = vpop.f32.mrf.mxu1 }
 0x138   : > { %v1437_v21 = vpop.f32.mrf.mxu0  ;;  %v6800_v43 = vpop.f32.mrf.mxu1 }
 0x13a   : > { %v5569_v23 = vpop.f32.mrf.mxu0  ;;  %v6802_v48 = vpop.f32.mrf.mxu1 }
 0x13b   : > { %v1471_v42 = vadd.f32 %v5569_v23, %v1189_v6 }
 0x13c   : > { %v1440_v26 = vpop.f32.mrf.mxu0  ;;  %v6804_v12 = vpop.f32.mrf.mxu1 }
 0x13d   : > { %7423 = vst [vmem:[#allocation10_spill] sm:$0xff] %v6804_v12  ;;  %v1470_v12 = vadd.f32 %v5568_v16, %v1188_v28  ;;  %v1023_v28 = vadd.f32 %v5525_v33, %v808_v27  ;;  %v1469_v46 = vadd.f32 %v1440_v26, %v1187_v59  ;;  %v1681_v3 = vadd.f32 %v5593_v32, %v1471_v42 }
 0x13e   : > { %v5572_v31 = vpop.f32.mrf.mxu0  ;;  %v6806_v53 = vpop.f32.mrf.mxu1  ;;  %v6822_v26 = vrot.slane %v2736_v62, 4 }
 0x13f   : > { %7424 = vst [vmem:[#allocation11_spill] sm:$0xff] %v6806_v53  ;;  %v1186_v53 = vadd.f32 %v1155_v4, %v1016_v8  ;;  %v1680_v58 = vadd.f32 %v5592_v25, %v1470_v12  ;;  %v1021_v8 = vadd.f32 %v1004_v13, %v800_v7  ;;  %v1193_v11 = vadd.f32 %v6798_v19, %v1023_v28 }
 0x140   : > { %v1453_v37 = vpop.f32.mrf.mxu0  ;;  %v1474_v44 = vadd.f32 %v5572_v31, %v1192_v2  ;;  %v1679_v23 = vadd.f32 %v1650_v38, %v1469_v46  ;;  %v6826_v31 = vrot.slane %v2739_v50, 5 }
 0x141   : > { %v1468_v17 = vadd.f32 %v1437_v21, %v1186_v53  ;;  %v1191_v61 = vadd.f32 %v1174_v22, %v1021_v8  ;;  %v1472_v5 = vadd.f32 %v1453_v37, %v1190_v20 }
 0x142   : > { %v5573_v39 = vpop.f32.mrf.mxu0  ;;  %v1684_v32 = vadd.f32 %v6800_v43, %v1474_v44  ;;  %v2742_v27 = vor.u32 %v6826_v31, %v6822_v26 }
 0x143   : > { %v1678_v0 = vadd.f32 %v1647_v14, %v1468_v17  ;;  %v1475_v25 = vadd.f32 %v5573_v39, %v1193_v11  ;;  %v1682_v12 = vadd.f32 %v6802_v48, %v1472_v5 }
 0x144   : > { %v1456_v18 = vpop.f32.mrf.mxu0  ;;  %v7425_v38 = vld [vmem:[#allocation10_spill] sm:$0xff] }
 0x145   : > { %v1473_v14 = vadd.f32 %v1456_v18, %v1191_v61  ;;  %v1685_v39 = vadd.f32 %v7425_v38, %v1475_v25 }
 0x146   : > { %v7426_v18 = vld [vmem:[#allocation11_spill] sm:$0xff] }
 0x150   : > { %v5640_v55 = vpop.f32.mrf.mxu1 }
 0x152   : > { %v2100_v1 = vpop.f32.mrf.mxu1 }
 0x154   : > { %v5641_v34 = vpop.f32.mrf.mxu1 }
 0x156   : > { %v5616_v49 = vpop.f32.mrf.mxu0  ;;  %v2103_v36 = vpop.f32.mrf.mxu1 }
 0x157   : > { %v1851_v56 = vadd.f32 %v5616_v49, %v1680_v58 }
 0x158   : > { %v1818_v35 = vpop.f32.mrf.mxu0  ;;  %v5644_v29 = vpop.f32.mrf.mxu1 }
 0x159   : > { %v1849_v16 = vadd.f32 %v1818_v35, %v1678_v0  ;;  %v2133_v33 = vadd.f32 %v5640_v55, %v1851_v56  ;;  %v1683_v55 = vadd.f32 %v7426_v18, %v1473_v14 }
 0x15a   : > { %v5617_v63 = vpop.f32.mrf.mxu0  ;;  %v2116_v21 = vpop.f32.mrf.mxu1 }
 0x15b   : > { %v1852_v13 = vadd.f32 %v5617_v63, %v1681_v3  ;;  %v2131_v9 = vadd.f32 %v2100_v1, %v1849_v16 }
 0x15c   : > { %v1821_v57 = vpop.f32.mrf.mxu0  ;;  %v5645_v35 = vpop.f32.mrf.mxu1 }
 0x15d   : > { %v1850_v19 = vadd.f32 %v1821_v57, %v1679_v23  ;;  %v2134_v37 = vadd.f32 %v5641_v34, %v1852_v13  ;;  %v6832_v34 = vld [vmem:[#allocation3 + $0x4] sm:$0x1] }
 0x15e   : > { %v5620_v30 = vpop.f32.mrf.mxu0  ;;  %v2119_v7 = vpop.f32.mrf.mxu1 }
 0x15f   : > { %v1855_v60 = vadd.f32 %v5620_v30, %v1684_v32  ;;  %v2132_v48 = vadd.f32 %v2103_v36, %v1850_v19  ;;  %v4964_v36 = vrot.slane %v6830_v52, 9  ;;  %v6004_v52 = vld [vmem:[%s7396_s2 + $0xf0] sm:$0xff]  }
 0x160   : > { %v1834_v54 = vpop.f32.mrf.mxu0 }
 0x161   : > { %v1853_v1 = vadd.f32 %v1834_v54, %v1682_v12  ;;  %v2745_v54 = vshll.u32 %v6832_v34, 16  ;;  %v2137_v58 = vadd.f32 %v5644_v29, %v1855_v60 }
 0x162   : > { %v5621_v4 = vpop.f32.mrf.mxu0 }
 0x163   : > { %v1856_v57 = vadd.f32 %v5621_v4, %v1685_v39  ;;  %v2135_v42 = vadd.f32 %v2116_v21, %v1853_v1 }
 0x164   : > { %v1837_v40 = vpop.f32.mrf.mxu0 }
 0x165   : > { %v1854_v6 = vadd.f32 %v1837_v40, %v1683_v55  ;;  %v2138_v56 = vadd.f32 %v5645_v35, %v1856_v57 }
 0x167   : > { %v2136_v2 = vadd.f32 %v2119_v7, %v1854_v6 }
 0x176   : > { %v5664_v49 = vpop.f32.mrf.mxu0 }
 0x177   : > { %v2343_v15 = vadd.f32 %v5664_v49, %v2133_v33  ;;  %v7429_v33 = vld [vmem:[#allocation8_spill] sm:$0xff] }
 0x178   : > { %v2310_v22 = vpop.f32.mrf.mxu0 }
 0x179   : > { %v2351_v53 = vmax.f32 %v2343_v15, 0.0  ;;  %v2341_v63 = vadd.f32 %v2310_v22, %v2131_v9 }
 0x17a   : > { %v5665_v45 = vpop.f32.mrf.mxu0 }
 0x17b   : > { %v5190_v47 = vpack.c.bf16 %v2351_v53, %v2351_v53  ;;  %v2349_v51 = vmax.f32 %v2341_v63, 0.0  ;;  %v2344_v43 = vadd.f32 %v5665_v45, %v2134_v37 }
 0x17c   : > { %v2313_v17 = vpop.f32.mrf.mxu0 }
 0x17d   : > { %v2396_v10 = vshrl.u32 %v5190_v47, 16  ;;  %v5188_v41 = vpack.c.bf16 %v2349_v51, %v2349_v51  ;;  %v2352_v30 = vmax.f32 %v2344_v43, 0.0  ;;  %v2342_v59 = vadd.f32 %v2313_v17, %v2132_v48 }
 0x17e   : > { %v5668_v28 = vpop.f32.mrf.mxu0  ;;  %v2399_v4 = vshll.u32 %v5190_v47, 16 }
 0x17f   : > { %v2398_v8 = vrot.slane %v2396_v10, 7  ;;  %v2382_v24 = vshrl.u32 %v5188_v41, 16  ;;  %v5191_v0 = vpack.c.bf16 %v2352_v30, %v2352_v30  ;;  %v2350_v20 = vmax.f32 %v2342_v59, 0.0 }
 0x180   : > { %v2347_v46 = vadd.f32 %v5668_v28, %v2137_v58  ;;  %v2326_v3 = vpop.f32.mrf.mxu0  ;;  %v2385_v50 = vshll.u32 %v5188_v41, 16  ;;  %v3027_v30 = vrot.slane %v6832_v34, 5  ;;  %v6858_v28 = vrot.slane %v2742_v27, 4 }
 0x181   : > { %v2401_v16 = vor.u32 %v2399_v4, %v2398_v8  ;;  %v2384_v62 = vrot.slane %v2382_v24, 7  ;;  %v2403_v11 = vshrl.u32 %v5191_v0, 16  ;;  %v2406_v61 = vshll.u32 %v5191_v0, 16 }
 0x182   : > { %v5189_v29 = vpack.c.bf16 %v2350_v20, %v2350_v20  ;;  %v2355_v44 = vmax.f32 %v2347_v46, 0.0  ;;  %v2345_v5 = vadd.f32 %v2326_v3, %v2135_v42  ;;  %v5669_v40 = vpop.f32.mrf.mxu0 }
 0x183   : > { %v2447_v13 = vsel %vm6181_vm4, 0, %v2401_v16  ;;  %v2387_v21 = vor.u32 %v2385_v50, %v2384_v62  ;;  %v2405_v23 = vrot.slane %v2403_v11, 7  ;;  %v2348_v25 = vadd.f32 %v5669_v40, %v2138_v56 }
 0x184   : > { %v2455_v49 = vsel %vm6191_vm5, %v2447_v13, 0  ;;  %v2389_v9 = vshrl.u32 %v5189_v29, 16  ;;  %v2392_v15 = vshll.u32 %v5189_v29, 16  ;;  %v5194_v32 = vpack.c.bf16 %v2355_v44, %v2355_v44  ;;  %v2329_v39 = vpop.f32.mrf.mxu0 }
 0x185   : > { %v4912_v12 = vcombine.low %v2455_v49, %v2455_v49  ;;  %v4913_v19 = vcombine.high %v2455_v49, %v2455_v49  ;;  %v2445_v22 = vsel %vm6181_vm4, 0, %v2387_v21  ;;  %v2408_v37 = vor.u32 %v2406_v61, %v2405_v23 }
 0x186   : > { %v2453_v35 = vsel %vm6191_vm5, %v2445_v22, 0  ;;  %v2391_v53 = vrot.slane %v2389_v9, 7  ;;  %v2424_v63 = vshrl.u32 %v5194_v32, 16  ;;  %v2427_v38 = vshll.u32 %v5194_v32, 16 }
 0x187   : > { %2522 = vst [vmem:[#allocation3 + $0x18] sm:$0xf] %v4912_v12  ;;  %2523 = vst [vmem:[#allocation3 + $0x1c] sm:$0x1] %v4913_v19  ;;  %v4908_v18 = vcombine.low %v2453_v35, %v2453_v35  ;;  %v4909_v55 = vcombine.high %v2453_v35, %v2453_v35  ;;  %v2448_v60 = vsel %vm6181_vm4, 0, %v2408_v37  ;;  %v2353_v1 = vmax.f32 %v2345_v5, 0.0 }
 0x188   : > { %v2456_v45 = vsel %vm6191_vm5, %v2448_v60, 0  ;;  %v2394_v47 = vor.u32 %v2392_v15, %v2391_v53  ;;  %v2426_v51 = vrot.slane %v2424_v63, 7  ;;  %v2356_v43 = vmax.f32 %v2348_v25, 0.0  ;;  %v5997_v35 = vld [vmem:[%s7396_s2 + $0xb0] sm:$0xff]  }
 0x189   : > { %2518 = vst [vmem:[#allocation3 + $0x8] sm:$0xf] %v4908_v18  ;;  %2519 = vst [vmem:[#allocation3 + $0xc] sm:$0x1] %v4909_v55  ;;  %v4914_v48 = vcombine.low %v2456_v45, %v2456_v45  ;;  %v4915_v57 = vcombine.high %v2456_v45, %v2456_v45  ;;  %v5192_v6 = vpack.c.bf16 %v2353_v1, %v2353_v1  ;;  %v2747_v15 = vrot.slane %v2745_v54, 5 }
 0x18a   : > { %v2346_v17 = vadd.f32 %v2329_v39, %v2136_v2  ;;  %v2446_v7 = vsel %vm6181_vm4, 0, %v2394_v47  ;;  %v2429_v10 = vor.u32 %v2427_v38, %v2426_v51  ;;  %v5195_v41 = vpack.c.bf16 %v2356_v43, %v2356_v43 }
 0x18b   : > { %2524 = vst [vmem:[#allocation3 + $0x20] sm:$0xf] %v4914_v48  ;;  %2525 = vst [vmem:[#allocation3 + $0x24] sm:$0x1] %v4915_v57  ;;  %v2454_v58 = vsel %vm6191_vm5, %v2446_v7, 0  ;;  %v2410_v42 = vshrl.u32 %v5192_v6, 16 }
 0x18c   : > { %v2354_v59 = vmax.f32 %v2346_v17, 0.0  ;;  %v4910_v8 = vcombine.low %v2454_v58, %v2454_v58  ;;  %v4911_v4 = vcombine.high %v2454_v58, %v2454_v58  ;;  %v2451_v24 = vsel %vm6181_vm4, 0, %v2429_v10  ;;  %v6062_v10 = vld [vmem:[%s7396_s2 + $0x200] sm:$0xff]  }
 0x18d   : > { %v2431_v0 = vshrl.u32 %v5195_v41, 16  ;;  %v2459_v56 = vsel %vm6191_vm5, %v2451_v24, 0  ;;  %v2412_v2 = vrot.slane %v2410_v42, 7  ;;  %v2413_v20 = vshll.u32 %v5192_v6, 16  ;;  %v6000_v42 = vld [vmem:[%s7396_s2 + $0xa8] sm:$0xff]  }
 0x18e   : > { %v5193_v46 = vpack.c.bf16 %v2354_v59, %v2354_v59  ;;  %2520 = vst [vmem:[#allocation3 + $0x10] sm:$0xf] %v4910_v8  ;;  %2521 = vst [vmem:[#allocation3 + $0x14] sm:$0x1] %v4911_v4  ;;  %v4920_v3 = vcombine.low %v2459_v56, %v2459_v56  ;;  %v4921_v16 = vcombine.high %v2459_v56, %v2459_v56  ;;  %v2434_v26 = vshll.u32 %v5195_v41, 16 }
 0x18f   : > { %v2433_v62 = vrot.slane %v2431_v0, 7  ;;  %v2725_v31 = vld [vmem:[#allocation3 + $0x18] sm:$0xf]  ;;  %v2415_v27 = vor.u32 %v2413_v20, %v2412_v2  ;;  %v6880_v18 = vld [vmem:[#allocation3 + $0x1c] sm:$0x1]  ;;  %v2748_v41 = vsel %vm6237_vm8, %v6858_v28, %v2747_v15 }
 0x190   : > { %v2417_v50 = vshrl.u32 %v5193_v46, 16  ;;  %v2420_v11 = vshll.u32 %v5193_v46, 16  ;;  %v2778_v61 = vshrl.u32 %v2725_v31, 16  ;;  %2530 = vst [vmem:[#allocation3 + $0x38] sm:$0xf] %v4920_v3  ;;  %v2781_v43 = vshll.u32 %v2725_v31, 16 }
 0x191   : > { %2531 = vst [vmem:[#allocation3 + $0x3c] sm:$0x1] %v4921_v16  ;;  %v2436_v29 = vor.u32 %v2434_v26, %v2433_v62  ;;  %v5992_v44 = vld [vmem:[#allocation3] ss:$8 sps:$4 sm:$0xff]   ;;  %v2449_v40 = vsel %vm6181_vm4, 0, %v2415_v27  ;;  %v2787_v56 = vshll.u32 %v6880_v18, 16 }
 0x192   : > { %v2721_v5 = vld [vmem:[#allocation3 + $0x8] sm:$0xf]  ;;  %v2419_v13 = vrot.slane %v2417_v50, 7  ;;  %v6866_v21 = vld [vmem:[#allocation3 + $0xc] sm:$0x1]  ;;  %v2457_v49 = vsel %vm6191_vm5, %v2449_v40, 0  ;;  %5686 = vmatprep.mubr.bf16.mxu1 %v5992_v44 }
 0x193   : > { %v2750_v23 = vshrl.u32 %v2721_v5, 16  ;;  %v2753_v25 = vshll.u32 %v2721_v5, 16  ;;  %v2452_v9 = vsel %vm6181_vm4, 0, %v2436_v29  ;;  %v2759_v32 = vshll.u32 %v6866_v21, 16  ;;  %v3002_v7 = vld [vmem:[#allocation3 + $0x8] sm:$0xe] }
 0x194   : > { %v4916_v12 = vcombine.low %v2457_v49, %v2457_v49  ;;  %v4917_v19 = vcombine.high %v2457_v49, %v2457_v49  ;;  %v2460_v22 = vsel %vm6191_vm5, %v2452_v9, 0  ;;  %v2422_v37 = vor.u32 %v2420_v11, %v2419_v13  ;;  %v2727_v8 = vld [vmem:[#allocation3 + $0x20] sm:$0xf]  ;;  %v6003_v62 = vld [vmem:[%s7396_s2 + $0xa0] sm:$0xff]   ;;  %v6903_v26 = vld [vmem:[#allocation3 + $0x24] sm:$0x1] }
 0x195   : > { %v4922_v53 = vcombine.low %v2460_v22, %v2460_v22  ;;  %v4923_v63 = vcombine.high %v2460_v22, %v2460_v22  ;;  %v2752_v38 = vrot.slane %v2750_v23, 4  ;;  %v2755_v39 = vrot.slane %v2753_v25, 5  ;;  %v5995_v55 = vld [vmem:[#allocation3 + $0x10] ss:$8 sps:$4 sm:$0xff]   ;;  %v6886_v51 = vld [vmem:[#allocation3 + $0x14] sm:$0x1] }
 0x196   : > { %2526 = vst [vmem:[#allocation3 + $0x28] sm:$0xf] %v4916_v12  ;;  %2527 = vst [vmem:[#allocation3 + $0x2c] sm:$0x1] %v4917_v19  ;;  %v2450_v54 = vsel %vm6181_vm4, 0, %v2422_v37  ;;  %v2780_v60 = vrot.slane %v2778_v61, 4  ;;  %5687 = vmatmul.mubr.bf16.vlgmr.msra.gmra.mxu1 %v5995_v55  ;;  %v3028_v23 = vsel %vm6331_vm11, %v4964_v36, %v3027_v30 }
 0x197   : > { %2532 = vst [vmem:[#allocation3 + $0x40] sm:$0xf] %v4922_v53  ;;  %2533 = vst [vmem:[#allocation3 + $0x44] sm:$0x1] %v4923_v63  ;;  %v2458_v1 = vsel %vm6191_vm5, %v2450_v54, 0  ;;  %v2756_v45 = vor.u32 %v2755_v39, %v2752_v38  ;;  %5719 = vmatpush3.bf16.msra.mxu1 %v7429_v33  ;;  %v2761_v14 = vrot.slane %v2759_v32, 5 }
 0x198   : > { %v2723_v47 = vld [vmem:[#allocation3 + $0x10] sm:$0xf]  ;;  %v4918_v48 = vcombine.low %v2458_v1, %v2458_v1  ;;  %v4919_v57 = vcombine.high %v2458_v1, %v2458_v1  ;;  %v2783_v59 = vrot.slane %v2781_v43, 5  ;;  %5720 = vmatprep.subr.bf16.mxu1 %v5997_v35  ;;  %v2773_v0 = vshll.u32 %v6886_v51, 16  ;;  %v2733_v27 = vld [vmem:[#allocation3 + $0x38] sm:$0xf] }
 0x199   : > { %v2764_v6 = vshrl.u32 %v2723_v47, 16  ;;  %v2767_v17 = vshll.u32 %v2723_v47, 16  ;;  %v2757_v58 = vrot.slane %v2756_v45, 4  ;;  %v4965_v20 = vrot.slane %v3002_v7, 9  ;;  %v6005_v36 = vld [vmem:[%s7396_s2 + $0x98] sm:$0xff]   ;;  %v7432_v47 = vld [vmem:[#allocation9_spill] sm:$0xff] }
 0x19a   : > { %2528 = vst [vmem:[#allocation3 + $0x30] sm:$0xf] %v4918_v48  ;;  %2529 = vst [vmem:[#allocation3 + $0x34] sm:$0x1] %v4919_v57  ;;  %v2784_v2 = vor.u32 %v2783_v59, %v2780_v60  ;;  %v3031_v46 = vrot.slane %v6866_v21, 5  ;;  %v2792_v31 = vshrl.u32 %v2727_v8, 16 }
 0x19b   : > { %v2766_v4 = vrot.slane %v2764_v6, 4  ;;  %v2769_v24 = vrot.slane %v2767_v17, 5  ;;  %v2762_v28 = vsel %vm6237_vm8, %v2757_v58, %v2761_v14  ;;  %5721 = vmatpush3.bf16.msra.mxu1 %v5997_v35  ;;  %v2795_v61 = vshll.u32 %v2727_v8, 16  ;;  %v6929_v60 = vld [vmem:[#allocation3 + $0x3c] sm:$0x1] }
 0x19c   : > { %v4952_v3 = vcombine.low %v2748_v41, %v2762_v28  ;;  %v2785_v11 = vrot.slane %v2784_v2, 4  ;;  %5722 = vmatprep.subr.bf16.mxu1 %v6000_v42  ;;  %v2775_v44 = vrot.slane %v2773_v0, 5  ;;  %v2789_v5 = vrot.slane %v2787_v56, 5  ;;  %v6006_v57 = vld [vmem:[%s7396_s2 + $0xe8] sm:$0xff]  }
 0x19d   : > { %v2770_v16 = vor.u32 %v2769_v24, %v2766_v4  ;;  %v5998_v50 = vld [vmem:[#allocation3 + $0x20] ss:$8 sps:$4 sm:$0xff]   ;;  %v2794_v13 = vrot.slane %v2792_v31, 4  ;;  %v3032_v25 = vsel %vm6331_vm11, %v4965_v20, %v3031_v46  ;;  %v6913_v49 = vld [vmem:[#allocation3 + $0x2c] sm:$0x1]  ;;  %v2797_v9 = vrot.slane %v2795_v61, 5 }
 0x19e   : > { %5710 = vmatprep.mubr.bf16.mxu0 %v4952_v3  ;;  %v2729_v40 = vld [vmem:[#allocation3 + $0x28] sm:$0xf]  ;;  %5690 = vmatprep.mubr.bf16.mxu1 %v5998_v50  ;;  %v2790_v12 = vsel %vm6237_vm8, %v2785_v11, %v2789_v5  ;;  %v2834_v30 = vshrl.u32 %v2733_v27, 16  ;;  %v2801_v35 = vshll.u32 %v6903_v26, 16  ;;  %v4988_v63 = vcombine.low %v3028_v23, %v3032_v25  ;;  %v6008_v4 = vld [vmem:[%s7396_s2 + $0x90] sm:$0xff]   ;;  %v6009_v3 = vld [vmem:[%s7396_s2 + $0xe0] sm:$0xff]  }
 0x19f   : > { %v2771_v29 = vrot.slane %v2770_v16, 4  ;;  %v2806_v15 = vshrl.u32 %v2729_v40, 16  ;;  %v2809_v34 = vshll.u32 %v2729_v40, 16  ;;  %5723 = vmatpush3.bf16.msra.mxu1 %v6000_v42  ;;  %v2798_v37 = vor.u32 %v2797_v9, %v2794_v13  ;;  %v6010_v31 = vld [vmem:[%s7396_s2 + $0x88] sm:$0xff]   ;;  %v3381_v50 = vld [vmem:[#allocation3 + $0x8] sm:$0xf] }
 0x1a0   : > { %5724 = vmatprep.subr.bf16.mxu1 %v6003_v62  ;;  %v2815_v39 = vshll.u32 %v6913_v49, 16  ;;  %v2836_v6 = vrot.slane %v2834_v30, 4  ;;  %v2837_v17 = vshll.u32 %v2733_v27, 16  ;;  %v2803_v7 = vrot.slane %v2801_v35, 5  ;;  %v3003_v61 = vld [vmem:[#allocation3 + $0x10] sm:$0xe] }
 0x1a1   : > { %v2776_v32 = vsel %vm6237_vm8, %v2771_v29, %v2775_v44  ;;  %v6001_v19 = vld [vmem:[#allocation3 + $0x30] ss:$8 sps:$4 sm:$0xff]   ;;  %v2808_v53 = vrot.slane %v2806_v15, 4  ;;  %v2811_v38 = vrot.slane %v2809_v34, 5  ;;  %v6927_v55 = vld [vmem:[#allocation3 + $0x34] sm:$0x1] }
 0x1a2   : > { %v4953_v22 = vcombine.low %v2776_v32, %v2790_v12  ;;  %v2731_v54 = vld [vmem:[#allocation3 + $0x30] sm:$0xf]  ;;  %5691 = vmatmul.mubr.bf16.gmra.mxu1 %v6001_v19  ;;  %v2799_v43 = vrot.slane %v2798_v37, 4  ;;  %v2829_v58 = vshll.u32 %v6927_v55, 16  ;;  %v2817_v42 = vrot.slane %v2815_v39, 5  ;;  %v6011_v5 = vld [vmem:[%s7396_s2 + $0xd8] sm:$0xff]  }
 0x1a3   : > { %v2820_v1 = vshrl.u32 %v2731_v54, 16  ;;  %v2823_v45 = vshll.u32 %v2731_v54, 16  ;;  %5734 = vmatprep.mubr.bf16.mxu1 %v4988_v63  ;;  %v2812_v48 = vor.u32 %v2811_v38, %v2808_v53  ;;  %5725 = vmatpush3.bf16.msra.mxu1 %v6003_v62  ;;  %v2839_v59 = vrot.slane %v2837_v17, 5  ;;  %v3383_v29 = vld [vmem:[#allocation3 + $0x10] sm:$0xf] }
 0x1a4   : > { %5711 = vmatmul.mubr.bf16.vlgmr.msra.gmra.mxu0 %v4953_v22  ;;  %5726 = vmatprep.subr.bf16.mxu1 %v6005_v36  ;;  %v2843_v8 = vshll.u32 %v6929_v60, 16  ;;  %v2804_v0 = vsel %vm6237_vm8, %v2799_v43, %v2803_v7  ;;  %v2831_v46 = vrot.slane %v2829_v58, 5  ;;  %v6012_v40 = vld [vmem:[%s7396_s2 + $0x80] sm:$0xff]   ;;  %v3006_v13 = vld [vmem:[#allocation3 + $0x28] sm:$0xe]  ;;  %v3398_v9 = vshrl.u32 %v3381_v50, 16 }
 0x1a5   : > { %5743 = vmatpush3.bf16.msra.mxu0 %v7432_v47  ;;  %v2822_v33 = vrot.slane %v2820_v1, 4  ;;  %v2825_v41 = vrot.slane %v2823_v45, 5  ;;  %v2813_v14 = vrot.slane %v2812_v48, 4  ;;  %v2840_v28 = vor.u32 %v2839_v59, %v2836_v6  ;;  %v6007_v23 = vld [vmem:[#allocation3 + $0x8] ss:$8 sps:$4 sm:$0xff]   ;;  %v6013_v22 = vld [vmem:[%s7396_s2 + $0xd0] sm:$0xff]  }
 0x1a6   : > { %5744 = vmatprep.subr.bf16.mxu0 %v6004_v52  ;;  %v2845_v62 = vrot.slane %v2843_v8, 5  ;;  %v3004_v25 = vld [vmem:[#allocation3 + $0x18] sm:$0xe]  ;;  %v3401_v15 = vshll.u32 %v3381_v50, 16  ;;  %v4966_v32 = vrot.slane %v3003_v61, 9  ;;  %v3035_v12 = vrot.slane %v6886_v51, 5 }
 0x1a7   : > { %v2826_v24 = vor.u32 %v2825_v41, %v2822_v33  ;;  %v2818_v56 = vsel %vm6237_vm8, %v2813_v14, %v2817_v42  ;;  %5727 = vmatpush3.bf16.msra.mxu1 %v6005_v36  ;;  %v2841_v16 = vrot.slane %v2840_v28, 4  ;;  %v3412_v34 = vshrl.u32 %v3383_v29, 16  ;;  %v6014_v51 = vld [vmem:[%s7396_s2 + $0x138] sm:$0xff]   ;;  %v6972_v45 = vld [vmem:[#allocation3 + $0x14] sm:$0x1]  ;;  %v6016_v14 = vld [vmem:[%s7396_s2 + $0x130] sm:$0xff]  }
 0x1a8   : > { %v4954_v2 = vcombine.low %v2804_v0, %v2818_v56  ;;  %5728 = vmatprep.subr.bf16.mxu1 %v6008_v4  ;;  %v3415_v36 = vshll.u32 %v3383_v29, 16  ;;  %v4969_v30 = vrot.slane %v3006_v13, 9  ;;  %v3047_v19 = vrot.slane %v6913_v49, 5  ;;  %v3007_v47 = vld [vmem:[#allocation3 + $0x30] sm:$0xe]  ;;  %v6023_v61 = vld [vmem:[%s7396_s2 + $0x170] sm:$0xff]  }
 0x1a9   : > { %5745 = vmatpush3.bf16.msra.mxu0 %v6004_v52  ;;  %v2827_v20 = vrot.slane %v2826_v24, 4  ;;  %v2846_v11 = vsel %vm6237_vm8, %v2841_v16, %v2845_v62  ;;  %v3005_v52 = vld [vmem:[#allocation3 + $0x20] sm:$0xe]  ;;  %v4967_v37 = vrot.slane %v3004_v25, 9  ;;  %v3039_v35 = vrot.slane %v6880_v18, 5  ;;  %v6017_v24 = vld [vmem:[%s7396_s2 + $0xc0] sm:$0xff]  }
 0x1aa   : > { %5746 = vmatprep.subr.bf16.mxu0 %v6006_v57  ;;  %5714 = vmatprep.mubr.bf16.mxu0 %v4954_v2  ;;  %v3414_v53 = vrot.slane %v3412_v34, 4  ;;  %v3417_v63 = vrot.slane %v3415_v36, 5  ;;  %v4968_v38 = vrot.slane %v3005_v52, 9  ;;  %v3043_v39 = vrot.slane %v6903_v26, 5  ;;  %v6015_v26 = vld [vmem:[%s7396_s2 + $0xc8] sm:$0xff]   ;;  %v6020_v16 = vld [vmem:[%s7396_s2 + $0x178] sm:$0xff]  }
 0x1ab   : > { %v2832_v27 = vsel %vm6237_vm8, %v2827_v20, %v2831_v46  ;;  %5729 = vmatpush3.bf16.msra.mxu1 %v6008_v4  ;;  %v3400_v49 = vrot.slane %v3398_v9, 4  ;;  %v3403_v54 = vrot.slane %v3401_v15, 5  ;;  %v3036_v1 = vsel %vm6331_vm11, %v4966_v32, %v3035_v12  ;;  %v3008_v7 = vld [vmem:[#allocation3 + $0x38] sm:$0xe]  ;;  %v6022_v50 = vld [vmem:[%s7396_s2 + $0x120] sm:$0xff]  }
 0x1ac   : > { %v4955_v44 = vcombine.low %v2832_v27, %v2846_v11  ;;  %5730 = vmatprep.subr.bf16.mxu1 %v6010_v31  ;;  %v3048_v18 = vsel %vm6331_vm11, %v4969_v30, %v3047_v19  ;;  %v3418_v43 = vor.u32 %v3417_v63, %v3414_v53  ;;  %v3040_v48 = vsel %vm6331_vm11, %v4967_v37, %v3039_v35  ;;  %v6018_v20 = vld [vmem:[%s7396_s2 + $0x128] sm:$0xff]   ;;  %v3664_v29 = vld [vmem:[#allocation3 + $0x10] sm:$0xe]  ;;  %v3387_v13 = vld [vmem:[#allocation3 + $0x20] sm:$0xf] }
 0x1ad   : > { %5747 = vmatpush3.bf16.msra.mxu0 %v6006_v57  ;;  %v6981_v57 = vld [vmem:[#allocation3 + $0xc] sm:$0x1]  ;;  %v4989_v6 = vcombine.low %v3036_v1, %v3040_v48  ;;  %v3044_v17 = vsel %vm6331_vm11, %v4968_v38, %v3043_v39  ;;  %v3404_v33 = vor.u32 %v3403_v54, %v3400_v49  ;;  %v3421_v41 = vshll.u32 %v6972_v45, 16  ;;  %v6019_v11 = vld [vmem:[#allocation3 + $0x18] ss:$8 sps:$4 sm:$0xff]   ;;  %v6028_v39 = vld [vmem:[%s7396_s2 + $0x160] sm:$0xff]  }
 0x1ae   : > { %5748 = vmatprep.subr.bf16.mxu0 %v6009_v3  ;;  %5715 = vmatmul.mubr.bf16.gmra.mxu0 %v4955_v44  ;;  %v4990_v58 = vcombine.low %v3044_v17, %v3048_v18  ;;  %v4970_v42 = vrot.slane %v3007_v47, 9  ;;  %v3051_v59 = vrot.slane %v6927_v55, 5  ;;  %v3407_v8 = vshll.u32 %v6981_v57, 16  ;;  %v6021_v44 = vld [vmem:[#allocation3 + $0x28] ss:$8 sps:$4 sm:$0xff]   ;;  %v6026_v34 = vld [vmem:[%s7396_s2 + $0x168] sm:$0xff]  }
 0x1af   : > { %5758 = vmatprep.mubr.bf16.mxu0 %v6007_v23  ;;  %5731 = vmatpush3.bf16.msra.mxu1 %v6010_v31  ;;  %v3419_v4 = vrot.slane %v3418_v43, 4  ;;  %v4971_v0 = vrot.slane %v3008_v7, 9  ;;  %v3055_v56 = vrot.slane %v6929_v60, 5  ;;  %v3405_v28 = vrot.slane %v3404_v33, 4  ;;  %v3385_v23 = vld [vmem:[#allocation3 + $0x18] sm:$0xf] }
 0x1b0   : > { %5732 = vmatprep.subr.bf16.mxu1 %v6012_v40  ;;  %v3423_v2 = vrot.slane %v3421_v41, 5  ;;  %v3052_v55 = vsel %vm6331_vm11, %v4970_v42, %v3051_v59  ;;  %v3409_v46 = vrot.slane %v3407_v8, 5  ;;  %v3391_v25 = vld [vmem:[#allocation3 + $0x30] sm:$0xf]  ;;  %v5057_v9 = vrot.slane %v3664_v29, 9  ;;  %v6027_v63 = vld [vmem:[%s7396_s2 + $0x110] sm:$0xff]  }
 0x1b1   : > { %5749 = vmatpush3.bf16.msra.mxu0 %v6009_v3  ;;  %v3056_v60 = vsel %vm6331_vm11, %v4971_v0, %v3055_v56  ;;  %v3693_v15 = vrot.slane %v6972_v45, 5  ;;  %v3389_v32 = vld [vmem:[#allocation3 + $0x28] sm:$0xf]  ;;  %v3440_v12 = vshrl.u32 %v3387_v13, 16  ;;  %v3443_v52 = vshll.u32 %v3387_v13, 16 }
 0x1b2   : > { %5750 = vmatprep.subr.bf16.mxu0 %v6011_v5  ;;  %v3424_v3 = vsel %vm6237_vm8, %v3419_v4, %v3423_v2  ;;  %v4991_v62 = vcombine.low %v3052_v55, %v3056_v60  ;;  %v3410_v31 = vsel %vm6237_vm8, %v3405_v28, %v3409_v46  ;;  %v3689_v30 = vrot.slane %v6981_v57, 5  ;;  %v6025_v1 = vld [vmem:[#allocation3 + $0x38] ss:$8 sps:$4 sm:$0xff]   ;;  %v7036_v17 = vld [vmem:[#allocation3 + $0x24] sm:$0x1]  ;;  %v6030_v8 = vld [vmem:[%s7396_s2 + $0x158] sm:$0xff]  }
 0x1b3   : > { %5733 = vmatpush3.bf16.msra.mxu1 %v6012_v40  ;;  %v5044_v27 = vcombine.low %v3410_v31, %v3424_v3  ;;  %v3663_v40 = vld [vmem:[#allocation3 + $0x8] sm:$0xe]  ;;  %v3468_v19 = vshrl.u32 %v3391_v25, 16  ;;  %v3426_v37 = vshrl.u32 %v3385_v23, 16  ;;  %v3429_v35 = vshll.u32 %v3385_v23, 16 }
 0x1b4   : > { %5766 = vmatprep.subr.bf16.mxu1 %v6014_v51  ;;  %v5056_v36 = vrot.slane %v3663_v40, 9  ;;  %v3694_v53 = vsel %vm6331_vm11, %v5057_v9, %v3693_v15  ;;  %v3457_v38 = vshll.u32 %v3389_v32, 16  ;;  %v3442_v49 = vrot.slane %v3440_v12, 4  ;;  %v3395_v43 = vld [vmem:[#allocation3 + $0x40] sm:$0xf]  ;;  %v6033_v40 = vld [vmem:[%s7396_s2 + $0x1b8] sm:$0xff]  }
 0x1b5   : > { %5751 = vmatpush3.bf16.msra.mxu0 %v6011_v5  ;;  %v6024_v5 = vld [vmem:[%s7396_s2 + $0x118] sm:$0xff]   ;;  %v3445_v54 = vrot.slane %v3443_v52, 5  ;;  %v3470_v18 = vrot.slane %v3468_v19, 4  ;;  %v3428_v57 = vrot.slane %v3426_v37, 4  ;;  %v3393_v41 = vld [vmem:[#allocation3 + $0x38] sm:$0xf] }
 0x1b6   : > { %5752 = vmatprep.subr.bf16.mxu0 %v6013_v22  ;;  %5735 = vmatmul.mubr.bf16.vlgmr.msra.gmra.mxu1 %v4989_v6  ;;  %v3690_v45 = vsel %vm6331_vm11, %v5056_v36, %v3689_v30  ;;  %v3431_v6 = vrot.slane %v3429_v35, 5  ;;  %v3459_v33 = vrot.slane %v3457_v38, 5  ;;  %v3496_v42 = vshrl.u32 %v3395_v43, 16  ;;  %v7043_v4 = vld [vmem:[#allocation3 + $0x1c] sm:$0x1] }
 0x1b7   : > { %5738 = vmatprep.mubr.bf16.mxu1 %v4990_v58  ;;  %5767 = vmatpush3.bf16.msra.mxu1 %v6014_v51  ;;  %v3454_v51 = vshrl.u32 %v3389_v32, 16  ;;  %v5080_v48 = vcombine.low %v3690_v45, %v3694_v53  ;;  %v3446_v58 = vor.u32 %v3445_v54, %v3442_v49  ;;  %v3499_v59 = vshll.u32 %v3395_v43, 16  ;;  %v7046_v28 = vld [vmem:[#allocation3 + $0x2c] sm:$0x1]  ;;  %v4044_v12 = vld [vmem:[#allocation3 + $0x10] sm:$0xf] }
 0x1b8   : > { %5768 = vmatprep.subr.bf16.mxu1 %v6016_v14  ;;  %v3432_v0 = vor.u32 %v3431_v6, %v3428_v57  ;;  %v3449_v56 = vshll.u32 %v7036_v17, 16  ;;  %v3482_v2 = vshrl.u32 %v3393_v41, 16  ;;  %v3485_v55 = vshll.u32 %v3393_v41, 16  ;;  %v6034_v36 = vld [vmem:[%s7396_s2 + $0x148] sm:$0xff]   ;;  %v3666_v38 = vld [vmem:[#allocation3 + $0x20] sm:$0xe] }
 0x1b9   : > { %5753 = vmatpush3.bf16.msra.mxu0 %v6013_v22  ;;  %v3471_v22 = vshll.u32 %v3391_v25, 16  ;;  %v3456_v7 = vrot.slane %v3454_v51, 4  ;;  %v3435_v60 = vshll.u32 %v7043_v4, 16  ;;  %v3501_v31 = vrot.slane %v3499_v59, 5  ;;  %v7060_v25 = vld [vmem:[#allocation3 + $0x44] sm:$0x1] }
 0x1ba   : > { %5754 = vmatprep.subr.bf16.mxu0 %v6015_v26  ;;  %v3451_v29 = vrot.slane %v3449_v56, 5  ;;  %v7069_v30 = vld [vmem:[#allocation3 + $0x3c] sm:$0x1]  ;;  %v3505_v37 = vshll.u32 %v7060_v25, 16  ;;  %v4046_v35 = vld [vmem:[#allocation3 + $0x18] sm:$0xf] }
 0x1bb   : > { %5769 = vmatpush3.bf16.msra.mxu1 %v6016_v14  ;;  %v3473_v47 = vrot.slane %v3471_v22, 5  ;;  %v7038_v14 = vld [vmem:[#allocation3 + $0x34] sm:$0x1]  ;;  %v3460_v46 = vor.u32 %v3459_v33, %v3456_v7  ;;  %v3437_v9 = vrot.slane %v3435_v60, 5  ;;  %v6035_v51 = vld [vmem:[%s7396_s2 + $0x1b0] sm:$0xff]   ;;  %v4064_v49 = vshll.u32 %v4044_v12, 16 }
 0x1bc   : > { %5770 = vmatprep.subr.bf16.mxu1 %v6018_v20  ;;  %v3477_v3 = vshll.u32 %v7038_v14, 16  ;;  %v3665_v43 = vld [vmem:[#allocation3 + $0x18] sm:$0xe]  ;;  %v3507_v6 = vrot.slane %v3505_v37, 5  ;;  %v5059_v7 = vrot.slane %v3666_v38, 9  ;;  %v3701_v33 = vrot.slane %v7036_v17, 5 }
 0x1bd   : > { %5755 = vmatpush3.bf16.msra.mxu0 %v6015_v26  ;;  %v6029_v26 = vld [vmem:[%s7396_s2 + $0x108] sm:$0xff]   ;;  %v3461_v13 = vrot.slane %v3460_v46, 4  ;;  %v3667_v41 = vld [vmem:[#allocation3 + $0x28] sm:$0xe]  ;;  %v3709_v59 = vrot.slane %v7038_v14, 5  ;;  %v3705_v46 = vrot.slane %v7046_v28, 5 }
 0x1be   : > { %5756 = vmatprep.subr.bf16.mxu0 %v6017_v24  ;;  %5739 = vmatmul.mubr.bf16.gmra.mxu1 %v4991_v62  ;;  %v3498_v62 = vrot.slane %v3496_v42, 4  ;;  %v3479_v23 = vrot.slane %v3477_v3, 5  ;;  %v6039_v17 = vld [vmem:[%s7396_s2 + $0x1f8] sm:$0xff]   ;;  %v6043_v37 = vld [vmem:[%s7396_s2 + $0x1e8] sm:$0xff]  }
 0x1bf   : > { %5782 = vmatprep.mubr.bf16.mxu1 %v5044_v27  ;;  %5771 = vmatpush3.bf16.msra.mxu1 %v6018_v20  ;;  %v6031_v20 = vld [vmem:[%s7396_s2 + $0x100] sm:$0xff]   ;;  %v6032_v27 = vld [vmem:[%s7396_s2 + $0x150] sm:$0xff]  }
 0x1c0   : > { %5772 = vmatprep.subr.bf16.mxu1 %v6022_v50  ;;  %v3502_v32 = vor.u32 %v3501_v31, %v3498_v62  ;;  %v7099_v62 = vld [vmem:[#allocation3 + $0x14] sm:$0x1] }
 0x1c1   : > { %5757 = vmatpush3.bf16.msra.mxu0 %v6017_v24  ;;  %v3474_v24 = vor.u32 %v3473_v47, %v3470_v18  ;;  %v3668_v18 = vld [vmem:[#allocation3 + $0x30] sm:$0xe] }
 0x1c2   : > { %5790 = vmatprep.subr.bf16.mxu0 %v6020_v16  ;;  %v3503_v45 = vrot.slane %v3502_v32, 4  ;;  %v6036_v47 = vld [vmem:[%s7396_s2 + $0x140] sm:$0xff]   ;;  %v5061_v42 = vrot.slane %v3668_v18, 9  ;;  %v4050_v18 = vld [vmem:[#allocation3 + $0x28] sm:$0xf] }
 0x1c3   : > { %5773 = vmatpush3.bf16.msra.mxu1 %v6022_v50  ;;  %v3463_v50 = vshll.u32 %v7046_v28, 16  ;;  %v6040_v28 = vld [vmem:[%s7396_s2 + $0x1a0] sm:$0xff]  }
 0x1c4   : > { %5759 = vmatmul.mubr.bf16.vlgmr.msra.gmra.mxu0 %v6019_v11  ;;  %5774 = vmatprep.subr.bf16.mxu1 %v6024_v5  ;;  %v3475_v11 = vrot.slane %v3474_v24, 4  ;;  %v4066_v24 = vrot.slane %v4064_v49, 5  ;;  %v3508_v56 = vsel %vm6237_vm8, %v3503_v45, %v3507_v6  ;;  %v3710_v31 = vsel %vm6331_vm11, %v5061_v42, %v3709_v59  ;;  %v6046_v45 = vld [vmem:[%s7396_s2 + $0x188] sm:$0xff]  }
 0x1c5   : > { %5762 = vmatprep.mubr.bf16.mxu0 %v6021_v44  ;;  %5791 = vmatpush3.bf16.msra.mxu0 %v6020_v16  ;;  %v3447_v16 = vrot.slane %v3446_v58, 4  ;;  %v3484_v44 = vrot.slane %v3482_v2, 4  ;;  %v3465_v52 = vrot.slane %v3463_v50, 5  ;;  %v6037_v58 = vld [vmem:[%s7396_s2 + $0x1a8] sm:$0xff]   ;;  %v5058_v2 = vrot.slane %v3665_v43, 9  ;;  %v6047_v43 = vld [vmem:[%s7396_s2 + $0x1d8] sm:$0xff]  }
 0x1c6   : > { %5792 = vmatprep.subr.bf16.mxu0 %v6023_v61  ;;  %v4106_v6 = vshll.u32 %v4050_v18, 16 }
 0x1c7   : > { %5775 = vmatpush3.bf16.msra.mxu1 %v6024_v5  ;;  %v3487_v5 = vrot.slane %v3485_v55, 5  ;;  %v3452_v15 = vsel %vm6237_vm8, %v3447_v16, %v3451_v29  ;;  %v3697_v55 = vrot.slane %v7043_v4, 5  ;;  %v3702_v16 = vsel %vm6331_vm11, %v5059_v7, %v3701_v33  ;;  %v7108_v29 = vld [vmem:[#allocation3 + $0x1c] sm:$0x1]  ;;  %v4054_v7 = vld [vmem:[#allocation3 + $0x38] sm:$0xf] }
 0x1c8   : > { %5776 = vmatprep.subr.bf16.mxu1 %v6027_v63  ;;  %v6048_v33 = vld [vmem:[%s7396_s2 + $0x180] sm:$0xff]  }
 0x1c9   : > { %5793 = vmatpush3.bf16.msra.mxu0 %v6023_v61  ;;  %v3433_v61 = vrot.slane %v3432_v0, 4  ;;  %v3488_v22 = vor.u32 %v3487_v5, %v3484_v44 }
 0x1ca   : > { %5794 = vmatprep.subr.bf16.mxu0 %v6026_v34 }
 0x1cb   : > { %5777 = vmatpush3.bf16.msra.mxu1 %v6027_v63  ;;  %v3438_v19 = vsel %vm6237_vm8, %v3433_v61, %v3437_v9  ;;  %v3466_v63 = vsel %vm6237_vm8, %v3461_v13, %v3465_v52  ;;  %v3489_v57 = vrot.slane %v3488_v22, 4  ;;  %v6038_v61 = vld [vmem:[#allocation3 + $0x10] ss:$8 sps:$4 sm:$0xff]   ;;  %v6042_v52 = vld [vmem:[%s7396_s2 + $0x198] sm:$0xff]   ;;  %v3713_v22 = vrot.slane %v7069_v30, 5 }
 0x1cc   : > { %5763 = vmatmul.mubr.bf16.gmra.mxu0 %v6025_v1  ;;  %5778 = vmatprep.subr.bf16.mxu1 %v6029_v26  ;;  %v5045_v53 = vcombine.low %v3438_v19, %v3452_v15  ;;  %v3491_v1 = vshll.u32 %v7069_v30, 16  ;;  %v3669_v13 = vld [vmem:[#allocation3 + $0x38] sm:$0xe]  ;;  %v6044_v30 = vld [vmem:[%s7396_s2 + $0x190] sm:$0xff]  }
 0x1cd   : > { %5795 = vmatpush3.bf16.msra.mxu0 %v6026_v34  ;;  %5806 = vmatprep.mubr.bf16.mxu0 %v5080_v48  ;;  %v3480_v34 = vsel %vm6237_vm8, %v3475_v11, %v3479_v23  ;;  %v4075_v48 = vshrl.u32 %v4046_v35, 16  ;;  %v3698_v11 = vsel %vm6331_vm11, %v5058_v2, %v3697_v55  ;;  %v4070_v23 = vshll.u32 %v7099_v62, 16 }
 0x1ce   : > { %5796 = vmatprep.subr.bf16.mxu0 %v6028_v39  ;;  %v5046_v54 = vcombine.low %v3466_v63, %v3480_v34  ;;  %v3493_v0 = vrot.slane %v3491_v1, 5  ;;  %v5081_v44 = vcombine.low %v3698_v11, %v3702_v16  ;;  %v5062_v19 = vrot.slane %v3669_v13, 9 }
 0x1cf   : > { %5779 = vmatpush3.bf16.msra.mxu1 %v6029_v26  ;;  %v4078_v26 = vshll.u32 %v4046_v35, 16  ;;  %v4077_v3 = vrot.slane %v4075_v48, 4  ;;  %v4048_v48 = vld [vmem:[#allocation3 + $0x20] sm:$0xf]  ;;  %v4108_v55 = vrot.slane %v4106_v6, 5 }
 0x1d0   : > { %5780 = vmatprep.subr.bf16.mxu1 %v6031_v20  ;;  %v3494_v60 = vsel %vm6237_vm8, %v3489_v57, %v3493_v0  ;;  %v3714_v38 = vsel %vm6331_vm11, %v5062_v19, %v3713_v22  ;;  %v4103_v57 = vshrl.u32 %v4050_v18, 16  ;;  %v4089_v42 = vshrl.u32 %v4048_v48, 16  ;;  %v6055_v22 = vld [vmem:[%s7396_s2 + $0x1c0] sm:$0xff]  }
 0x1d1   : > { %5797 = vmatpush3.bf16.msra.mxu0 %v6028_v39  ;;  %v4061_v39 = vshrl.u32 %v4044_v12, 16  ;;  %v4080_v14 = vrot.slane %v4078_v26, 5  ;;  %v5047_v4 = vcombine.low %v3494_v60, %v3508_v56  ;;  %v3717_v12 = vrot.slane %v7060_v25, 5  ;;  %v4058_v26 = vld [vmem:[#allocation3 + $0x48] sm:$0xf] }
 0x1d2   : > { %5798 = vmatprep.subr.bf16.mxu0 %v6030_v8  ;;  %v4072_v25 = vrot.slane %v4070_v23, 5  ;;  %v4092_v59 = vshll.u32 %v4048_v48, 16  ;;  %v4131_v0 = vshrl.u32 %v4054_v7, 16  ;;  %v4134_v56 = vshll.u32 %v4054_v7, 16  ;;  %v6050_v23 = vld [vmem:[#allocation3 + $0x20] ss:$8 sps:$4 sm:$0xff]  }
 0x1d3   : > { %5781 = vmatpush3.bf16.msra.mxu1 %v6031_v20  ;;  %v5060_v20 = vrot.slane %v3667_v41, 9  ;;  %v4081_v9 = vor.u32 %v4080_v14, %v4077_v3  ;;  %v4105_v2 = vrot.slane %v4103_v57, 4  ;;  %v4056_v3 = vld [vmem:[#allocation3 + $0x40] sm:$0xf]  ;;  %v4091_v14 = vrot.slane %v4089_v42, 4 }
 0x1d4   : > { %5814 = vmatprep.subr.bf16.mxu1 %v6033_v40  ;;  %v4094_v60 = vrot.slane %v4092_v59, 5  ;;  %v4136_v11 = vrot.slane %v4134_v56, 5  ;;  %v4148_v13 = vshll.u32 %v4056_v3, 16  ;;  %v7186_v57 = vld [vmem:[#allocation3 + $0x4c] sm:$0x1] }
 0x1d5   : > { %5799 = vmatpush3.bf16.msra.mxu0 %v6030_v8  ;;  %v4063_v8 = vrot.slane %v4061_v39, 4  ;;  %v3706_v5 = vsel %vm6331_vm11, %v5060_v20, %v3705_v46  ;;  %v4082_v35 = vrot.slane %v4081_v9, 4  ;;  %v6052_v9 = vld [vmem:[#allocation3 + $0x30] ss:$8 sps:$4 sm:$0xff]  }
 0x1d6   : > { %5800 = vmatprep.subr.bf16.mxu0 %v6032_v27  ;;  %5783 = vmatmul.mubr.bf16.vlgmr.msra.gmra.mxu1 %v5045_v53  ;;  %v5082_v15 = vcombine.low %v3706_v5, %v3710_v31  ;;  %v6053_v31 = vld [vmem:[%s7396_s2 + $0x1c8] sm:$0xff]   ;;  %v7164_v5 = vld [vmem:[#allocation3 + $0x34] sm:$0x1] }
 0x1d7   : > { %5786 = vmatprep.mubr.bf16.mxu1 %v5046_v54  ;;  %5815 = vmatpush3.bf16.msra.mxu1 %v6033_v40  ;;  %v4067_v50 = vor.u32 %v4066_v24, %v4063_v8  ;;  %v6041_v40 = vld [vmem:[%s7396_s2 + $0x1f0] sm:$0xff]   ;;  %v6045_v54 = vld [vmem:[%s7396_s2 + $0x1e0] sm:$0xff]   ;;  %v4159_v8 = vshrl.u32 %v4058_v26, 16 }
 0x1d8   : > { %5816 = vmatprep.subr.bf16.mxu1 %v6035_v51  ;;  %v6049_v24 = vld [vmem:[%s7396_s2 + $0x1d0] sm:$0xff]  }
 0x1d9   : > { %5801 = vmatpush3.bf16.msra.mxu0 %v6032_v27  ;;  %v3670_v27 = vld [vmem:[#allocation3 + $0x40] sm:$0xe]  ;;  %v4068_v34 = vrot.slane %v4067_v50, 4  ;;  %v7154_v16 = vrot.slane %v4159_v8, 4  ;;  %v4133_v50 = vrot.slane %v4131_v0, 4 }
 0x1da   : > { %5802 = vmatprep.subr.bf16.mxu0 %v6034_v36  ;;  %v5063_v32 = vrot.slane %v3670_v27, 9  ;;  %v7162_v27 = vld [vmem:[#allocation3 + $0x2c] sm:$0x1] }
 0x1db   : > { %5817 = vmatpush3.bf16.msra.mxu1 %v6035_v51  ;;  %v4073_v63 = vsel %vm6237_vm8, %v4068_v34, %v4072_v25  ;;  %v4327_v34 = vld [vmem:[#allocation3 + $0x18] sm:$0xe]  ;;  %v4352_v25 = vrot.slane %v7099_v62, 5 }
 0x1dc   : > { %5818 = vmatprep.subr.bf16.mxu1 %v6037_v58  ;;  %v3718_v53 = vsel %vm6331_vm11, %v5063_v32, %v3717_v12  ;;  %v4095_v12 = vor.u32 %v4094_v60, %v4091_v14  ;;  %v6059_v60 = vld [vmem:[%s7396_s2 + $0x218] sm:$0xff]  }
 0x1dd   : > { %5803 = vmatpush3.bf16.msra.mxu0 %v6034_v36  ;;  %v4084_v36 = vshll.u32 %v7108_v29, 16  ;;  %v5083_v39 = vcombine.low %v3714_v38, %v3718_v53  ;;  %v4137_v53 = vor.u32 %v4136_v11, %v4133_v50  ;;  %v4150_v38 = vrot.slane %v4148_v13, 5  ;;  %v6061_v11 = vld [vmem:[%s7396_s2 + $0x208] sm:$0xff]  }
 0x1de   : > { %5804 = vmatprep.subr.bf16.mxu0 %v6036_v47  ;;  %5787 = vmatmul.mubr.bf16.gmra.mxu1 %v5047_v4  ;;  %v4162_v4 = vshll.u32 %v4058_v26, 16  ;;  %v7184_v26 = vld [vmem:[#allocation3 + $0x44] sm:$0x1] }
 0x1df   : > { %5819 = vmatpush3.bf16.msra.mxu1 %v6037_v58  ;;  %5830 = vmatprep.mubr.bf16.mxu1 %v6038_v61  ;;  %v4086_v51 = vrot.slane %v4084_v36, 5  ;;  %v4109_v61 = vor.u32 %v4108_v55, %v4105_v2  ;;  %v7169_v36 = vld [vmem:[#allocation3 + $0x3c] sm:$0x1]  ;;  %v4138_v48 = vrot.slane %v4137_v53, 4  ;;  %v4154_v2 = vshll.u32 %v7184_v26, 16 }
 0x1e0   : > { %5820 = vmatprep.subr.bf16.mxu1 %v6040_v28  ;;  %v4164_v19 = vrot.slane %v4162_v4, 5  ;;  %v4140_v62 = vshll.u32 %v7169_v36, 16 }
 0x1e1   : > { %5805 = vmatpush3.bf16.msra.mxu0 %v6036_v47  ;;  %v4087_v49 = vsel %vm6237_vm8, %v4082_v35, %v4086_v51  ;;  %v4052_v47 = vld [vmem:[#allocation3 + $0x30] sm:$0xf]  ;;  %v4126_v35 = vshll.u32 %v7164_v5, 16  ;;  %v4110_v51 = vrot.slane %v4109_v61, 4  ;;  %v4329_v61 = vld [vmem:[#allocation3 + $0x28] sm:$0xe] }
 0x1e2   : > { %5838 = vmatprep.subr.bf16.mxu0 %v6039_v17  ;;  %v5136_v1 = vcombine.low %v4073_v63, %v4087_v49  ;;  %v4117_v41 = vshrl.u32 %v4052_v47, 16  ;;  %v4120_v58 = vshll.u32 %v4052_v47, 16  ;;  %v5149_v49 = vrot.slane %v4327_v34, 9 }
 0x1e3   : > { %5821 = vmatpush3.bf16.msra.mxu1 %v6040_v28  ;;  %v6054_v28 = vld [vmem:[%s7396_s2 + $0x230] sm:$0xff]   ;;  %v4165_v6 = vor.u32 %v4164_v19, %v7154_v16  ;;  %v4142_v8 = vrot.slane %v4140_v62, 5  ;;  %v4156_v16 = vrot.slane %v4154_v2, 5  ;;  %v5151_v13 = vrot.slane %v4329_v61, 9 }
 0x1e4   : > { %5807 = vmatmul.mubr.bf16.vlgmr.msra.gmra.mxu0 %v5081_v44  ;;  %5822 = vmatprep.subr.bf16.mxu1 %v6042_v52  ;;  %v4119_v20 = vrot.slane %v4117_v41, 4  ;;  %v4122_v46 = vrot.slane %v4120_v58, 5  ;;  %v4326_v44 = vld [vmem:[#allocation3 + $0x10] sm:$0xe]  ;;  %v4168_v41 = vshll.u32 %v7186_v57, 16 }
 0x1e5   : > { %5810 = vmatprep.mubr.bf16.mxu0 %v5082_v15  ;;  %5839 = vmatpush3.bf16.msra.mxu0 %v6039_v17  ;;  %v6051_v17 = vld [vmem:[%s7396_s2 + $0x238] sm:$0xff]   ;;  %v7166_v15 = vld [vmem:[#allocation3 + $0x24] sm:$0x1] }
 0x1e6   : > { %5840 = vmatprep.subr.bf16.mxu0 %v6041_v40  ;;  %v4123_v32 = vor.u32 %v4122_v46, %v4119_v20  ;;  %v4098_v63 = vshll.u32 %v7166_v15, 16  ;;  %v6056_v58 = vld [vmem:[#allocation3 + $0x40] ss:$8 sps:$4 sm:$0xff]   ;;  %v4170_v14 = vrot.slane %v4168_v41, 5  ;;  %v4360_v34 = vrot.slane %v7166_v15, 5 }
 0x1e7   : > { %5823 = vmatpush3.bf16.msra.mxu1 %v6042_v52  ;;  %v4112_v52 = vshll.u32 %v7162_v27, 16 }
 0x1e8   : > { %5824 = vmatprep.subr.bf16.mxu1 %v6044_v30 }
 0x1e9   : > { %5841 = vmatpush3.bf16.msra.mxu0 %v6041_v40  ;;  %v4145_v40 = vshrl.u32 %v4056_v3, 16  ;;  %v4114_v18 = vrot.slane %v4112_v52, 5  ;;  %v4166_v3 = vrot.slane %v4165_v6, 4 }
 0x1ea   : > { %5842 = vmatprep.subr.bf16.mxu0 %v6043_v37 }
 0x1eb   : > { %5825 = vmatpush3.bf16.msra.mxu1 %v6044_v30  ;;  %v4147_v30 = vrot.slane %v4145_v40, 4  ;;  %v4115_v7 = vsel %vm6237_vm8, %v4110_v51, %v4114_v18  ;;  %v4328_v40 = vld [vmem:[#allocation3 + $0x20] sm:$0xe] }
 0x1ec   : > { %5811 = vmatmul.mubr.bf16.gmra.mxu0 %v5083_v39  ;;  %5826 = vmatprep.subr.bf16.mxu1 %v6046_v45  ;;  %v6057_v39 = vld [vmem:[%s7396_s2 + $0x228] sm:$0xff]   ;;  %v5150_v52 = vrot.slane %v4328_v40, 9 }
 0x1ed   : > { %5843 = vmatpush3.bf16.msra.mxu0 %v6043_v37  ;;  %5854 = vmatprep.mubr.bf16.mxu0 %v5136_v1  ;;  %v5148_v37 = vrot.slane %v4326_v44, 9  ;;  %v4124_v1 = vrot.slane %v4123_v32, 4  ;;  %v4330_v44 = vld [vmem:[#allocation3 + $0x30] sm:$0xe] }
 0x1ee   : > { %5844 = vmatprep.subr.bf16.mxu0 %v6045_v54  ;;  %v5152_v32 = vrot.slane %v4330_v44, 9 }
 0x1ef   : > { %5827 = vmatpush3.bf16.msra.mxu1 %v6046_v45  ;;  %v4096_v45 = vrot.slane %v4095_v12, 4  ;;  %v4353_v47 = vsel %vm6331_vm11, %v5148_v37, %v4352_v25  ;;  %v4368_v12 = vrot.slane %v7164_v5, 5  ;;  %v4333_v25 = vld [vmem:[#allocation3 + $0x48] sm:$0xe]  ;;  %v4361_v5 = vsel %vm6331_vm11, %v5150_v52, %v4360_v34 }
 0x1f0   : > { %5828 = vmatprep.subr.bf16.mxu1 %v6048_v33 }
 0x1f1   : > { %5845 = vmatpush3.bf16.msra.mxu0 %v6045_v54  ;;  %v4356_v54 = vrot.slane %v7108_v29, 5  ;;  %v4100_v29 = vrot.slane %v4098_v63, 5  ;;  %v5155_v63 = vrot.slane %v4333_v25, 9 }
 0x1f2   : > { %5846 = vmatprep.subr.bf16.mxu0 %v6047_v43 }
 0x1f3   : > { %5829 = vmatpush3.bf16.msra.mxu1 %v6048_v33  ;;  %v4151_v33 = vor.u32 %v4150_v38, %v4147_v30  ;;  %v4357_v42 = vsel %vm6331_vm11, %v5149_v49, %v4356_v54  ;;  %v4101_v0 = vsel %vm6237_vm8, %v4096_v45, %v4100_v29  ;;  %v4380_v38 = vrot.slane %v7186_v57, 5 }
 0x1f4   : > { %5862 = vmatprep.subr.bf16.mxu1 %v6051_v17  ;;  %v5172_v56 = vcombine.low %v4353_v47, %v4357_v42  ;;  %v5137_v55 = vcombine.low %v4101_v0, %v4115_v7 }
 0x1f5   : > { %5847 = vmatpush3.bf16.msra.mxu0 %v6047_v43  ;;  %v4128_v43 = vrot.slane %v4126_v35, 5  ;;  %v4152_v46 = vrot.slane %v4151_v33, 4  ;;  %v4369_v35 = vsel %vm6331_vm11, %v5152_v32, %v4368_v12  ;;  %v4381_v49 = vsel %vm6331_vm11, %v5155_v63, %v4380_v38 }
 0x1f6   : > { %5848 = vmatprep.subr.bf16.mxu0 %v6049_v24  ;;  %5831 = vmatmul.mubr.bf16.vlgmr.msra.gmra.mxu1 %v6050_v23  ;;  %v4364_v23 = vrot.slane %v7162_v27, 5  ;;  %v4332_v27 = vld [vmem:[#allocation3 + $0x40] sm:$0xe] }
 0x1f7   : > { %5834 = vmatprep.mubr.bf16.mxu1 %v6052_v9  ;;  %5863 = vmatpush3.bf16.msra.mxu1 %v6051_v17  ;;  %v4129_v59 = vsel %vm6237_vm8, %v4124_v1, %v4128_v43  ;;  %v4143_v17 = vsel %vm6237_vm8, %v4138_v48, %v4142_v8  ;;  %v4157_v4 = vsel %vm6237_vm8, %v4152_v46, %v4156_v16  ;;  %v4331_v9 = vld [vmem:[#allocation3 + $0x38] sm:$0xe]  ;;  %v5154_v30 = vrot.slane %v4332_v27, 9 }
 0x1f8   : > { %5864 = vmatprep.subr.bf16.mxu1 %v6054_v28  ;;  %v5138_v20 = vcombine.low %v4129_v59, %v4143_v17  ;;  %v5153_v19 = vrot.slane %v4331_v9, 9  ;;  %v4365_v37 = vsel %vm6331_vm11, %v5151_v13, %v4364_v23 }
 0x1f9   : > { %5849 = vmatpush3.bf16.msra.mxu0 %v6049_v24  ;;  %v6058_v24 = vld [vmem:[%s7396_s2 + $0x220] sm:$0xff]   ;;  %v5173_v53 = vcombine.low %v4361_v5, %v4365_v37 }
 0x1fa   : > { %5850 = vmatprep.subr.bf16.mxu0 %v6053_v31 }
 0x1fb   : > { %5865 = vmatpush3.bf16.msra.mxu1 %v6054_v28  ;;  %v6060_v28 = vld [vmem:[%s7396_s2 + $0x210] sm:$0xff]  }
 0x1fc   : > { %5866 = vmatprep.subr.bf16.mxu1 %v6057_v39 }
 0x1fd   : > { %5851 = vmatpush3.bf16.msra.mxu0 %v6053_v31  ;;  %v4171_v31 = vsel %vm6237_vm8, %v4166_v3, %v4170_v14 }
 0x1fe   : > { %5852 = vmatprep.subr.bf16.mxu0 %v6055_v22  ;;  %5835 = vmatmul.mubr.bf16.gmra.mxu1 %v6056_v58  ;;  %v5139_v50 = vcombine.low %v4157_v4, %v4171_v31 }
 0x1ff   : > { %5867 = vmatpush3.bf16.msra.mxu1 %v6057_v39  ;;  %5878 = vmatprep.mubr.bf16.mxu1 %v5172_v56 }
 0x200   : > { %5868 = vmatprep.subr.bf16.mxu1 %v6058_v24 }
 0x201   : > { %5853 = vmatpush3.bf16.msra.mxu0 %v6055_v22  ;;  %v4372_v22 = vrot.slane %v7169_v36, 5  ;;  %v4376_v36 = vrot.slane %v7184_v26, 5 }
 0x203   : > { %5869 = vmatpush3.bf16.msra.mxu1 %v6058_v24  ;;  %v4373_v15 = vsel %vm6331_vm11, %v5153_v19, %v4372_v22  ;;  %v4377_v39 = vsel %vm6331_vm11, %v5154_v30, %v4376_v36 }
 0x204   : > { %5855 = vmatmul.mubr.bf16.vlgmr.msra.gmra.mxu0 %v5137_v55  ;;  %5870 = vmatprep.subr.bf16.mxu1 %v6059_v60  ;;  %v5174_v51 = vcombine.low %v4369_v35, %v4373_v15  ;;  %v5175_v54 = vcombine.low %v4377_v39, %v4381_v49  ;;  %v5232_v35 = vld [vmem:[%s6152_s11 + $0x8] sm:$0xff]  }
 0x205   : > { %5858 = vmatprep.mubr.bf16.mxu0 %v5138_v20  ;;  %v5202_v15 = vunpack.c.l.bf16 %v5232_v35  ;;  %v5203_v63 = vunpack.c.h.bf16 %v5232_v35 }
 0x207   : > { %5871 = vmatpush3.bf16.msra.mxu1 %v6059_v60 }
 0x208   : > { %5872 = vmatprep.subr.bf16.mxu1 %v6060_v28 }
 0x20b   : > { %5873 = vmatpush3.bf16.msra.mxu1 %v6060_v28 }
 0x20c   : > { %5859 = vmatmul.mubr.bf16.gmra.mxu0 %v5139_v50  ;;  %5874 = vmatprep.subr.bf16.mxu1 %v6061_v11 }
 0x20f   : > { %5875 = vmatpush3.bf16.msra.mxu1 %v6061_v11 }
 0x210   : > { %5876 = vmatprep.subr.bf16.mxu1 %v6062_v10 }
 0x213   : > { %5877 = vmatpush3.bf16.msra.mxu1 %v6062_v10 }
 0x216   : > { %5879 = vmatmul.mubr.bf16.vlgmr.msra.gmra.mxu1 %v5173_v53  ;;  %v5197_v53 = vld [vmem:[%s6152_s11] sm:$0xff]  }
 0x217   : > { %5882 = vmatprep.mubr.bf16.mxu1 %v5174_v51  ;;  %v5198_v36 = vunpack.c.l.bf16 %v5197_v53  ;;  %v5199_v38 = vunpack.c.h.bf16 %v5197_v53 }
 0x21e   : > { %5883 = vmatmul.mubr.bf16.gmra.mxu1 %v5175_v54  ;;  %v5234_v54 = vld [vmem:[%s6152_s11 + $0x18] sm:$0xff]  }
 0x256   : > { %v5688_v1 = vpop.f32.mrf.mxu1 }
 0x257   : > { %v2713_v39 = vadd.f32 %v5688_v1, %v5202_v15 }
 0x258   : > { %v7238_v62 = vpop.f32.mrf.mxu1 }
 0x25a   : > { %v5689_v45 = vpop.f32.mrf.mxu1 }
 0x25b   : > { %v2714_v49 = vadd.f32 %v5689_v45, %v5203_v63 }
 0x25c   : > { %v7240_v18 = vpop.f32.mrf.mxu1 }
 0x262   : > { %v7244_v43 = vpop.f32.mrf.mxu1 }
 0x264   : > { %v7242_v47 = vpop.f32.mrf.mxu0  ;;  %v7248_v26 = vpop.f32.mrf.mxu1 }
 0x266   : > { %v7246_v48 = vpop.f32.mrf.mxu0  ;;  %v7250_v6 = vpop.f32.mrf.mxu1 }
 0x268   : > { %v5713_v57 = vpop.f32.mrf.mxu0  ;;  %v7254_v29 = vpop.f32.mrf.mxu1 }
 0x269   : > { %v2996_v35 = vadd.f32 %v5713_v57, %v2714_v49 }
 0x26a   : > { %v7252_v21 = vpop.f32.mrf.mxu0 }
 0x26e   : > { %v7256_v7 = vpop.f32.mrf.mxu0 }
 0x270   : > { %v7258_v41 = vpop.f32.mrf.mxu0 }
 0x272   : > { %v7262_v42 = vpop.f32.mrf.mxu0 }
 0x274   : > { %v7264_v8 = vpop.f32.mrf.mxu0 }
 0x276   : > { %v5736_v33 = vpop.f32.mrf.mxu1 }
 0x278   : > { %v7260_v58 = vpop.f32.mrf.mxu1 }
 0x27a   : > { %v5737_v59 = vpop.f32.mrf.mxu1 }
 0x27b   : > { %v3206_v45 = vadd.f32 %v5737_v59, %v2996_v35 }
 0x27c   : > { %v7266_v24 = vpop.f32.mrf.mxu1 }
 0x27e   : > { %v7270_v56 = vpop.f32.mrf.mxu1 }
 0x280   : > { %v7274_v55 = vpop.f32.mrf.mxu1 }
 0x282   : > { %v7276_v20 = vpop.f32.mrf.mxu1 }
 0x284   : > { %v7268_v0 = vpop.f32.mrf.mxu0  ;;  %v7278_v3 = vpop.f32.mrf.mxu1 }
 0x286   : > { %v7272_v2 = vpop.f32.mrf.mxu0 }
 0x288   : > { %v5761_v17 = vpop.f32.mrf.mxu0 }
 0x289   : > { %v3376_v57 = vadd.f32 %v5761_v17, %v3206_v45 }
 0x28a   : > { %v3345_v46 = vpop.f32.mrf.mxu0 }
 0x28c   : > { %v7280_v14 = vpop.f32.mrf.mxu0 }
 0x28e   : > { %v7282_v16 = vpop.f32.mrf.mxu0 }
 0x290   : > { %v7286_v31 = vpop.f32.mrf.mxu0 }
 0x292   : > { %v7288_v50 = vpop.f32.mrf.mxu0 }
 0x296   : > { %v5784_v60 = vpop.f32.mrf.mxu1 }
 0x298   : > { %v7284_v4 = vpop.f32.mrf.mxu1 }
 0x29a   : > { %v5785_v28 = vpop.f32.mrf.mxu1 }
 0x29c   : > { %v7290_v11 = vpop.f32.mrf.mxu1 }
 0x29e   : > { %v7294_v44 = vpop.f32.mrf.mxu1 }
 0x29f   : > { %7433 = vst [vmem:[#allocation10_spill] sm:$0xff] %v7294_v44 }
 0x2a0   : > { %v7298_v40 = vpop.f32.mrf.mxu1 }
 0x2a1   : > { %7434 = vst [vmem:[#allocation11_spill] sm:$0xff] %v7298_v40  ;;  %v5233_v40 = vld [vmem:[%s6152_s11 + $0x10] sm:$0xff]  }
 0x2a2   : > { %v7300_v23 = vpop.f32.mrf.mxu1  ;;  %v5206_v15 = vunpack.c.l.bf16 %v5233_v40  ;;  %v5207_v63 = vunpack.c.h.bf16 %v5233_v40 }
 0x2a3   : > { %7435 = vst [vmem:[#allocation4_spill] sm:$0xff] %v7300_v23  ;;  %v5210_v23 = vunpack.c.l.bf16 %v5234_v54 }
 0x2a4   : > { %v7292_v61 = vpop.f32.mrf.mxu0  ;;  %v7304_v32 = vpop.f32.mrf.mxu1  ;;  %v2715_v40 = vadd.f32 %v5206_v15, %v7248_v26 }
 0x2a5   : > { %7436 = vst [vmem:[#allocation5_spill] sm:$0xff] %v7304_v32  ;;  %v2995_v32 = vadd.f32 %v7242_v47, %v2713_v39 }
 0x2a6   : > { %v7296_v10 = vpop.f32.mrf.mxu0 }
 0x2a7   : > { %v3205_v1 = vadd.f32 %v5736_v33, %v2995_v32  ;;  %v3658_v32 = vadd.f32 %v5785_v28, %v3376_v57 }
 0x2a8   : > { %v5809_v13 = vpop.f32.mrf.mxu0  ;;  %v7447_v35 = vld [vmem:[#allocation11_spill] sm:$0xff] }
 0x2a9   : > { %v3375_v47 = vadd.f32 %v7268_v0, %v3205_v1 }
 0x2aa   : > { %v7302_v9 = vpop.f32.mrf.mxu0 }
 0x2ab   : > { %v3657_v59 = vadd.f32 %v5784_v60, %v3375_v47 }
 0x2ac   : > { %v7306_v12 = vpop.f32.mrf.mxu0 }
 0x2ad   : > { %7437 = vst [vmem:[#allocation8_spill] sm:$0xff] %v7306_v12  ;;  %v2712_v12 = vadd.f32 %v5199_v38, %v7240_v18 }
 0x2ae   : > { %v7310_v34 = vpop.f32.mrf.mxu0 }
 0x2af   : > { %7438 = vst [vmem:[#allocation6_spill] sm:$0xff] %v7310_v34  ;;  %v2994_v53 = vadd.f32 %v7252_v21, %v2712_v12  ;;  %v2716_v12 = vadd.f32 %v5207_v63, %v7254_v29 }
 0x2b0   : > { %v7314_v22 = vpop.f32.mrf.mxu0 }
 0x2b1   : > { %7439 = vst [vmem:[#allocation7_spill] sm:$0xff] %v7314_v22  ;;  %v2711_v22 = vadd.f32 %v5198_v36, %v7238_v62  ;;  %v3204_v18 = vadd.f32 %v7266_v24, %v2994_v53  ;;  %v2717_v36 = vadd.f32 %v7244_v43, %v5210_v23  ;;  %v2998_v60 = vadd.f32 %v7264_v8, %v2716_v12  ;;  %v7448_v53 = vld [vmem:[#allocation5_spill] sm:$0xff] }
 0x2b2   : > { %v7316_v25 = vpop.f32.mrf.mxu0 }
 0x2b3   : > { %7440 = vst [vmem:[#allocation9_spill] sm:$0xff] %v7316_v25  ;;  %v3374_v33 = vadd.f32 %v3345_v46, %v3204_v18  ;;  %v2997_v46 = vadd.f32 %v7258_v41, %v2715_v40 }
 0x2b5   : > { %v3656_v43 = vadd.f32 %v7290_v11, %v3374_v33  ;;  %v3207_v11 = vadd.f32 %v7274_v55, %v2997_v46 }
 0x2b6   : > { %v7308_v52 = vpop.f32.mrf.mxu1  ;;  %v7451_v18 = vld [vmem:[#allocation6_spill] sm:$0xff] }
 0x2b7   : > { %v3866_v28 = vadd.f32 %v7302_v9, %v3656_v43 }
 0x2b8   : > { %v7312_v19 = vpop.f32.mrf.mxu1 }
 0x2ba   : > { %v5833_v37 = vpop.f32.mrf.mxu1 }
 0x2bc   : > { %v7319_v27 = vpop.f32.mrf.mxu1 }
 0x2be   : > { %v7324_v51 = vpop.f32.mrf.mxu1 }
 0x2bf   : > { %7441 = vst [vmem:[#allocation12_spill] sm:$0xff] %v7324_v51  ;;  %v5211_v51 = vunpack.c.h.bf16 %v5234_v54 }
 0x2c0   : > { %v7329_v34 = vpop.f32.mrf.mxu1 }
 0x2c1   : > { %7443 = vst [vmem:[#allocation14_spill] sm:$0xff] %v7329_v34 }
 0x2c2   : > { %v7337_v34 = vpop.f32.mrf.mxu1 }
 0x2c4   : > { %v7321_v5 = vpop.f32.mrf.mxu0 }
 0x2c6   : > { %v7326_v30 = vpop.f32.mrf.mxu0 }
 0x2c7   : > { %7442 = vst [vmem:[#allocation13_spill] sm:$0xff] %v7326_v30  ;;  %v2993_v30 = vadd.f32 %v7246_v48, %v2711_v22  ;;  %v2718_v48 = vadd.f32 %v7250_v6, %v5211_v51  ;;  %v4024_v22 = vpop.f32.mrf.mxu1  ;;  %v3867_v6 = vadd.f32 %v7292_v61, %v3657_v59  ;;  %v3208_v61 = vadd.f32 %v7278_v3, %v2998_v60 }
 0x2c8   : > { %v5857_v25 = vpop.f32.mrf.mxu0  ;;  %v4037_v51 = vadd.f32 %v7319_v27, %v3866_v28 }
 0x2c9   : > { %v3203_v62 = vadd.f32 %v7260_v58, %v2993_v30  ;;  %v2999_v58 = vadd.f32 %v7256_v7, %v2717_v36  ;;  %v3000_v24 = vadd.f32 %v7262_v42, %v2718_v48  ;;  %v3378_v55 = vadd.f32 %v7288_v50, %v3208_v61  ;;  %v7445_v30 = vld [vmem:[#allocation4_spill] sm:$0xff]  ;;  %v7450_v50 = vld [vmem:[#allocation7_spill] sm:$0xff]  ;;  %v7452_v36 = vld [vmem:[#allocation9_spill] sm:$0xff] }
 0x2ca   : > { %v4290_v44 = vpop.f32.mrf.mxu0 }
 0x2cb   : > { %v3373_v21 = vadd.f32 %v7272_v2, %v3203_v62  ;;  %v3868_v2 = vadd.f32 %v5809_v13, %v3658_v32  ;;  %v3209_v26 = vadd.f32 %v7270_v56, %v2999_v58  ;;  %v3210_v29 = vadd.f32 %v7276_v20, %v3000_v24  ;;  %v7454_v58 = vld [vmem:[#allocation14_spill] sm:$0xff] }
 0x2cc   : > { %v5860_v0 = vpop.f32.mrf.mxu0  ;;  %v4319_v49 = vadd.f32 %v4290_v44, %v4037_v51  ;;  %v3660_v1 = vadd.f32 %v7448_v53, %v3378_v55 }
 0x2cd   : > { %v3655_v17 = vadd.f32 %v7284_v4, %v3373_v21  ;;  %v4038_v4 = vadd.f32 %v7308_v52, %v3867_v6  ;;  %v4039_v23 = vadd.f32 %v5833_v37, %v3868_v2  ;;  %v3379_v41 = vadd.f32 %v7280_v14, %v3209_v26  ;;  %v7444_v37 = vld [vmem:[#allocation10_spill] sm:$0xff]  ;;  %v7453_v21 = vld [vmem:[#allocation12_spill] sm:$0xff] }
 0x2ce   : > { %v3380_v8 = vadd.f32 %v7286_v31, %v3210_v29  ;;  %v4303_v13 = vpop.f32.mrf.mxu0  ;;  %v3377_v52 = vadd.f32 %v7282_v16, %v3207_v11  ;;  %v7446_v31 = vld [vmem:[#allocation13_spill] sm:$0xff]  ;;  %v3870_v48 = vadd.f32 %v7452_v36, %v3660_v1 }
 0x2cf   : > { %v3865_v42 = vadd.f32 %v7296_v10, %v3655_v17  ;;  %v4320_v10 = vadd.f32 %v7321_v5, %v4038_v4  ;;  %v4321_v9 = vadd.f32 %v5857_v25, %v4039_v23  ;;  %v3661_v3 = vadd.f32 %v7444_v37, %v3379_v41  ;;  %v7449_v5 = vld [vmem:[#allocation8_spill] sm:$0xff] }
 0x2d0   : > { %v3662_v14 = vadd.f32 %v7445_v30, %v3380_v8  ;;  %v3659_v27 = vadd.f32 %v7447_v35, %v3377_v52  ;;  %v5861_v45 = vpop.f32.mrf.mxu0  ;;  %v4041_v17 = vadd.f32 %v4024_v22, %v3870_v48 }
 0x2d1   : > { %v4036_v20 = vadd.f32 %v7312_v19, %v3865_v42  ;;  %v3871_v25 = vadd.f32 %v7449_v5, %v3661_v3 }
 0x2d2   : > { %v3872_v15 = vadd.f32 %v7450_v50, %v3662_v14  ;;  %v3869_v47 = vadd.f32 %v7451_v18, %v3659_v27  ;;  %v4306_v40 = vpop.f32.mrf.mxu0 }
 0x2d3   : > { %v4318_v39 = vadd.f32 %v7446_v31, %v4036_v20  ;;  %v4042_v33 = vadd.f32 %v7453_v21, %v3871_v25  ;;  %v4323_v60 = vadd.f32 %v4306_v40, %v4041_v17 }
 0x2d4   : > { %v4043_v59 = vadd.f32 %v7337_v34, %v3872_v15  ;;  %v4040_v24 = vadd.f32 %v7454_v58, %v3869_v47 }
 0x2d5   : > { %v4324_v43 = vadd.f32 %v5860_v0, %v4042_v33 }
 0x2d6   : > { %v5880_v7 = vpop.f32.mrf.mxu1  ;;  %v4325_v6 = vadd.f32 %v5861_v45, %v4043_v59  ;;  %v4322_v46 = vadd.f32 %v4303_v13, %v4040_v24 }
 0x2d7   : > { %v4530_v54 = vadd.f32 %v5880_v7, %v4320_v10 }
 0x2d8   : > { %v4497_v56 = vpop.f32.mrf.mxu1 }
 0x2d9   : > { %v4528_v44 = vadd.f32 %v4497_v56, %v4318_v39 }
 0x2da   : > { %v5881_v38 = vpop.f32.mrf.mxu1 }
 0x2db   : > { %v4531_v19 = vadd.f32 %v5881_v38, %v4321_v9 }
 0x2dc   : > { %v4500_v16 = vpop.f32.mrf.mxu1 }
 0x2dd   : > { %v5220_v63 = vpack.c.bf16 %v4531_v19, %v4530_v54  ;;  %v4529_v62 = vadd.f32 %v4500_v16, %v4319_v49 }
 0x2de   : > { %v5884_v57 = vpop.f32.mrf.mxu1 }
 0x2df   : > { %5235 = vst [vmem:[%s7379_s30 + $0x8] sm:$0xff] %v5220_v63   ;;  %v5215_v32 = vpack.c.bf16 %v4529_v62, %v4528_v44  ;;  %v4534_v26 = vadd.f32 %v5884_v57, %v4324_v43 }
 0x2e0   : > { %v4513_v12 = vpop.f32.mrf.mxu1 }
 0x2e1   : > { %5216 = vst [vmem:[%s7379_s30] sm:$0xff] %v5215_v32   ;;  %v4532_v42 = vadd.f32 %v4513_v12, %v4322_v46 }
 0x2e2   : > { %v5885_v2 = vpop.f32.mrf.mxu1 }
 0x2e3   : > { %v4535_v29 = vadd.f32 %v5885_v2, %v4325_v6 }
 0x2e4   : > { %v4516_v7 = vpop.f32.mrf.mxu1 }
 0x2e5   : > { %v5230_v34 = vpack.c.bf16 %v4535_v29, %v4534_v26  ;;  %v4533_v28 = vadd.f32 %v4516_v7, %v4323_v60 }
 0x2e7   : > { %5237 = vst [vmem:[%s7379_s30 + $0x18] sm:$0xff] %v5230_v34   ;;  %v5225_v4 = vpack.c.bf16 %v4533_v28, %v4532_v42 }
 0x2e9   : > { %5236 = vst [vmem:[%s7379_s30 + $0x10] sm:$0xff] %v5225_v4  }
 0x2ea PF: > { %s13_s12 = sadd.s32 1, %s6069_s12  }
 0x2eb   : > { %p10_p4 = scmp.ge.s32.totalorder %s13_s12, 4  }
 0x2ed   :  { %12 = sbr.rel (!%p10_p4) target bundleno = 1 (0x1), region = 84 }

</bundles_post_ra>
